<compile_context>
chip_gen: v7x
topology: tpu7x:2x2x1
jax: 0.10.0
libtpu: 0.0.40
codegen_flags: <defaults>
</compile_context>

<pallas_src>
import functools
import math

import jax
import jax.numpy as jnp
from jax.experimental import pallas as pl
from jax.experimental.pallas import tpu as pltpu


# ----------------------------- Pallas kernels ---------------------------------------


def gemm_bias_act_kernel(x_ref, w_ref, b_ref, o_ref, *, apply_relu):
    """One M-tile of (M, K) @ (K, N) + bias (+ ReLU).  K and N are un-tiled."""
    acc = jnp.dot(x_ref[...], w_ref[...], preferred_element_type=jnp.float32)
    acc = acc + b_ref[...]
    if apply_relu:
        acc = jnp.maximum(acc, 0.0)
    o_ref[...] = acc.astype(o_ref.dtype)


def pool_1x1_kernel(x_ref, w_ref, b_ref, o_ref):
    """Fused MaxPool2d(2,2) + 1x1 conv (channel GEMM) + bias + ReLU; one batch per step.

    x_ref: (1, Hh, 2, Wh, 2, C)  activation viewed with both 2x2 window axes exposed
    w_ref: (C, Cout)
    b_ref: (1, Cout)
    o_ref: (1, Hh*Wh, Cout)
    """
    hh = x_ref.shape[1]
    wh = x_ref.shape[3]
    c = x_ref.shape[5]
    # 2x2 window max via the four statically-indexed corners (axes 2 and 4).
    pooled = jnp.maximum(
        jnp.maximum(x_ref[0, :, 0, :, 0, :], x_ref[0, :, 0, :, 1, :]),
        jnp.maximum(x_ref[0, :, 1, :, 0, :], x_ref[0, :, 1, :, 1, :]),
    )                                                        # (Hh, Wh, C)
    p2 = pooled.reshape(hh * wh, c)                          # (Hh*Wh, C)
    acc = jnp.dot(p2, w_ref[...], preferred_element_type=jnp.float32) + b_ref[...]
    o_ref[0] = jnp.maximum(acc, 0.0).astype(o_ref.dtype)


def head_kernel(x_ref, w7_ref, b7_ref, w8_ref, b8_ref, o_ref):
    """Fused Linear(768,128) + ReLU + Linear(128,128-padded); hidden stays in VMEM."""
    h = jnp.dot(x_ref[...], w7_ref[...], preferred_element_type=jnp.float32) + b7_ref[...]
    h = jnp.maximum(h, 0.0)
    out = jnp.dot(h, w8_ref[...], preferred_element_type=jnp.float32) + b8_ref[...]
    o_ref[...] = out.astype(o_ref.dtype)


# ----------------------------- wrappers ----------------------------------------------


def matmul_bias_act(x, w, b, *, apply_relu, tile_m=256):
    """x: (M, K); w: (K, N); b: (1, N).  Tiled over M, parallel grid axis."""
    M, K = x.shape
    _, N = w.shape
    tm = math.gcd(M, tile_m)                 # divisor of M, multiple of 8 for our shapes
    kern = functools.partial(gemm_bias_act_kernel, apply_relu=apply_relu)
    return pl.pallas_call(
        kern,
        out_shape=jax.ShapeDtypeStruct((M, N), x.dtype),
        grid=(M // tm,),
        in_specs=[
            pl.BlockSpec((tm, K), lambda i: (i, 0)),
            pl.BlockSpec((K, N), lambda i: (0, 0)),
            pl.BlockSpec((1, N), lambda i: (0, 0)),
        ],
        out_specs=pl.BlockSpec((tm, N), lambda i: (i, 0)),
        compiler_params=pltpu.CompilerParams(dimension_semantics=("parallel",)),
    )(x, w, b)


def conv2d_relu_im2col(x, w_mat, b, kh, kw, padding):
    """x: (B, H, W, Cin) NHWC; w_mat: (KH*KW*Cin, Cout) im2col weight; b: (1, Cout)."""
    B, H, W, Cin = x.shape
    Cout = w_mat.shape[1]
    p = padding
    xp = jnp.pad(x, ((0, 0), (p, p), (p, p), (0, 0)))
    # glue: im2col patches, feature order (kh, kw, cin) == w_mat row order
    cols = [xp[:, i:i + H, j:j + W, :] for i in range(kh) for j in range(kw)]
    patches = jnp.concatenate(cols, axis=-1).reshape(B * H * W, kh * kw * Cin)
    y = matmul_bias_act(patches, w_mat, b, apply_relu=True)
    return y.reshape(B, H, W, Cout)


def maxpool2x2_conv1x1_relu(x, w, b):
    """x: (B, H, W, C); w: (C, Cout); b: (1, Cout) -> (B, H//2, W//2, Cout)."""
    B, H, W, C = x.shape
    Hh, Wh = H // 2, W // 2
    Cout = w.shape[1]
    x6 = x.reshape(B, Hh, 2, Wh, 2, C)        # free contiguous reshape in glue
    y = pl.pallas_call(
        pool_1x1_kernel,
        out_shape=jax.ShapeDtypeStruct((B, Hh * Wh, Cout), x.dtype),
        grid=(B,),
        in_specs=[
            pl.BlockSpec((1, Hh, 2, Wh, 2, C), lambda bi: (bi, 0, 0, 0, 0, 0)),
            pl.BlockSpec((C, Cout), lambda bi: (0, 0)),
            pl.BlockSpec((1, Cout), lambda bi: (0, 0)),
        ],
        out_specs=pl.BlockSpec((1, Hh * Wh, Cout), lambda bi: (bi, 0, 0)),
        compiler_params=pltpu.CompilerParams(dimension_semantics=("parallel",)),
    )(x6, w, b)
    return y.reshape(B, Hh, Wh, Cout)


def mlp_head(feat, w7, b7, w8p, b8p, n_out):
    """feat: (B, 768) -> (B, n_out).  Both Linears fused; head padded to 128 lanes."""
    B, K = feat.shape
    H1 = w7.shape[1]
    Np = w8p.shape[1]
    out = pl.pallas_call(
        head_kernel,
        out_shape=jax.ShapeDtypeStruct((B, Np), feat.dtype),
        grid=(1,),
        in_specs=[
            pl.BlockSpec((B, K), lambda i: (0, 0)),
            pl.BlockSpec((K, H1), lambda i: (0, 0)),
            pl.BlockSpec((1, H1), lambda i: (0, 0)),
            pl.BlockSpec((H1, Np), lambda i: (0, 0)),
            pl.BlockSpec((1, Np), lambda i: (0, 0)),
        ],
        out_specs=pl.BlockSpec((B, Np), lambda i: (0, 0)),
        compiler_params=pltpu.CompilerParams(dimension_semantics=("arbitrary",)),
    )(feat, w7, b7, w8p, b8p)
    return out[:, :n_out]                     # lane-dense 128-wide store; slice in glue


# ----------------------------- model --------------------------------------------------


def init_params(key):
    ks = jax.random.split(key, 16)

    def conv_w_mat(k, kh, kw, cin, cout):
        w = jax.random.normal(k, (kh, kw, cin, cout), jnp.float32) / jnp.sqrt(kh * kw * cin)
        return w.reshape(kh * kw * cin, cout)            # im2col (K, Cout)

    def lin_w(k, cin, cout):
        return jax.random.normal(k, (cin, cout), jnp.float32) / jnp.sqrt(cin)

    def bias(k, n):
        return 0.01 * jax.random.normal(k, (1, n), jnp.float32)

    p = {}
    p["w1"] = conv_w_mat(ks[0], 5, 5, 1, 96);   p["b1"] = bias(ks[1], 96)    # Conv2d(1,96,5x5,p=2)
    p["w2"] = lin_w(ks[2], 96, 48);             p["b2"] = bias(ks[3], 48)    # Conv2d(96,48,1x1)
    p["w3"] = conv_w_mat(ks[4], 3, 3, 48, 96);  p["b3"] = bias(ks[5], 96)    # Conv2d(48,96,3x3,p=1)
    p["w4"] = lin_w(ks[6], 96, 48);             p["b4"] = bias(ks[7], 48)    # Conv2d(96,48,1x1)
    p["w5"] = conv_w_mat(ks[8], 3, 3, 48, 96);  p["b5"] = bias(ks[9], 96)    # Conv2d(48,96,3x3,p=1)
    p["w6"] = lin_w(ks[10], 96, 48);            p["b6"] = bias(ks[11], 48)   # Conv2d(96,48,1x1)

    # Linear(768,128): defined in PyTorch NCHW-flatten row order (c*16 + h*4 + w), then
    # rows permuted ONCE so the forward pass can flatten NHWC ((h*4+w)*48 + c) directly
    # with no transpose before the head.
    w7_pt = lin_w(ks[12], 768, 128)
    s = jnp.arange(16)                                   # spatial index h*4 + w
    c = jnp.arange(48)
    perm = (c[None, :] * 16 + s[:, None]).reshape(-1)    # NHWC row -> NCHW row
    p["w7"] = w7_pt[perm];                      p["b7"] = bias(ks[13], 128)  # Linear(768,128)

    # Linear(128,101): pad N 101 -> 128 with zero columns (lane-dense store); wrapper
    # slices the output back to 101.
    w8 = lin_w(ks[14], 128, 101)
    p["w8"] = jnp.pad(w8, ((0, 0), (0, 27)))
    p["b8"] = jnp.pad(bias(ks[15], 101), ((0, 0), (0, 27)))
    return p


@jax.jit
def simple_model_forward(x_nchw, params):
    # Input is NCHW (PyTorch convention); all kernel compute runs in NHWC.
    B = x_nchw.shape[0]
    x = jnp.transpose(x_nchw, (0, 2, 3, 1))                            # (B, 32, 32, 1)
    x = conv2d_relu_im2col(x, params["w1"], params["b1"], 5, 5, 2)     # (B, 32, 32, 96)
    x = maxpool2x2_conv1x1_relu(x, params["w2"], params["b2"])         # (B, 16, 16, 48)
    x = conv2d_relu_im2col(x, params["w3"], params["b3"], 3, 3, 1)     # (B, 16, 16, 96)
    x = maxpool2x2_conv1x1_relu(x, params["w4"], params["b4"])         # (B,  8,  8, 48)
    x = conv2d_relu_im2col(x, params["w5"], params["b5"], 3, 3, 1)     # (B,  8,  8, 96)
    x = maxpool2x2_conv1x1_relu(x, params["w6"], params["b6"])         # (B,  4,  4, 48)
    feat = x.reshape(B, -1)                                            # (B, 768) NHWC flatten
    out = mlp_head(feat, params["w7"], params["b7"],
                   params["w8"], params["b8"], 101)                    # (B, 101)
    return out


if __name__ == "__main__":
    key = jax.random.PRNGKey(0)
    pkey, xkey = jax.random.split(key)
    params = init_params(pkey)
    # Input must be 32x32 so that after three 2x2 pools Flatten yields 48*4*4 = 768.
    x = jax.random.normal(xkey, (2, 1, 32, 32), jnp.float32)           # NCHW
    out = simple_model_forward(x, params)
    out = jax.block_until_ready(out)
    assert out.shape == (2, 101), out.shape
    assert bool(jnp.all(jnp.isfinite(out)))
    print("KERNEL_OK")
</pallas_src>

<mosaic_0001>
module attributes {stable_mosaic.version = 11 : i64} {
  func.func @gemm_bias_act_kernel(%arg0: i32, %arg1: memref<256x25xf32, #tpu.memory_space<vmem>>, %arg2: memref<25x96xf32, #tpu.memory_space<vmem>>, %arg3: memref<1x96xf32, #tpu.memory_space<vmem>>, %arg4: memref<256x96xf32, #tpu.memory_space<vmem>>) attributes {dimension_semantics = [#tpu.dimension_semantics<parallel>], iteration_bounds = array<i64: 8>, scalar_prefetch = 0 : i64, scratch_operands = 0 : i64, tpu.core_type = #tpu.core_type<tc>, window_params = [{transform_indices = @transform_0, window_bounds = array<i64: 256, 25>}, {pipeline_mode = #tpu.pipeline_mode<synchronous>, transform_indices = @transform_1, window_bounds = array<i64: 25, 96>}, {pipeline_mode = #tpu.pipeline_mode<synchronous>, transform_indices = @transform_2, window_bounds = array<i64: 1, 96>}, {transform_indices = @transform_3, window_bounds = array<i64: 256, 96>}]} {
    %c0 = arith.constant 0 : index
    %c0_0 = arith.constant 0 : index
    %0 = vector.load %arg1[%c0, %c0_0] : memref<256x25xf32, #tpu.memory_space<vmem>>, vector<256x25xf32>
    %c0_1 = arith.constant 0 : index
    %c0_2 = arith.constant 0 : index
    %1 = vector.load %arg2[%c0_1, %c0_2] : memref<25x96xf32, #tpu.memory_space<vmem>>, vector<25x96xf32>
    %cst = arith.constant dense<0.000000e+00> : vector<256x96xf32>
    %2 = tpu.matmul %0, %1, %cst {dimension_numbers = #tpu.dot_dimension_numbers<[1], [0], [0], [1], [0, 0, 1, 1], [], []>} : vector<256x25xf32>, vector<25x96xf32>, vector<256x96xf32> -> vector<256x96xf32>
    %c0_3 = arith.constant 0 : index
    %c0_4 = arith.constant 0 : index
    %3 = vector.load %arg3[%c0_3, %c0_4] : memref<1x96xf32, #tpu.memory_space<vmem>>, vector<1x96xf32>
    %4 = vector.broadcast %3 : vector<1x96xf32> to vector<256x96xf32>
    %5 = arith.addf %2, %4 : vector<256x96xf32>
    %cst_5 = arith.constant 0.000000e+00 : f32
    %6 = vector.broadcast %cst_5 : f32 to vector<256x96xf32>
    %7 = arith.maximumf %5, %6 : vector<256x96xf32>
    %c0_6 = arith.constant 0 : index
    %c0_7 = arith.constant 0 : index
    %8 = vector.load %arg4[%c0_6, %c0_7] : memref<256x96xf32, #tpu.memory_space<vmem>>, vector<256x96xf32>
    tpu.vector_store %arg4[%c0_6, %c0_7], %7 {strides = array<i32>} : memref<256x96xf32, #tpu.memory_space<vmem>>, vector<256x96xf32>,
    return
  }
  func.func @transform_0(%arg0: i32) -> (i32, i32) {
    %c0_i32 = arith.constant 0 : i32
    %c0_i32_0 = arith.constant 0 : i32
    return %arg0, %c0_i32 : i32, i32
  }
  func.func @transform_1(%arg0: i32) -> (i32, i32) {
    %c0_i32 = arith.constant 0 : i32
    %c0_i32_0 = arith.constant 0 : i32
    %c0_i32_1 = arith.constant 0 : i32
    return %c0_i32, %c0_i32_0 : i32, i32
  }
  func.func @transform_2(%arg0: i32) -> (i32, i32) {
    %c0_i32 = arith.constant 0 : i32
    %c0_i32_0 = arith.constant 0 : i32
    %c0_i32_1 = arith.constant 0 : i32
    return %c0_i32, %c0_i32_0 : i32, i32
  }
  func.func @transform_3(%arg0: i32) -> (i32, i32) {
    %c0_i32 = arith.constant 0 : i32
    %c0_i32_0 = arith.constant 0 : i32
    return %arg0, %c0_i32 : i32, i32
  }
}

module attributes {stable_mosaic.version = 11 : i64} {
  func.func @pool_1x1_kernel(%arg0: i32, %arg1: memref<1x16x2x16x2x96xf32, #tpu.memory_space<vmem>>, %arg2: memref<96x48xf32, #tpu.memory_space<vmem>>, %arg3: memref<1x48xf32, #tpu.memory_space<vmem>>, %arg4: memref<1x256x48xf32, #tpu.memory_space<vmem>>) attributes {dimension_semantics = [#tpu.dimension_semantics<parallel>], iteration_bounds = array<i64: 2>, scalar_prefetch = 0 : i64, scratch_operands = 0 : i64, tpu.core_type = #tpu.core_type<tc>, window_params = [{transform_indices = @transform_0, window_bounds = array<i64: 1, 16, 2, 16, 2, 96>}, {pipeline_mode = #tpu.pipeline_mode<synchronous>, transform_indices = @transform_1, window_bounds = array<i64: 96, 48>}, {pipeline_mode = #tpu.pipeline_mode<synchronous>, transform_indices = @transform_2, window_bounds = array<i64: 1, 48>}, {transform_indices = @transform_3, window_bounds = array<i64: 1, 256, 48>}]} {
    %c0 = arith.constant 0 : index
    %c0_0 = arith.constant 0 : index
    %c0_1 = arith.constant 0 : index
    %c0_2 = arith.constant 0 : index
    %c0_3 = arith.constant 0 : index
    %c0_4 = arith.constant 0 : index
    %0 = vector.load %arg1[%c0, %c0_0, %c0_1, %c0_2, %c0_3, %c0_4] : memref<1x16x2x16x2x96xf32, #tpu.memory_space<vmem>>, vector<1x16x1x16x1x96xf32>
    %1 = vector.shape_cast %0 : vector<1x16x1x16x1x96xf32> to vector<16x16x96xf32>
    %c0_5 = arith.constant 0 : index
    %c0_6 = arith.constant 0 : index
    %c0_7 = arith.constant 0 : index
    %c0_8 = arith.constant 0 : index
    %c1 = arith.constant 1 : index
    %c0_9 = arith.constant 0 : index
    %2 = vector.load %arg1[%c0_5, %c0_6, %c0_7, %c0_8, %c1, %c0_9] : memref<1x16x2x16x2x96xf32, #tpu.memory_space<vmem>>, vector<1x16x1x16x1x96xf32>
    %3 = vector.shape_cast %2 : vector<1x16x1x16x1x96xf32> to vector<16x16x96xf32>
    %4 = arith.maximumf %1, %3 : vector<16x16x96xf32>
    %c0_10 = arith.constant 0 : index
    %c0_11 = arith.constant 0 : index
    %c1_12 = arith.constant 1 : index
    %c0_13 = arith.constant 0 : index
    %c0_14 = arith.constant 0 : index
    %c0_15 = arith.constant 0 : index
    %5 = vector.load %arg1[%c0_10, %c0_11, %c1_12, %c0_13, %c0_14, %c0_15] : memref<1x16x2x16x2x96xf32, #tpu.memory_space<vmem>>, vector<1x16x1x16x1x96xf32>
    %6 = vector.shape_cast %5 : vector<1x16x1x16x1x96xf32> to vector<16x16x96xf32>
    %c0_16 = arith.constant 0 : index
    %c0_17 = arith.constant 0 : index
    %c1_18 = arith.constant 1 : index
    %c0_19 = arith.constant 0 : index
    %c1_20 = arith.constant 1 : index
    %c0_21 = arith.constant 0 : index
    %7 = vector.load %arg1[%c0_16, %c0_17, %c1_18, %c0_19, %c1_20, %c0_21] : memref<1x16x2x16x2x96xf32, #tpu.memory_space<vmem>>, vector<1x16x1x16x1x96xf32>
    %8 = vector.shape_cast %7 : vector<1x16x1x16x1x96xf32> to vector<16x16x96xf32>
    %9 = arith.maximumf %6, %8 : vector<16x16x96xf32>
    %10 = arith.maximumf %4, %9 : vector<16x16x96xf32>
    %11 = vector.shape_cast %10 : vector<16x16x96xf32> to vector<256x96xf32>
    %c0_22 = arith.constant 0 : index
    %c0_23 = arith.constant 0 : index
    %12 = vector.load %arg2[%c0_22, %c0_23] : memref<96x48xf32, #tpu.memory_space<vmem>>, vector<96x48xf32>
    %cst = arith.constant dense<0.000000e+00> : vector<256x48xf32>
    %13 = tpu.matmul %11, %12, %cst {dimension_numbers = #tpu.dot_dimension_numbers<[1], [0], [0], [1], [0, 0, 1, 1], [], []>} : vector<256x96xf32>, vector<96x48xf32>, vector<256x48xf32> -> vector<256x48xf32>
    %c0_24 = arith.constant 0 : index
    %c0_25 = arith.constant 0 : index
    %14 = vector.load %arg3[%c0_24, %c0_25] : memref<1x48xf32, #tpu.memory_space<vmem>>, vector<1x48xf32>
    %15 = vector.broadcast %14 : vector<1x48xf32> to vector<256x48xf32>
    %16 = arith.addf %13, %15 : vector<256x48xf32>
    %cst_26 = arith.constant 0.000000e+00 : f32
    %17 = vector.broadcast %cst_26 : f32 to vector<256x48xf32>
    %18 = arith.maximumf %16, %17 : vector<256x48xf32>
    %c0_27 = arith.constant 0 : index
    %c0_28 = arith.constant 0 : index
    %c0_29 = arith.constant 0 : index
    %19 = vector.load %arg4[%c0_27, %c0_28, %c0_29] : memref<1x256x48xf32, #tpu.memory_space<vmem>>, vector<1x256x48xf32>
    %20 = vector.shape_cast %19 : vector<1x256x48xf32> to vector<256x48xf32>
    %21 = vector.shape_cast %18 : vector<256x48xf32> to vector<1x256x48xf32>
    tpu.vector_store %arg4[%c0_27, %c0_28, %c0_29], %21 {strides = array<i32>} : memref<1x256x48xf32, #tpu.memory_space<vmem>>, vector<1x256x48xf32>,
    return
  }
  func.func @transform_0(%arg0: i32) -> (i32, i32, i32, i32, i32, i32) {
    %c0_i32 = arith.constant 0 : i32
    %c0_i32_0 = arith.constant 0 : i32
    %c0_i32_1 = arith.constant 0 : i32
    %c0_i32_2 = arith.constant 0 : i32
    %c0_i32_3 = arith.constant 0 : i32
    %c0_i32_4 = arith.constant 0 : i32
    return %arg0, %c0_i32, %c0_i32_0, %c0_i32_1, %c0_i32_2, %c0_i32_3 : i32, i32, i32, i32, i32, i32
  }
  func.func @transform_1(%arg0: i32) -> (i32, i32) {
    %c0_i32 = arith.constant 0 : i32
    %c0_i32_0 = arith.constant 0 : i32
    %c0_i32_1 = arith.constant 0 : i32
    return %c0_i32, %c0_i32_0 : i32, i32
  }
  func.func @transform_2(%arg0: i32) -> (i32, i32) {
    %c0_i32 = arith.constant 0 : i32
    %c0_i32_0 = arith.constant 0 : i32
    %c0_i32_1 = arith.constant 0 : i32
    return %c0_i32, %c0_i32_0 : i32, i32
  }
  func.func @transform_3(%arg0: i32) -> (i32, i32, i32) {
    %c0_i32 = arith.constant 0 : i32
    %c0_i32_0 = arith.constant 0 : i32
    %c0_i32_1 = arith.constant 0 : i32
    return %arg0, %c0_i32, %c0_i32_0 : i32, i32, i32
  }
}

module attributes {stable_mosaic.version = 11 : i64} {
  func.func @gemm_bias_act_kernel(%arg0: i32, %arg1: memref<256x432xf32, #tpu.memory_space<vmem>>, %arg2: memref<432x96xf32, #tpu.memory_space<vmem>>, %arg3: memref<1x96xf32, #tpu.memory_space<vmem>>, %arg4: memref<256x96xf32, #tpu.memory_space<vmem>>) attributes {dimension_semantics = [#tpu.dimension_semantics<parallel>], iteration_bounds = array<i64: 2>, scalar_prefetch = 0 : i64, scratch_operands = 0 : i64, tpu.core_type = #tpu.core_type<tc>, window_params = [{transform_indices = @transform_0, window_bounds = array<i64: 256, 432>}, {pipeline_mode = #tpu.pipeline_mode<synchronous>, transform_indices = @transform_1, window_bounds = array<i64: 432, 96>}, {pipeline_mode = #tpu.pipeline_mode<synchronous>, transform_indices = @transform_2, window_bounds = array<i64: 1, 96>}, {transform_indices = @transform_3, window_bounds = array<i64: 256, 96>}]} {
    %c0 = arith.constant 0 : index
    %c0_0 = arith.constant 0 : index
    %0 = vector.load %arg1[%c0, %c0_0] : memref<256x432xf32, #tpu.memory_space<vmem>>, vector<256x432xf32>
    %c0_1 = arith.constant 0 : index
    %c0_2 = arith.constant 0 : index
    %1 = vector.load %arg2[%c0_1, %c0_2] : memref<432x96xf32, #tpu.memory_space<vmem>>, vector<432x96xf32>
    %cst = arith.constant dense<0.000000e+00> : vector<256x96xf32>
    %2 = tpu.matmul %0, %1, %cst {dimension_numbers = #tpu.dot_dimension_numbers<[1], [0], [0], [1], [0, 0, 1, 1], [], []>} : vector<256x432xf32>, vector<432x96xf32>, vector<256x96xf32> -> vector<256x96xf32>
    %c0_3 = arith.constant 0 : index
    %c0_4 = arith.constant 0 : index
    %3 = vector.load %arg3[%c0_3, %c0_4] : memref<1x96xf32, #tpu.memory_space<vmem>>, vector<1x96xf32>
    %4 = vector.broadcast %3 : vector<1x96xf32> to vector<256x96xf32>
    %5 = arith.addf %2, %4 : vector<256x96xf32>
    %cst_5 = arith.constant 0.000000e+00 : f32
    %6 = vector.broadcast %cst_5 : f32 to vector<256x96xf32>
    %7 = arith.maximumf %5, %6 : vector<256x96xf32>
    %c0_6 = arith.constant 0 : index
    %c0_7 = arith.constant 0 : index
    %8 = vector.load %arg4[%c0_6, %c0_7] : memref<256x96xf32, #tpu.memory_space<vmem>>, vector<256x96xf32>
    tpu.vector_store %arg4[%c0_6, %c0_7], %7 {strides = array<i32>} : memref<256x96xf32, #tpu.memory_space<vmem>>, vector<256x96xf32>,
    return
  }
  func.func @transform_0(%arg0: i32) -> (i32, i32) {
    %c0_i32 = arith.constant 0 : i32
    %c0_i32_0 = arith.constant 0 : i32
    return %arg0, %c0_i32 : i32, i32
  }
  func.func @transform_1(%arg0: i32) -> (i32, i32) {
    %c0_i32 = arith.constant 0 : i32
    %c0_i32_0 = arith.constant 0 : i32
    %c0_i32_1 = arith.constant 0 : i32
    return %c0_i32, %c0_i32_0 : i32, i32
  }
  func.func @transform_2(%arg0: i32) -> (i32, i32) {
    %c0_i32 = arith.constant 0 : i32
    %c0_i32_0 = arith.constant 0 : i32
    %c0_i32_1 = arith.constant 0 : i32
    return %c0_i32, %c0_i32_0 : i32, i32
  }
  func.func @transform_3(%arg0: i32) -> (i32, i32) {
    %c0_i32 = arith.constant 0 : i32
    %c0_i32_0 = arith.constant 0 : i32
    return %arg0, %c0_i32 : i32, i32
  }
}

module attributes {stable_mosaic.version = 11 : i64} {
  func.func @pool_1x1_kernel(%arg0: i32, %arg1: memref<1x8x2x8x2x96xf32, #tpu.memory_space<vmem>>, %arg2: memref<96x48xf32, #tpu.memory_space<vmem>>, %arg3: memref<1x48xf32, #tpu.memory_space<vmem>>, %arg4: memref<1x64x48xf32, #tpu.memory_space<vmem>>) attributes {dimension_semantics = [#tpu.dimension_semantics<parallel>], iteration_bounds = array<i64: 2>, scalar_prefetch = 0 : i64, scratch_operands = 0 : i64, tpu.core_type = #tpu.core_type<tc>, window_params = [{transform_indices = @transform_0, window_bounds = array<i64: 1, 8, 2, 8, 2, 96>}, {pipeline_mode = #tpu.pipeline_mode<synchronous>, transform_indices = @transform_1, window_bounds = array<i64: 96, 48>}, {pipeline_mode = #tpu.pipeline_mode<synchronous>, transform_indices = @transform_2, window_bounds = array<i64: 1, 48>}, {transform_indices = @transform_3, window_bounds = array<i64: 1, 64, 48>}]} {
    %c0 = arith.constant 0 : index
    %c0_0 = arith.constant 0 : index
    %c0_1 = arith.constant 0 : index
    %c0_2 = arith.constant 0 : index
    %c0_3 = arith.constant 0 : index
    %c0_4 = arith.constant 0 : index
    %0 = vector.load %arg1[%c0, %c0_0, %c0_1, %c0_2, %c0_3, %c0_4] : memref<1x8x2x8x2x96xf32, #tpu.memory_space<vmem>>, vector<1x8x1x8x1x96xf32>
    %1 = vector.shape_cast %0 : vector<1x8x1x8x1x96xf32> to vector<8x8x96xf32>
    %c0_5 = arith.constant 0 : index
    %c0_6 = arith.constant 0 : index
    %c0_7 = arith.constant 0 : index
    %c0_8 = arith.constant 0 : index
    %c1 = arith.constant 1 : index
    %c0_9 = arith.constant 0 : index
    %2 = vector.load %arg1[%c0_5, %c0_6, %c0_7, %c0_8, %c1, %c0_9] : memref<1x8x2x8x2x96xf32, #tpu.memory_space<vmem>>, vector<1x8x1x8x1x96xf32>
    %3 = vector.shape_cast %2 : vector<1x8x1x8x1x96xf32> to vector<8x8x96xf32>
    %4 = arith.maximumf %1, %3 : vector<8x8x96xf32>
    %c0_10 = arith.constant 0 : index
    %c0_11 = arith.constant 0 : index
    %c1_12 = arith.constant 1 : index
    %c0_13 = arith.constant 0 : index
    %c0_14 = arith.constant 0 : index
    %c0_15 = arith.constant 0 : index
    %5 = vector.load %arg1[%c0_10, %c0_11, %c1_12, %c0_13, %c0_14, %c0_15] : memref<1x8x2x8x2x96xf32, #tpu.memory_space<vmem>>, vector<1x8x1x8x1x96xf32>
    %6 = vector.shape_cast %5 : vector<1x8x1x8x1x96xf32> to vector<8x8x96xf32>
    %c0_16 = arith.constant 0 : index
    %c0_17 = arith.constant 0 : index
    %c1_18 = arith.constant 1 : index
    %c0_19 = arith.constant 0 : index
    %c1_20 = arith.constant 1 : index
    %c0_21 = arith.constant 0 : index
    %7 = vector.load %arg1[%c0_16, %c0_17, %c1_18, %c0_19, %c1_20, %c0_21] : memref<1x8x2x8x2x96xf32, #tpu.memory_space<vmem>>, vector<1x8x1x8x1x96xf32>
    %8 = vector.shape_cast %7 : vector<1x8x1x8x1x96xf32> to vector<8x8x96xf32>
    %9 = arith.maximumf %6, %8 : vector<8x8x96xf32>
    %10 = arith.maximumf %4, %9 : vector<8x8x96xf32>
    %11 = vector.shape_cast %10 : vector<8x8x96xf32> to vector<64x96xf32>
    %c0_22 = arith.constant 0 : index
    %c0_23 = arith.constant 0 : index
    %12 = vector.load %arg2[%c0_22, %c0_23] : memref<96x48xf32, #tpu.memory_space<vmem>>, vector<96x48xf32>
    %cst = arith.constant dense<0.000000e+00> : vector<64x48xf32>
    %13 = tpu.matmul %11, %12, %cst {dimension_numbers = #tpu.dot_dimension_numbers<[1], [0], [0], [1], [0, 0, 1, 1], [], []>} : vector<64x96xf32>, vector<96x48xf32>, vector<64x48xf32> -> vector<64x48xf32>
    %c0_24 = arith.constant 0 : index
    %c0_25 = arith.constant 0 : index
    %14 = vector.load %arg3[%c0_24, %c0_25] : memref<1x48xf32, #tpu.memory_space<vmem>>, vector<1x48xf32>
    %15 = vector.broadcast %14 : vector<1x48xf32> to vector<64x48xf32>
    %16 = arith.addf %13, %15 : vector<64x48xf32>
    %cst_26 = arith.constant 0.000000e+00 : f32
    %17 = vector.broadcast %cst_26 : f32 to vector<64x48xf32>
    %18 = arith.maximumf %16, %17 : vector<64x48xf32>
    %c0_27 = arith.constant 0 : index
    %c0_28 = arith.constant 0 : index
    %c0_29 = arith.constant 0 : index
    %19 = vector.load %arg4[%c0_27, %c0_28, %c0_29] : memref<1x64x48xf32, #tpu.memory_space<vmem>>, vector<1x64x48xf32>
    %20 = vector.shape_cast %19 : vector<1x64x48xf32> to vector<64x48xf32>
    %21 = vector.shape_cast %18 : vector<64x48xf32> to vector<1x64x48xf32>
    tpu.vector_store %arg4[%c0_27, %c0_28, %c0_29], %21 {strides = array<i32>} : memref<1x64x48xf32, #tpu.memory_space<vmem>>, vector<1x64x48xf32>,
    return
  }
  func.func @transform_0(%arg0: i32) -> (i32, i32, i32, i32, i32, i32) {
    %c0_i32 = arith.constant 0 : i32
    %c0_i32_0 = arith.constant 0 : i32
    %c0_i32_1 = arith.constant 0 : i32
    %c0_i32_2 = arith.constant 0 : i32
    %c0_i32_3 = arith.constant 0 : i32
    %c0_i32_4 = arith.constant 0 : i32
    return %arg0, %c0_i32, %c0_i32_0, %c0_i32_1, %c0_i32_2, %c0_i32_3 : i32, i32, i32, i32, i32, i32
  }
  func.func @transform_1(%arg0: i32) -> (i32, i32) {
    %c0_i32 = arith.constant 0 : i32
    %c0_i32_0 = arith.constant 0 : i32
    %c0_i32_1 = arith.constant 0 : i32
    return %c0_i32, %c0_i32_0 : i32, i32
  }
  func.func @transform_2(%arg0: i32) -> (i32, i32) {
    %c0_i32 = arith.constant 0 : i32
    %c0_i32_0 = arith.constant 0 : i32
    %c0_i32_1 = arith.constant 0 : i32
    return %c0_i32, %c0_i32_0 : i32, i32
  }
  func.func @transform_3(%arg0: i32) -> (i32, i32, i32) {
    %c0_i32 = arith.constant 0 : i32
    %c0_i32_0 = arith.constant 0 : i32
    %c0_i32_1 = arith.constant 0 : i32
    return %arg0, %c0_i32, %c0_i32_0 : i32, i32, i32
  }
}

module attributes {stable_mosaic.version = 11 : i64} {
  func.func @gemm_bias_act_kernel(%arg0: i32, %arg1: memref<128x432xf32, #tpu.memory_space<vmem>>, %arg2: memref<432x96xf32, #tpu.memory_space<vmem>>, %arg3: memref<1x96xf32, #tpu.memory_space<vmem>>, %arg4: memref<128x96xf32, #tpu.memory_space<vmem>>) attributes {dimension_semantics = [#tpu.dimension_semantics<parallel>], iteration_bounds = array<i64: 1>, scalar_prefetch = 0 : i64, scratch_operands = 0 : i64, tpu.core_type = #tpu.core_type<tc>, window_params = [{transform_indices = @transform_0, window_bounds = array<i64: 128, 432>}, {pipeline_mode = #tpu.pipeline_mode<synchronous>, transform_indices = @transform_1, window_bounds = array<i64: 432, 96>}, {pipeline_mode = #tpu.pipeline_mode<synchronous>, transform_indices = @transform_2, window_bounds = array<i64: 1, 96>}, {transform_indices = @transform_3, window_bounds = array<i64: 128, 96>}]} {
    %c0 = arith.constant 0 : index
    %c0_0 = arith.constant 0 : index
    %0 = vector.load %arg1[%c0, %c0_0] : memref<128x432xf32, #tpu.memory_space<vmem>>, vector<128x432xf32>
    %c0_1 = arith.constant 0 : index
    %c0_2 = arith.constant 0 : index
    %1 = vector.load %arg2[%c0_1, %c0_2] : memref<432x96xf32, #tpu.memory_space<vmem>>, vector<432x96xf32>
    %cst = arith.constant dense<0.000000e+00> : vector<128x96xf32>
    %2 = tpu.matmul %0, %1, %cst {dimension_numbers = #tpu.dot_dimension_numbers<[1], [0], [0], [1], [0, 0, 1, 1], [], []>} : vector<128x432xf32>, vector<432x96xf32>, vector<128x96xf32> -> vector<128x96xf32>
    %c0_3 = arith.constant 0 : index
    %c0_4 = arith.constant 0 : index
    %3 = vector.load %arg3[%c0_3, %c0_4] : memref<1x96xf32, #tpu.memory_space<vmem>>, vector<1x96xf32>
    %4 = vector.broadcast %3 : vector<1x96xf32> to vector<128x96xf32>
    %5 = arith.addf %2, %4 : vector<128x96xf32>
    %cst_5 = arith.constant 0.000000e+00 : f32
    %6 = vector.broadcast %cst_5 : f32 to vector<128x96xf32>
    %7 = arith.maximumf %5, %6 : vector<128x96xf32>
    %c0_6 = arith.constant 0 : index
    %c0_7 = arith.constant 0 : index
    %8 = vector.load %arg4[%c0_6, %c0_7] : memref<128x96xf32, #tpu.memory_space<vmem>>, vector<128x96xf32>
    tpu.vector_store %arg4[%c0_6, %c0_7], %7 {strides = array<i32>} : memref<128x96xf32, #tpu.memory_space<vmem>>, vector<128x96xf32>,
    return
  }
  func.func @transform_0(%arg0: i32) -> (i32, i32) {
    %c0_i32 = arith.constant 0 : i32
    %c0_i32_0 = arith.constant 0 : i32
    return %arg0, %c0_i32 : i32, i32
  }
  func.func @transform_1(%arg0: i32) -> (i32, i32) {
    %c0_i32 = arith.constant 0 : i32
    %c0_i32_0 = arith.constant 0 : i32
    %c0_i32_1 = arith.constant 0 : i32
    return %c0_i32, %c0_i32_0 : i32, i32
  }
  func.func @transform_2(%arg0: i32) -> (i32, i32) {
    %c0_i32 = arith.constant 0 : i32
    %c0_i32_0 = arith.constant 0 : i32
    %c0_i32_1 = arith.constant 0 : i32
    return %c0_i32, %c0_i32_0 : i32, i32
  }
  func.func @transform_3(%arg0: i32) -> (i32, i32) {
    %c0_i32 = arith.constant 0 : i32
    %c0_i32_0 = arith.constant 0 : i32
    return %arg0, %c0_i32 : i32, i32
  }
}

module attributes {stable_mosaic.version = 11 : i64} {
  func.func @pool_1x1_kernel(%arg0: i32, %arg1: memref<1x4x2x4x2x96xf32, #tpu.memory_space<vmem>>, %arg2: memref<96x48xf32, #tpu.memory_space<vmem>>, %arg3: memref<1x48xf32, #tpu.memory_space<vmem>>, %arg4: memref<1x16x48xf32, #tpu.memory_space<vmem>>) attributes {dimension_semantics = [#tpu.dimension_semantics<parallel>], iteration_bounds = array<i64: 2>, scalar_prefetch = 0 : i64, scratch_operands = 0 : i64, tpu.core_type = #tpu.core_type<tc>, window_params = [{transform_indices = @transform_0, window_bounds = array<i64: 1, 4, 2, 4, 2, 96>}, {pipeline_mode = #tpu.pipeline_mode<synchronous>, transform_indices = @transform_1, window_bounds = array<i64: 96, 48>}, {pipeline_mode = #tpu.pipeline_mode<synchronous>, transform_indices = @transform_2, window_bounds = array<i64: 1, 48>}, {transform_indices = @transform_3, window_bounds = array<i64: 1, 16, 48>}]} {
    %c0 = arith.constant 0 : index
    %c0_0 = arith.constant 0 : index
    %c0_1 = arith.constant 0 : index
    %c0_2 = arith.constant 0 : index
    %c0_3 = arith.constant 0 : index
    %c0_4 = arith.constant 0 : index
    %0 = vector.load %arg1[%c0, %c0_0, %c0_1, %c0_2, %c0_3, %c0_4] : memref<1x4x2x4x2x96xf32, #tpu.memory_space<vmem>>, vector<1x4x1x4x1x96xf32>
    %1 = vector.shape_cast %0 : vector<1x4x1x4x1x96xf32> to vector<4x4x96xf32>
    %c0_5 = arith.constant 0 : index
    %c0_6 = arith.constant 0 : index
    %c0_7 = arith.constant 0 : index
    %c0_8 = arith.constant 0 : index
    %c1 = arith.constant 1 : index
    %c0_9 = arith.constant 0 : index
    %2 = vector.load %arg1[%c0_5, %c0_6, %c0_7, %c0_8, %c1, %c0_9] : memref<1x4x2x4x2x96xf32, #tpu.memory_space<vmem>>, vector<1x4x1x4x1x96xf32>
    %3 = vector.shape_cast %2 : vector<1x4x1x4x1x96xf32> to vector<4x4x96xf32>
    %4 = arith.maximumf %1, %3 : vector<4x4x96xf32>
    %c0_10 = arith.constant 0 : index
    %c0_11 = arith.constant 0 : index
    %c1_12 = arith.constant 1 : index
    %c0_13 = arith.constant 0 : index
    %c0_14 = arith.constant 0 : index
    %c0_15 = arith.constant 0 : index
    %5 = vector.load %arg1[%c0_10, %c0_11, %c1_12, %c0_13, %c0_14, %c0_15] : memref<1x4x2x4x2x96xf32, #tpu.memory_space<vmem>>, vector<1x4x1x4x1x96xf32>
    %6 = vector.shape_cast %5 : vector<1x4x1x4x1x96xf32> to vector<4x4x96xf32>
    %c0_16 = arith.constant 0 : index
    %c0_17 = arith.constant 0 : index
    %c1_18 = arith.constant 1 : index
    %c0_19 = arith.constant 0 : index
    %c1_20 = arith.constant 1 : index
    %c0_21 = arith.constant 0 : index
    %7 = vector.load %arg1[%c0_16, %c0_17, %c1_18, %c0_19, %c1_20, %c0_21] : memref<1x4x2x4x2x96xf32, #tpu.memory_space<vmem>>, vector<1x4x1x4x1x96xf32>
    %8 = vector.shape_cast %7 : vector<1x4x1x4x1x96xf32> to vector<4x4x96xf32>
    %9 = arith.maximumf %6, %8 : vector<4x4x96xf32>
    %10 = arith.maximumf %4, %9 : vector<4x4x96xf32>
    %11 = vector.shape_cast %10 : vector<4x4x96xf32> to vector<16x96xf32>
    %c0_22 = arith.constant 0 : index
    %c0_23 = arith.constant 0 : index
    %12 = vector.load %arg2[%c0_22, %c0_23] : memref<96x48xf32, #tpu.memory_space<vmem>>, vector<96x48xf32>
    %cst = arith.constant dense<0.000000e+00> : vector<16x48xf32>
    %13 = tpu.matmul %11, %12, %cst {dimension_numbers = #tpu.dot_dimension_numbers<[1], [0], [0], [1], [0, 0, 1, 1], [], []>} : vector<16x96xf32>, vector<96x48xf32>, vector<16x48xf32> -> vector<16x48xf32>
    %c0_24 = arith.constant 0 : index
    %c0_25 = arith.constant 0 : index
    %14 = vector.load %arg3[%c0_24, %c0_25] : memref<1x48xf32, #tpu.memory_space<vmem>>, vector<1x48xf32>
    %15 = vector.broadcast %14 : vector<1x48xf32> to vector<16x48xf32>
    %16 = arith.addf %13, %15 : vector<16x48xf32>
    %cst_26 = arith.constant 0.000000e+00 : f32
    %17 = vector.broadcast %cst_26 : f32 to vector<16x48xf32>
    %18 = arith.maximumf %16, %17 : vector<16x48xf32>
    %c0_27 = arith.constant 0 : index
    %c0_28 = arith.constant 0 : index
    %c0_29 = arith.constant 0 : index
    %19 = vector.load %arg4[%c0_27, %c0_28, %c0_29] : memref<1x16x48xf32, #tpu.memory_space<vmem>>, vector<1x16x48xf32>
    %20 = vector.shape_cast %19 : vector<1x16x48xf32> to vector<16x48xf32>
    %21 = vector.shape_cast %18 : vector<16x48xf32> to vector<1x16x48xf32>
    tpu.vector_store %arg4[%c0_27, %c0_28, %c0_29], %21 {strides = array<i32>} : memref<1x16x48xf32, #tpu.memory_space<vmem>>, vector<1x16x48xf32>,
    return
  }
  func.func @transform_0(%arg0: i32) -> (i32, i32, i32, i32, i32, i32) {
    %c0_i32 = arith.constant 0 : i32
    %c0_i32_0 = arith.constant 0 : i32
    %c0_i32_1 = arith.constant 0 : i32
    %c0_i32_2 = arith.constant 0 : i32
    %c0_i32_3 = arith.constant 0 : i32
    %c0_i32_4 = arith.constant 0 : i32
    return %arg0, %c0_i32, %c0_i32_0, %c0_i32_1, %c0_i32_2, %c0_i32_3 : i32, i32, i32, i32, i32, i32
  }
  func.func @transform_1(%arg0: i32) -> (i32, i32) {
    %c0_i32 = arith.constant 0 : i32
    %c0_i32_0 = arith.constant 0 : i32
    %c0_i32_1 = arith.constant 0 : i32
    return %c0_i32, %c0_i32_0 : i32, i32
  }
  func.func @transform_2(%arg0: i32) -> (i32, i32) {
    %c0_i32 = arith.constant 0 : i32
    %c0_i32_0 = arith.constant 0 : i32
    %c0_i32_1 = arith.constant 0 : i32
    return %c0_i32, %c0_i32_0 : i32, i32
  }
  func.func @transform_3(%arg0: i32) -> (i32, i32, i32) {
    %c0_i32 = arith.constant 0 : i32
    %c0_i32_0 = arith.constant 0 : i32
    %c0_i32_1 = arith.constant 0 : i32
    return %arg0, %c0_i32, %c0_i32_0 : i32, i32, i32
  }
}

module attributes {stable_mosaic.version = 11 : i64} {
  func.func @head_kernel(%arg0: i32, %arg1: memref<2x768xf32, #tpu.memory_space<vmem>>, %arg2: memref<768x128xf32, #tpu.memory_space<vmem>>, %arg3: memref<1x128xf32, #tpu.memory_space<vmem>>, %arg4: memref<128x128xf32, #tpu.memory_space<vmem>>, %arg5: memref<1x128xf32, #tpu.memory_space<vmem>>, %arg6: memref<2x128xf32, #tpu.memory_space<vmem>>) attributes {dimension_semantics = [#tpu.dimension_semantics<arbitrary>], iteration_bounds = array<i64: 1>, scalar_prefetch = 0 : i64, scratch_operands = 0 : i64, tpu.core_type = #tpu.core_type<tc>, window_params = [{pipeline_mode = #tpu.pipeline_mode<synchronous>, transform_indices = @transform_0, window_bounds = array<i64: 2, 768>}, {pipeline_mode = #tpu.pipeline_mode<synchronous>, transform_indices = @transform_1, window_bounds = array<i64: 768, 128>}, {pipeline_mode = #tpu.pipeline_mode<synchronous>, transform_indices = @transform_2, window_bounds = array<i64: 1, 128>}, {pipeline_mode = #tpu.pipeline_mode<synchronous>, transform_indices = @transform_3, window_bounds = array<i64: 128, 128>}, {pipeline_mode = #tpu.pipeline_mode<synchronous>, transform_indices = @transform_4, window_bounds = array<i64: 1, 128>}, {pipeline_mode = #tpu.pipeline_mode<synchronous>, transform_indices = @transform_5, window_bounds = array<i64: 2, 128>}]} {
    %c0 = arith.constant 0 : index
    %c0_0 = arith.constant 0 : index
    %0 = vector.load %arg1[%c0, %c0_0] : memref<2x768xf32, #tpu.memory_space<vmem>>, vector<2x768xf32>
    %c0_1 = arith.constant 0 : index
    %c0_2 = arith.constant 0 : index
    %1 = vector.load %arg2[%c0_1, %c0_2] : memref<768x128xf32, #tpu.memory_space<vmem>>, vector<768x128xf32>
    %cst = arith.constant dense<0.000000e+00> : vector<2x128xf32>
    %2 = tpu.matmul %0, %1, %cst {dimension_numbers = #tpu.dot_dimension_numbers<[1], [0], [0], [1], [0, 0, 1, 1], [], []>} : vector<2x768xf32>, vector<768x128xf32>, vector<2x128xf32> -> vector<2x128xf32>
    %c0_3 = arith.constant 0 : index
    %c0_4 = arith.constant 0 : index
    %3 = vector.load %arg3[%c0_3, %c0_4] : memref<1x128xf32, #tpu.memory_space<vmem>>, vector<1x128xf32>
    %4 = vector.broadcast %3 : vector<1x128xf32> to vector<2x128xf32>
    %5 = arith.addf %2, %4 : vector<2x128xf32>
    %cst_5 = arith.constant 0.000000e+00 : f32
    %6 = vector.broadcast %cst_5 : f32 to vector<2x128xf32>
    %7 = arith.maximumf %5, %6 : vector<2x128xf32>
    %c0_6 = arith.constant 0 : index
    %c0_7 = arith.constant 0 : index
    %8 = vector.load %arg4[%c0_6, %c0_7] : memref<128x128xf32, #tpu.memory_space<vmem>>, vector<128x128xf32>
    %cst_8 = arith.constant dense<0.000000e+00> : vector<2x128xf32>
    %9 = tpu.matmul %7, %8, %cst_8 {dimension_numbers = #tpu.dot_dimension_numbers<[1], [0], [0], [1], [0, 0, 1, 1], [], []>} : vector<2x128xf32>, vector<128x128xf32>, vector<2x128xf32> -> vector<2x128xf32>
    %c0_9 = arith.constant 0 : index
    %c0_10 = arith.constant 0 : index
    %10 = vector.load %arg5[%c0_9, %c0_10] : memref<1x128xf32, #tpu.memory_space<vmem>>, vector<1x128xf32>
    %11 = vector.broadcast %10 : vector<1x128xf32> to vector<2x128xf32>
    %12 = arith.addf %9, %11 : vector<2x128xf32>
    %c0_11 = arith.constant 0 : index
    %c0_12 = arith.constant 0 : index
    %13 = vector.load %arg6[%c0_11, %c0_12] : memref<2x128xf32, #tpu.memory_space<vmem>>, vector<2x128xf32>
    tpu.vector_store %arg6[%c0_11, %c0_12], %12 {strides = array<i32>} : memref<2x128xf32, #tpu.memory_space<vmem>>, vector<2x128xf32>,
    return
  }
  func.func @transform_0(%arg0: i32) -> (i32, i32) {
    %c0_i32 = arith.constant 0 : i32
    %c0_i32_0 = arith.constant 0 : i32
    %c0_i32_1 = arith.constant 0 : i32
    return %c0_i32, %c0_i32_0 : i32, i32
  }
  func.func @transform_1(%arg0: i32) -> (i32, i32) {
    %c0_i32 = arith.constant 0 : i32
    %c0_i32_0 = arith.constant 0 : i32
    %c0_i32_1 = arith.constant 0 : i32
    return %c0_i32, %c0_i32_0 : i32, i32
  }
  func.func @transform_2(%arg0: i32) -> (i32, i32) {
    %c0_i32 = arith.constant 0 : i32
    %c0_i32_0 = arith.constant 0 : i32
    %c0_i32_1 = arith.constant 0 : i32
    return %c0_i32, %c0_i32_0 : i32, i32
  }
  func.func @transform_3(%arg0: i32) -> (i32, i32) {
    %c0_i32 = arith.constant 0 : i32
    %c0_i32_0 = arith.constant 0 : i32
    %c0_i32_1 = arith.constant 0 : i32
    return %c0_i32, %c0_i32_0 : i32, i32
  }
  func.func @transform_4(%arg0: i32) -> (i32, i32) {
    %c0_i32 = arith.constant 0 : i32
    %c0_i32_0 = arith.constant 0 : i32
    %c0_i32_1 = arith.constant 0 : i32
    return %c0_i32, %c0_i32_0 : i32, i32
  }
  func.func @transform_5(%arg0: i32) -> (i32, i32) {
    %c0_i32 = arith.constant 0 : i32
    %c0_i32_0 = arith.constant 0 : i32
    %c0_i32_1 = arith.constant 0 : i32
    return %c0_i32, %c0_i32_0 : i32, i32
  }
}

</mosaic_0001>

<bundles_post_ra>
// kernel: simple_model_forward.7
= control target key start
LH: loop header
LB: loop body
LE: loop exit
PB: predicated region body
PF: predicated region fallthrough
CT: control target
= control target key end

     0   :  { %s853_s12 = smov 0   ;;  %s1058_s0 = inlined_call_operand.vmem [shape: f32[2048,25], index: 0, kind: input, shape index: {}]   ;;  %s1059_s1 = inlined_call_operand.vmem [shape: f32[25,96], index: 1, kind: input, shape index: {}]   ;;  %s1060_s2 = inlined_call_operand.vmem [shape: f32[1,96], index: 2, kind: input, shape index: {}]   ;;  %s1061_s3 = inlined_call_operand.vmem [shape: f32[2048,96], index: 3, kind: output, shape index: {}]  }
   0x1 LB: > { %s664_s13 = sadd.s32 4294967295, %s830_s12   ;;  %p668_p0 = scmp.ge.s32.totalorder %s830_s12, 1  ;;  %s830_s12 = sphi %s853_s12, %s13_s12  }
   0x2   : > { %p138_p1 = scmp.lt.s32.totalorder %s830_s12, 9 }
   0x4   : > { %p139_p2 = pnand %p668_p0, %p138_p1 }
   0x5   : > { %v206_v0 = vld [vmem:[%s1059_s1] sm:$0xff] (!%p139_p2)  ;;  %v207_v1 = vld [vmem:[%s1059_s1 + $0x8] sm:$0xff] (!%p139_p2)  ;;  %v208_v2 = vld [vmem:[%s1059_s1 + $0x10] sm:$0xff] (!%p139_p2)  ;;  %vm314_vm0 = vcmask (!%p139_p2), 1040384   ;;  %s669_s20 = sshll.u32 (!%p139_p2), %s664_s13, 5  ;;  %vm832_vm1 = vmmov (!%p139_p2), 1  }
   0x6   : > { %142 = sbr.rel (%p139_p2) target bundleno = 265 (0x109), region = 32  ;;  %v801_v3 = vpack.c.bf16 (!%p139_p2), %v207_v1, %v206_v0  ;;  %v209_v4 = vld [vmem:[%s1059_s1 + $0x18] sm:$0x1] (!%p139_p2)  ;;  %p163_p3 = scmp.lt.s32.totalorder (!%p139_p2), %s669_s20, 255  ;;  %vm806_vm2 = vmpackc.low (!%p139_p2), %vm314_vm0, %vm832_vm1  ;;  %vm217_vm3 = vcmask (!%p139_p2), 203776   ;;  %vm575_vm4 = vcmask (!%p139_p2), 785408  }
   0x7   : > { %v805_v5 = vpack.c.bf16 (!%p139_p2), %v209_v4, %v208_v2  ;;  %v950_v38 = vld [vmem:[%s1060_s2] ss:$0 sm:$0xff] (!%p139_p2) }
   0x8   : > { %802 = vmatprep.subr.bf16.mxu0 (!%p139_p2), %v801_v3  ;;  %811 = vmatprep.subr.bf16.mxu1 (!%p139_p2), %v801_v3 }
   0x9   : > { %804 = vmatpush3.bf16.msra.mxu0 (!%p139_p2), %v801_v3  ;;  %813 = vmatpush3.bf16.msra.mxu1 (!%p139_p2), %v801_v3 }
   0xa   : > { %807 = vmatprep.subr.msk.bf16.mxu0 (!%p139_p2), %vm806_vm2, %v805_v5  ;;  %812 = vmatprep.subr.msk.bf16.mxu1 (!%p139_p2), %vm806_vm2, %v805_v5 }
   0xd   : > { %s1063_s20 = smov (!%p163_p3, %s669_s20), 255  ;;  %810 = vmatpush3.bf16.msk.msra.mxu0 %vm806_vm2, %v805_v5  ;;  %814 = vmatpush3.bf16.msk.msra.mxu1 %vm806_vm2, %v805_v5 }
   0xe   : > { %s670_s23 = sshll.u32 %s1063_s20, 3 }
   0xf   : > { %s881_s26 = scalar_lea.vmem %s1058_s0, %s670_s23  ;;  %s959_s4 = scalar_lea.vmem %s1061_s3, %s670_s23 }
  0x10   : > { %v174_v6 = vld [vmem:[%s881_s26] sm:$0xff]  ;;  %v175_v8 = vld [vmem:[%s881_s26 + $0x8] sm:$0xff]  ;;  %v176_v10 = vld [vmem:[%s881_s26 + $0x10] sm:$0xff] }
  0x11   : > { %v190_v7 = vld [vmem:[%s881_s26 + $0x80] sm:$0xff]  ;;  %v191_v9 = vld [vmem:[%s881_s26 + $0x88] sm:$0xff]  ;;  %753 = vmatprep.mubr.msk.f32.mxu0 %vm217_vm3, %v174_v6  ;;  %v192_v11 = vld [vmem:[%s881_s26 + $0x90] sm:$0xff] }
  0x12   : > { %777 = vmatprep.mubr.msk.f32.mxu1 %vm217_vm3, %v190_v7  ;;  %754 = vmatmul.mubr.msk.f32.vlgmr.msra.gmra.mrb[0].mxu0 %vm217_vm3, %v175_v8  ;;  %v177_v12 = vld [vmem:[%s881_s26 + $0x18] sm:$0xff]  ;;  %v178_v14 = vld [vmem:[%s881_s26 + $0x20] sm:$0xff]  ;;  %v179_v16 = vld [vmem:[%s881_s26 + $0x28] sm:$0xff] }
  0x13   : > { %778 = vmatmul.mubr.msk.f32.vlgmr.msra.gmra.mrb[0].mxu1 %vm217_vm3, %v191_v9  ;;  %756 = vmatprep.mubr.msk.f32.mxu0 %vm217_vm3, %v176_v10  ;;  %v193_v13 = vld [vmem:[%s881_s26 + $0x98] sm:$0xff]  ;;  %v194_v15 = vld [vmem:[%s881_s26 + $0xa0] sm:$0xff]  ;;  %v195_v17 = vld [vmem:[%s881_s26 + $0xa8] sm:$0xff] }
  0x14   : > { %780 = vmatprep.mubr.msk.f32.mxu1 %vm217_vm3, %v192_v11  ;;  %v180_v18 = vld [vmem:[%s881_s26 + $0x30] sm:$0xff]  ;;  %v181_v20 = vld [vmem:[%s881_s26 + $0x38] sm:$0xff]  ;;  %v182_v22 = vld [vmem:[%s881_s26 + $0x40] sm:$0xff] }
  0x15   : > { %v196_v19 = vld [vmem:[%s881_s26 + $0xb0] sm:$0xff]  ;;  %v197_v21 = vld [vmem:[%s881_s26 + $0xb8] sm:$0xff]  ;;  %v198_v23 = vld [vmem:[%s881_s26 + $0xc0] sm:$0xff] }
  0x16   : > { %757 = vmatmul.mubr.msk.f32.gmra.mrb[2].mxu0 %vm217_vm3, %v177_v12  ;;  %v183_v24 = vld [vmem:[%s881_s26 + $0x48] sm:$0xff]  ;;  %v184_v26 = vld [vmem:[%s881_s26 + $0x50] sm:$0xff]  ;;  %v185_v28 = vld [vmem:[%s881_s26 + $0x58] sm:$0xff] }
  0x17   : > { %781 = vmatmul.mubr.msk.f32.gmra.mrb[2].mxu1 %vm217_vm3, %v193_v13  ;;  %759 = vmatprep.mubr.msk.f32.mxu0 %vm217_vm3, %v178_v14  ;;  %v199_v25 = vld [vmem:[%s881_s26 + $0xc8] sm:$0xff]  ;;  %v200_v27 = vld [vmem:[%s881_s26 + $0xd0] sm:$0xff]  ;;  %v201_v29 = vld [vmem:[%s881_s26 + $0xd8] sm:$0xff] }
  0x18   : > { %783 = vmatprep.mubr.msk.f32.mxu1 %vm217_vm3, %v194_v15  ;;  %v186_v30 = vld [vmem:[%s881_s26 + $0x60] sm:$0xff]  ;;  %v187_v32 = vld [vmem:[%s881_s26 + $0x68] sm:$0xff]  ;;  %v188_v34 = vld [vmem:[%s881_s26 + $0x70] sm:$0xff] }
  0x19   : > { %v202_v31 = vld [vmem:[%s881_s26 + $0xe0] sm:$0xff]  ;;  %v203_v33 = vld [vmem:[%s881_s26 + $0xe8] sm:$0xff]  ;;  %v204_v35 = vld [vmem:[%s881_s26 + $0xf0] sm:$0xff] }
  0x1a   : > { %760 = vmatmul.mubr.msk.f32.gmra.mrb[4].mxu0 %vm217_vm3, %v179_v16  ;;  %v189_v36 = vld [vmem:[%s881_s26 + $0x78] sm:$0xff] }
  0x1b   : > { %784 = vmatmul.mubr.msk.f32.gmra.mrb[4].mxu1 %vm217_vm3, %v195_v17  ;;  %762 = vmatprep.mubr.msk.f32.mxu0 %vm217_vm3, %v180_v18  ;;  %v205_v37 = vld [vmem:[%s881_s26 + $0xf8] sm:$0xff] }
  0x1c   : > { %786 = vmatprep.mubr.msk.f32.mxu1 %vm217_vm3, %v196_v19 }
  0x1e   : > { %763 = vmatmul.mubr.msk.f32.gmra.mrb[6].mxu0 %vm217_vm3, %v181_v20 }
  0x1f   : > { %787 = vmatmul.mubr.msk.f32.gmra.mrb[6].mxu1 %vm217_vm3, %v197_v21  ;;  %765 = vmatprep.mubr.msk.f32.mxu0 %vm217_vm3, %v182_v22 }
  0x20   : > { %789 = vmatprep.mubr.msk.f32.mxu1 %vm217_vm3, %v198_v23 }
  0x22   : > { %766 = vmatmul.mubr.msk.f32.gmra.mrb[8].mxu0 %vm217_vm3, %v183_v24 }
  0x23   : > { %790 = vmatmul.mubr.msk.f32.gmra.mrb[8].mxu1 %vm217_vm3, %v199_v25  ;;  %768 = vmatprep.mubr.msk.f32.mxu0 %vm217_vm3, %v184_v26 }
  0x24   : > { %792 = vmatprep.mubr.msk.f32.mxu1 %vm217_vm3, %v200_v27 }
  0x26   : > { %769 = vmatmul.mubr.msk.f32.gmra.mrb[10].mxu0 %vm217_vm3, %v185_v28 }
  0x27   : > { %793 = vmatmul.mubr.msk.f32.gmra.mrb[10].mxu1 %vm217_vm3, %v201_v29  ;;  %771 = vmatprep.mubr.msk.f32.mxu0 %vm217_vm3, %v186_v30 }
  0x28   : > { %795 = vmatprep.mubr.msk.f32.mxu1 %vm217_vm3, %v202_v31 }
  0x2a   : > { %772 = vmatmul.mubr.msk.f32.gmra.mrb[12].mxu0 %vm217_vm3, %v187_v32 }
  0x2b   : > { %796 = vmatmul.mubr.msk.f32.gmra.mrb[12].mxu1 %vm217_vm3, %v203_v33  ;;  %774 = vmatprep.mubr.msk.f32.mxu0 %vm217_vm3, %v188_v34 }
  0x2c   : > { %798 = vmatprep.mubr.msk.f32.mxu1 %vm217_vm3, %v204_v35 }
  0x2e   : > { %775 = vmatmul.mubr.msk.f32.gmra.mrb[14].mxu0 %vm217_vm3, %v189_v36 }
  0x2f   : > { %799 = vmatmul.mubr.msk.f32.gmra.mrb[14].mxu1 %vm217_vm3, %v205_v37 }
  0xe5   : > { %v755_v39 = vpop.f32.mrb[0].mxu0 }
  0xe6   : > { %v779_v40 = vpop.f32.mrb[0].mxu1  ;;  %v390_v41 = vadd.f32 %v755_v39, %v950_v38  ;;  %v384_v43 = vpop.f32.mrb[1].mxu0 }
  0xe7   : > { %v470_v42 = vadd.f32 %v779_v40, %v950_v38  ;;  %v464_v44 = vpop.f32.mrb[1].mxu1  ;;  %v385_v45 = vadd.f32 %v950_v38, %v384_v43 }
  0xe8   : > { %v465_v46 = vadd.f32 %v950_v38, %v464_v44  ;;  %v544_v47 = vmax.f32 %v390_v41, 0.0 }
  0xe9   : > { %v560_v48 = vmax.f32 %v470_v42, 0.0  ;;  %v543_v49 = vmax.f32 %v385_v45, 0.0  ;;  %v758_v51 = vpop.f32.mrb[2].mxu0 }
  0xea   : > { %v559_v50 = vmax.f32 %v465_v46, 0.0  ;;  %v782_v52 = vpop.f32.mrb[2].mxu1  ;;  %577 = vst.msk [vmem:[%s959_s4 + $0x8] sm:$0xff] %vm575_vm4, %v544_v47  ;;  %v400_v53 = vadd.f32 %v758_v51, %v950_v38  ;;  %v394_v55 = vpop.f32.mrb[3].mxu0 }
  0xeb   : > { %593 = vst.msk [vmem:[%s959_s4 + $0x88] sm:$0xff] %vm575_vm4, %v560_v48  ;;  %v480_v54 = vadd.f32 %v782_v52, %v950_v38  ;;  %v474_v56 = vpop.f32.mrb[3].mxu1  ;;  %576 = vst.msk [vmem:[%s959_s4] sm:$0xff] %vm575_vm4, %v543_v49  ;;  %v395_v57 = vadd.f32 %v950_v38, %v394_v55 }
  0xec   : > { %592 = vst.msk [vmem:[%s959_s4 + $0x80] sm:$0xff] %vm575_vm4, %v559_v50  ;;  %v475_v58 = vadd.f32 %v950_v38, %v474_v56  ;;  %v546_v59 = vmax.f32 %v400_v53, 0.0 }
  0xed   : > { %v562_v60 = vmax.f32 %v480_v54, 0.0  ;;  %v545_v61 = vmax.f32 %v395_v57, 0.0  ;;  %v761_v63 = vpop.f32.mrb[4].mxu0 }
  0xee   : > { %v561_v62 = vmax.f32 %v475_v58, 0.0  ;;  %v785_v0 = vpop.f32.mrb[4].mxu1  ;;  %579 = vst.msk [vmem:[%s959_s4 + $0x18] sm:$0xff] %vm575_vm4, %v546_v59  ;;  %v410_v1 = vadd.f32 %v761_v63, %v950_v38  ;;  %v404_v3 = vpop.f32.mrb[5].mxu0 }
  0xef   : > { %595 = vst.msk [vmem:[%s959_s4 + $0x98] sm:$0xff] %vm575_vm4, %v562_v60  ;;  %v490_v2 = vadd.f32 %v785_v0, %v950_v38  ;;  %v484_v4 = vpop.f32.mrb[5].mxu1  ;;  %578 = vst.msk [vmem:[%s959_s4 + $0x10] sm:$0xff] %vm575_vm4, %v545_v61  ;;  %v405_v5 = vadd.f32 %v950_v38, %v404_v3 }
  0xf0   : > { %594 = vst.msk [vmem:[%s959_s4 + $0x90] sm:$0xff] %vm575_vm4, %v561_v62  ;;  %v485_v6 = vadd.f32 %v950_v38, %v484_v4  ;;  %v548_v7 = vmax.f32 %v410_v1, 0.0 }
  0xf1   : > { %v564_v8 = vmax.f32 %v490_v2, 0.0  ;;  %v547_v9 = vmax.f32 %v405_v5, 0.0  ;;  %v764_v11 = vpop.f32.mrb[6].mxu0 }
  0xf2   : > { %v563_v10 = vmax.f32 %v485_v6, 0.0  ;;  %v788_v12 = vpop.f32.mrb[6].mxu1  ;;  %581 = vst.msk [vmem:[%s959_s4 + $0x28] sm:$0xff] %vm575_vm4, %v548_v7  ;;  %v420_v13 = vadd.f32 %v764_v11, %v950_v38  ;;  %v414_v15 = vpop.f32.mrb[7].mxu0 }
  0xf3   : > { %597 = vst.msk [vmem:[%s959_s4 + $0xa8] sm:$0xff] %vm575_vm4, %v564_v8  ;;  %v500_v14 = vadd.f32 %v788_v12, %v950_v38  ;;  %v494_v16 = vpop.f32.mrb[7].mxu1  ;;  %580 = vst.msk [vmem:[%s959_s4 + $0x20] sm:$0xff] %vm575_vm4, %v547_v9  ;;  %v415_v17 = vadd.f32 %v950_v38, %v414_v15 }
  0xf4   : > { %596 = vst.msk [vmem:[%s959_s4 + $0xa0] sm:$0xff] %vm575_vm4, %v563_v10  ;;  %v495_v18 = vadd.f32 %v950_v38, %v494_v16  ;;  %v550_v19 = vmax.f32 %v420_v13, 0.0 }
  0xf5   : > { %v566_v20 = vmax.f32 %v500_v14, 0.0  ;;  %v549_v21 = vmax.f32 %v415_v17, 0.0  ;;  %v767_v23 = vpop.f32.mrb[8].mxu0 }
  0xf6   : > { %v565_v22 = vmax.f32 %v495_v18, 0.0  ;;  %v791_v24 = vpop.f32.mrb[8].mxu1  ;;  %583 = vst.msk [vmem:[%s959_s4 + $0x38] sm:$0xff] %vm575_vm4, %v550_v19  ;;  %v430_v25 = vadd.f32 %v767_v23, %v950_v38  ;;  %v424_v27 = vpop.f32.mrb[9].mxu0 }
  0xf7   : > { %599 = vst.msk [vmem:[%s959_s4 + $0xb8] sm:$0xff] %vm575_vm4, %v566_v20  ;;  %v510_v26 = vadd.f32 %v791_v24, %v950_v38  ;;  %v504_v28 = vpop.f32.mrb[9].mxu1  ;;  %582 = vst.msk [vmem:[%s959_s4 + $0x30] sm:$0xff] %vm575_vm4, %v549_v21  ;;  %v425_v29 = vadd.f32 %v950_v38, %v424_v27 }
  0xf8   : > { %598 = vst.msk [vmem:[%s959_s4 + $0xb0] sm:$0xff] %vm575_vm4, %v565_v22  ;;  %v505_v30 = vadd.f32 %v950_v38, %v504_v28  ;;  %v552_v31 = vmax.f32 %v430_v25, 0.0 }
  0xf9   : > { %v568_v32 = vmax.f32 %v510_v26, 0.0  ;;  %v551_v33 = vmax.f32 %v425_v29, 0.0  ;;  %v770_v35 = vpop.f32.mrb[10].mxu0 }
  0xfa   : > { %v567_v34 = vmax.f32 %v505_v30, 0.0  ;;  %v794_v36 = vpop.f32.mrb[10].mxu1  ;;  %585 = vst.msk [vmem:[%s959_s4 + $0x48] sm:$0xff] %vm575_vm4, %v552_v31  ;;  %v440_v37 = vadd.f32 %v770_v35, %v950_v38  ;;  %v434_v40 = vpop.f32.mrb[11].mxu0 }
  0xfb   : > { %601 = vst.msk [vmem:[%s959_s4 + $0xc8] sm:$0xff] %vm575_vm4, %v568_v32  ;;  %v520_v39 = vadd.f32 %v794_v36, %v950_v38  ;;  %v514_v41 = vpop.f32.mrb[11].mxu1  ;;  %584 = vst.msk [vmem:[%s959_s4 + $0x40] sm:$0xff] %vm575_vm4, %v551_v33  ;;  %v435_v42 = vadd.f32 %v950_v38, %v434_v40 }
  0xfc   : > { %600 = vst.msk [vmem:[%s959_s4 + $0xc0] sm:$0xff] %vm575_vm4, %v567_v34  ;;  %v515_v43 = vadd.f32 %v950_v38, %v514_v41  ;;  %v554_v44 = vmax.f32 %v440_v37, 0.0 }
  0xfd   : > { %v570_v45 = vmax.f32 %v520_v39, 0.0  ;;  %v553_v46 = vmax.f32 %v435_v42, 0.0  ;;  %v773_v48 = vpop.f32.mrb[12].mxu0 }
  0xfe   : > { %v569_v47 = vmax.f32 %v515_v43, 0.0  ;;  %v797_v49 = vpop.f32.mrb[12].mxu1  ;;  %587 = vst.msk [vmem:[%s959_s4 + $0x58] sm:$0xff] %vm575_vm4, %v554_v44  ;;  %v450_v50 = vadd.f32 %v773_v48, %v950_v38  ;;  %v444_v52 = vpop.f32.mrb[13].mxu0 }
  0xff   : > { %603 = vst.msk [vmem:[%s959_s4 + $0xd8] sm:$0xff] %vm575_vm4, %v570_v45  ;;  %v530_v51 = vadd.f32 %v797_v49, %v950_v38  ;;  %v524_v53 = vpop.f32.mrb[13].mxu1  ;;  %586 = vst.msk [vmem:[%s959_s4 + $0x50] sm:$0xff] %vm575_vm4, %v553_v46  ;;  %v445_v54 = vadd.f32 %v950_v38, %v444_v52 }
 0x100   : > { %602 = vst.msk [vmem:[%s959_s4 + $0xd0] sm:$0xff] %vm575_vm4, %v569_v47  ;;  %v525_v55 = vadd.f32 %v950_v38, %v524_v53  ;;  %v556_v56 = vmax.f32 %v450_v50, 0.0 }
 0x101   : > { %v572_v57 = vmax.f32 %v530_v51, 0.0  ;;  %v555_v58 = vmax.f32 %v445_v54, 0.0  ;;  %v776_v60 = vpop.f32.mrb[14].mxu0 }
 0x102   : > { %v571_v59 = vmax.f32 %v525_v55, 0.0  ;;  %v800_v61 = vpop.f32.mrb[14].mxu1  ;;  %589 = vst.msk [vmem:[%s959_s4 + $0x68] sm:$0xff] %vm575_vm4, %v556_v56  ;;  %v460_v62 = vadd.f32 %v776_v60, %v950_v38  ;;  %v454_v0 = vpop.f32.mrb[15].mxu0 }
 0x103   : > { %605 = vst.msk [vmem:[%s959_s4 + $0xe8] sm:$0xff] %vm575_vm4, %v572_v57  ;;  %v540_v63 = vadd.f32 %v800_v61, %v950_v38  ;;  %v534_v1 = vpop.f32.mrb[15].mxu1  ;;  %588 = vst.msk [vmem:[%s959_s4 + $0x60] sm:$0xff] %vm575_vm4, %v555_v58  ;;  %v455_v2 = vadd.f32 %v950_v38, %v454_v0 }
 0x104   : > { %604 = vst.msk [vmem:[%s959_s4 + $0xe0] sm:$0xff] %vm575_vm4, %v571_v59  ;;  %v535_v3 = vadd.f32 %v950_v38, %v534_v1  ;;  %v558_v4 = vmax.f32 %v460_v62, 0.0 }
 0x105   : > { %v574_v5 = vmax.f32 %v540_v63, 0.0  ;;  %v557_v6 = vmax.f32 %v455_v2, 0.0 }
 0x106   : > { %v573_v7 = vmax.f32 %v535_v3, 0.0  ;;  %591 = vst.msk [vmem:[%s959_s4 + $0x78] sm:$0xff] %vm575_vm4, %v558_v4 }
 0x107   : > { %607 = vst.msk [vmem:[%s959_s4 + $0xf8] sm:$0xff] %vm575_vm4, %v574_v5  ;;  %590 = vst.msk [vmem:[%s959_s4 + $0x70] sm:$0xff] %vm575_vm4, %v557_v6 }
 0x108   : > { %606 = vst.msk [vmem:[%s959_s4 + $0xf0] sm:$0xff] %vm575_vm4, %v573_v7 }
 0x109 PF: > { %s13_s12 = sadd.s32 1, %s830_s12  }
 0x10a   : > { %p10_p4 = scmp.ge.s32.totalorder %s13_s12, 10  }
 0x10c   :  { %12 = sbr.rel (!%p10_p4) target bundleno = 1 (0x1), region = 62 }

// kernel: simple_model_forward.9
= control target key start
LH: loop header
LB: loop body
LE: loop exit
PB: predicated region body
PF: predicated region fallthrough
CT: control target
= control target key end

     0   :  { %s1263_s12 = smov 0   ;;  %s1739_s0 = inlined_call_operand.vmem [shape: f32[512,432], index: 0, kind: input, shape index: {}]   ;;  %s1740_s1 = inlined_call_operand.vmem [shape: f32[432,96], index: 1, kind: input, shape index: {}]   ;;  %s1741_s2 = inlined_call_operand.vmem [shape: f32[1,96], index: 2, kind: input, shape index: {}]   ;;  %s1742_s3 = inlined_call_operand.vmem [shape: f32[512,96], index: 3, kind: output, shape index: {}]  }
   0x1 LB: > { %s1034_s13 = sadd.s32 4294967295, %s1240_s12   ;;  %p1038_p0 = scmp.ge.s32.totalorder %s1240_s12, 1  ;;  %s1240_s12 = sphi %s1263_s12, %s13_s12  }
   0x2   : > { %p139_p1 = scmp.lt.s32.totalorder %s1240_s12, 3 }
   0x4   : > { %p140_p2 = pnand %p1038_p0, %p139_p1 }
   0x5   : > { %v305_v0 = vld [vmem:[%s1740_s1] sm:$0xff] (!%p140_p2)  ;;  %v306_v1 = vld [vmem:[%s1740_s1 + $0x8] sm:$0xff] (!%p140_p2)  ;;  %v307_v2 = vld [vmem:[%s1740_s1 + $0x10] sm:$0xff] (!%p140_p2)  ;;  %v1242_v3 = vmov (!%p140_p2), 0.0|0.0   ;;  %s1039_s22 = sshll.u32 (!%p140_p2), %s1034_s13, 5  ;;  %vm366_vm0 = vcmask (!%p140_p2), 392192  }
   0x6   : > { %143 = sbr.rel (%p140_p2) target bundleno = 414 (0x19e), region = 32  ;;  %1080 = vmatprep.subr.bf16.mxu1 (!%p140_p2), %v1242_v3  ;;  %v1081_v4 = vpack.c.bf16 (!%p140_p2), %v306_v1, %v305_v0  ;;  %v308_v5 = vld [vmem:[%s1740_s1 + $0x18] sm:$0xff] (!%p140_p2)  ;;  %1128 = vmatprep.subr.bf16.mxu0 (!%p140_p2), %v1242_v3  ;;  %v309_v7 = vld [vmem:[%s1740_s1 + $0x20] sm:$0xff] (!%p140_p2)  ;;  %v310_v8 = vld [vmem:[%s1740_s1 + $0x28] sm:$0xff] (!%p140_p2)  ;;  %p165_p3 = scmp.lt.s32.totalorder (!%p140_p2), %s1039_s22, 63  ;;  %vm945_vm1 = vcmask (!%p140_p2), 785408  }
   0x7   : > { %v1084_v6 = vpack.c.bf16 (!%p140_p2), %v308_v5, %v307_v2  ;;  %v337_v9 = vld [vmem:[%s1740_s1 + $0x100] sm:$0xff] (!%p140_p2)  ;;  %v338_v10 = vld [vmem:[%s1740_s1 + $0x108] sm:$0xff] (!%p140_p2)  ;;  %v339_v12 = vld [vmem:[%s1740_s1 + $0x110] sm:$0xff] (!%p140_p2)  ;;  %v1087_v14 = vpack.c.bf16 (!%p140_p2), %v310_v8, %v309_v7 }
   0x8   : > { %1082 = vmatpush1.bf16.msra.mxu1 (!%p140_p2), %v1081_v4  ;;  %v1129_v11 = vpack.c.bf16 (!%p140_p2), %v338_v10, %v337_v9  ;;  %v340_v13 = vld [vmem:[%s1740_s1 + $0x118] sm:$0xff] (!%p140_p2)  ;;  %v311_v15 = vld [vmem:[%s1740_s1 + $0x30] sm:$0xff] (!%p140_p2)  ;;  %v341_v18 = vld [vmem:[%s1740_s1 + $0x120] sm:$0xff] (!%p140_p2) }
   0x9   : > { %1083 = vmatprep.subr.bf16.mxu1 (!%p140_p2), %v1242_v3  ;;  %v1132_v16 = vpack.c.bf16 (!%p140_p2), %v340_v13, %v339_v12  ;;  %v312_v17 = vld [vmem:[%s1740_s1 + $0x38] sm:$0xff] (!%p140_p2)  ;;  %v342_v19 = vld [vmem:[%s1740_s1 + $0x128] sm:$0xff] (!%p140_p2)  ;;  %v313_v21 = vld [vmem:[%s1740_s1 + $0x40] sm:$0xff] (!%p140_p2) }
   0xa   : > { %1130 = vmatpush1.bf16.msra.mxu0 (!%p140_p2), %v1129_v11  ;;  %v1090_v20 = vpack.c.bf16 (!%p140_p2), %v312_v17, %v311_v15  ;;  %v1135_v22 = vpack.c.bf16 (!%p140_p2), %v342_v19, %v341_v18  ;;  %v314_v23 = vld [vmem:[%s1740_s1 + $0x48] sm:$0xff] (!%p140_p2)  ;;  %v343_v24 = vld [vmem:[%s1740_s1 + $0x130] sm:$0xff] (!%p140_p2)  ;;  %v344_v25 = vld [vmem:[%s1740_s1 + $0x138] sm:$0xff] (!%p140_p2) }
   0xb   : > { %1131 = vmatprep.subr.bf16.mxu0 (!%p140_p2), %v1242_v3  ;;  %v1093_v26 = vpack.c.bf16 (!%p140_p2), %v314_v23, %v313_v21  ;;  %v315_v27 = vld [vmem:[%s1740_s1 + $0x50] sm:$0xff] (!%p140_p2)  ;;  %v1138_v28 = vpack.c.bf16 (!%p140_p2), %v344_v25, %v343_v24  ;;  %v316_v29 = vld [vmem:[%s1740_s1 + $0x58] sm:$0xff] (!%p140_p2)  ;;  %v345_v30 = vld [vmem:[%s1740_s1 + $0x140] sm:$0xff] (!%p140_p2) }
   0xc   : > { %1085 = vmatpush1.bf16.msra.mxu1 (!%p140_p2), %v1084_v6  ;;  %v346_v31 = vld [vmem:[%s1740_s1 + $0x148] sm:$0xff] (!%p140_p2)  ;;  %v1096_v34 = vpack.c.bf16 (!%p140_p2), %v316_v29, %v315_v27  ;;  %v317_v35 = vld [vmem:[%s1740_s1 + $0x60] sm:$0xff] (!%p140_p2)  ;;  %v347_v38 = vld [vmem:[%s1740_s1 + $0x150] sm:$0xff] (!%p140_p2) }
   0xd   : > { %1086 = vmatprep.subr.bf16.mxu1 %v1242_v3  ;;  %s1744_s22 = smov (!%p165_p3, %s1039_s22), 63  ;;  %v1141_v36 = vpack.c.bf16 %v346_v31, %v345_v30  ;;  %v318_v37 = vld [vmem:[%s1740_s1 + $0x68] sm:$0xff]  ;;  %v348_v39 = vld [vmem:[%s1740_s1 + $0x158] sm:$0xff]  ;;  %v319_v41 = vld [vmem:[%s1740_s1 + $0x70] sm:$0xff] }
   0xe   : > { %1133 = vmatpush1.bf16.msra.mxu0 %v1132_v16  ;;  %s1079_s26 = sshll.u32 %s1744_s22, 5  ;;  %v1099_v40 = vpack.c.bf16 %v318_v37, %v317_v35  ;;  %v1144_v42 = vpack.c.bf16 %v348_v39, %v347_v38  ;;  %v320_v43 = vld [vmem:[%s1740_s1 + $0x78] sm:$0xff]  ;;  %v349_v44 = vld [vmem:[%s1740_s1 + $0x160] sm:$0xff]  ;;  %v350_v45 = vld [vmem:[%s1740_s1 + $0x168] sm:$0xff] }
   0xf   : > { %1134 = vmatprep.subr.bf16.mxu0 %v1242_v3  ;;  %s1342_s4 = scalar_lea.vmem %s1739_s0, %s1079_s26  ;;  %v1102_v46 = vpack.c.bf16 %v320_v43, %v319_v41  ;;  %v321_v47 = vld [vmem:[%s1740_s1 + $0x80] sm:$0xff]  ;;  %v1147_v48 = vpack.c.bf16 %v350_v45, %v349_v44  ;;  %v322_v49 = vld [vmem:[%s1740_s1 + $0x88] sm:$0xff]  ;;  %v351_v50 = vld [vmem:[%s1740_s1 + $0x170] sm:$0xff] }
  0x10   : > { %1088 = vmatpush1.bf16.msra.mxu1 %v1087_v14  ;;  %v178_v32 = vld [vmem:[%s1342_s4 + $0x8] sm:$0xff]  ;;  %v180_v33 = vld [vmem:[%s1342_s4 + $0x18] sm:$0xff]  ;;  %v1105_v52 = vpack.c.bf16 %v322_v49, %v321_v47  ;;  %v323_v53 = vld [vmem:[%s1740_s1 + $0x90] sm:$0xff] }
  0x11   : > { %1089 = vmatprep.subr.bf16.mxu1 %v1242_v3  ;;  %527 = vmatprep.mubr.f32.mxu1 %v178_v32  ;;  %v352_v51 = vld [vmem:[%s1740_s1 + $0x178] sm:$0xff]  ;;  %v353_v56 = vld [vmem:[%s1740_s1 + $0x180] sm:$0xff]  ;;  %v354_v57 = vld [vmem:[%s1740_s1 + $0x188] sm:$0xff] }
  0x12   : > { %1136 = vmatpush1.bf16.msra.mxu0 %v1135_v22  ;;  %1045 = vmatprep.mubr.msk.f32.mxu0 %vm366_vm0, %v180_v33  ;;  %v1150_v54 = vpack.c.bf16 %v352_v51, %v351_v50  ;;  %v324_v55 = vld [vmem:[%s1740_s1 + $0x98] sm:$0xff]  ;;  %v325_v59 = vld [vmem:[%s1740_s1 + $0xa0] sm:$0xff]  ;;  %v1153_v60 = vpack.c.bf16 %v354_v57, %v353_v56  ;;  %v326_v61 = vld [vmem:[%s1740_s1 + $0xa8] sm:$0xff] }
  0x13   : > { %1137 = vmatprep.subr.bf16.mxu0 %v1242_v3  ;;  %v1108_v58 = vpack.c.bf16 %v324_v55, %v323_v53  ;;  %v355_v62 = vld [vmem:[%s1740_s1 + $0x190] sm:$0xff]  ;;  %v356_v63 = vld [vmem:[%s1740_s1 + $0x198] sm:$0xff]  ;;  %v1111_v0 = vpack.c.bf16 %v326_v61, %v325_v59  ;;  %v357_v5 = vld [vmem:[%s1740_s1 + $0x1a0] sm:$0xff] }
  0x14   : > { %1091 = vmatpush1.bf16.msra.mxu1 %v1090_v20  ;;  %v327_v1 = vld [vmem:[%s1740_s1 + $0xb0] sm:$0xff]  ;;  %v1156_v2 = vpack.c.bf16 %v356_v63, %v355_v62  ;;  %v328_v4 = vld [vmem:[%s1740_s1 + $0xb8] sm:$0xff]  ;;  %v358_v6 = vld [vmem:[%s1740_s1 + $0x1a8] sm:$0xff] }
  0x15   : > { %1092 = vmatprep.subr.bf16.mxu1 %v1242_v3  ;;  %v1114_v7 = vpack.c.bf16 %v328_v4, %v327_v1  ;;  %v1159_v8 = vpack.c.bf16 %v358_v6, %v357_v5  ;;  %v329_v9 = vld [vmem:[%s1740_s1 + $0xc0] sm:$0xff]  ;;  %v330_v10 = vld [vmem:[%s1740_s1 + $0xc8] sm:$0xff]  ;;  %v179_v12 = vld [vmem:[%s1342_s4 + $0x10] sm:$0xff] }
  0x16   : > { %1139 = vmatpush1.bf16.msra.mxu0 %v1138_v28  ;;  %v1117_v11 = vpack.c.bf16 %v330_v10, %v329_v9  ;;  %v331_v13 = vld [vmem:[%s1740_s1 + $0xd0] sm:$0xff]  ;;  %v332_v14 = vld [vmem:[%s1740_s1 + $0xd8] sm:$0xff]  ;;  %v333_v18 = vld [vmem:[%s1740_s1 + $0xe0] sm:$0xff] }
  0x17   : > { %1140 = vmatprep.subr.bf16.mxu0 %v1242_v3  ;;  %v184_v15 = vld [vmem:[%s1342_s4 + $0x38] sm:$0xff]  ;;  %v1120_v16 = vpack.c.bf16 %v332_v14, %v331_v13  ;;  %v183_v17 = vld [vmem:[%s1342_s4 + $0x30] sm:$0xff]  ;;  %v334_v19 = vld [vmem:[%s1740_s1 + $0xe8] sm:$0xff] }
  0x18   : > { %1094 = vmatpush1.bf16.msra.mxu1 %v1093_v26  ;;  %v188_v20 = vld [vmem:[%s1342_s4 + $0x58] sm:$0xff]  ;;  %v1123_v21 = vpack.c.bf16 %v334_v19, %v333_v18  ;;  %v187_v22 = vld [vmem:[%s1342_s4 + $0x50] sm:$0xff]  ;;  %v177_v29 = vld [vmem:[%s1342_s4] sm:$0xff] }
  0x19   : > { %1095 = vmatprep.subr.bf16.mxu1 %v1242_v3  ;;  %v335_v23 = vld [vmem:[%s1740_s1 + $0xf0] sm:$0xff]  ;;  %v336_v24 = vld [vmem:[%s1740_s1 + $0xf8] sm:$0xff]  ;;  %v182_v31 = vld [vmem:[%s1342_s4 + $0x28] sm:$0xff] }
  0x1a   : > { %1142 = vmatpush1.bf16.msra.mxu0 %v1141_v36  ;;  %v192_v25 = vld [vmem:[%s1342_s4 + $0x78] sm:$0xff]  ;;  %v1126_v26 = vpack.c.bf16 %v336_v24, %v335_v23  ;;  %v191_v27 = vld [vmem:[%s1342_s4 + $0x70] sm:$0xff]  ;;  %v181_v33 = vld [vmem:[%s1342_s4 + $0x20] sm:$0xff] }
  0x1b   : > { %1143 = vmatprep.subr.bf16.mxu0 %v1242_v3  ;;  %v196_v28 = vld [vmem:[%s1342_s4 + $0x98] sm:$0xff]  ;;  %v195_v30 = vld [vmem:[%s1342_s4 + $0x90] sm:$0xff]  ;;  %v185_v36 = vld [vmem:[%s1342_s4 + $0x40] sm:$0xff] }
  0x1c   : > { %1097 = vmatpush1.bf16.msra.mxu1 %v1096_v34  ;;  %v200_v32 = vld [vmem:[%s1342_s4 + $0xb8] sm:$0xff]  ;;  %v186_v34 = vld [vmem:[%s1342_s4 + $0x48] sm:$0xff]  ;;  %v203_v37 = vld [vmem:[%s1342_s4 + $0xd0] sm:$0xff] }
  0x1d   : > { %1098 = vmatprep.subr.bf16.mxu1 %v1242_v3  ;;  %v204_v35 = vld [vmem:[%s1342_s4 + $0xd8] sm:$0xff]  ;;  %v190_v38 = vld [vmem:[%s1342_s4 + $0x68] sm:$0xff]  ;;  %v207_v41 = vld [vmem:[%s1342_s4 + $0xf0] sm:$0xff] }
  0x1e   : > { %1145 = vmatpush1.bf16.msra.mxu0 %v1144_v42  ;;  %v208_v39 = vld [vmem:[%s1342_s4 + $0xf8] sm:$0xff]  ;;  %v194_v42 = vld [vmem:[%s1342_s4 + $0x88] sm:$0xff]  ;;  %v193_v44 = vld [vmem:[%s1342_s4 + $0x80] sm:$0xff] }
  0x1f   : > { %1146 = vmatprep.subr.bf16.mxu0 %v1242_v3  ;;  %v212_v43 = vld [vmem:[%s1342_s4 + $0x118] sm:$0xff]  ;;  %v211_v45 = vld [vmem:[%s1342_s4 + $0x110] sm:$0xff]  ;;  %v202_v50 = vld [vmem:[%s1342_s4 + $0xc8] sm:$0xff] }
  0x20   : > { %1100 = vmatpush1.bf16.msra.mxu1 %v1099_v40  ;;  %v189_v40 = vld [vmem:[%s1342_s4 + $0x60] sm:$0xff]  ;;  %v216_v47 = vld [vmem:[%s1342_s4 + $0x138] sm:$0xff]  ;;  %v215_v49 = vld [vmem:[%s1342_s4 + $0x130] sm:$0xff] }
  0x21   : > { %1101 = vmatprep.subr.bf16.mxu1 %v1242_v3  ;;  %v220_v51 = vld [vmem:[%s1342_s4 + $0x158] sm:$0xff]  ;;  %v219_v53 = vld [vmem:[%s1342_s4 + $0x150] sm:$0xff]  ;;  %v205_v56 = vld [vmem:[%s1342_s4 + $0xe0] sm:$0xff] }
  0x22   : > { %1148 = vmatpush1.bf16.msra.mxu0 %v1147_v48  ;;  %v197_v48 = vld [vmem:[%s1342_s4 + $0xa0] sm:$0xff]  ;;  %v224_v55 = vld [vmem:[%s1342_s4 + $0x178] sm:$0xff]  ;;  %v223_v57 = vld [vmem:[%s1342_s4 + $0x170] sm:$0xff] }
  0x23   : > { %1149 = vmatprep.subr.bf16.mxu0 %v1242_v3  ;;  %v228_v59 = vld [vmem:[%s1342_s4 + $0x198] sm:$0xff]  ;;  %v227_v61 = vld [vmem:[%s1342_s4 + $0x190] sm:$0xff]  ;;  %v214_v62 = vld [vmem:[%s1342_s4 + $0x128] sm:$0xff] }
  0x24   : > { %1103 = vmatpush1.bf16.msra.mxu1 %v1102_v46  ;;  %v198_v46 = vld [vmem:[%s1342_s4 + $0xa8] sm:$0xff]  ;;  %v232_v63 = vld [vmem:[%s1342_s4 + $0x1b8] sm:$0xff]  ;;  %v231_v1 = vld [vmem:[%s1342_s4 + $0x1b0] sm:$0xff] }
  0x25   : > { %1104 = vmatprep.subr.bf16.mxu1 %v1242_v3  ;;  %v236_v4 = vld [vmem:[%s1342_s4 + $0x1d8] sm:$0xff]  ;;  %v217_v5 = vld [vmem:[%s1342_s4 + $0x140] sm:$0xff]  ;;  %v235_v6 = vld [vmem:[%s1342_s4 + $0x1d0] sm:$0xff] }
  0x26   : > { %1151 = vmatpush1.bf16.msra.mxu0 %v1150_v54  ;;  %v206_v54 = vld [vmem:[%s1342_s4 + $0xe8] sm:$0xff]  ;;  %v221_v9 = vld [vmem:[%s1342_s4 + $0x160] sm:$0xff]  ;;  %v239_v10 = vld [vmem:[%s1342_s4 + $0x1f0] sm:$0xff] }
  0x27   : > { %1152 = vmatprep.subr.bf16.mxu0 %v1242_v3  ;;  %v225_v13 = vld [vmem:[%s1342_s4 + $0x180] sm:$0xff]  ;;  %v243_v14 = vld [vmem:[%s1342_s4 + $0x210] sm:$0xff]  ;;  %v234_v19 = vld [vmem:[%s1342_s4 + $0x1c8] sm:$0xff] }
  0x28   : > { %1106 = vmatpush1.bf16.msra.mxu1 %v1105_v52  ;;  %v201_v52 = vld [vmem:[%s1342_s4 + $0xc0] sm:$0xff]  ;;  %v247_v18 = vld [vmem:[%s1342_s4 + $0x230] sm:$0xff]  ;;  %v238_v23 = vld [vmem:[%s1342_s4 + $0x1e8] sm:$0xff] }
  0x29   : > { %1107 = vmatprep.subr.bf16.mxu1 %v1242_v3  ;;  %v256_v24 = vld [vmem:[%s1342_s4 + $0x278] sm:$0xff] }
  0x2a   : > { %1154 = vmatpush1.bf16.msra.mxu0 %v1153_v60  ;;  %v209_v60 = vld [vmem:[%s1342_s4 + $0x100] sm:$0xff] }
  0x2b   : > { %1155 = vmatprep.subr.bf16.mxu0 %v1242_v3 }
  0x2c   : > { %1109 = vmatpush1.bf16.msra.mxu1 %v1108_v58  ;;  %v210_v58 = vld [vmem:[%s1342_s4 + $0x108] sm:$0xff] }
  0x2d   : > { %1110 = vmatprep.subr.bf16.mxu1 %v1242_v3 }
  0x2e   : > { %1157 = vmatpush1.bf16.msra.mxu0 %v1156_v2  ;;  %v218_v2 = vld [vmem:[%s1342_s4 + $0x148] sm:$0xff] }
  0x2f   : > { %1158 = vmatprep.subr.bf16.mxu0 %v1242_v3 }
  0x30   : > { %1112 = vmatpush1.bf16.msra.mxu1 %v1111_v0  ;;  %v213_v0 = vld [vmem:[%s1342_s4 + $0x120] sm:$0xff] }
  0x31   : > { %1113 = vmatprep.subr.bf16.mxu1 %v1242_v3 }
  0x32   : > { %1160 = vmatpush1.bf16.msra.mxu0 %v1159_v8  ;;  %v240_v8 = vld [vmem:[%s1342_s4 + $0x1f8] sm:$0xff] }
  0x34   : > { %1115 = vmatpush1.bf16.msra.mxu1 %v1114_v7  ;;  %v222_v7 = vld [vmem:[%s1342_s4 + $0x168] sm:$0xff] }
  0x35   : > { %1116 = vmatprep.subr.bf16.mxu1 %v1242_v3  ;;  %753 = vmatmul.mubr.f32.vlgmr.msra.gmra.mrb[0].mxu0 %v179_v12  ;;  %v244_v12 = vld [vmem:[%s1342_s4 + $0x218] sm:$0xff] }
  0x36   : > { %1046 = vmatprep.mubr.msk.f32.mxu0 %vm366_vm0, %v184_v15  ;;  %v230_v15 = vld [vmem:[%s1342_s4 + $0x1a8] sm:$0xff] }
  0x38   : > { %1118 = vmatpush1.bf16.msra.mxu1 %v1117_v11  ;;  %v226_v11 = vld [vmem:[%s1342_s4 + $0x188] sm:$0xff] }
  0x39   : > { %1119 = vmatprep.subr.bf16.mxu1 %v1242_v3  ;;  %758 = vmatmul.mubr.f32.gmra.mrb[2].mxu0 %v183_v17  ;;  %v229_v17 = vld [vmem:[%s1342_s4 + $0x1a0] sm:$0xff] }
  0x3a   : > { %1047 = vmatprep.mubr.msk.f32.mxu0 %vm366_vm0, %v188_v20  ;;  %v252_v20 = vld [vmem:[%s1342_s4 + $0x258] sm:$0xff] }
  0x3c   : > { %1121 = vmatpush1.bf16.msra.mxu1 %v1120_v16  ;;  %v248_v16 = vld [vmem:[%s1342_s4 + $0x238] sm:$0xff] }
  0x3d   : > { %1122 = vmatprep.subr.bf16.mxu1 %v1242_v3  ;;  %763 = vmatmul.mubr.f32.gmra.mrb[4].mxu0 %v187_v22  ;;  %v251_v22 = vld [vmem:[%s1342_s4 + $0x250] sm:$0xff] }
  0x3e   : > { %1048 = vmatprep.mubr.msk.f32.mxu0 %vm366_vm0, %v192_v25  ;;  %v237_v25 = vld [vmem:[%s1342_s4 + $0x1e0] sm:$0xff] }
  0x40   : > { %1124 = vmatpush1.bf16.msra.mxu1 %v1123_v21  ;;  %v233_v21 = vld [vmem:[%s1342_s4 + $0x1c0] sm:$0xff] }
  0x41   : > { %1125 = vmatprep.subr.bf16.mxu1 %v1242_v3  ;;  %768 = vmatmul.mubr.f32.gmra.mrb[6].mxu0 %v191_v27  ;;  %v199_v3 = vld [vmem:[%s1342_s4 + $0xb0] sm:$0xff]  ;;  %v242_v27 = vld [vmem:[%s1342_s4 + $0x208] sm:$0xff] }
  0x42   : > { %1049 = vmatprep.mubr.msk.f32.mxu0 %vm366_vm0, %v196_v28  ;;  %v260_v28 = vld [vmem:[%s1342_s4 + $0x298] sm:$0xff] }
  0x44   : > { %1127 = vmatpush1.bf16.msra.mxu1 %v1126_v26  ;;  %v255_v26 = vld [vmem:[%s1342_s4 + $0x270] sm:$0xff] }
  0x45   : > { %773 = vmatmul.mubr.f32.gmra.mrb[8].mxu0 %v195_v30  ;;  %v259_v30 = vld [vmem:[%s1342_s4 + $0x290] sm:$0xff] }
  0x46   : > { %1050 = vmatprep.mubr.msk.f32.mxu0 %vm366_vm0, %v200_v32  ;;  %v264_v32 = vld [vmem:[%s1342_s4 + $0x2b8] sm:$0xff] }
  0x47   : > { %528 = vmatmul.mubr.f32.vlgmr.msra.gmra.mrb[0].mxu1 %v177_v29  ;;  %v241_v29 = vld [vmem:[%s1342_s4 + $0x200] sm:$0xff] }
  0x48   : > { %532 = vmatprep.mubr.f32.mxu1 %v182_v31  ;;  %v246_v31 = vld [vmem:[%s1342_s4 + $0x228] sm:$0xff] }
  0x49   : > { %778 = vmatmul.mubr.f32.gmra.mrb[10].mxu0 %v199_v3  ;;  %v263_v3 = vld [vmem:[%s1342_s4 + $0x2b0] sm:$0xff] }
  0x4a   : > { %1051 = vmatprep.mubr.msk.f32.mxu0 %vm366_vm0, %v204_v35  ;;  %v268_v35 = vld [vmem:[%s1342_s4 + $0x2d8] sm:$0xff] }
  0x4b   : > { %533 = vmatmul.mubr.f32.gmra.mrb[2].mxu1 %v181_v33  ;;  %v245_v33 = vld [vmem:[%s1342_s4 + $0x220] sm:$0xff] }
  0x4c   : > { %537 = vmatprep.mubr.f32.mxu1 %v186_v34  ;;  %v250_v34 = vld [vmem:[%s1342_s4 + $0x248] sm:$0xff] }
  0x4d   : > { %783 = vmatmul.mubr.f32.gmra.mrb[12].mxu0 %v203_v37  ;;  %v267_v37 = vld [vmem:[%s1342_s4 + $0x2d0] sm:$0xff] }
  0x4e   : > { %1052 = vmatprep.mubr.msk.f32.mxu0 %vm366_vm0, %v208_v39  ;;  %v272_v39 = vld [vmem:[%s1342_s4 + $0x2f8] sm:$0xff] }
  0x4f   : > { %538 = vmatmul.mubr.f32.gmra.mrb[4].mxu1 %v185_v36  ;;  %v249_v36 = vld [vmem:[%s1342_s4 + $0x240] sm:$0xff] }
  0x50   : > { %542 = vmatprep.mubr.f32.mxu1 %v190_v38  ;;  %v254_v38 = vld [vmem:[%s1342_s4 + $0x268] sm:$0xff] }
  0x51   : > { %788 = vmatmul.mubr.f32.gmra.mrb[14].mxu0 %v207_v41  ;;  %v271_v41 = vld [vmem:[%s1342_s4 + $0x2f0] sm:$0xff] }
  0x52   : > { %1053 = vmatprep.mubr.msk.f32.mxu0 %vm366_vm0, %v212_v43  ;;  %v276_v43 = vld [vmem:[%s1342_s4 + $0x318] sm:$0xff] }
  0x53   : > { %543 = vmatmul.mubr.f32.gmra.mrb[6].mxu1 %v189_v40  ;;  %v253_v40 = vld [vmem:[%s1342_s4 + $0x260] sm:$0xff] }
  0x54   : > { %547 = vmatprep.mubr.f32.mxu1 %v194_v42  ;;  %v258_v42 = vld [vmem:[%s1342_s4 + $0x288] sm:$0xff] }
  0x55   : > { %793 = vmatmul.mubr.f32.gmra.mrb[16].mxu0 %v211_v45  ;;  %v275_v45 = vld [vmem:[%s1342_s4 + $0x310] sm:$0xff] }
  0x56   : > { %1054 = vmatprep.mubr.msk.f32.mxu0 %vm366_vm0, %v216_v47  ;;  %v280_v47 = vld [vmem:[%s1342_s4 + $0x338] sm:$0xff] }
  0x57   : > { %548 = vmatmul.mubr.f32.gmra.mrb[8].mxu1 %v193_v44  ;;  %v257_v44 = vld [vmem:[%s1342_s4 + $0x280] sm:$0xff] }
  0x58   : > { %552 = vmatprep.mubr.f32.mxu1 %v198_v46  ;;  %v262_v46 = vld [vmem:[%s1342_s4 + $0x2a8] sm:$0xff] }
  0x59   : > { %798 = vmatmul.mubr.f32.gmra.mrb[18].mxu0 %v215_v49  ;;  %v279_v49 = vld [vmem:[%s1342_s4 + $0x330] sm:$0xff] }
  0x5a   : > { %1055 = vmatprep.mubr.msk.f32.mxu0 %vm366_vm0, %v220_v51  ;;  %v284_v51 = vld [vmem:[%s1342_s4 + $0x358] sm:$0xff] }
  0x5b   : > { %553 = vmatmul.mubr.f32.gmra.mrb[10].mxu1 %v197_v48  ;;  %v261_v48 = vld [vmem:[%s1342_s4 + $0x2a0] sm:$0xff] }
  0x5c   : > { %557 = vmatprep.mubr.f32.mxu1 %v202_v50  ;;  %v266_v50 = vld [vmem:[%s1342_s4 + $0x2c8] sm:$0xff] }
  0x5d   : > { %803 = vmatmul.mubr.f32.gmra.mrb[20].mxu0 %v219_v53  ;;  %v283_v53 = vld [vmem:[%s1342_s4 + $0x350] sm:$0xff] }
  0x5e   : > { %1056 = vmatprep.mubr.msk.f32.mxu0 %vm366_vm0, %v224_v55  ;;  %v288_v55 = vld [vmem:[%s1342_s4 + $0x378] sm:$0xff] }
  0x5f   : > { %558 = vmatmul.mubr.f32.gmra.mrb[12].mxu1 %v201_v52  ;;  %v265_v52 = vld [vmem:[%s1342_s4 + $0x2c0] sm:$0xff] }
  0x60   : > { %562 = vmatprep.mubr.f32.mxu1 %v206_v54  ;;  %v270_v54 = vld [vmem:[%s1342_s4 + $0x2e8] sm:$0xff] }
  0x61   : > { %808 = vmatmul.mubr.f32.gmra.mrb[22].mxu0 %v223_v57  ;;  %v287_v57 = vld [vmem:[%s1342_s4 + $0x370] sm:$0xff] }
  0x62   : > { %1057 = vmatprep.mubr.msk.f32.mxu0 %vm366_vm0, %v228_v59  ;;  %v292_v59 = vld [vmem:[%s1342_s4 + $0x398] sm:$0xff] }
  0x63   : > { %563 = vmatmul.mubr.f32.gmra.mrb[14].mxu1 %v205_v56  ;;  %v269_v56 = vld [vmem:[%s1342_s4 + $0x2e0] sm:$0xff] }
  0x64   : > { %567 = vmatprep.mubr.f32.mxu1 %v210_v58  ;;  %v274_v58 = vld [vmem:[%s1342_s4 + $0x308] sm:$0xff] }
  0x65   : > { %813 = vmatmul.mubr.f32.gmra.mrb[24].mxu0 %v227_v61  ;;  %v291_v61 = vld [vmem:[%s1342_s4 + $0x390] sm:$0xff] }
  0x66   : > { %1058 = vmatprep.mubr.msk.f32.mxu0 %vm366_vm0, %v232_v63  ;;  %v296_v63 = vld [vmem:[%s1342_s4 + $0x3b8] sm:$0xff] }
  0x67   : > { %568 = vmatmul.mubr.f32.gmra.mrb[16].mxu1 %v209_v60  ;;  %v273_v60 = vld [vmem:[%s1342_s4 + $0x300] sm:$0xff] }
  0x68   : > { %572 = vmatprep.mubr.f32.mxu1 %v214_v62  ;;  %v278_v62 = vld [vmem:[%s1342_s4 + $0x328] sm:$0xff] }
  0x69   : > { %818 = vmatmul.mubr.f32.gmra.mrb[26].mxu0 %v231_v1  ;;  %v295_v1 = vld [vmem:[%s1342_s4 + $0x3b0] sm:$0xff] }
  0x6a   : > { %1059 = vmatprep.mubr.msk.f32.mxu0 %vm366_vm0, %v236_v4  ;;  %v300_v4 = vld [vmem:[%s1342_s4 + $0x3d8] sm:$0xff] }
  0x6b   : > { %573 = vmatmul.mubr.f32.gmra.mrb[18].mxu1 %v213_v0  ;;  %v277_v0 = vld [vmem:[%s1342_s4 + $0x320] sm:$0xff] }
  0x6c   : > { %577 = vmatprep.mubr.f32.mxu1 %v218_v2  ;;  %v282_v2 = vld [vmem:[%s1342_s4 + $0x348] sm:$0xff] }
  0x6d   : > { %823 = vmatmul.mubr.f32.gmra.mrb[28].mxu0 %v235_v6  ;;  %v299_v6 = vld [vmem:[%s1342_s4 + $0x3d0] sm:$0xff] }
  0x6e   : > { %1060 = vmatprep.mubr.msk.f32.mxu0 %vm366_vm0, %v240_v8  ;;  %v304_v8 = vld [vmem:[%s1342_s4 + $0x3f8] sm:$0xff] }
  0x6f   : > { %578 = vmatmul.mubr.f32.gmra.mrb[20].mxu1 %v217_v5  ;;  %v281_v5 = vld [vmem:[%s1342_s4 + $0x340] sm:$0xff] }
  0x70   : > { %582 = vmatprep.mubr.f32.mxu1 %v222_v7  ;;  %v286_v7 = vld [vmem:[%s1342_s4 + $0x368] sm:$0xff] }
  0x71   : > { %828 = vmatmul.mubr.f32.gmra.mrb[30].mxu0 %v239_v10  ;;  %v303_v10 = vld [vmem:[%s1342_s4 + $0x3f0] sm:$0xff] }
  0x72   : > { %1061 = vmatprep.mubr.msk.f32.mxu0 %vm366_vm0, %v244_v12  ;;  %v289_v12 = vld [vmem:[%s1342_s4 + $0x380] sm:$0xff] }
  0x73   : > { %583 = vmatmul.mubr.f32.gmra.mrb[22].mxu1 %v221_v9  ;;  %v285_v9 = vld [vmem:[%s1342_s4 + $0x360] sm:$0xff] }
  0x74   : > { %587 = vmatprep.mubr.f32.mxu1 %v226_v11  ;;  %v290_v11 = vld [vmem:[%s1342_s4 + $0x388] sm:$0xff] }
  0x75   : > { %833 = vmatmul.mubr.f32.gmra.mrb[32].mxu0 %v243_v14  ;;  %v293_v14 = vld [vmem:[%s1342_s4 + $0x3a0] sm:$0xff] }
  0x76   : > { %1062 = vmatprep.mubr.msk.f32.mxu0 %vm366_vm0, %v248_v16  ;;  %v297_v16 = vld [vmem:[%s1342_s4 + $0x3c0] sm:$0xff] }
  0x77   : > { %588 = vmatmul.mubr.f32.gmra.mrb[24].mxu1 %v225_v13  ;;  %v294_v13 = vld [vmem:[%s1342_s4 + $0x3a8] sm:$0xff] }
  0x78   : > { %592 = vmatprep.mubr.f32.mxu1 %v230_v15  ;;  %v298_v15 = vld [vmem:[%s1342_s4 + $0x3c8] sm:$0xff] }
  0x79   : > { %838 = vmatmul.mubr.f32.gmra.mrb[34].mxu0 %v247_v18  ;;  %v301_v18 = vld [vmem:[%s1342_s4 + $0x3e0] sm:$0xff] }
  0x7a   : > { %1063 = vmatprep.mubr.msk.f32.mxu0 %vm366_vm0, %v252_v20 }
  0x7b   : > { %593 = vmatmul.mubr.f32.gmra.mrb[26].mxu1 %v229_v17  ;;  %v302_v17 = vld [vmem:[%s1342_s4 + $0x3e8] sm:$0xff]  ;;  %s1043_s4 = sshll.u32 %s1744_s22, 3 }
  0x7c   : > { %597 = vmatprep.mubr.f32.mxu1 %v234_v19  ;;  %s1639_s7 = scalar_lea.vmem %s1742_s3, %s1043_s4 }
  0x7d   : > { %843 = vmatmul.mubr.f32.gmra.mrb[36].mxu0 %v251_v22 }
  0x7e   : > { %1064 = vmatprep.mubr.msk.f32.mxu0 %vm366_vm0, %v256_v24 }
  0x7f   : > { %598 = vmatmul.mubr.f32.gmra.mrb[28].mxu1 %v233_v21 }
  0x80   : > { %602 = vmatprep.mubr.f32.mxu1 %v238_v23 }
  0x81   : > { %848 = vmatmul.mubr.f32.gmra.mrb[38].mxu0 %v255_v26 }
  0x82   : > { %1065 = vmatprep.mubr.msk.f32.mxu0 %vm366_vm0, %v260_v28 }
  0x83   : > { %603 = vmatmul.mubr.f32.gmra.mrb[30].mxu1 %v237_v25 }
  0x84   : > { %607 = vmatprep.mubr.f32.mxu1 %v242_v27  ;;  %v1632_v27 = vld [vmem:[%s1741_s2] ss:$0 sm:$0xff] }
  0x85   : > { %853 = vmatmul.mubr.f32.gmra.mrb[40].mxu0 %v259_v30 }
  0x86   : > { %1066 = vmatprep.mubr.msk.f32.mxu0 %vm366_vm0, %v264_v32 }
  0x87   : > { %608 = vmatmul.mubr.f32.gmra.mrb[32].mxu1 %v241_v29 }
  0x88   : > { %612 = vmatprep.mubr.f32.mxu1 %v246_v31 }
  0x89   : > { %858 = vmatmul.mubr.f32.gmra.mrb[42].mxu0 %v263_v3 }
  0x8a   : > { %1067 = vmatprep.mubr.msk.f32.mxu0 %vm366_vm0, %v268_v35 }
  0x8b   : > { %613 = vmatmul.mubr.f32.gmra.mrb[34].mxu1 %v245_v33 }
  0x8c   : > { %617 = vmatprep.mubr.f32.mxu1 %v250_v34 }
  0x8d   : > { %863 = vmatmul.mubr.f32.gmra.mrb[44].mxu0 %v267_v37 }
  0x8e   : > { %1068 = vmatprep.mubr.msk.f32.mxu0 %vm366_vm0, %v272_v39 }
  0x8f   : > { %618 = vmatmul.mubr.f32.gmra.mrb[36].mxu1 %v249_v36 }
  0x90   : > { %622 = vmatprep.mubr.f32.mxu1 %v254_v38 }
  0x91   : > { %868 = vmatmul.mubr.f32.gmra.mrb[46].mxu0 %v271_v41 }
  0x92   : > { %1069 = vmatprep.mubr.msk.f32.mxu0 %vm366_vm0, %v276_v43 }
  0x93   : > { %623 = vmatmul.mubr.f32.gmra.mrb[38].mxu1 %v253_v40 }
  0x94   : > { %627 = vmatprep.mubr.f32.mxu1 %v258_v42 }
  0x95   : > { %873 = vmatmul.mubr.f32.gmra.mrb[48].mxu0 %v275_v45 }
  0x96   : > { %1070 = vmatprep.mubr.msk.f32.mxu0 %vm366_vm0, %v280_v47 }
  0x97   : > { %628 = vmatmul.mubr.f32.gmra.mrb[40].mxu1 %v257_v44 }
  0x98   : > { %632 = vmatprep.mubr.f32.mxu1 %v262_v46 }
  0x99   : > { %878 = vmatmul.mubr.f32.gmra.mrb[50].mxu0 %v279_v49 }
  0x9a   : > { %1071 = vmatprep.mubr.msk.f32.mxu0 %vm366_vm0, %v284_v51 }
  0x9b   : > { %633 = vmatmul.mubr.f32.gmra.mrb[42].mxu1 %v261_v48 }
  0x9c   : > { %637 = vmatprep.mubr.f32.mxu1 %v266_v50 }
  0x9d   : > { %883 = vmatmul.mubr.f32.gmra.mrb[52].mxu0 %v283_v53 }
  0x9e   : > { %1072 = vmatprep.mubr.msk.f32.mxu0 %vm366_vm0, %v288_v55 }
  0x9f   : > { %638 = vmatmul.mubr.f32.gmra.mrb[44].mxu1 %v265_v52 }
  0xa0   : > { %642 = vmatprep.mubr.f32.mxu1 %v270_v54 }
  0xa1   : > { %888 = vmatmul.mubr.f32.gmra.mrb[54].mxu0 %v287_v57 }
  0xa2   : > { %1073 = vmatprep.mubr.msk.f32.mxu0 %vm366_vm0, %v292_v59 }
  0xa3   : > { %643 = vmatmul.mubr.f32.gmra.mrb[46].mxu1 %v269_v56 }
  0xa4   : > { %647 = vmatprep.mubr.f32.mxu1 %v274_v58 }
  0xa5   : > { %893 = vmatmul.mubr.f32.gmra.mrb[56].mxu0 %v291_v61 }
  0xa6   : > { %1074 = vmatprep.mubr.msk.f32.mxu0 %vm366_vm0, %v296_v63 }
  0xa7   : > { %648 = vmatmul.mubr.f32.gmra.mrb[48].mxu1 %v273_v60 }
  0xa8   : > { %652 = vmatprep.mubr.f32.mxu1 %v278_v62 }
  0xa9   : > { %898 = vmatmul.mubr.f32.gmra.mrb[58].mxu0 %v295_v1 }
  0xaa   : > { %1075 = vmatprep.mubr.msk.f32.mxu0 %vm366_vm0, %v300_v4 }
  0xab   : > { %653 = vmatmul.mubr.f32.gmra.mrb[50].mxu1 %v277_v0 }
  0xac   : > { %657 = vmatprep.mubr.f32.mxu1 %v282_v2 }
  0xad   : > { %903 = vmatmul.mubr.f32.gmra.mrb[60].mxu0 %v299_v6 }
  0xae   : > { %1076 = vmatprep.mubr.msk.f32.mxu0 %vm366_vm0, %v304_v8 }
  0xaf   : > { %658 = vmatmul.mubr.f32.gmra.mrb[52].mxu1 %v281_v5 }
  0xb0   : > { %662 = vmatprep.mubr.f32.mxu1 %v286_v7 }
  0xb1   : > { %908 = vmatmul.mubr.f32.gmra.mrb[62].mxu0 %v303_v10 }
  0xb3   : > { %663 = vmatmul.mubr.f32.gmra.mrb[54].mxu1 %v285_v9 }
  0xb4   : > { %667 = vmatprep.mubr.f32.mxu1 %v290_v11 }
  0xb7   : > { %668 = vmatmul.mubr.f32.gmra.mrb[56].mxu1 %v289_v12 }
  0xb8   : > { %672 = vmatprep.mubr.f32.mxu1 %v294_v13 }
  0xbb   : > { %673 = vmatmul.mubr.f32.gmra.mrb[58].mxu1 %v293_v14 }
  0xbc   : > { %677 = vmatprep.mubr.f32.mxu1 %v298_v15 }
  0xbf   : > { %678 = vmatmul.mubr.f32.gmra.mrb[60].mxu1 %v297_v16 }
  0xc0   : > { %682 = vmatprep.mubr.f32.mxu1 %v302_v17 }
  0xc3   : > { %683 = vmatmul.mubr.f32.gmra.mrb[62].mxu1 %v301_v18 }
 0x108   : > { %v754_v19 = vpop.f32.mrb[0].mxu0 }
 0x109   : > { %v756_v20 = vpop.f32.mrb[1].mxu0 }
 0x10c   : > { %v759_v21 = vpop.f32.mrb[2].mxu0 }
 0x10d   : > { %v761_v22 = vpop.f32.mrb[3].mxu0 }
 0x110   : > { %v764_v23 = vpop.f32.mrb[4].mxu0 }
 0x111   : > { %v766_v24 = vpop.f32.mrb[5].mxu0 }
 0x114   : > { %v769_v25 = vpop.f32.mrb[6].mxu0 }
 0x115   : > { %v771_v26 = vpop.f32.mrb[7].mxu0 }
 0x118   : > { %v774_v29 = vpop.f32.mrb[8].mxu0 }
 0x119   : > { %v776_v32 = vpop.f32.mrb[9].mxu0 }
 0x11a   : > { %v529_v28 = vpop.f32.mrb[0].mxu1 }
 0x11b   : > { %v530_v30 = vadd.f32 %v1632_v27, %v529_v28  ;;  %v531_v31 = vpop.f32.mrb[1].mxu1 }
 0x11c   : > { %v779_v34 = vpop.f32.mrb[10].mxu0 }
 0x11d   : > { %v755_v33 = vadd.f32 %v754_v19, %v530_v30  ;;  %v781_v38 = vpop.f32.mrb[11].mxu0 }
 0x11e   : > { %v534_v3 = vpop.f32.mrb[2].mxu1 }
 0x11f   : > { %v913_v35 = vmax.f32 %v755_v33, 0.0  ;;  %v535_v36 = vadd.f32 %v1632_v27, %v534_v3  ;;  %v536_v37 = vpop.f32.mrb[3].mxu1 }
 0x120   : > { %v784_v41 = vpop.f32.mrb[12].mxu0 }
 0x121   : > { %946 = vst.msk [vmem:[%s1639_s7] sm:$0xff] %vm945_vm1, %v913_v35  ;;  %v760_v39 = vadd.f32 %v759_v21, %v535_v36  ;;  %v786_v45 = vpop.f32.mrb[13].mxu0 }
 0x122   : > { %v539_v40 = vpop.f32.mrb[4].mxu1 }
 0x123   : > { %v914_v42 = vmax.f32 %v760_v39, 0.0  ;;  %v540_v43 = vadd.f32 %v1632_v27, %v539_v40  ;;  %v541_v44 = vpop.f32.mrb[5].mxu1 }
 0x124   : > { %v789_v48 = vpop.f32.mrb[14].mxu0 }
 0x125   : > { %947 = vst.msk [vmem:[%s1639_s7 + $0x8] sm:$0xff] %vm945_vm1, %v914_v42  ;;  %v765_v46 = vadd.f32 %v764_v23, %v540_v43  ;;  %v791_v52 = vpop.f32.mrb[15].mxu0 }
 0x126   : > { %v544_v47 = vpop.f32.mrb[6].mxu1 }
 0x127   : > { %v915_v49 = vmax.f32 %v765_v46, 0.0  ;;  %v545_v50 = vadd.f32 %v1632_v27, %v544_v47  ;;  %v546_v51 = vpop.f32.mrb[7].mxu1 }
 0x128   : > { %v794_v55 = vpop.f32.mrb[16].mxu0 }
 0x129   : > { %948 = vst.msk [vmem:[%s1639_s7 + $0x10] sm:$0xff] %vm945_vm1, %v915_v49  ;;  %v770_v53 = vadd.f32 %v769_v25, %v545_v50  ;;  %v796_v59 = vpop.f32.mrb[17].mxu0 }
 0x12a   : > { %v549_v54 = vpop.f32.mrb[8].mxu1 }
 0x12b   : > { %v916_v56 = vmax.f32 %v770_v53, 0.0  ;;  %v550_v57 = vadd.f32 %v1632_v27, %v549_v54  ;;  %v551_v58 = vpop.f32.mrb[9].mxu1 }
 0x12c   : > { %v799_v62 = vpop.f32.mrb[18].mxu0 }
 0x12d   : > { %949 = vst.msk [vmem:[%s1639_s7 + $0x18] sm:$0xff] %vm945_vm1, %v916_v56  ;;  %v775_v60 = vadd.f32 %v774_v29, %v550_v57  ;;  %v801_v2 = vpop.f32.mrb[19].mxu0 }
 0x12e   : > { %v554_v61 = vpop.f32.mrb[10].mxu1 }
 0x12f   : > { %v917_v63 = vmax.f32 %v775_v60, 0.0  ;;  %v555_v0 = vadd.f32 %v1632_v27, %v554_v61  ;;  %v556_v1 = vpop.f32.mrb[11].mxu1 }
 0x130   : > { %v804_v6 = vpop.f32.mrb[20].mxu0 }
 0x131   : > { %950 = vst.msk [vmem:[%s1639_s7 + $0x20] sm:$0xff] %vm945_vm1, %v917_v63  ;;  %v780_v4 = vadd.f32 %v779_v34, %v555_v0  ;;  %v806_v10 = vpop.f32.mrb[21].mxu0 }
 0x132   : > { %v559_v5 = vpop.f32.mrb[12].mxu1 }
 0x133   : > { %v918_v7 = vmax.f32 %v780_v4, 0.0  ;;  %v560_v8 = vadd.f32 %v1632_v27, %v559_v5  ;;  %v561_v9 = vpop.f32.mrb[13].mxu1 }
 0x134   : > { %v809_v13 = vpop.f32.mrb[22].mxu0 }
 0x135   : > { %951 = vst.msk [vmem:[%s1639_s7 + $0x28] sm:$0xff] %vm945_vm1, %v918_v7  ;;  %v785_v11 = vadd.f32 %v784_v41, %v560_v8  ;;  %v811_v17 = vpop.f32.mrb[23].mxu0 }
 0x136   : > { %v564_v12 = vpop.f32.mrb[14].mxu1 }
 0x137   : > { %v919_v14 = vmax.f32 %v785_v11, 0.0  ;;  %v565_v15 = vadd.f32 %v1632_v27, %v564_v12  ;;  %v566_v16 = vpop.f32.mrb[15].mxu1 }
 0x138   : > { %v814_v20 = vpop.f32.mrb[24].mxu0 }
 0x139   : > { %952 = vst.msk [vmem:[%s1639_s7 + $0x30] sm:$0xff] %vm945_vm1, %v919_v14  ;;  %v790_v18 = vadd.f32 %v789_v48, %v565_v15  ;;  %v816_v24 = vpop.f32.mrb[25].mxu0 }
 0x13a   : > { %v569_v19 = vpop.f32.mrb[16].mxu1 }
 0x13b   : > { %v920_v21 = vmax.f32 %v790_v18, 0.0  ;;  %v570_v22 = vadd.f32 %v1632_v27, %v569_v19  ;;  %v571_v23 = vpop.f32.mrb[17].mxu1 }
 0x13c   : > { %v819_v28 = vpop.f32.mrb[26].mxu0 }
 0x13d   : > { %953 = vst.msk [vmem:[%s1639_s7 + $0x38] sm:$0xff] %vm945_vm1, %v920_v21  ;;  %v795_v25 = vadd.f32 %v794_v55, %v570_v22  ;;  %v821_v32 = vpop.f32.mrb[27].mxu0 }
 0x13e   : > { %v574_v26 = vpop.f32.mrb[18].mxu1 }
 0x13f   : > { %v921_v29 = vmax.f32 %v795_v25, 0.0  ;;  %v575_v30 = vadd.f32 %v1632_v27, %v574_v26  ;;  %v576_v31 = vpop.f32.mrb[19].mxu1 }
 0x140   : > { %v824_v34 = vpop.f32.mrb[28].mxu0 }
 0x141   : > { %954 = vst.msk [vmem:[%s1639_s7 + $0x40] sm:$0xff] %vm945_vm1, %v921_v29  ;;  %v800_v33 = vadd.f32 %v799_v62, %v575_v30  ;;  %v826_v38 = vpop.f32.mrb[29].mxu0 }
 0x142   : > { %v579_v3 = vpop.f32.mrb[20].mxu1 }
 0x143   : > { %v922_v35 = vmax.f32 %v800_v33, 0.0  ;;  %v580_v36 = vadd.f32 %v1632_v27, %v579_v3  ;;  %v581_v37 = vpop.f32.mrb[21].mxu1 }
 0x144   : > { %v829_v41 = vpop.f32.mrb[30].mxu0 }
 0x145   : > { %955 = vst.msk [vmem:[%s1639_s7 + $0x48] sm:$0xff] %vm945_vm1, %v922_v35  ;;  %v805_v39 = vadd.f32 %v804_v6, %v580_v36  ;;  %v831_v45 = vpop.f32.mrb[31].mxu0 }
 0x146   : > { %v584_v40 = vpop.f32.mrb[22].mxu1 }
 0x147   : > { %v923_v42 = vmax.f32 %v805_v39, 0.0  ;;  %v585_v43 = vadd.f32 %v1632_v27, %v584_v40  ;;  %v586_v44 = vpop.f32.mrb[23].mxu1 }
 0x148   : > { %v834_v48 = vpop.f32.mrb[32].mxu0 }
 0x149   : > { %956 = vst.msk [vmem:[%s1639_s7 + $0x50] sm:$0xff] %vm945_vm1, %v923_v42  ;;  %v810_v46 = vadd.f32 %v809_v13, %v585_v43  ;;  %v836_v52 = vpop.f32.mrb[33].mxu0 }
 0x14a   : > { %v589_v47 = vpop.f32.mrb[24].mxu1 }
 0x14b   : > { %v924_v49 = vmax.f32 %v810_v46, 0.0  ;;  %v590_v50 = vadd.f32 %v1632_v27, %v589_v47  ;;  %v591_v51 = vpop.f32.mrb[25].mxu1 }
 0x14c   : > { %v839_v55 = vpop.f32.mrb[34].mxu0 }
 0x14d   : > { %957 = vst.msk [vmem:[%s1639_s7 + $0x58] sm:$0xff] %vm945_vm1, %v924_v49  ;;  %v815_v53 = vadd.f32 %v814_v20, %v590_v50  ;;  %v841_v59 = vpop.f32.mrb[35].mxu0 }
 0x14e   : > { %v594_v54 = vpop.f32.mrb[26].mxu1 }
 0x14f   : > { %v925_v56 = vmax.f32 %v815_v53, 0.0  ;;  %v595_v57 = vadd.f32 %v1632_v27, %v594_v54  ;;  %v596_v58 = vpop.f32.mrb[27].mxu1 }
 0x150   : > { %v844_v62 = vpop.f32.mrb[36].mxu0 }
 0x151   : > { %958 = vst.msk [vmem:[%s1639_s7 + $0x60] sm:$0xff] %vm945_vm1, %v925_v56  ;;  %v820_v60 = vadd.f32 %v819_v28, %v595_v57  ;;  %v846_v2 = vpop.f32.mrb[37].mxu0 }
 0x152   : > { %v599_v61 = vpop.f32.mrb[28].mxu1 }
 0x153   : > { %v926_v63 = vmax.f32 %v820_v60, 0.0  ;;  %v600_v0 = vadd.f32 %v1632_v27, %v599_v61  ;;  %v601_v1 = vpop.f32.mrb[29].mxu1 }
 0x154   : > { %v849_v6 = vpop.f32.mrb[38].mxu0 }
 0x155   : > { %959 = vst.msk [vmem:[%s1639_s7 + $0x68] sm:$0xff] %vm945_vm1, %v926_v63  ;;  %v825_v4 = vadd.f32 %v824_v34, %v600_v0  ;;  %v851_v10 = vpop.f32.mrb[39].mxu0 }
 0x156   : > { %v604_v5 = vpop.f32.mrb[30].mxu1 }
 0x157   : > { %v927_v7 = vmax.f32 %v825_v4, 0.0  ;;  %v605_v8 = vadd.f32 %v1632_v27, %v604_v5  ;;  %v606_v9 = vpop.f32.mrb[31].mxu1 }
 0x158   : > { %v854_v13 = vpop.f32.mrb[40].mxu0 }
 0x159   : > { %960 = vst.msk [vmem:[%s1639_s7 + $0x70] sm:$0xff] %vm945_vm1, %v927_v7  ;;  %v830_v11 = vadd.f32 %v829_v41, %v605_v8  ;;  %v856_v17 = vpop.f32.mrb[41].mxu0 }
 0x15a   : > { %v609_v12 = vpop.f32.mrb[32].mxu1 }
 0x15b   : > { %v928_v14 = vmax.f32 %v830_v11, 0.0  ;;  %v610_v15 = vadd.f32 %v1632_v27, %v609_v12  ;;  %v611_v16 = vpop.f32.mrb[33].mxu1 }
 0x15c   : > { %v859_v20 = vpop.f32.mrb[42].mxu0 }
 0x15d   : > { %961 = vst.msk [vmem:[%s1639_s7 + $0x78] sm:$0xff] %vm945_vm1, %v928_v14  ;;  %v835_v18 = vadd.f32 %v834_v48, %v610_v15  ;;  %v861_v24 = vpop.f32.mrb[43].mxu0 }
 0x15e   : > { %v614_v19 = vpop.f32.mrb[34].mxu1 }
 0x15f   : > { %v929_v21 = vmax.f32 %v835_v18, 0.0  ;;  %v615_v22 = vadd.f32 %v1632_v27, %v614_v19  ;;  %v616_v23 = vpop.f32.mrb[35].mxu1 }
 0x160   : > { %v864_v28 = vpop.f32.mrb[44].mxu0 }
 0x161   : > { %962 = vst.msk [vmem:[%s1639_s7 + $0x80] sm:$0xff] %vm945_vm1, %v929_v21  ;;  %v840_v25 = vadd.f32 %v839_v55, %v615_v22  ;;  %v866_v32 = vpop.f32.mrb[45].mxu0 }
 0x162   : > { %v619_v26 = vpop.f32.mrb[36].mxu1 }
 0x163   : > { %v930_v29 = vmax.f32 %v840_v25, 0.0  ;;  %v620_v30 = vadd.f32 %v1632_v27, %v619_v26  ;;  %v621_v31 = vpop.f32.mrb[37].mxu1 }
 0x164   : > { %v869_v34 = vpop.f32.mrb[46].mxu0 }
 0x165   : > { %963 = vst.msk [vmem:[%s1639_s7 + $0x88] sm:$0xff] %vm945_vm1, %v930_v29  ;;  %v845_v33 = vadd.f32 %v844_v62, %v620_v30  ;;  %v871_v38 = vpop.f32.mrb[47].mxu0 }
 0x166   : > { %v624_v3 = vpop.f32.mrb[38].mxu1 }
 0x167   : > { %v931_v35 = vmax.f32 %v845_v33, 0.0  ;;  %v625_v36 = vadd.f32 %v1632_v27, %v624_v3  ;;  %v626_v37 = vpop.f32.mrb[39].mxu1 }
 0x168   : > { %v874_v41 = vpop.f32.mrb[48].mxu0 }
 0x169   : > { %964 = vst.msk [vmem:[%s1639_s7 + $0x90] sm:$0xff] %vm945_vm1, %v931_v35  ;;  %v850_v39 = vadd.f32 %v849_v6, %v625_v36  ;;  %v876_v45 = vpop.f32.mrb[49].mxu0 }
 0x16a   : > { %v629_v40 = vpop.f32.mrb[40].mxu1 }
 0x16b   : > { %v932_v42 = vmax.f32 %v850_v39, 0.0  ;;  %v630_v43 = vadd.f32 %v1632_v27, %v629_v40  ;;  %v631_v44 = vpop.f32.mrb[41].mxu1 }
 0x16c   : > { %v879_v48 = vpop.f32.mrb[50].mxu0 }
 0x16d   : > { %965 = vst.msk [vmem:[%s1639_s7 + $0x98] sm:$0xff] %vm945_vm1, %v932_v42  ;;  %v855_v46 = vadd.f32 %v854_v13, %v630_v43  ;;  %v881_v52 = vpop.f32.mrb[51].mxu0 }
 0x16e   : > { %v634_v47 = vpop.f32.mrb[42].mxu1 }
 0x16f   : > { %v933_v49 = vmax.f32 %v855_v46, 0.0  ;;  %v635_v50 = vadd.f32 %v1632_v27, %v634_v47  ;;  %v636_v51 = vpop.f32.mrb[43].mxu1 }
 0x170   : > { %v884_v55 = vpop.f32.mrb[52].mxu0 }
 0x171   : > { %966 = vst.msk [vmem:[%s1639_s7 + $0xa0] sm:$0xff] %vm945_vm1, %v933_v49  ;;  %v860_v53 = vadd.f32 %v859_v20, %v635_v50  ;;  %v886_v59 = vpop.f32.mrb[53].mxu0 }
 0x172   : > { %v639_v54 = vpop.f32.mrb[44].mxu1 }
 0x173   : > { %v934_v56 = vmax.f32 %v860_v53, 0.0  ;;  %v640_v57 = vadd.f32 %v1632_v27, %v639_v54  ;;  %v641_v58 = vpop.f32.mrb[45].mxu1 }
 0x174   : > { %v889_v62 = vpop.f32.mrb[54].mxu0 }
 0x175   : > { %967 = vst.msk [vmem:[%s1639_s7 + $0xa8] sm:$0xff] %vm945_vm1, %v934_v56  ;;  %v865_v60 = vadd.f32 %v864_v28, %v640_v57  ;;  %v891_v2 = vpop.f32.mrb[55].mxu0 }
 0x176   : > { %v644_v61 = vpop.f32.mrb[46].mxu1 }
 0x177   : > { %v935_v63 = vmax.f32 %v865_v60, 0.0  ;;  %v645_v0 = vadd.f32 %v1632_v27, %v644_v61  ;;  %v646_v1 = vpop.f32.mrb[47].mxu1 }
 0x178   : > { %v894_v6 = vpop.f32.mrb[56].mxu0 }
 0x179   : > { %968 = vst.msk [vmem:[%s1639_s7 + $0xb0] sm:$0xff] %vm945_vm1, %v935_v63  ;;  %v870_v4 = vadd.f32 %v869_v34, %v645_v0  ;;  %v896_v10 = vpop.f32.mrb[57].mxu0 }
 0x17a   : > { %v649_v5 = vpop.f32.mrb[48].mxu1 }
 0x17b   : > { %v936_v7 = vmax.f32 %v870_v4, 0.0  ;;  %v650_v8 = vadd.f32 %v1632_v27, %v649_v5  ;;  %v651_v9 = vpop.f32.mrb[49].mxu1 }
 0x17c   : > { %v899_v13 = vpop.f32.mrb[58].mxu0 }
 0x17d   : > { %969 = vst.msk [vmem:[%s1639_s7 + $0xb8] sm:$0xff] %vm945_vm1, %v936_v7  ;;  %v875_v11 = vadd.f32 %v874_v41, %v650_v8  ;;  %v901_v17 = vpop.f32.mrb[59].mxu0 }
 0x17e   : > { %v654_v12 = vpop.f32.mrb[50].mxu1 }
 0x17f   : > { %v937_v14 = vmax.f32 %v875_v11, 0.0  ;;  %v655_v15 = vadd.f32 %v1632_v27, %v654_v12  ;;  %v656_v16 = vpop.f32.mrb[51].mxu1 }
 0x180   : > { %v904_v20 = vpop.f32.mrb[60].mxu0 }
 0x181   : > { %970 = vst.msk [vmem:[%s1639_s7 + $0xc0] sm:$0xff] %vm945_vm1, %v937_v14  ;;  %v880_v18 = vadd.f32 %v879_v48, %v655_v15  ;;  %v906_v24 = vpop.f32.mrb[61].mxu0 }
 0x182   : > { %v659_v19 = vpop.f32.mrb[52].mxu1 }
 0x183   : > { %v938_v21 = vmax.f32 %v880_v18, 0.0  ;;  %v660_v22 = vadd.f32 %v1632_v27, %v659_v19  ;;  %v661_v23 = vpop.f32.mrb[53].mxu1 }
 0x184   : > { %v909_v28 = vpop.f32.mrb[62].mxu0 }
 0x185   : > { %971 = vst.msk [vmem:[%s1639_s7 + $0xc8] sm:$0xff] %vm945_vm1, %v938_v21  ;;  %v885_v25 = vadd.f32 %v884_v55, %v660_v22  ;;  %v911_v32 = vpop.f32.mrb[63].mxu0 }
 0x186   : > { %v664_v26 = vpop.f32.mrb[54].mxu1 }
 0x187   : > { %v939_v29 = vmax.f32 %v885_v25, 0.0  ;;  %v665_v30 = vadd.f32 %v1632_v27, %v664_v26  ;;  %v666_v31 = vpop.f32.mrb[55].mxu1 }
 0x189   : > { %972 = vst.msk [vmem:[%s1639_s7 + $0xd0] sm:$0xff] %vm945_vm1, %v939_v29  ;;  %v890_v33 = vadd.f32 %v889_v62, %v665_v30 }
 0x18a   : > { %v669_v3 = vpop.f32.mrb[56].mxu1 }
 0x18b   : > { %v940_v34 = vmax.f32 %v890_v33, 0.0  ;;  %v670_v35 = vadd.f32 %v1632_v27, %v669_v3  ;;  %v671_v36 = vpop.f32.mrb[57].mxu1 }
 0x18d   : > { %973 = vst.msk [vmem:[%s1639_s7 + $0xd8] sm:$0xff] %vm945_vm1, %v940_v34  ;;  %v895_v37 = vadd.f32 %v894_v6, %v670_v35 }
 0x18e   : > { %v674_v38 = vpop.f32.mrb[58].mxu1 }
 0x18f   : > { %v941_v39 = vmax.f32 %v895_v37, 0.0  ;;  %v675_v40 = vadd.f32 %v1632_v27, %v674_v38  ;;  %v676_v41 = vpop.f32.mrb[59].mxu1 }
 0x191   : > { %974 = vst.msk [vmem:[%s1639_s7 + $0xe0] sm:$0xff] %vm945_vm1, %v941_v39  ;;  %v900_v42 = vadd.f32 %v899_v13, %v675_v40 }
 0x192   : > { %v679_v43 = vpop.f32.mrb[60].mxu1 }
 0x193   : > { %v942_v44 = vmax.f32 %v900_v42, 0.0  ;;  %v680_v45 = vadd.f32 %v1632_v27, %v679_v43  ;;  %v681_v46 = vpop.f32.mrb[61].mxu1 }
 0x195   : > { %975 = vst.msk [vmem:[%s1639_s7 + $0xe8] sm:$0xff] %vm945_vm1, %v942_v44  ;;  %v905_v47 = vadd.f32 %v904_v20, %v680_v45 }
 0x196   : > { %v684_v48 = vpop.f32.mrb[62].mxu1 }
 0x197   : > { %v943_v49 = vmax.f32 %v905_v47, 0.0  ;;  %v685_v50 = vadd.f32 %v1632_v27, %v684_v48  ;;  %v686_v51 = vpop.f32.mrb[63].mxu1 }
 0x199   : > { %976 = vst.msk [vmem:[%s1639_s7 + $0xf0] sm:$0xff] %vm945_vm1, %v943_v49  ;;  %v910_v52 = vadd.f32 %v909_v28, %v685_v50 }
 0x19b   : > { %v944_v53 = vmax.f32 %v910_v52, 0.0 }
 0x19d   : > { %977 = vst.msk [vmem:[%s1639_s7 + $0xf8] sm:$0xff] %vm945_vm1, %v944_v53 }
 0x19e PF: > { %s13_s12 = sadd.s32 1, %s1240_s12  }
 0x19f   : > { %p10_p4 = scmp.ge.s32.totalorder %s13_s12, 4  }
 0x1a1   :  { %12 = sbr.rel (!%p10_p4) target bundleno = 1 (0x1), region = 62 }

// kernel: simple_model_forward.10
= control target key start
LH: loop header
LB: loop body
LE: loop exit
PB: predicated region body
PF: predicated region fallthrough
CT: control target
= control target key end

     0   :  { %s1294_s12 = smov 0   ;;  %s1774_s0 = inlined_call_operand.vmem [shape: f32[2,8,2,8,2,96], index: 0, kind: input, shape index: {}]   ;;  %s1775_s1 = inlined_call_operand.vmem [shape: f32[96,48], index: 1, kind: input, shape index: {}]   ;;  %s1776_s2 = inlined_call_operand.vmem [shape: f32[1,48], index: 2, kind: input, shape index: {}]   ;;  %s1777_s3 = inlined_call_operand.vmem [shape: f32[2,64,48], index: 3, kind: output, shape index: {}]  }
   0x1 LB: > { %s1016_s13 = sadd.s32 4294967295, %s1272_s12   ;;  %p1020_p0 = scmp.ge.s32.totalorder %s1272_s12, 1  ;;  %s1272_s12 = sphi %s1294_s12, %s13_s12  }
   0x2   : > { %p137_p1 = scmp.lt.s32.totalorder %s1272_s12, 3 }
   0x4   : > { %p138_p2 = pnand %p1020_p0, %p137_p1 }
   0x5   : > { %v620_v0 = vld [vmem:[%s1775_s1] sm:$0xff] (!%p138_p2)  ;;  %v621_v1 = vld [vmem:[%s1775_s1 + $0x8] sm:$0xff] (!%p138_p2)  ;;  %v622_v2 = vld [vmem:[%s1775_s1 + $0x10] sm:$0xff] (!%p138_p2)  ;;  %p161_p3 = scmp.lt.s32.totalorder (!%p138_p2), %s1016_s13, 1  ;;  %vm704_vm0 = vcmask (!%p138_p2), 1041409   ;;  %vm707_vm1 = vcmask (!%p138_p2), 1042434  }
   0x6   : > { %141 = sbr.rel (%p138_p2) target bundleno = 340 (0x154), region = 32  ;;  %v1222_v3 = vpack.c.bf16 (!%p138_p2), %v621_v1, %v620_v0  ;;  %v623_v4 = vld [vmem:[%s1775_s1 + $0x18] sm:$0xff] (!%p138_p2)  ;;  %v624_v6 = vld [vmem:[%s1775_s1 + $0x20] sm:$0xff] (!%p138_p2)  ;;  %v625_v7 = vld [vmem:[%s1775_s1 + $0x28] sm:$0xff] (!%p138_p2)  ;;  %vm710_vm2 = vcmask (!%p138_p2), 1043459   ;;  %vm713_vm3 = vcmask (!%p138_p2), 1044484  }
   0x7   : > { %v1226_v5 = vpack.c.bf16 (!%p138_p2), %v623_v4, %v622_v2  ;;  %v1230_v8 = vpack.c.bf16 (!%p138_p2), %v625_v7, %v624_v6  ;;  %v626_v9 = vld [vmem:[%s1775_s1 + $0x30] sm:$0xff] (!%p138_p2)  ;;  %v627_v10 = vld [vmem:[%s1775_s1 + $0x38] sm:$0xff] (!%p138_p2)  ;;  %v628_v11 = vld [vmem:[%s1775_s1 + $0x40] sm:$0xff] (!%p138_p2)  ;;  %vm716_vm4 = vcmask (!%p138_p2), 1045509   ;;  %vm719_vm5 = vcmask (!%p138_p2), 1046534  }
   0x8   : > { %1223 = vmatprep.subr.bf16.mxu0 (!%p138_p2), %v1222_v3  ;;  %1246 = vmatprep.subr.bf16.mxu1 (!%p138_p2), %v1222_v3  ;;  %v629_v12 = vld [vmem:[%s1775_s1 + $0x48] sm:$0xff] (!%p138_p2)  ;;  %v630_v13 = vld [vmem:[%s1775_s1 + $0x50] sm:$0xff] (!%p138_p2)  ;;  %v631_v14 = vld [vmem:[%s1775_s1 + $0x58] sm:$0xff] (!%p138_p2)  ;;  %v1234_v19 = vpack.c.bf16 (!%p138_p2), %v627_v10, %v626_v9  ;;  %vm722_vm6 = vcmask (!%p138_p2), 1047559   ;;  %vm822_vm7 = vcmask (!%p138_p2), 785408   ;;  %vm952_vm8 = vcmask (!%p138_p2), 392192  }
   0x9   : > { %1225 = vmatpush3.bf16.msra.mxu0 (!%p138_p2), %v1222_v3  ;;  %1252 = vmatpush3.bf16.msra.mxu1 (!%p138_p2), %v1222_v3  ;;  %v1238_v34 = vpack.c.bf16 (!%p138_p2), %v629_v12, %v628_v11  ;;  %v1380_v35 = vpack.c.bf16 (!%p138_p2), %v631_v14, %v630_v13 }
   0xa   : > { %1227 = vmatprep.subr.bf16.mxu0 (!%p138_p2), %v1226_v5  ;;  %1247 = vmatprep.subr.bf16.mxu1 (!%p138_p2), %v1226_v5 }
   0xd   : > { %s1779_s13 = smov (!%p161_p3, %s1016_s13), 1  ;;  %1229 = vmatpush3.bf16.msra.mxu0 %v1226_v5  ;;  %1253 = vmatpush3.bf16.msra.mxu1 %v1226_v5 }
   0xe   : > { %s1164_s26 = sshll.u32 %s1779_s13, 8  ;;  %1231 = vmatprep.subr.bf16.mxu0 %v1230_v8  ;;  %1248 = vmatprep.subr.bf16.mxu1 %v1230_v8  ;;  %s1165_s19 = sshll.u32 %s1779_s13, 6 }
   0xf   : > { %s1326_s29 = scalar_lea.vmem %s1774_s0, %s1164_s26  ;;  %s170_s22 = scalar_lea.vmem %s1777_s3, %s1165_s19 }
  0x10   : > { %v1347_v15 = vld [vmem:[%s1326_s29] sm:$0x1]  ;;  %v1350_v16 = vld [vmem:[%s1326_s29 + $0x2] sm:$0x1]  ;;  %v1353_v17 = vld [vmem:[%s1326_s29 + $0x4] sm:$0x1] }
  0x11   : > { %v1356_v18 = vld [vmem:[%s1326_s29 + $0x1] sm:$0x1]  ;;  %v1359_v20 = vld [vmem:[%s1326_s29 + $0x6] sm:$0x1]  ;;  %v1362_v21 = vld [vmem:[%s1326_s29 + $0x8] sm:$0x1]  ;;  %1233 = vmatpush3.bf16.msra.mxu0 %v1230_v8  ;;  %1254 = vmatpush3.bf16.msra.mxu1 %v1230_v8 }
  0x12   : > { %v1365_v22 = vld [vmem:[%s1326_s29 + $0xa] sm:$0x1]  ;;  %v1368_v23 = vld [vmem:[%s1326_s29 + $0xc] sm:$0x1]  ;;  %v236_v24 = vld [vmem:[%s1326_s29 + $0x3] sm:$0x1]  ;;  %1235 = vmatprep.subr.bf16.mxu0 %v1234_v19  ;;  %1249 = vmatprep.subr.bf16.mxu1 %v1234_v19  ;;  %v299_v39 = vmax.f32 %v1347_v15, %v1356_v18 }
  0x13   : > { %v237_v25 = vld [vmem:[%s1326_s29 + $0x5] sm:$0x1]  ;;  %v238_v26 = vld [vmem:[%s1326_s29 + $0x7] sm:$0x1]  ;;  %v178_v27 = vld [vmem:[%s1326_s29 + $0xe] sm:$0x1]  ;;  %v300_v40 = vmax.f32 %v1350_v16, %v236_v24 }
  0x14   : > { %v239_v28 = vld [vmem:[%s1326_s29 + $0x9] sm:$0x1]  ;;  %v240_v29 = vld [vmem:[%s1326_s29 + $0xb] sm:$0x1]  ;;  %v241_v30 = vld [vmem:[%s1326_s29 + $0xd] sm:$0x1]  ;;  %v301_v41 = vmax.f32 %v1353_v17, %v237_v25  ;;  %v302_v45 = vmax.f32 %v1359_v20, %v238_v26 }
  0x15   : > { %v242_v31 = vld [vmem:[%s1326_s29 + $0xf] sm:$0x1]  ;;  %v1025_v32 = vld [vmem:[%s1326_s29 + $0x10] sm:$0x1]  ;;  %v1026_v33 = vld [vmem:[%s1326_s29 + $0x12] sm:$0x1]  ;;  %v303_v46 = vmax.f32 %v1362_v21, %v239_v28  ;;  %v304_v47 = vmax.f32 %v1365_v22, %v240_v29  ;;  %v305_v48 = vmax.f32 %v1368_v23, %v241_v30  ;;  %1237 = vmatpush3.bf16.msra.mxu0 %v1234_v19  ;;  %1255 = vmatpush3.bf16.msra.mxu1 %v1234_v19 }
  0x16   : > { %v1027_v36 = vld [vmem:[%s1326_s29 + $0x14] sm:$0x1]  ;;  %v1028_v37 = vld [vmem:[%s1326_s29 + $0x16] sm:$0x1]  ;;  %v1029_v38 = vld [vmem:[%s1326_s29 + $0x18] sm:$0x1]  ;;  %v306_v52 = vmax.f32 %v178_v27, %v242_v31  ;;  %1239 = vmatprep.subr.bf16.mxu0 %v1238_v34  ;;  %1250 = vmatprep.subr.bf16.mxu1 %v1238_v34 }
  0x17   : > { %v1030_v42 = vld [vmem:[%s1326_s29 + $0x1a] sm:$0x1]  ;;  %v1031_v43 = vld [vmem:[%s1326_s29 + $0x1c] sm:$0x1]  ;;  %v1032_v44 = vld [vmem:[%s1326_s29 + $0x1e] sm:$0x1] }
  0x18   : > { %v1089_v49 = vld [vmem:[%s1326_s29 + $0x11] sm:$0x1]  ;;  %v1090_v50 = vld [vmem:[%s1326_s29 + $0x13] sm:$0x1]  ;;  %v1091_v51 = vld [vmem:[%s1326_s29 + $0x15] sm:$0x1] }
  0x19   : > { %v1092_v53 = vld [vmem:[%s1326_s29 + $0x17] sm:$0x1]  ;;  %v1093_v54 = vld [vmem:[%s1326_s29 + $0x19] sm:$0x1]  ;;  %v1094_v55 = vld [vmem:[%s1326_s29 + $0x1b] sm:$0x1]  ;;  %v492_v56 = vmax.f32 %v1025_v32, %v1089_v49  ;;  %v493_v57 = vmax.f32 %v1026_v33, %v1090_v50  ;;  %v494_v58 = vmax.f32 %v1027_v36, %v1091_v51  ;;  %1241 = vmatpush3.bf16.msra.mxu0 %v1238_v34  ;;  %1256 = vmatpush3.bf16.msra.mxu1 %v1238_v34 }
  0x1a   : > { %v1095_v59 = vld [vmem:[%s1326_s29 + $0x1d] sm:$0x1]  ;;  %v1096_v60 = vld [vmem:[%s1326_s29 + $0x1f] sm:$0x1]  ;;  %v495_v61 = vmax.f32 %v1028_v37, %v1092_v53  ;;  %v496_v62 = vmax.f32 %v1029_v38, %v1093_v54  ;;  %v497_v63 = vmax.f32 %v1030_v42, %v1094_v55  ;;  %v1407_v10 = vld [vmem:[%s1326_s29 + $0x80] sm:$0x1]  ;;  %1243 = vmatprep.subr.bf16.mxu0 %v1380_v35  ;;  %1251 = vmatprep.subr.bf16.mxu1 %v1380_v35 }
  0x1b   : > { %v498_v0 = vmax.f32 %v1031_v43, %v1095_v59  ;;  %v499_v1 = vmax.f32 %v1032_v44, %v1096_v60  ;;  %v556_v2 = vmax.f32 %v299_v39, %v492_v56  ;;  %v557_v3 = vmax.f32 %v300_v40, %v493_v57  ;;  %v1410_v11 = vld [vmem:[%s1326_s29 + $0x82] sm:$0x1]  ;;  %v1413_v12 = vld [vmem:[%s1326_s29 + $0x81] sm:$0x1]  ;;  %v1416_v13 = vld [vmem:[%s1326_s29 + $0x83] sm:$0x1] }
  0x1c   : > { %v558_v4 = vmax.f32 %v301_v41, %v494_v58  ;;  %v559_v5 = vmax.f32 %v302_v45, %v495_v61  ;;  %v560_v6 = vmax.f32 %v303_v46, %v496_v62  ;;  %v561_v7 = vmax.f32 %v304_v47, %v497_v63  ;;  %v1419_v17 = vld [vmem:[%s1326_s29 + $0x84] sm:$0x1]  ;;  %v1422_v18 = vld [vmem:[%s1326_s29 + $0x86] sm:$0x1]  ;;  %v1425_v19 = vld [vmem:[%s1326_s29 + $0x88] sm:$0x1] }
  0x1d   : > { %v562_v8 = vmax.f32 %v305_v48, %v498_v0  ;;  %v1404_v9 = vmax.f32 %v306_v52, %v499_v1  ;;  %v703_v14 = vrot.slane %v557_v3, 7  ;;  %v269_v20 = vld [vmem:[%s1326_s29 + $0x85] sm:$0x1]  ;;  %v208_v25 = vld [vmem:[%s1326_s29 + $0x8a] sm:$0x1]  ;;  %1245 = vmatpush3.bf16.msra.mxu0 %v1380_v35  ;;  %1257 = vmatpush3.bf16.msra.mxu1 %v1380_v35  ;;  %v331_v39 = vmax.f32 %v1407_v10, %v1413_v12 }
  0x1e   : > { %v706_v15 = vrot.slane %v558_v4, 6  ;;  %v709_v16 = vrot.slane %v559_v5, 5  ;;  %v712_v21 = vrot.slane %v560_v6, 4  ;;  %v715_v22 = vrot.slane %v561_v7, 3  ;;  %v209_v26 = vld [vmem:[%s1326_s29 + $0x8c] sm:$0x1] }
  0x1f   : > { %v718_v23 = vrot.slane %v562_v8, 2  ;;  %v721_v24 = vrot.slane %v1404_v9, 1  ;;  %v210_v27 = vld [vmem:[%s1326_s29 + $0x8e] sm:$0x1]  ;;  %v270_v28 = vld [vmem:[%s1326_s29 + $0x87] sm:$0x1]  ;;  %v705_v29 = vsel %vm704_vm0, %v703_v14, %v556_v2  ;;  %v332_v40 = vmax.f32 %v1410_v11, %v1416_v13 }
  0x20   : > { %v271_v30 = vld [vmem:[%s1326_s29 + $0x89] sm:$0x1]  ;;  %v272_v31 = vld [vmem:[%s1326_s29 + $0x8b] sm:$0x1]  ;;  %v273_v32 = vld [vmem:[%s1326_s29 + $0x8d] sm:$0x1]  ;;  %v708_v33 = vsel %vm707_vm1, %v706_v15, %v705_v29  ;;  %v333_v35 = vmax.f32 %v1419_v17, %v269_v20  ;;  %v334_v45 = vmax.f32 %v1422_v18, %v270_v28 }
  0x21   : > { %v274_v34 = vld [vmem:[%s1326_s29 + $0x8f] sm:$0x1]  ;;  %v1057_v36 = vld [vmem:[%s1326_s29 + $0x90] sm:$0x1]  ;;  %v1058_v37 = vld [vmem:[%s1326_s29 + $0x92] sm:$0x1]  ;;  %v711_v38 = vsel %vm710_vm2, %v709_v16, %v708_v33  ;;  %v335_v46 = vmax.f32 %v1425_v19, %v271_v30  ;;  %v336_v51 = vmax.f32 %v208_v25, %v272_v31  ;;  %v337_v52 = vmax.f32 %v209_v26, %v273_v32 }
  0x22   : > { %v1059_v41 = vld [vmem:[%s1326_s29 + $0x94] sm:$0x1]  ;;  %v1060_v42 = vld [vmem:[%s1326_s29 + $0x96] sm:$0x1]  ;;  %v1061_v43 = vld [vmem:[%s1326_s29 + $0x98] sm:$0x1]  ;;  %v714_v44 = vsel %vm713_vm3, %v712_v21, %v711_v38  ;;  %v338_v53 = vmax.f32 %v210_v27, %v274_v34 }
  0x23   : > { %v1062_v47 = vld [vmem:[%s1326_s29 + $0x9a] sm:$0x1]  ;;  %v1063_v48 = vld [vmem:[%s1326_s29 + $0x9c] sm:$0x1]  ;;  %v1064_v49 = vld [vmem:[%s1326_s29 + $0x9e] sm:$0x1]  ;;  %v717_v50 = vsel %vm716_vm4, %v715_v22, %v714_v44 }
  0x24   : > { %v1121_v54 = vld [vmem:[%s1326_s29 + $0x91] sm:$0x1]  ;;  %v1122_v55 = vld [vmem:[%s1326_s29 + $0x93] sm:$0x1]  ;;  %v1123_v56 = vld [vmem:[%s1326_s29 + $0x95] sm:$0x1]  ;;  %v720_v57 = vsel %vm719_vm5, %v718_v23, %v717_v50 }
  0x25   : > { %v1124_v58 = vld [vmem:[%s1326_s29 + $0x97] sm:$0x1]  ;;  %v1125_v59 = vld [vmem:[%s1326_s29 + $0x99] sm:$0x1]  ;;  %v1126_v60 = vld [vmem:[%s1326_s29 + $0x9b] sm:$0x1]  ;;  %v524_v61 = vmax.f32 %v1057_v36, %v1121_v54  ;;  %v525_v62 = vmax.f32 %v1058_v37, %v1122_v55  ;;  %v526_v63 = vmax.f32 %v1059_v41, %v1123_v56  ;;  %v723_v0 = vsel %vm722_vm6, %v721_v24, %v720_v57 }
  0x26   : > { %v1127_v1 = vld [vmem:[%s1326_s29 + $0x9d] sm:$0x1]  ;;  %v1128_v2 = vld [vmem:[%s1326_s29 + $0x9f] sm:$0x1]  ;;  %v527_v3 = vmax.f32 %v1060_v42, %v1124_v58  ;;  %v528_v4 = vmax.f32 %v1061_v43, %v1125_v59  ;;  %v529_v5 = vmax.f32 %v1062_v47, %v1126_v60  ;;  %1210 = vmatprep.mubr.msk.f32.mxu0 %vm822_vm7, %v723_v0  ;;  %v1473_v17 = vld [vmem:[%s1326_s29 + $0x20] sm:$0x1] }
  0x27   : > { %v530_v6 = vmax.f32 %v1063_v48, %v1127_v1  ;;  %v531_v7 = vmax.f32 %v1064_v49, %v1128_v2  ;;  %v588_v8 = vmax.f32 %v331_v39, %v524_v61  ;;  %v589_v9 = vmax.f32 %v332_v40, %v525_v62  ;;  %v1476_v18 = vld [vmem:[%s1326_s29 + $0x22] sm:$0x1]  ;;  %v243_v19 = vld [vmem:[%s1326_s29 + $0x21] sm:$0x1]  ;;  %v181_v24 = vld [vmem:[%s1326_s29 + $0x24] sm:$0x1] }
  0x28   : > { %v590_v10 = vmax.f32 %v333_v35, %v526_v63  ;;  %v591_v11 = vmax.f32 %v334_v45, %v527_v3  ;;  %v592_v12 = vmax.f32 %v335_v46, %v528_v4  ;;  %v593_v13 = vmax.f32 %v336_v51, %v529_v5  ;;  %v182_v25 = vld [vmem:[%s1326_s29 + $0x26] sm:$0x1]  ;;  %v183_v26 = vld [vmem:[%s1326_s29 + $0x28] sm:$0x1]  ;;  %v244_v27 = vld [vmem:[%s1326_s29 + $0x23] sm:$0x1] }
  0x29   : > { %v594_v14 = vmax.f32 %v337_v52, %v530_v6  ;;  %v595_v15 = vmax.f32 %v338_v53, %v531_v7  ;;  %v766_v16 = vrot.slane %v589_v9, 7  ;;  %v184_v31 = vld [vmem:[%s1326_s29 + $0x2a] sm:$0x1]  ;;  %v185_v32 = vld [vmem:[%s1326_s29 + $0x2c] sm:$0x1]  ;;  %v307_v45 = vmax.f32 %v1473_v17, %v243_v19 }
  0x2a   : > { %v768_v20 = vrot.slane %v590_v10, 6  ;;  %v770_v21 = vrot.slane %v591_v11, 5  ;;  %v772_v22 = vrot.slane %v592_v12, 4  ;;  %v774_v23 = vrot.slane %v593_v13, 3  ;;  %v186_v33 = vld [vmem:[%s1326_s29 + $0x2e] sm:$0x1] }
  0x2b   : > { %v767_v28 = vsel %vm704_vm0, %v766_v16, %v588_v8  ;;  %v776_v29 = vrot.slane %v594_v14, 2  ;;  %v778_v30 = vrot.slane %v595_v15, 1  ;;  %v245_v34 = vld [vmem:[%s1326_s29 + $0x25] sm:$0x1]  ;;  %v246_v36 = vld [vmem:[%s1326_s29 + $0x27] sm:$0x1]  ;;  %v308_v46 = vmax.f32 %v1476_v18, %v244_v27 }
  0x2c   : > { %v769_v37 = vsel %vm707_vm1, %v768_v20, %v767_v28  ;;  %v247_v38 = vld [vmem:[%s1326_s29 + $0x29] sm:$0x1]  ;;  %v248_v39 = vld [vmem:[%s1326_s29 + $0x2b] sm:$0x1]  ;;  %v249_v40 = vld [vmem:[%s1326_s29 + $0x2d] sm:$0x1]  ;;  %v309_v51 = vmax.f32 %v181_v24, %v245_v34  ;;  %v310_v52 = vmax.f32 %v182_v25, %v246_v36 }
  0x2d   : > { %v771_v41 = vsel %vm710_vm2, %v770_v21, %v769_v37  ;;  %v250_v42 = vld [vmem:[%s1326_s29 + $0x2f] sm:$0x1]  ;;  %v1033_v43 = vld [vmem:[%s1326_s29 + $0x30] sm:$0x1]  ;;  %v1034_v44 = vld [vmem:[%s1326_s29 + $0x32] sm:$0x1]  ;;  %v311_v53 = vmax.f32 %v183_v26, %v247_v38  ;;  %v312_v58 = vmax.f32 %v184_v31, %v248_v39  ;;  %v313_v59 = vmax.f32 %v185_v32, %v249_v40 }
  0x2e   : > { %v773_v35 = vsel %vm713_vm3, %v772_v22, %v771_v41  ;;  %v1035_v47 = vld [vmem:[%s1326_s29 + $0x34] sm:$0x1]  ;;  %v1036_v48 = vld [vmem:[%s1326_s29 + $0x36] sm:$0x1]  ;;  %v1037_v49 = vld [vmem:[%s1326_s29 + $0x38] sm:$0x1]  ;;  %v314_v60 = vmax.f32 %v186_v33, %v250_v42 }
  0x2f   : > { %v775_v50 = vsel %vm716_vm4, %v774_v23, %v773_v35  ;;  %v1038_v54 = vld [vmem:[%s1326_s29 + $0x3a] sm:$0x1]  ;;  %v1039_v55 = vld [vmem:[%s1326_s29 + $0x3c] sm:$0x1]  ;;  %v1040_v56 = vld [vmem:[%s1326_s29 + $0x3e] sm:$0x1] }
  0x30   : > { %v777_v57 = vsel %vm719_vm5, %v776_v29, %v775_v50  ;;  %v1097_v61 = vld [vmem:[%s1326_s29 + $0x31] sm:$0x1]  ;;  %v1098_v62 = vld [vmem:[%s1326_s29 + $0x33] sm:$0x1]  ;;  %v1099_v63 = vld [vmem:[%s1326_s29 + $0x35] sm:$0x1] }
  0x31   : > { %v779_v0 = vsel %vm722_vm6, %v778_v30, %v777_v57  ;;  %v1100_v1 = vld [vmem:[%s1326_s29 + $0x37] sm:$0x1]  ;;  %v1101_v2 = vld [vmem:[%s1326_s29 + $0x39] sm:$0x1]  ;;  %v1102_v3 = vld [vmem:[%s1326_s29 + $0x3b] sm:$0x1]  ;;  %v500_v4 = vmax.f32 %v1033_v43, %v1097_v61  ;;  %v501_v5 = vmax.f32 %v1034_v44, %v1098_v62  ;;  %v502_v6 = vmax.f32 %v1035_v47, %v1099_v63 }
  0x32   : > { %1216 = vmatprep.mubr.msk.f32.mxu1 %vm822_vm7, %v779_v0  ;;  %v1103_v7 = vld [vmem:[%s1326_s29 + $0x3d] sm:$0x1]  ;;  %v1104_v8 = vld [vmem:[%s1326_s29 + $0x3f] sm:$0x1]  ;;  %v503_v9 = vmax.f32 %v1036_v48, %v1100_v1  ;;  %v504_v10 = vmax.f32 %v1037_v49, %v1101_v2  ;;  %v505_v11 = vmax.f32 %v1038_v54, %v1102_v3  ;;  %v1519_v23 = vld [vmem:[%s1326_s29 + $0xa0] sm:$0x1] }
  0x33   : > { %v506_v12 = vmax.f32 %v1039_v55, %v1103_v7  ;;  %v507_v13 = vmax.f32 %v1040_v56, %v1104_v8  ;;  %v564_v14 = vmax.f32 %v307_v45, %v500_v4  ;;  %v565_v15 = vmax.f32 %v308_v46, %v501_v5  ;;  %v1522_v24 = vld [vmem:[%s1326_s29 + $0xa2] sm:$0x1]  ;;  %v275_v25 = vld [vmem:[%s1326_s29 + $0xa1] sm:$0x1]  ;;  %v213_v30 = vld [vmem:[%s1326_s29 + $0xa4] sm:$0x1] }
  0x34   : > { %v566_v16 = vmax.f32 %v309_v51, %v502_v6  ;;  %v567_v17 = vmax.f32 %v310_v52, %v503_v9  ;;  %v568_v18 = vmax.f32 %v311_v53, %v504_v10  ;;  %v569_v19 = vmax.f32 %v312_v58, %v505_v11  ;;  %v214_v31 = vld [vmem:[%s1326_s29 + $0xa6] sm:$0x1]  ;;  %v215_v32 = vld [vmem:[%s1326_s29 + $0xa8] sm:$0x1]  ;;  %v276_v33 = vld [vmem:[%s1326_s29 + $0xa3] sm:$0x1] }
  0x35   : > { %v570_v20 = vmax.f32 %v313_v59, %v506_v12  ;;  %v571_v21 = vmax.f32 %v314_v60, %v507_v13  ;;  %v724_v22 = vrot.slane %v565_v15, 7  ;;  %v216_v38 = vld [vmem:[%s1326_s29 + $0xaa] sm:$0x1]  ;;  %v217_v39 = vld [vmem:[%s1326_s29 + $0xac] sm:$0x1]  ;;  %v339_v51 = vmax.f32 %v1519_v23, %v275_v25 }
  0x36   : > { %v726_v26 = vrot.slane %v566_v16, 6  ;;  %v728_v27 = vrot.slane %v567_v17, 5  ;;  %v730_v28 = vrot.slane %v568_v18, 4  ;;  %v732_v29 = vrot.slane %v569_v19, 3  ;;  %v218_v40 = vld [vmem:[%s1326_s29 + $0xae] sm:$0x1] }
  0x37   : > { %v725_v34 = vsel %vm704_vm0, %v724_v22, %v564_v14  ;;  %v734_v36 = vrot.slane %v570_v20, 2  ;;  %v736_v37 = vrot.slane %v571_v21, 1  ;;  %v277_v41 = vld [vmem:[%s1326_s29 + $0xa5] sm:$0x1]  ;;  %v278_v42 = vld [vmem:[%s1326_s29 + $0xa7] sm:$0x1]  ;;  %v340_v52 = vmax.f32 %v1522_v24, %v276_v33 }
  0x38   : > { %v727_v43 = vsel %vm707_vm1, %v726_v26, %v725_v34  ;;  %v279_v44 = vld [vmem:[%s1326_s29 + $0xa9] sm:$0x1]  ;;  %v280_v35 = vld [vmem:[%s1326_s29 + $0xab] sm:$0x1]  ;;  %v281_v45 = vld [vmem:[%s1326_s29 + $0xad] sm:$0x1]  ;;  %v341_v57 = vmax.f32 %v213_v30, %v277_v41  ;;  %v342_v58 = vmax.f32 %v214_v31, %v278_v42 }
  0x39   : > { %v729_v46 = vsel %vm710_vm2, %v728_v27, %v727_v43  ;;  %v282_v47 = vld [vmem:[%s1326_s29 + $0xaf] sm:$0x1]  ;;  %v1065_v48 = vld [vmem:[%s1326_s29 + $0xb0] sm:$0x1]  ;;  %v1066_v49 = vld [vmem:[%s1326_s29 + $0xb2] sm:$0x1]  ;;  %v343_v59 = vmax.f32 %v215_v32, %v279_v44  ;;  %v344_v0 = vmax.f32 %v216_v38, %v280_v35  ;;  %v345_v1 = vmax.f32 %v217_v39, %v281_v45 }
  0x3a   : > { %v731_v50 = vsel %vm713_vm3, %v730_v28, %v729_v46  ;;  %v1067_v53 = vld [vmem:[%s1326_s29 + $0xb4] sm:$0x1]  ;;  %v1068_v54 = vld [vmem:[%s1326_s29 + $0xb6] sm:$0x1]  ;;  %v1069_v55 = vld [vmem:[%s1326_s29 + $0xb8] sm:$0x1]  ;;  %v346_v2 = vmax.f32 %v218_v40, %v282_v47 }
  0x3b   : > { %v733_v56 = vsel %vm716_vm4, %v732_v29, %v731_v50  ;;  %v1070_v60 = vld [vmem:[%s1326_s29 + $0xba] sm:$0x1]  ;;  %v1071_v61 = vld [vmem:[%s1326_s29 + $0xbc] sm:$0x1]  ;;  %v1072_v62 = vld [vmem:[%s1326_s29 + $0xbe] sm:$0x1] }
  0x3c   : > { %v735_v63 = vsel %vm719_vm5, %v734_v36, %v733_v56  ;;  %v1129_v3 = vld [vmem:[%s1326_s29 + $0xb1] sm:$0x1]  ;;  %v1130_v4 = vld [vmem:[%s1326_s29 + $0xb3] sm:$0x1]  ;;  %v1131_v5 = vld [vmem:[%s1326_s29 + $0xb5] sm:$0x1] }
  0x3d   : > { %v737_v6 = vsel %vm722_vm6, %v736_v37, %v735_v63  ;;  %v1132_v7 = vld [vmem:[%s1326_s29 + $0xb7] sm:$0x1]  ;;  %v1133_v8 = vld [vmem:[%s1326_s29 + $0xb9] sm:$0x1]  ;;  %v1134_v9 = vld [vmem:[%s1326_s29 + $0xbb] sm:$0x1]  ;;  %v532_v10 = vmax.f32 %v1065_v48, %v1129_v3  ;;  %v533_v11 = vmax.f32 %v1066_v49, %v1130_v4  ;;  %v534_v12 = vmax.f32 %v1067_v53, %v1131_v5 }
  0x3e   : > { %1211 = vmatmul.mubr.msk.f32.vlgmr.msra.gmra.mrb[0].mxu0 %vm822_vm7, %v737_v6  ;;  %v1135_v13 = vld [vmem:[%s1326_s29 + $0xbd] sm:$0x1]  ;;  %v1136_v14 = vld [vmem:[%s1326_s29 + $0xbf] sm:$0x1]  ;;  %v535_v15 = vmax.f32 %v1068_v54, %v1132_v7  ;;  %v536_v16 = vmax.f32 %v1069_v55, %v1133_v8  ;;  %v537_v17 = vmax.f32 %v1070_v60, %v1134_v9  ;;  %v1565_v29 = vld [vmem:[%s1326_s29 + $0x40] sm:$0x1] }
  0x3f   : > { %v538_v18 = vmax.f32 %v1071_v61, %v1135_v13  ;;  %v539_v19 = vmax.f32 %v1072_v62, %v1136_v14  ;;  %v596_v20 = vmax.f32 %v339_v51, %v532_v10  ;;  %v597_v21 = vmax.f32 %v340_v52, %v533_v11  ;;  %v1568_v30 = vld [vmem:[%s1326_s29 + $0x42] sm:$0x1]  ;;  %v251_v31 = vld [vmem:[%s1326_s29 + $0x41] sm:$0x1]  ;;  %v189_v37 = vld [vmem:[%s1326_s29 + $0x44] sm:$0x1] }
  0x40   : > { %v598_v22 = vmax.f32 %v341_v57, %v534_v12  ;;  %v599_v23 = vmax.f32 %v342_v58, %v535_v15  ;;  %v600_v24 = vmax.f32 %v343_v59, %v536_v16  ;;  %v601_v25 = vmax.f32 %v344_v0, %v537_v17  ;;  %v190_v38 = vld [vmem:[%s1326_s29 + $0x46] sm:$0x1]  ;;  %v191_v39 = vld [vmem:[%s1326_s29 + $0x48] sm:$0x1]  ;;  %v252_v40 = vld [vmem:[%s1326_s29 + $0x43] sm:$0x1] }
  0x41   : > { %v602_v26 = vmax.f32 %v345_v1, %v538_v18  ;;  %v603_v27 = vmax.f32 %v346_v2, %v539_v19  ;;  %v780_v28 = vrot.slane %v597_v21, 7  ;;  %v192_v44 = vld [vmem:[%s1326_s29 + $0x4a] sm:$0x1]  ;;  %v193_v35 = vld [vmem:[%s1326_s29 + $0x4c] sm:$0x1]  ;;  %v315_v57 = vmax.f32 %v1565_v29, %v251_v31 }
  0x42   : > { %v782_v32 = vrot.slane %v598_v22, 6  ;;  %v784_v33 = vrot.slane %v599_v23, 5  ;;  %v786_v34 = vrot.slane %v600_v24, 4  ;;  %v788_v36 = vrot.slane %v601_v25, 3  ;;  %v194_v45 = vld [vmem:[%s1326_s29 + $0x4e] sm:$0x1] }
  0x43   : > { %v781_v41 = vsel %vm704_vm0, %v780_v28, %v596_v20  ;;  %v790_v42 = vrot.slane %v602_v26, 2  ;;  %v792_v43 = vrot.slane %v603_v27, 1  ;;  %v253_v46 = vld [vmem:[%s1326_s29 + $0x45] sm:$0x1]  ;;  %v254_v47 = vld [vmem:[%s1326_s29 + $0x47] sm:$0x1]  ;;  %v316_v58 = vmax.f32 %v1568_v30, %v252_v40 }
  0x44   : > { %v783_v48 = vsel %vm707_vm1, %v782_v32, %v781_v41  ;;  %v255_v49 = vld [vmem:[%s1326_s29 + $0x49] sm:$0x1]  ;;  %v256_v50 = vld [vmem:[%s1326_s29 + $0x4b] sm:$0x1]  ;;  %v257_v51 = vld [vmem:[%s1326_s29 + $0x4d] sm:$0x1]  ;;  %v317_v63 = vmax.f32 %v189_v37, %v253_v46  ;;  %v318_v0 = vmax.f32 %v190_v38, %v254_v47 }
  0x45   : > { %v785_v52 = vsel %vm710_vm2, %v784_v33, %v783_v48  ;;  %v258_v53 = vld [vmem:[%s1326_s29 + $0x4f] sm:$0x1]  ;;  %v1041_v54 = vld [vmem:[%s1326_s29 + $0x50] sm:$0x1]  ;;  %v1042_v55 = vld [vmem:[%s1326_s29 + $0x52] sm:$0x1]  ;;  %v319_v1 = vmax.f32 %v191_v39, %v255_v49  ;;  %v320_v6 = vmax.f32 %v192_v44, %v256_v50  ;;  %v321_v7 = vmax.f32 %v193_v35, %v257_v51 }
  0x46   : > { %v787_v56 = vsel %vm713_vm3, %v786_v34, %v785_v52  ;;  %v1043_v59 = vld [vmem:[%s1326_s29 + $0x54] sm:$0x1]  ;;  %v1044_v60 = vld [vmem:[%s1326_s29 + $0x56] sm:$0x1]  ;;  %v1045_v61 = vld [vmem:[%s1326_s29 + $0x58] sm:$0x1]  ;;  %v322_v8 = vmax.f32 %v194_v45, %v258_v53 }
  0x47   : > { %v789_v62 = vsel %vm716_vm4, %v788_v36, %v787_v56  ;;  %v1046_v2 = vld [vmem:[%s1326_s29 + $0x5a] sm:$0x1]  ;;  %v1047_v3 = vld [vmem:[%s1326_s29 + $0x5c] sm:$0x1]  ;;  %v1048_v4 = vld [vmem:[%s1326_s29 + $0x5e] sm:$0x1] }
  0x48   : > { %v791_v5 = vsel %vm719_vm5, %v790_v42, %v789_v62  ;;  %v1105_v9 = vld [vmem:[%s1326_s29 + $0x51] sm:$0x1]  ;;  %v1106_v10 = vld [vmem:[%s1326_s29 + $0x53] sm:$0x1]  ;;  %v1107_v11 = vld [vmem:[%s1326_s29 + $0x55] sm:$0x1] }
  0x49   : > { %v793_v12 = vsel %vm722_vm6, %v792_v43, %v791_v5  ;;  %v1108_v13 = vld [vmem:[%s1326_s29 + $0x57] sm:$0x1]  ;;  %v1109_v14 = vld [vmem:[%s1326_s29 + $0x59] sm:$0x1]  ;;  %v1110_v15 = vld [vmem:[%s1326_s29 + $0x5b] sm:$0x1]  ;;  %v508_v16 = vmax.f32 %v1041_v54, %v1105_v9  ;;  %v509_v17 = vmax.f32 %v1042_v55, %v1106_v10  ;;  %v510_v18 = vmax.f32 %v1043_v59, %v1107_v11 }
  0x4a   : > { %1217 = vmatmul.mubr.msk.f32.vlgmr.msra.gmra.mrb[0].mxu1 %vm822_vm7, %v793_v12  ;;  %v1111_v19 = vld [vmem:[%s1326_s29 + $0x5d] sm:$0x1]  ;;  %v1112_v20 = vld [vmem:[%s1326_s29 + $0x5f] sm:$0x1]  ;;  %v511_v21 = vmax.f32 %v1044_v60, %v1108_v13  ;;  %v512_v22 = vmax.f32 %v1045_v61, %v1109_v14  ;;  %v513_v23 = vmax.f32 %v1046_v2, %v1110_v15  ;;  %v1611_v36 = vld [vmem:[%s1326_s29 + $0xc0] sm:$0x1] }
  0x4b   : > { %v514_v24 = vmax.f32 %v1047_v3, %v1111_v19  ;;  %v515_v25 = vmax.f32 %v1048_v4, %v1112_v20  ;;  %v572_v26 = vmax.f32 %v315_v57, %v508_v16  ;;  %v573_v27 = vmax.f32 %v316_v58, %v509_v17  ;;  %v1614_v37 = vld [vmem:[%s1326_s29 + $0xc2] sm:$0x1]  ;;  %v283_v38 = vld [vmem:[%s1326_s29 + $0xc1] sm:$0x1]  ;;  %v221_v43 = vld [vmem:[%s1326_s29 + $0xc4] sm:$0x1] }
  0x4c   : > { %v574_v28 = vmax.f32 %v317_v63, %v510_v18  ;;  %v575_v29 = vmax.f32 %v318_v0, %v511_v21  ;;  %v576_v30 = vmax.f32 %v319_v1, %v512_v22  ;;  %v577_v31 = vmax.f32 %v320_v6, %v513_v23  ;;  %v222_v44 = vld [vmem:[%s1326_s29 + $0xc6] sm:$0x1]  ;;  %v223_v35 = vld [vmem:[%s1326_s29 + $0xc8] sm:$0x1]  ;;  %v284_v45 = vld [vmem:[%s1326_s29 + $0xc3] sm:$0x1] }
  0x4d   : > { %v578_v32 = vmax.f32 %v321_v7, %v514_v24  ;;  %v579_v33 = vmax.f32 %v322_v8, %v515_v25  ;;  %v738_v34 = vrot.slane %v573_v27, 7  ;;  %v224_v49 = vld [vmem:[%s1326_s29 + $0xca] sm:$0x1]  ;;  %v225_v50 = vld [vmem:[%s1326_s29 + $0xcc] sm:$0x1]  ;;  %v347_v63 = vmax.f32 %v1611_v36, %v283_v38 }
  0x4e   : > { %v740_v39 = vrot.slane %v574_v28, 6  ;;  %v742_v40 = vrot.slane %v575_v29, 5  ;;  %v744_v41 = vrot.slane %v576_v30, 4  ;;  %v746_v42 = vrot.slane %v577_v31, 3  ;;  %v226_v51 = vld [vmem:[%s1326_s29 + $0xce] sm:$0x1] }
  0x4f   : > { %v739_v46 = vsel %vm704_vm0, %v738_v34, %v572_v26  ;;  %v748_v47 = vrot.slane %v578_v32, 2  ;;  %v750_v48 = vrot.slane %v579_v33, 1  ;;  %v285_v52 = vld [vmem:[%s1326_s29 + $0xc5] sm:$0x1]  ;;  %v286_v53 = vld [vmem:[%s1326_s29 + $0xc7] sm:$0x1]  ;;  %v348_v0 = vmax.f32 %v1614_v37, %v284_v45 }
  0x50   : > { %v741_v54 = vsel %vm707_vm1, %v740_v39, %v739_v46  ;;  %v287_v55 = vld [vmem:[%s1326_s29 + $0xc9] sm:$0x1]  ;;  %v288_v56 = vld [vmem:[%s1326_s29 + $0xcb] sm:$0x1]  ;;  %v289_v57 = vld [vmem:[%s1326_s29 + $0xcd] sm:$0x1]  ;;  %v349_v5 = vmax.f32 %v221_v43, %v285_v52  ;;  %v350_v6 = vmax.f32 %v222_v44, %v286_v53 }
  0x51   : > { %v743_v58 = vsel %vm710_vm2, %v742_v40, %v741_v54  ;;  %v290_v59 = vld [vmem:[%s1326_s29 + $0xcf] sm:$0x1]  ;;  %v1073_v60 = vld [vmem:[%s1326_s29 + $0xd0] sm:$0x1]  ;;  %v1074_v61 = vld [vmem:[%s1326_s29 + $0xd2] sm:$0x1]  ;;  %v351_v7 = vmax.f32 %v223_v35, %v287_v55  ;;  %v352_v12 = vmax.f32 %v224_v49, %v288_v56  ;;  %v353_v13 = vmax.f32 %v225_v50, %v289_v57 }
  0x52   : > { %v745_v62 = vsel %vm713_vm3, %v744_v41, %v743_v58  ;;  %v1075_v1 = vld [vmem:[%s1326_s29 + $0xd4] sm:$0x1]  ;;  %v1076_v2 = vld [vmem:[%s1326_s29 + $0xd6] sm:$0x1]  ;;  %v1077_v3 = vld [vmem:[%s1326_s29 + $0xd8] sm:$0x1]  ;;  %v354_v14 = vmax.f32 %v226_v51, %v290_v59 }
  0x53   : > { %v747_v4 = vsel %vm716_vm4, %v746_v42, %v745_v62  ;;  %v1078_v8 = vld [vmem:[%s1326_s29 + $0xda] sm:$0x1]  ;;  %v1079_v9 = vld [vmem:[%s1326_s29 + $0xdc] sm:$0x1]  ;;  %v1080_v10 = vld [vmem:[%s1326_s29 + $0xde] sm:$0x1] }
  0x54   : > { %v749_v11 = vsel %vm719_vm5, %v748_v47, %v747_v4  ;;  %v1137_v15 = vld [vmem:[%s1326_s29 + $0xd1] sm:$0x1]  ;;  %v1138_v16 = vld [vmem:[%s1326_s29 + $0xd3] sm:$0x1]  ;;  %v1139_v17 = vld [vmem:[%s1326_s29 + $0xd5] sm:$0x1] }
  0x55   : > { %v751_v18 = vsel %vm722_vm6, %v750_v48, %v749_v11  ;;  %v1140_v19 = vld [vmem:[%s1326_s29 + $0xd7] sm:$0x1]  ;;  %v1141_v20 = vld [vmem:[%s1326_s29 + $0xd9] sm:$0x1]  ;;  %v1142_v21 = vld [vmem:[%s1326_s29 + $0xdb] sm:$0x1]  ;;  %v540_v22 = vmax.f32 %v1073_v60, %v1137_v15  ;;  %v541_v23 = vmax.f32 %v1074_v61, %v1138_v16  ;;  %v542_v24 = vmax.f32 %v1075_v1, %v1139_v17 }
  0x56   : > { %1213 = vmatprep.mubr.msk.f32.mxu0 %vm822_vm7, %v751_v18  ;;  %v1143_v25 = vld [vmem:[%s1326_s29 + $0xdd] sm:$0x1]  ;;  %v1144_v26 = vld [vmem:[%s1326_s29 + $0xdf] sm:$0x1]  ;;  %v543_v27 = vmax.f32 %v1076_v2, %v1140_v19  ;;  %v544_v28 = vmax.f32 %v1077_v3, %v1141_v20  ;;  %v545_v29 = vmax.f32 %v1078_v8, %v1142_v21  ;;  %v1657_v42 = vld [vmem:[%s1326_s29 + $0x60] sm:$0x1] }
  0x57   : > { %v546_v30 = vmax.f32 %v1079_v9, %v1143_v25  ;;  %v547_v31 = vmax.f32 %v1080_v10, %v1144_v26  ;;  %v604_v32 = vmax.f32 %v347_v63, %v540_v22  ;;  %v605_v33 = vmax.f32 %v348_v0, %v541_v23  ;;  %v1660_v43 = vld [vmem:[%s1326_s29 + $0x62] sm:$0x1]  ;;  %v259_v44 = vld [vmem:[%s1326_s29 + $0x61] sm:$0x1]  ;;  %v197_v48 = vld [vmem:[%s1326_s29 + $0x64] sm:$0x1] }
  0x58   : > { %v606_v34 = vmax.f32 %v349_v5, %v542_v24  ;;  %v607_v36 = vmax.f32 %v350_v6, %v543_v27  ;;  %v608_v37 = vmax.f32 %v351_v7, %v544_v28  ;;  %v609_v38 = vmax.f32 %v352_v12, %v545_v29  ;;  %v198_v49 = vld [vmem:[%s1326_s29 + $0x66] sm:$0x1]  ;;  %v199_v50 = vld [vmem:[%s1326_s29 + $0x68] sm:$0x1]  ;;  %v260_v51 = vld [vmem:[%s1326_s29 + $0x63] sm:$0x1] }
  0x59   : > { %v610_v39 = vmax.f32 %v353_v13, %v546_v30  ;;  %v611_v40 = vmax.f32 %v354_v14, %v547_v31  ;;  %v794_v41 = vrot.slane %v605_v33, 7  ;;  %v200_v55 = vld [vmem:[%s1326_s29 + $0x6a] sm:$0x1]  ;;  %v201_v56 = vld [vmem:[%s1326_s29 + $0x6c] sm:$0x1]  ;;  %v323_v5 = vmax.f32 %v1657_v42, %v259_v44 }
  0x5a   : > { %v796_v35 = vrot.slane %v606_v34, 6  ;;  %v798_v45 = vrot.slane %v607_v36, 5  ;;  %v800_v46 = vrot.slane %v608_v37, 4  ;;  %v802_v47 = vrot.slane %v609_v38, 3  ;;  %v202_v57 = vld [vmem:[%s1326_s29 + $0x6e] sm:$0x1] }
  0x5b   : > { %v795_v52 = vsel %vm704_vm0, %v794_v41, %v604_v32  ;;  %v804_v53 = vrot.slane %v610_v39, 2  ;;  %v806_v54 = vrot.slane %v611_v40, 1  ;;  %v261_v58 = vld [vmem:[%s1326_s29 + $0x65] sm:$0x1]  ;;  %v262_v59 = vld [vmem:[%s1326_s29 + $0x67] sm:$0x1]  ;;  %v324_v6 = vmax.f32 %v1660_v43, %v260_v51 }
  0x5c   : > { %v797_v60 = vsel %vm707_vm1, %v796_v35, %v795_v52  ;;  %v263_v61 = vld [vmem:[%s1326_s29 + $0x69] sm:$0x1]  ;;  %v264_v62 = vld [vmem:[%s1326_s29 + $0x6b] sm:$0x1]  ;;  %v265_v63 = vld [vmem:[%s1326_s29 + $0x6d] sm:$0x1]  ;;  %v325_v11 = vmax.f32 %v197_v48, %v261_v58  ;;  %v326_v12 = vmax.f32 %v198_v49, %v262_v59 }
  0x5d   : > { %v799_v0 = vsel %vm710_vm2, %v798_v45, %v797_v60  ;;  %v266_v1 = vld [vmem:[%s1326_s29 + $0x6f] sm:$0x1]  ;;  %v1049_v2 = vld [vmem:[%s1326_s29 + $0x70] sm:$0x1]  ;;  %v1050_v3 = vld [vmem:[%s1326_s29 + $0x72] sm:$0x1]  ;;  %v327_v13 = vmax.f32 %v199_v50, %v263_v61  ;;  %v328_v18 = vmax.f32 %v200_v55, %v264_v62  ;;  %v329_v19 = vmax.f32 %v201_v56, %v265_v63 }
  0x5e   : > { %v801_v4 = vsel %vm713_vm3, %v800_v46, %v799_v0  ;;  %v1051_v7 = vld [vmem:[%s1326_s29 + $0x74] sm:$0x1]  ;;  %v1052_v8 = vld [vmem:[%s1326_s29 + $0x76] sm:$0x1]  ;;  %v1053_v9 = vld [vmem:[%s1326_s29 + $0x78] sm:$0x1]  ;;  %v330_v20 = vmax.f32 %v202_v57, %v266_v1 }
  0x5f   : > { %v803_v10 = vsel %vm716_vm4, %v802_v47, %v801_v4  ;;  %v1054_v14 = vld [vmem:[%s1326_s29 + $0x7a] sm:$0x1]  ;;  %v1055_v15 = vld [vmem:[%s1326_s29 + $0x7c] sm:$0x1]  ;;  %v1056_v16 = vld [vmem:[%s1326_s29 + $0x7e] sm:$0x1] }
  0x60   : > { %v805_v17 = vsel %vm719_vm5, %v804_v53, %v803_v10  ;;  %v1113_v21 = vld [vmem:[%s1326_s29 + $0x71] sm:$0x1]  ;;  %v1114_v22 = vld [vmem:[%s1326_s29 + $0x73] sm:$0x1]  ;;  %v1115_v23 = vld [vmem:[%s1326_s29 + $0x75] sm:$0x1] }
  0x61   : > { %v807_v24 = vsel %vm722_vm6, %v806_v54, %v805_v17  ;;  %v1116_v25 = vld [vmem:[%s1326_s29 + $0x77] sm:$0x1]  ;;  %v1117_v26 = vld [vmem:[%s1326_s29 + $0x79] sm:$0x1]  ;;  %v1118_v27 = vld [vmem:[%s1326_s29 + $0x7b] sm:$0x1]  ;;  %v516_v28 = vmax.f32 %v1049_v2, %v1113_v21  ;;  %v517_v29 = vmax.f32 %v1050_v3, %v1114_v22  ;;  %v518_v30 = vmax.f32 %v1051_v7, %v1115_v23 }
  0x62   : > { %1219 = vmatprep.mubr.msk.f32.mxu1 %vm822_vm7, %v807_v24  ;;  %v1119_v31 = vld [vmem:[%s1326_s29 + $0x7d] sm:$0x1]  ;;  %v1120_v32 = vld [vmem:[%s1326_s29 + $0x7f] sm:$0x1]  ;;  %v519_v33 = vmax.f32 %v1052_v8, %v1116_v25  ;;  %v520_v34 = vmax.f32 %v1053_v9, %v1117_v26  ;;  %v521_v36 = vmax.f32 %v1054_v14, %v1118_v27  ;;  %v1703_v47 = vld [vmem:[%s1326_s29 + $0xe0] sm:$0x1] }
  0x63   : > { %v522_v37 = vmax.f32 %v1055_v15, %v1119_v31  ;;  %v523_v38 = vmax.f32 %v1056_v16, %v1120_v32  ;;  %v580_v39 = vmax.f32 %v323_v5, %v516_v28  ;;  %v581_v40 = vmax.f32 %v324_v6, %v517_v29  ;;  %v1706_v48 = vld [vmem:[%s1326_s29 + $0xe2] sm:$0x1]  ;;  %v291_v49 = vld [vmem:[%s1326_s29 + $0xe1] sm:$0x1]  ;;  %v229_v54 = vld [vmem:[%s1326_s29 + $0xe4] sm:$0x1] }
  0x64   : > { %v582_v41 = vmax.f32 %v325_v11, %v518_v30  ;;  %v583_v42 = vmax.f32 %v326_v12, %v519_v33  ;;  %v584_v43 = vmax.f32 %v327_v13, %v520_v34  ;;  %v585_v44 = vmax.f32 %v328_v18, %v521_v36  ;;  %v230_v55 = vld [vmem:[%s1326_s29 + $0xe6] sm:$0x1]  ;;  %v231_v56 = vld [vmem:[%s1326_s29 + $0xe8] sm:$0x1]  ;;  %v292_v57 = vld [vmem:[%s1326_s29 + $0xe3] sm:$0x1] }
  0x65   : > { %v586_v35 = vmax.f32 %v329_v19, %v522_v37  ;;  %v587_v45 = vmax.f32 %v330_v20, %v523_v38  ;;  %v752_v46 = vrot.slane %v581_v40, 7  ;;  %v232_v61 = vld [vmem:[%s1326_s29 + $0xea] sm:$0x1]  ;;  %v233_v62 = vld [vmem:[%s1326_s29 + $0xec] sm:$0x1]  ;;  %v355_v11 = vmax.f32 %v1703_v47, %v291_v49 }
  0x66   : > { %v754_v50 = vrot.slane %v582_v41, 6  ;;  %v756_v51 = vrot.slane %v583_v42, 5  ;;  %v758_v52 = vrot.slane %v584_v43, 4  ;;  %v760_v53 = vrot.slane %v585_v44, 3  ;;  %v234_v63 = vld [vmem:[%s1326_s29 + $0xee] sm:$0x1] }
  0x67   : > { %v753_v58 = vsel %vm704_vm0, %v752_v46, %v580_v39  ;;  %v762_v59 = vrot.slane %v586_v35, 2  ;;  %v764_v60 = vrot.slane %v587_v45, 1  ;;  %v293_v0 = vld [vmem:[%s1326_s29 + $0xe5] sm:$0x1]  ;;  %v294_v1 = vld [vmem:[%s1326_s29 + $0xe7] sm:$0x1]  ;;  %v356_v12 = vmax.f32 %v1706_v48, %v292_v57 }
  0x68   : > { %v755_v2 = vsel %vm707_vm1, %v754_v50, %v753_v58  ;;  %v295_v3 = vld [vmem:[%s1326_s29 + $0xe9] sm:$0x1]  ;;  %v296_v4 = vld [vmem:[%s1326_s29 + $0xeb] sm:$0x1]  ;;  %v297_v5 = vld [vmem:[%s1326_s29 + $0xed] sm:$0x1]  ;;  %v357_v17 = vmax.f32 %v229_v54, %v293_v0  ;;  %v358_v18 = vmax.f32 %v230_v55, %v294_v1 }
  0x69   : > { %v757_v6 = vsel %vm710_vm2, %v756_v51, %v755_v2  ;;  %v298_v7 = vld [vmem:[%s1326_s29 + $0xef] sm:$0x1]  ;;  %v1081_v8 = vld [vmem:[%s1326_s29 + $0xf0] sm:$0x1]  ;;  %v1082_v9 = vld [vmem:[%s1326_s29 + $0xf2] sm:$0x1]  ;;  %v359_v19 = vmax.f32 %v231_v56, %v295_v3  ;;  %v360_v24 = vmax.f32 %v232_v61, %v296_v4  ;;  %v361_v25 = vmax.f32 %v233_v62, %v297_v5 }
  0x6a   : > { %v759_v10 = vsel %vm713_vm3, %v758_v52, %v757_v6  ;;  %v1083_v13 = vld [vmem:[%s1326_s29 + $0xf4] sm:$0x1]  ;;  %v1084_v14 = vld [vmem:[%s1326_s29 + $0xf6] sm:$0x1]  ;;  %v1085_v15 = vld [vmem:[%s1326_s29 + $0xf8] sm:$0x1]  ;;  %v362_v26 = vmax.f32 %v234_v63, %v298_v7 }
  0x6b   : > { %v761_v16 = vsel %vm716_vm4, %v760_v53, %v759_v10  ;;  %v1086_v20 = vld [vmem:[%s1326_s29 + $0xfa] sm:$0x1]  ;;  %v1087_v21 = vld [vmem:[%s1326_s29 + $0xfc] sm:$0x1]  ;;  %v1088_v22 = vld [vmem:[%s1326_s29 + $0xfe] sm:$0x1] }
  0x6c   : > { %v763_v23 = vsel %vm719_vm5, %v762_v59, %v761_v16  ;;  %v1145_v27 = vld [vmem:[%s1326_s29 + $0xf1] sm:$0x1]  ;;  %v1146_v28 = vld [vmem:[%s1326_s29 + $0xf3] sm:$0x1]  ;;  %v1147_v29 = vld [vmem:[%s1326_s29 + $0xf5] sm:$0x1] }
  0x6d   : > { %v765_v30 = vsel %vm722_vm6, %v764_v60, %v763_v23  ;;  %v1148_v31 = vld [vmem:[%s1326_s29 + $0xf7] sm:$0x1]  ;;  %v1149_v32 = vld [vmem:[%s1326_s29 + $0xf9] sm:$0x1]  ;;  %v1150_v33 = vld [vmem:[%s1326_s29 + $0xfb] sm:$0x1]  ;;  %v548_v34 = vmax.f32 %v1081_v8, %v1145_v27  ;;  %v549_v36 = vmax.f32 %v1082_v9, %v1146_v28  ;;  %v550_v37 = vmax.f32 %v1083_v13, %v1147_v29 }
  0x6e   : > { %1214 = vmatmul.mubr.msk.f32.gmra.mrb[2].mxu0 %vm822_vm7, %v765_v30  ;;  %v1151_v38 = vld [vmem:[%s1326_s29 + $0xfd] sm:$0x1]  ;;  %v1152_v39 = vld [vmem:[%s1326_s29 + $0xff] sm:$0x1]  ;;  %v551_v40 = vmax.f32 %v1084_v14, %v1148_v31  ;;  %v552_v41 = vmax.f32 %v1085_v15, %v1149_v32  ;;  %v553_v42 = vmax.f32 %v1086_v20, %v1150_v33  ;;  %v1153_v2 = vld [vmem:[%s1776_s2] ss:$0 sm:$0xff] }
  0x6f   : > { %v554_v43 = vmax.f32 %v1087_v21, %v1151_v38  ;;  %v555_v44 = vmax.f32 %v1088_v22, %v1152_v39  ;;  %v612_v35 = vmax.f32 %v355_v11, %v548_v34  ;;  %v613_v45 = vmax.f32 %v356_v12, %v549_v36 }
  0x70   : > { %v614_v46 = vmax.f32 %v357_v17, %v550_v37  ;;  %v615_v47 = vmax.f32 %v358_v18, %v551_v40  ;;  %v616_v48 = vmax.f32 %v359_v19, %v552_v41  ;;  %v617_v49 = vmax.f32 %v360_v24, %v553_v42 }
  0x71   : > { %v618_v50 = vmax.f32 %v361_v25, %v554_v43  ;;  %v619_v51 = vmax.f32 %v362_v26, %v555_v44  ;;  %v808_v52 = vrot.slane %v613_v45, 7 }
  0x72   : > { %v810_v53 = vrot.slane %v614_v46, 6  ;;  %v812_v54 = vrot.slane %v615_v47, 5  ;;  %v814_v55 = vrot.slane %v616_v48, 4  ;;  %v816_v57 = vrot.slane %v617_v49, 3 }
  0x73   : > { %v809_v56 = vsel %vm704_vm0, %v808_v52, %v612_v35  ;;  %v818_v59 = vrot.slane %v618_v50, 2  ;;  %v820_v61 = vrot.slane %v619_v51, 1 }
  0x74   : > { %v811_v58 = vsel %vm707_vm1, %v810_v53, %v809_v56 }
  0x75   : > { %v813_v60 = vsel %vm710_vm2, %v812_v54, %v811_v58 }
  0x76   : > { %v815_v62 = vsel %vm713_vm3, %v814_v55, %v813_v60 }
  0x77   : > { %v817_v63 = vsel %vm716_vm4, %v816_v57, %v815_v62 }
  0x78   : > { %v819_v0 = vsel %vm719_vm5, %v818_v59, %v817_v63 }
  0x79   : > { %v821_v1 = vsel %vm722_vm6, %v820_v61, %v819_v0 }
  0x7a   : > { %1220 = vmatmul.mubr.msk.f32.gmra.mrb[2].mxu1 %vm822_vm7, %v821_v1 }
 0x111   : > { %v1212_v3 = vpop.f32.mrb[0].mxu0 }
 0x112   : > { %v911_v4 = vadd.f32 %v1212_v3, %v1153_v2  ;;  %v905_v5 = vpop.f32.mrb[1].mxu0 }
 0x113   : > { %v906_v6 = vadd.f32 %v1153_v2, %v905_v5 }
 0x114   : > { %v945_v7 = vmax.f32 %v911_v4, 0.0 }
 0x115   : > { %v944_v8 = vmax.f32 %v906_v6, 0.0 }
 0x116   : > { %954 = vst.msk [vmem:[%s170_s22 + $0x8] sm:$0xff] %vm952_vm8, %v945_v7 }
 0x117   : > { %953 = vst.msk [vmem:[%s170_s22] sm:$0xff] %vm952_vm8, %v944_v8 }
 0x11d   : > { %v1218_v9 = vpop.f32.mrb[0].mxu1 }
 0x11e   : > { %v931_v10 = vadd.f32 %v1218_v9, %v1153_v2  ;;  %v925_v11 = vpop.f32.mrb[1].mxu1 }
 0x11f   : > { %v926_v12 = vadd.f32 %v1153_v2, %v925_v11 }
 0x120   : > { %v949_v13 = vmax.f32 %v931_v10, 0.0 }
 0x121   : > { %v948_v14 = vmax.f32 %v926_v12, 0.0 }
 0x122   : > { %958 = vst.msk [vmem:[%s170_s22 + $0x28] sm:$0xff] %vm952_vm8, %v949_v13 }
 0x123   : > { %957 = vst.msk [vmem:[%s170_s22 + $0x20] sm:$0xff] %vm952_vm8, %v948_v14 }
 0x141   : > { %v1215_v15 = vpop.f32.mrb[2].mxu0 }
 0x142   : > { %v921_v16 = vadd.f32 %v1215_v15, %v1153_v2  ;;  %v915_v17 = vpop.f32.mrb[3].mxu0 }
 0x143   : > { %v916_v18 = vadd.f32 %v1153_v2, %v915_v17 }
 0x144   : > { %v947_v19 = vmax.f32 %v921_v16, 0.0 }
 0x145   : > { %v946_v20 = vmax.f32 %v916_v18, 0.0 }
 0x146   : > { %956 = vst.msk [vmem:[%s170_s22 + $0x18] sm:$0xff] %vm952_vm8, %v947_v19 }
 0x147   : > { %955 = vst.msk [vmem:[%s170_s22 + $0x10] sm:$0xff] %vm952_vm8, %v946_v20 }
 0x14d   : > { %v1221_v21 = vpop.f32.mrb[2].mxu1 }
 0x14e   : > { %v941_v22 = vadd.f32 %v1221_v21, %v1153_v2  ;;  %v935_v23 = vpop.f32.mrb[3].mxu1 }
 0x14f   : > { %v936_v24 = vadd.f32 %v1153_v2, %v935_v23 }
 0x150   : > { %v951_v25 = vmax.f32 %v941_v22, 0.0 }
 0x151   : > { %v950_v26 = vmax.f32 %v936_v24, 0.0 }
 0x152   : > { %960 = vst.msk [vmem:[%s170_s22 + $0x38] sm:$0xff] %vm952_vm8, %v951_v25 }
 0x153   : > { %959 = vst.msk [vmem:[%s170_s22 + $0x30] sm:$0xff] %vm952_vm8, %v950_v26 }
 0x154 PF: > { %s13_s12 = sadd.s32 1, %s1272_s12  }
 0x155   : > { %p10_p4 = scmp.ge.s32.totalorder %s13_s12, 4  }
 0x157   :  { %12 = sbr.rel (!%p10_p4) target bundleno = 1 (0x1), region = 63 }

// kernel: simple_model_forward.11
= control target key start
LH: loop header
LB: loop body
LE: loop exit
PB: predicated region body
PF: predicated region fallthrough
CT: control target
= control target key end

     0   :  { %v700_v0 = vmov 0.0|0.0   ;;  %vm139_vm0 = vcmask 392192   ;;  %vm494_vm1 = vcmask 785408   ;;  %s1245_s1 = inlined_call_operand.vmem [shape: f32[432,96], index: 1, kind: input, shape index: {}]   ;;  %s1246_s0 = inlined_call_operand.vmem [shape: f32[128,432], index: 0, kind: input, shape index: {}]   ;;  %s1247_s2 = inlined_call_operand.vmem [shape: f32[1,96], index: 2, kind: input, shape index: {}]   ;;  %s1248_s3 = inlined_call_operand.vmem [shape: f32[128,96], index: 3, kind: output, shape index: {}]  }
   0x1   :  { %677 = vmatprep.subr.bf16.mxu1 %v700_v0  ;;  %v94_v1 = vld [vmem:[%s1245_s1 + $0x80] sm:$0xff]  ;;  %v95_v2 = vld [vmem:[%s1245_s1 + $0x88] sm:$0xff]  ;;  %v96_v10 = vld [vmem:[%s1245_s1 + $0x90] sm:$0xff] }
   0x2   :  { %v110_v3 = vld [vmem:[%s1245_s1 + $0x100] sm:$0xff]  ;;  %v612_v4 = vpack.c.bf16 %v95_v2, %v94_v1  ;;  %v111_v5 = vld [vmem:[%s1245_s1 + $0x108] sm:$0xff]  ;;  %v97_v11 = vld [vmem:[%s1245_s1 + $0x98] sm:$0xff] }
   0x3   :  { %v78_v6 = vld [vmem:[%s1245_s1] sm:$0xff]  ;;  %v79_v7 = vld [vmem:[%s1245_s1 + $0x8] sm:$0xff]  ;;  %v740_v8 = vpack.c.bf16 %v111_v5, %v110_v3  ;;  %v112_v12 = vld [vmem:[%s1245_s1 + $0x110] sm:$0xff]  ;;  %v616_v13 = vpack.c.bf16 %v97_v11, %v96_v10 }
   0x4   :  { %v614_v9 = vpack.c.bf16 %v79_v7, %v78_v6  ;;  %613 = vmatprep.subr.bf16.mxu0 %v612_v4  ;;  %v113_v14 = vld [vmem:[%s1245_s1 + $0x118] sm:$0xff]  ;;  %v80_v15 = vld [vmem:[%s1245_s1 + $0x10] sm:$0xff]  ;;  %v98_v19 = vld [vmem:[%s1245_s1 + $0xa0] sm:$0xff] }
   0x5   :  { %v81_v16 = vld [vmem:[%s1245_s1 + $0x18] sm:$0xff]  ;;  %688 = vmatpush1.bf16.msra.mxu1 %v740_v8  ;;  %v761_v17 = vpack.c.bf16 %v113_v14, %v112_v12  ;;  %v99_v20 = vld [vmem:[%s1245_s1 + $0xa8] sm:$0xff]  ;;  %v114_v21 = vld [vmem:[%s1245_s1 + $0x120] sm:$0xff] }
   0x6   :  { %615 = vmatpush3.bf16.msra.mxu0 %v614_v9  ;;  %v618_v18 = vpack.c.bf16 %v81_v16, %v80_v15  ;;  %678 = vmatprep.subr.bf16.mxu1 %v700_v0  ;;  %v620_v22 = vpack.c.bf16 %v99_v20, %v98_v19  ;;  %v115_v23 = vld [vmem:[%s1245_s1 + $0x128] sm:$0xff]  ;;  %v82_v24 = vld [vmem:[%s1245_s1 + $0x20] sm:$0xff]  ;;  %v100_v26 = vld [vmem:[%s1245_s1 + $0xb0] sm:$0xff] }
   0x7   :  { %617 = vmatprep.subr.bf16.mxu0 %v616_v13  ;;  %v83_v25 = vld [vmem:[%s1245_s1 + $0x28] sm:$0xff]  ;;  %v101_v27 = vld [vmem:[%s1245_s1 + $0xb8] sm:$0xff]  ;;  %v789_v28 = vpack.c.bf16 %v115_v23, %v114_v21  ;;  %v116_v30 = vld [vmem:[%s1245_s1 + $0x130] sm:$0xff] }
   0x8   :  { %v622_v29 = vpack.c.bf16 %v83_v25, %v82_v24  ;;  %v624_v31 = vpack.c.bf16 %v101_v27, %v100_v26  ;;  %v117_v32 = vld [vmem:[%s1245_s1 + $0x138] sm:$0xff]  ;;  %v84_v33 = vld [vmem:[%s1245_s1 + $0x30] sm:$0xff]  ;;  %v102_v35 = vld [vmem:[%s1245_s1 + $0xc0] sm:$0xff] }
   0x9   :  { %689 = vmatpush1.bf16.msra.mxu1 %v761_v17  ;;  %v85_v34 = vld [vmem:[%s1245_s1 + $0x38] sm:$0xff]  ;;  %v103_v36 = vld [vmem:[%s1245_s1 + $0xc8] sm:$0xff]  ;;  %v811_v37 = vpack.c.bf16 %v117_v32, %v116_v30  ;;  %v118_v39 = vld [vmem:[%s1245_s1 + $0x140] sm:$0xff] }
   0xa   :  { %619 = vmatpush3.bf16.msra.mxu0 %v618_v18  ;;  %679 = vmatprep.subr.bf16.mxu1 %v700_v0  ;;  %v626_v38 = vpack.c.bf16 %v85_v34, %v84_v33  ;;  %v628_v40 = vpack.c.bf16 %v103_v36, %v102_v35  ;;  %v119_v41 = vld [vmem:[%s1245_s1 + $0x148] sm:$0xff]  ;;  %v86_v42 = vld [vmem:[%s1245_s1 + $0x40] sm:$0xff]  ;;  %v104_v44 = vld [vmem:[%s1245_s1 + $0xd0] sm:$0xff] }
   0xb   :  { %621 = vmatprep.subr.bf16.mxu0 %v620_v22  ;;  %v87_v43 = vld [vmem:[%s1245_s1 + $0x48] sm:$0xff]  ;;  %v105_v45 = vld [vmem:[%s1245_s1 + $0xd8] sm:$0xff]  ;;  %v833_v46 = vpack.c.bf16 %v119_v41, %v118_v39  ;;  %v120_v48 = vld [vmem:[%s1245_s1 + $0x150] sm:$0xff] }
   0xc   :  { %v630_v47 = vpack.c.bf16 %v87_v43, %v86_v42  ;;  %v15_v49 = vld [vmem:[%s1246_s0 + $0x8] sm:$0xff]  ;;  %v632_v50 = vpack.c.bf16 %v105_v45, %v104_v44  ;;  %v121_v51 = vld [vmem:[%s1245_s1 + $0x158] sm:$0xff]  ;;  %v88_v52 = vld [vmem:[%s1245_s1 + $0x50] sm:$0xff] }
   0xd   :  { %690 = vmatpush1.bf16.msra.mxu1 %v789_v28  ;;  %v89_v53 = vld [vmem:[%s1245_s1 + $0x58] sm:$0xff]  ;;  %v106_v54 = vld [vmem:[%s1245_s1 + $0xe0] sm:$0xff]  ;;  %v107_v55 = vld [vmem:[%s1245_s1 + $0xe8] sm:$0xff]  ;;  %252 = vmatprep.mubr.f32.mxu0 %v15_v49  ;;  %v858_v56 = vpack.c.bf16 %v121_v51, %v120_v48 }
   0xe   :  { %623 = vmatpush3.bf16.msra.mxu0 %v622_v29  ;;  %680 = vmatprep.subr.bf16.mxu1 %v700_v0  ;;  %v634_v57 = vpack.c.bf16 %v89_v53, %v88_v52  ;;  %v122_v58 = vld [vmem:[%s1245_s1 + $0x160] sm:$0xff]  ;;  %v21_v59 = vld [vmem:[%s1246_s0 + $0x38] sm:$0xff]  ;;  %v636_v60 = vpack.c.bf16 %v107_v55, %v106_v54  ;;  %v123_v61 = vld [vmem:[%s1245_s1 + $0x168] sm:$0xff] }
   0xf   :  { %625 = vmatprep.subr.bf16.mxu0 %v624_v31  ;;  %v90_v62 = vld [vmem:[%s1245_s1 + $0x60] sm:$0xff]  ;;  %v91_v63 = vld [vmem:[%s1245_s1 + $0x68] sm:$0xff]  ;;  %v108_v1 = vld [vmem:[%s1245_s1 + $0xf0] sm:$0xff]  ;;  %517 = vmatprep.mubr.msk.f32.mxu1 %vm139_vm0, %v21_v59  ;;  %v884_v3 = vpack.c.bf16 %v123_v61, %v122_v58 }
  0x10   :  { %v109_v2 = vld [vmem:[%s1245_s1 + $0xf8] sm:$0xff]  ;;  %v638_v4 = vpack.c.bf16 %v91_v63, %v90_v62  ;;  %v124_v5 = vld [vmem:[%s1245_s1 + $0x170] sm:$0xff]  ;;  %v126_v13 = vld [vmem:[%s1245_s1 + $0x180] sm:$0xff] }
  0x11   :  { %691 = vmatpush1.bf16.msra.mxu1 %v811_v37  ;;  %v640_v6 = vpack.c.bf16 %v109_v2, %v108_v1  ;;  %v125_v7 = vld [vmem:[%s1245_s1 + $0x178] sm:$0xff]  ;;  %v92_v9 = vld [vmem:[%s1245_s1 + $0x70] sm:$0xff]  ;;  %v127_v14 = vld [vmem:[%s1245_s1 + $0x188] sm:$0xff] }
  0x12   :  { %627 = vmatpush3.bf16.msra.mxu0 %v626_v38  ;;  %681 = vmatprep.subr.bf16.mxu1 %v700_v0  ;;  %v93_v10 = vld [vmem:[%s1245_s1 + $0x78] sm:$0xff]  ;;  %v900_v11 = vpack.c.bf16 %v125_v7, %v124_v5  ;;  %v14_v15 = vld [vmem:[%s1246_s0] sm:$0xff]  ;;  %v913_v16 = vpack.c.bf16 %v127_v14, %v126_v13  ;;  %v19_v18 = vld [vmem:[%s1246_s0 + $0x28] sm:$0xff] }
  0x13   :  { %629 = vmatprep.subr.bf16.mxu0 %v628_v40  ;;  %v642_v12 = vpack.c.bf16 %v93_v10, %v92_v9  ;;  %v128_v19 = vld [vmem:[%s1245_s1 + $0x190] sm:$0xff]  ;;  %v129_v20 = vld [vmem:[%s1245_s1 + $0x198] sm:$0xff]  ;;  %v18_v21 = vld [vmem:[%s1246_s0 + $0x20] sm:$0xff] }
  0x14   :  { %v930_v22 = vpack.c.bf16 %v129_v20, %v128_v19  ;;  %v23_v23 = vld [vmem:[%s1246_s0 + $0x48] sm:$0xff]  ;;  %v130_v24 = vld [vmem:[%s1245_s1 + $0x1a0] sm:$0xff]  ;;  %v20_v29 = vld [vmem:[%s1246_s0 + $0x30] sm:$0xff] }
  0x15   :  { %692 = vmatpush1.bf16.msra.mxu1 %v833_v46  ;;  %v131_v25 = vld [vmem:[%s1245_s1 + $0x1a8] sm:$0xff]  ;;  %v26_v30 = vld [vmem:[%s1246_s0 + $0x60] sm:$0xff]  ;;  %v24_v32 = vld [vmem:[%s1246_s0 + $0x50] sm:$0xff] }
  0x16   :  { %631 = vmatpush3.bf16.msra.mxu0 %v630_v47  ;;  %682 = vmatprep.subr.bf16.mxu1 %v700_v0  ;;  %v948_v26 = vpack.c.bf16 %v131_v25, %v130_v24  ;;  %v27_v27 = vld [vmem:[%s1246_s0 + $0x68] sm:$0xff]  ;;  %v30_v33 = vld [vmem:[%s1246_s0 + $0x80] sm:$0xff]  ;;  %v29_v34 = vld [vmem:[%s1246_s0 + $0x78] sm:$0xff] }
  0x17   :  { %633 = vmatprep.subr.bf16.mxu0 %v632_v50  ;;  %v31_v31 = vld [vmem:[%s1246_s0 + $0x88] sm:$0xff]  ;;  %v28_v35 = vld [vmem:[%s1246_s0 + $0x70] sm:$0xff]  ;;  %v34_v36 = vld [vmem:[%s1246_s0 + $0xa0] sm:$0xff] }
  0x18   :  { %v33_v38 = vld [vmem:[%s1246_s0 + $0x98] sm:$0xff]  ;;  %v32_v39 = vld [vmem:[%s1246_s0 + $0x90] sm:$0xff]  ;;  %v38_v40 = vld [vmem:[%s1246_s0 + $0xc0] sm:$0xff] }
  0x19   :  { %693 = vmatpush1.bf16.msra.mxu1 %v858_v56  ;;  %v37_v41 = vld [vmem:[%s1246_s0 + $0xb8] sm:$0xff]  ;;  %v43_v42 = vld [vmem:[%s1246_s0 + $0xe8] sm:$0xff]  ;;  %v36_v43 = vld [vmem:[%s1246_s0 + $0xb0] sm:$0xff] }
  0x1a   :  { %635 = vmatpush3.bf16.msra.mxu0 %v634_v57  ;;  %683 = vmatprep.subr.bf16.mxu1 %v700_v0  ;;  %v42_v44 = vld [vmem:[%s1246_s0 + $0xe0] sm:$0xff]  ;;  %v41_v45 = vld [vmem:[%s1246_s0 + $0xd8] sm:$0xff]  ;;  %v40_v47 = vld [vmem:[%s1246_s0 + $0xd0] sm:$0xff] }
  0x1b   :  { %637 = vmatprep.subr.bf16.mxu0 %v636_v60  ;;  %v46_v48 = vld [vmem:[%s1246_s0 + $0x100] sm:$0xff]  ;;  %v45_v49 = vld [vmem:[%s1246_s0 + $0xf8] sm:$0xff]  ;;  %v51_v50 = vld [vmem:[%s1246_s0 + $0x128] sm:$0xff] }
  0x1c   :  { %v44_v51 = vld [vmem:[%s1246_s0 + $0xf0] sm:$0xff]  ;;  %v50_v52 = vld [vmem:[%s1246_s0 + $0x120] sm:$0xff]  ;;  %v49_v53 = vld [vmem:[%s1246_s0 + $0x118] sm:$0xff] }
  0x1d   :  { %694 = vmatpush1.bf16.msra.mxu1 %v884_v3  ;;  %v55_v54 = vld [vmem:[%s1246_s0 + $0x148] sm:$0xff]  ;;  %v48_v55 = vld [vmem:[%s1246_s0 + $0x110] sm:$0xff]  ;;  %v53_v57 = vld [vmem:[%s1246_s0 + $0x138] sm:$0xff] }
  0x1e   :  { %639 = vmatpush3.bf16.msra.mxu0 %v638_v4  ;;  %684 = vmatprep.subr.bf16.mxu1 %v700_v0  ;;  %v59_v58 = vld [vmem:[%s1246_s0 + $0x168] sm:$0xff]  ;;  %v52_v59 = vld [vmem:[%s1246_s0 + $0x130] sm:$0xff]  ;;  %v58_v60 = vld [vmem:[%s1246_s0 + $0x160] sm:$0xff] }
  0x1f   :  { %641 = vmatprep.subr.bf16.mxu0 %v640_v6  ;;  %v57_v61 = vld [vmem:[%s1246_s0 + $0x158] sm:$0xff]  ;;  %v56_v62 = vld [vmem:[%s1246_s0 + $0x150] sm:$0xff]  ;;  %v62_v63 = vld [vmem:[%s1246_s0 + $0x180] sm:$0xff] }
  0x20   :  { %v61_v1 = vld [vmem:[%s1246_s0 + $0x178] sm:$0xff]  ;;  %v67_v2 = vld [vmem:[%s1246_s0 + $0x1a8] sm:$0xff]  ;;  %v66_v4 = vld [vmem:[%s1246_s0 + $0x1a0] sm:$0xff] }
  0x21   :  { %695 = vmatpush1.bf16.msra.mxu1 %v900_v11  ;;  %v65_v5 = vld [vmem:[%s1246_s0 + $0x198] sm:$0xff]  ;;  %v71_v6 = vld [vmem:[%s1246_s0 + $0x1c8] sm:$0xff]  ;;  %v64_v7 = vld [vmem:[%s1246_s0 + $0x190] sm:$0xff] }
  0x22   :  { %643 = vmatpush3.bf16.msra.mxu0 %v642_v12  ;;  %685 = vmatprep.subr.bf16.mxu1 %v700_v0  ;;  %v70_v9 = vld [vmem:[%s1246_s0 + $0x1c0] sm:$0xff]  ;;  %v69_v10 = vld [vmem:[%s1246_s0 + $0x1b8] sm:$0xff]  ;;  %v68_v12 = vld [vmem:[%s1246_s0 + $0x1b0] sm:$0xff] }
  0x23   :  { %644 = vmatprep.subr.bf16.mxu0 %v700_v0  ;;  %v74_v13 = vld [vmem:[%s1246_s0 + $0x1e0] sm:$0xff]  ;;  %v73_v14 = vld [vmem:[%s1246_s0 + $0x1d8] sm:$0xff]  ;;  %v76_v20 = vld [vmem:[%s1246_s0 + $0x1f0] sm:$0xff] }
  0x24   :  { %v77_v19 = vld [vmem:[%s1246_s0 + $0x1f8] sm:$0xff] }
  0x25   :  { %253 = vmatmul.mubr.f32.vlgmr.msra.gmra.mrb[0].mxu0 %v14_v15  ;;  %696 = vmatpush1.bf16.msra.mxu1 %v913_v16  ;;  %v17_v15 = vld [vmem:[%s1246_s0 + $0x18] sm:$0xff] }
  0x26   :  { %257 = vmatprep.mubr.f32.mxu0 %v19_v18  ;;  %646 = vmatpush1.bf16.msra.mxu0 %v740_v8  ;;  %v22_v8 = vld [vmem:[%s1246_s0 + $0x40] sm:$0xff]  ;;  %v16_v18 = vld [vmem:[%s1246_s0 + $0x10] sm:$0xff] }
  0x27   :  { %686 = vmatprep.subr.bf16.mxu1 %v700_v0  ;;  %647 = vmatprep.subr.bf16.mxu0 %v700_v0 }
  0x29   :  { %258 = vmatmul.mubr.f32.gmra.mrb[2].mxu0 %v18_v21  ;;  %697 = vmatpush1.bf16.msra.mxu1 %v930_v22 }
  0x2a   :  { %262 = vmatprep.mubr.f32.mxu0 %v23_v23  ;;  %687 = vmatprep.subr.bf16.mxu1 %v700_v0 }
  0x2b   :  { %649 = vmatpush1.bf16.msra.mxu0 %v761_v17  ;;  %v25_v17 = vld [vmem:[%s1246_s0 + $0x58] sm:$0xff] }
  0x2c   :  { %650 = vmatprep.subr.bf16.mxu0 %v700_v0 }
  0x2d   :  { %263 = vmatmul.mubr.f32.gmra.mrb[4].mxu0 %v22_v8  ;;  %698 = vmatpush1.bf16.msra.mxu1 %v948_v26 }
  0x2e   :  { %267 = vmatprep.mubr.f32.mxu0 %v27_v27  ;;  %v1162_v27 = vld [vmem:[%s1247_s2] ss:$0 sm:$0xff] }
  0x2f   :  { %652 = vmatpush1.bf16.msra.mxu0 %v789_v28  ;;  %v35_v28 = vld [vmem:[%s1246_s0 + $0xa8] sm:$0xff] }
  0x30   :  { %653 = vmatprep.subr.bf16.mxu0 %v700_v0  ;;  %403 = vmatmul.mubr.f32.vlgmr.msra.gmra.mrb[0].mxu1 %v20_v29 }
  0x31   :  { %268 = vmatmul.mubr.f32.gmra.mrb[6].mxu0 %v26_v30  ;;  %518 = vmatprep.mubr.msk.f32.mxu1 %vm139_vm0, %v25_v17 }
  0x32   :  { %272 = vmatprep.mubr.f32.mxu0 %v31_v31 }
  0x33   :  { %655 = vmatpush1.bf16.msra.mxu0 %v811_v37  ;;  %v39_v37 = vld [vmem:[%s1246_s0 + $0xc8] sm:$0xff] }
  0x34   :  { %656 = vmatprep.subr.bf16.mxu0 %v700_v0  ;;  %408 = vmatmul.mubr.f32.gmra.mrb[2].mxu1 %v24_v32 }
  0x35   :  { %273 = vmatmul.mubr.f32.gmra.mrb[8].mxu0 %v30_v33  ;;  %519 = vmatprep.mubr.msk.f32.mxu1 %vm139_vm0, %v29_v34 }
  0x36   :  { %277 = vmatprep.mubr.f32.mxu0 %v35_v28 }
  0x37   :  { %658 = vmatpush1.bf16.msra.mxu0 %v833_v46  ;;  %v47_v46 = vld [vmem:[%s1246_s0 + $0x108] sm:$0xff] }
  0x38   :  { %659 = vmatprep.subr.bf16.mxu0 %v700_v0  ;;  %413 = vmatmul.mubr.f32.gmra.mrb[4].mxu1 %v28_v35 }
  0x39   :  { %278 = vmatmul.mubr.f32.gmra.mrb[10].mxu0 %v34_v36  ;;  %520 = vmatprep.mubr.msk.f32.mxu1 %vm139_vm0, %v33_v38 }
  0x3a   :  { %282 = vmatprep.mubr.f32.mxu0 %v39_v37 }
  0x3b   :  { %661 = vmatpush1.bf16.msra.mxu0 %v858_v56  ;;  %v54_v56 = vld [vmem:[%s1246_s0 + $0x140] sm:$0xff] }
  0x3c   :  { %662 = vmatprep.subr.bf16.mxu0 %v700_v0  ;;  %418 = vmatmul.mubr.f32.gmra.mrb[6].mxu1 %v32_v39 }
  0x3d   :  { %283 = vmatmul.mubr.f32.gmra.mrb[12].mxu0 %v38_v40  ;;  %521 = vmatprep.mubr.msk.f32.mxu1 %vm139_vm0, %v37_v41 }
  0x3e   :  { %287 = vmatprep.mubr.f32.mxu0 %v43_v42 }
  0x3f   :  { %664 = vmatpush1.bf16.msra.mxu0 %v884_v3  ;;  %v60_v3 = vld [vmem:[%s1246_s0 + $0x170] sm:$0xff] }
  0x40   :  { %665 = vmatprep.subr.bf16.mxu0 %v700_v0  ;;  %423 = vmatmul.mubr.f32.gmra.mrb[8].mxu1 %v36_v43 }
  0x41   :  { %288 = vmatmul.mubr.f32.gmra.mrb[14].mxu0 %v42_v44  ;;  %522 = vmatprep.mubr.msk.f32.mxu1 %vm139_vm0, %v41_v45 }
  0x42   :  { %292 = vmatprep.mubr.f32.mxu0 %v47_v46 }
  0x43   :  { %667 = vmatpush1.bf16.msra.mxu0 %v900_v11  ;;  %v75_v11 = vld [vmem:[%s1246_s0 + $0x1e8] sm:$0xff] }
  0x44   :  { %668 = vmatprep.subr.bf16.mxu0 %v700_v0  ;;  %428 = vmatmul.mubr.f32.gmra.mrb[10].mxu1 %v40_v47 }
  0x45   :  { %293 = vmatmul.mubr.f32.gmra.mrb[16].mxu0 %v46_v48  ;;  %523 = vmatprep.mubr.msk.f32.mxu1 %vm139_vm0, %v45_v49 }
  0x46   :  { %297 = vmatprep.mubr.f32.mxu0 %v51_v50 }
  0x47   :  { %670 = vmatpush1.bf16.msra.mxu0 %v913_v16  ;;  %v72_v16 = vld [vmem:[%s1246_s0 + $0x1d0] sm:$0xff] }
  0x48   :  { %671 = vmatprep.subr.bf16.mxu0 %v700_v0  ;;  %433 = vmatmul.mubr.f32.gmra.mrb[12].mxu1 %v44_v51 }
  0x49   :  { %298 = vmatmul.mubr.f32.gmra.mrb[18].mxu0 %v50_v52  ;;  %524 = vmatprep.mubr.msk.f32.mxu1 %vm139_vm0, %v49_v53 }
  0x4a   :  { %302 = vmatprep.mubr.f32.mxu0 %v55_v54 }
  0x4b   :  { %673 = vmatpush1.bf16.msra.mxu0 %v930_v22 }
  0x4c   :  { %674 = vmatprep.subr.bf16.mxu0 %v700_v0  ;;  %438 = vmatmul.mubr.f32.gmra.mrb[14].mxu1 %v48_v55  ;;  %v63_v0 = vld [vmem:[%s1246_s0 + $0x188] sm:$0xff] }
  0x4d   :  { %303 = vmatmul.mubr.f32.gmra.mrb[20].mxu0 %v54_v56  ;;  %525 = vmatprep.mubr.msk.f32.mxu1 %vm139_vm0, %v53_v57 }
  0x4e   :  { %307 = vmatprep.mubr.f32.mxu0 %v59_v58 }
  0x4f   :  { %676 = vmatpush1.bf16.msra.mxu0 %v948_v26 }
  0x50   :  { %443 = vmatmul.mubr.f32.gmra.mrb[16].mxu1 %v52_v59 }
  0x51   :  { %308 = vmatmul.mubr.f32.gmra.mrb[22].mxu0 %v58_v60  ;;  %526 = vmatprep.mubr.msk.f32.mxu1 %vm139_vm0, %v57_v61 }
  0x52   :  { %312 = vmatprep.mubr.f32.mxu0 %v63_v0 }
  0x54   :  { %448 = vmatmul.mubr.f32.gmra.mrb[18].mxu1 %v56_v62 }
  0x55   :  { %313 = vmatmul.mubr.f32.gmra.mrb[24].mxu0 %v62_v63  ;;  %527 = vmatprep.mubr.msk.f32.mxu1 %vm139_vm0, %v61_v1 }
  0x56   :  { %317 = vmatprep.mubr.f32.mxu0 %v67_v2 }
  0x58   :  { %453 = vmatmul.mubr.f32.gmra.mrb[20].mxu1 %v60_v3 }
  0x59   :  { %318 = vmatmul.mubr.f32.gmra.mrb[26].mxu0 %v66_v4  ;;  %528 = vmatprep.mubr.msk.f32.mxu1 %vm139_vm0, %v65_v5 }
  0x5a   :  { %322 = vmatprep.mubr.f32.mxu0 %v71_v6 }
  0x5c   :  { %458 = vmatmul.mubr.f32.gmra.mrb[22].mxu1 %v64_v7 }
  0x5d   :  { %323 = vmatmul.mubr.f32.gmra.mrb[28].mxu0 %v70_v9  ;;  %529 = vmatprep.mubr.msk.f32.mxu1 %vm139_vm0, %v69_v10 }
  0x5e   :  { %327 = vmatprep.mubr.f32.mxu0 %v75_v11 }
  0x60   :  { %463 = vmatmul.mubr.f32.gmra.mrb[24].mxu1 %v68_v12 }
  0x61   :  { %328 = vmatmul.mubr.f32.gmra.mrb[30].mxu0 %v74_v13  ;;  %530 = vmatprep.mubr.msk.f32.mxu1 %vm139_vm0, %v73_v14 }
  0x62   :  { %516 = vmatprep.mubr.msk.f32.mxu0 %vm139_vm0, %v17_v15 }
  0x64   :  { %468 = vmatmul.mubr.f32.gmra.mrb[26].mxu1 %v72_v16 }
  0x65   :  { %398 = vmatmul.mubr.f32.vlgmr.msra.gmra.mrb[32].mxu0 %v16_v18  ;;  %531 = vmatprep.mubr.msk.f32.mxu1 %vm139_vm0, %v77_v19 }
  0x68   :  { %473 = vmatmul.mubr.f32.gmra.mrb[28].mxu1 %v76_v20 }
  0xf8   :  { %v564_v21 = vpop.f32.mrb[0].mxu0 }
  0xf9   :  { %v565_v22 = vpop.f32.mrb[1].mxu0 }
  0xfa   :  { %v1157_v23 = vadd.f32 %v565_v22, %v564_v21 }
  0xfc   :  { %v567_v24 = vpop.f32.mrb[2].mxu0 }
  0xfd   :  { %v568_v25 = vpop.f32.mrb[3].mxu0 }
  0xfe   :  { %v569_v8 = vadd.f32 %v568_v25, %v567_v24 }
 0x100   :  { %v570_v26 = vpop.f32.mrb[4].mxu0  ;;  %v260_v30 = vadd.f32 %v569_v8, %v1162_v27 }
 0x101   :  { %v571_v29 = vpop.f32.mrb[5].mxu0 }
 0x102   :  { %v572_v17 = vadd.f32 %v571_v29, %v570_v26 }
 0x103   :  { %v404_v31 = vpop.f32.mrb[0].mxu1 }
 0x104   :  { %v573_v32 = vpop.f32.mrb[6].mxu0  ;;  %v405_v33 = vadd.f32 %v404_v31, %v260_v30  ;;  %v406_v34 = vpop.f32.mrb[1].mxu1  ;;  %v265_v35 = vadd.f32 %v572_v17, %v1162_v27 }
 0x105   :  { %v574_v28 = vpop.f32.mrb[7].mxu0 }
 0x106   :  { %v575_v36 = vadd.f32 %v574_v28, %v573_v32  ;;  %v479_v38 = vmax.f32 %v405_v33, 0.0 }
 0x107   :  { %v409_v37 = vpop.f32.mrb[2].mxu1 }
 0x108   :  { %v576_v39 = vpop.f32.mrb[8].mxu0  ;;  %496 = vst.msk [vmem:[%s1248_s3 + $0x8] sm:$0xff] %vm494_vm1, %v479_v38  ;;  %v410_v40 = vadd.f32 %v409_v37, %v265_v35  ;;  %v411_v41 = vpop.f32.mrb[3].mxu1  ;;  %v270_v43 = vadd.f32 %v575_v36, %v1162_v27 }
 0x109   :  { %v577_v42 = vpop.f32.mrb[9].mxu0 }
 0x10a   :  { %v578_v44 = vadd.f32 %v577_v42, %v576_v39  ;;  %v480_v45 = vmax.f32 %v410_v40, 0.0 }
 0x10b   :  { %v414_v46 = vpop.f32.mrb[4].mxu1 }
 0x10c   :  { %v579_v47 = vpop.f32.mrb[10].mxu0  ;;  %497 = vst.msk [vmem:[%s1248_s3 + $0x10] sm:$0xff] %vm494_vm1, %v480_v45  ;;  %v415_v48 = vadd.f32 %v414_v46, %v270_v43  ;;  %v416_v49 = vpop.f32.mrb[5].mxu1  ;;  %v275_v51 = vadd.f32 %v578_v44, %v1162_v27 }
 0x10d   :  { %v580_v50 = vpop.f32.mrb[11].mxu0 }
 0x10e   :  { %v581_v52 = vadd.f32 %v580_v50, %v579_v47  ;;  %v481_v53 = vmax.f32 %v415_v48, 0.0 }
 0x10f   :  { %v419_v54 = vpop.f32.mrb[6].mxu1 }
 0x110   :  { %v582_v55 = vpop.f32.mrb[12].mxu0  ;;  %498 = vst.msk [vmem:[%s1248_s3 + $0x18] sm:$0xff] %vm494_vm1, %v481_v53  ;;  %v420_v56 = vadd.f32 %v419_v54, %v275_v51  ;;  %v421_v57 = vpop.f32.mrb[7].mxu1  ;;  %v280_v59 = vadd.f32 %v581_v52, %v1162_v27 }
 0x111   :  { %v583_v58 = vpop.f32.mrb[13].mxu0 }
 0x112   :  { %v584_v60 = vadd.f32 %v583_v58, %v582_v55  ;;  %v482_v61 = vmax.f32 %v420_v56, 0.0 }
 0x113   :  { %v424_v0 = vpop.f32.mrb[8].mxu1 }
 0x114   :  { %v585_v62 = vpop.f32.mrb[14].mxu0  ;;  %499 = vst.msk [vmem:[%s1248_s3 + $0x20] sm:$0xff] %vm494_vm1, %v482_v61  ;;  %v425_v63 = vadd.f32 %v424_v0, %v280_v59  ;;  %v426_v1 = vpop.f32.mrb[9].mxu1  ;;  %v285_v3 = vadd.f32 %v584_v60, %v1162_v27 }
 0x115   :  { %v586_v2 = vpop.f32.mrb[15].mxu0 }
 0x116   :  { %v587_v4 = vadd.f32 %v586_v2, %v585_v62  ;;  %v483_v5 = vmax.f32 %v425_v63, 0.0 }
 0x117   :  { %v429_v6 = vpop.f32.mrb[10].mxu1 }
 0x118   :  { %v588_v7 = vpop.f32.mrb[16].mxu0  ;;  %500 = vst.msk [vmem:[%s1248_s3 + $0x28] sm:$0xff] %vm494_vm1, %v483_v5  ;;  %v430_v9 = vadd.f32 %v429_v6, %v285_v3  ;;  %v431_v10 = vpop.f32.mrb[11].mxu1  ;;  %v290_v12 = vadd.f32 %v587_v4, %v1162_v27 }
 0x119   :  { %v589_v11 = vpop.f32.mrb[17].mxu0 }
 0x11a   :  { %v590_v13 = vadd.f32 %v589_v11, %v588_v7  ;;  %v484_v14 = vmax.f32 %v430_v9, 0.0  ;;  %v255_v9 = vadd.f32 %v1157_v23, %v1162_v27 }
 0x11b   :  { %v434_v15 = vpop.f32.mrb[12].mxu1 }
 0x11c   :  { %v591_v16 = vpop.f32.mrb[18].mxu0  ;;  %501 = vst.msk [vmem:[%s1248_s3 + $0x30] sm:$0xff] %vm494_vm1, %v484_v14  ;;  %v435_v18 = vadd.f32 %v434_v15, %v290_v12  ;;  %v436_v19 = vpop.f32.mrb[13].mxu1  ;;  %v295_v21 = vadd.f32 %v590_v13, %v1162_v27 }
 0x11d   :  { %v592_v20 = vpop.f32.mrb[19].mxu0 }
 0x11e   :  { %v593_v22 = vadd.f32 %v592_v20, %v591_v16  ;;  %v485_v24 = vmax.f32 %v435_v18, 0.0 }
 0x11f   :  { %v439_v25 = vpop.f32.mrb[14].mxu1 }
 0x120   :  { %v594_v8 = vpop.f32.mrb[20].mxu0  ;;  %502 = vst.msk [vmem:[%s1248_s3 + $0x38] sm:$0xff] %vm494_vm1, %v485_v24  ;;  %v440_v26 = vadd.f32 %v439_v25, %v295_v21  ;;  %v441_v29 = vpop.f32.mrb[15].mxu1  ;;  %v300_v17 = vadd.f32 %v593_v22, %v1162_v27 }
 0x121   :  { %v595_v30 = vpop.f32.mrb[21].mxu0 }
 0x122   :  { %v596_v31 = vadd.f32 %v595_v30, %v594_v8  ;;  %v486_v32 = vmax.f32 %v440_v26, 0.0 }
 0x123   :  { %v444_v33 = vpop.f32.mrb[16].mxu1 }
 0x124   :  { %v597_v34 = vpop.f32.mrb[22].mxu0  ;;  %503 = vst.msk [vmem:[%s1248_s3 + $0x40] sm:$0xff] %vm494_vm1, %v486_v32  ;;  %v445_v28 = vadd.f32 %v444_v33, %v300_v17  ;;  %v446_v35 = vpop.f32.mrb[17].mxu1  ;;  %v305_v38 = vadd.f32 %v596_v31, %v1162_v27 }
 0x125   :  { %v598_v36 = vpop.f32.mrb[23].mxu0 }
 0x126   :  { %v599_v37 = vadd.f32 %v598_v36, %v597_v34  ;;  %v487_v39 = vmax.f32 %v445_v28, 0.0 }
 0x127   :  { %v449_v40 = vpop.f32.mrb[18].mxu1 }
 0x128   :  { %v600_v41 = vpop.f32.mrb[24].mxu0  ;;  %504 = vst.msk [vmem:[%s1248_s3 + $0x48] sm:$0xff] %vm494_vm1, %v487_v39  ;;  %v450_v42 = vadd.f32 %v449_v40, %v305_v38  ;;  %v451_v43 = vpop.f32.mrb[19].mxu1  ;;  %v310_v45 = vadd.f32 %v599_v37, %v1162_v27 }
 0x129   :  { %v601_v44 = vpop.f32.mrb[25].mxu0 }
 0x12a   :  { %v602_v46 = vadd.f32 %v601_v44, %v600_v41  ;;  %v488_v47 = vmax.f32 %v450_v42, 0.0 }
 0x12b   :  { %v454_v48 = vpop.f32.mrb[20].mxu1 }
 0x12c   :  { %v603_v49 = vpop.f32.mrb[26].mxu0  ;;  %505 = vst.msk [vmem:[%s1248_s3 + $0x50] sm:$0xff] %vm494_vm1, %v488_v47  ;;  %v455_v50 = vadd.f32 %v454_v48, %v310_v45  ;;  %v456_v51 = vpop.f32.mrb[21].mxu1  ;;  %v315_v53 = vadd.f32 %v602_v46, %v1162_v27 }
 0x12d   :  { %v604_v52 = vpop.f32.mrb[27].mxu0 }
 0x12e   :  { %v605_v54 = vadd.f32 %v604_v52, %v603_v49  ;;  %v489_v55 = vmax.f32 %v455_v50, 0.0 }
 0x12f   :  { %v459_v56 = vpop.f32.mrb[22].mxu1 }
 0x130   :  { %v606_v57 = vpop.f32.mrb[28].mxu0  ;;  %506 = vst.msk [vmem:[%s1248_s3 + $0x58] sm:$0xff] %vm494_vm1, %v489_v55  ;;  %v460_v58 = vadd.f32 %v459_v56, %v315_v53  ;;  %v461_v59 = vpop.f32.mrb[23].mxu1  ;;  %v320_v61 = vadd.f32 %v605_v54, %v1162_v27 }
 0x131   :  { %v607_v60 = vpop.f32.mrb[29].mxu0 }
 0x132   :  { %v608_v0 = vadd.f32 %v607_v60, %v606_v57  ;;  %v490_v62 = vmax.f32 %v460_v58, 0.0 }
 0x133   :  { %v464_v63 = vpop.f32.mrb[24].mxu1 }
 0x134   :  { %v609_v1 = vpop.f32.mrb[30].mxu0  ;;  %507 = vst.msk [vmem:[%s1248_s3 + $0x60] sm:$0xff] %vm494_vm1, %v490_v62  ;;  %v465_v2 = vadd.f32 %v464_v63, %v320_v61  ;;  %v466_v3 = vpop.f32.mrb[25].mxu1  ;;  %v325_v5 = vadd.f32 %v608_v0, %v1162_v27 }
 0x135   :  { %v610_v4 = vpop.f32.mrb[31].mxu0 }
 0x136   :  { %v611_v6 = vadd.f32 %v610_v4, %v609_v1  ;;  %v491_v7 = vmax.f32 %v465_v2, 0.0 }
 0x137   :  { %v469_v10 = vpop.f32.mrb[26].mxu1 }
 0x138   :  { %v399_v11 = vpop.f32.mrb[32].mxu0  ;;  %508 = vst.msk [vmem:[%s1248_s3 + $0x68] sm:$0xff] %vm494_vm1, %v491_v7  ;;  %v470_v12 = vadd.f32 %v469_v10, %v325_v5  ;;  %v471_v14 = vpop.f32.mrb[27].mxu1  ;;  %v330_v16 = vadd.f32 %v611_v6, %v1162_v27 }
 0x139   :  { %v400_v13 = vadd.f32 %v399_v11, %v255_v9  ;;  %v401_v15 = vpop.f32.mrb[33].mxu0 }
 0x13a   :  { %v492_v18 = vmax.f32 %v470_v12, 0.0 }
 0x13b   :  { %v478_v19 = vmax.f32 %v400_v13, 0.0  ;;  %v474_v20 = vpop.f32.mrb[28].mxu1 }
 0x13c   :  { %509 = vst.msk [vmem:[%s1248_s3 + $0x70] sm:$0xff] %vm494_vm1, %v492_v18  ;;  %v475_v23 = vadd.f32 %v474_v20, %v330_v16  ;;  %v476_v21 = vpop.f32.mrb[29].mxu1 }
 0x13d   :  { %495 = vst.msk [vmem:[%s1248_s3] sm:$0xff] %vm494_vm1, %v478_v19 }
 0x13e   :  { %v493_v22 = vmax.f32 %v475_v23, 0.0 }
 0x140   :  { %510 = vst.msk [vmem:[%s1248_s3 + $0x78] sm:$0xff] %vm494_vm1, %v493_v22 }

// kernel: simple_model_forward.12
= control target key start
LH: loop header
LB: loop body
LE: loop exit
PB: predicated region body
PF: predicated region fallthrough
CT: control target
= control target key end

     0   :  { %s643_s12 = smov 0   ;;  %s818_s0 = inlined_call_operand.vmem [shape: f32[2,4,2,4,2,96], index: 0, kind: input, shape index: {}]   ;;  %s819_s1 = inlined_call_operand.vmem [shape: f32[96,48], index: 1, kind: input, shape index: {}]   ;;  %s820_s2 = inlined_call_operand.vmem [shape: f32[1,48], index: 2, kind: input, shape index: {}]   ;;  %s821_s3 = inlined_call_operand.vmem [shape: f32[2,16,48], index: 3, kind: output, shape index: {}]  }
   0x1 LB: > { %s494_s13 = sadd.s32 4294967295, %s621_s12   ;;  %p498_p0 = scmp.ge.s32.totalorder %s621_s12, 1  ;;  %s621_s12 = sphi %s643_s12, %s13_s12  }
   0x2   : > { %p137_p1 = scmp.lt.s32.totalorder %s621_s12, 3 }
   0x4   : > { %p138_p2 = pnand %p498_p0, %p137_p1 }
   0x5   : > { %v284_v0 = vld [vmem:[%s819_s1] sm:$0xff] (!%p138_p2)  ;;  %v285_v1 = vld [vmem:[%s819_s1 + $0x8] sm:$0xff] (!%p138_p2)  ;;  %v286_v2 = vld [vmem:[%s819_s1 + $0x10] sm:$0xff] (!%p138_p2)  ;;  %p161_p3 = scmp.lt.s32.totalorder (!%p138_p2), %s494_s13, 1  ;;  %vm320_vm0 = vcmask (!%p138_p2), 1041409   ;;  %vm323_vm1 = vcmask (!%p138_p2), 1042434  }
   0x6   : > { %141 = sbr.rel (%p138_p2) target bundleno = 268 (0x10c), region = 32  ;;  %v583_v3 = vpack.c.bf16 (!%p138_p2), %v285_v1, %v284_v0  ;;  %v287_v4 = vld [vmem:[%s819_s1 + $0x18] sm:$0xff] (!%p138_p2)  ;;  %v288_v6 = vld [vmem:[%s819_s1 + $0x20] sm:$0xff] (!%p138_p2)  ;;  %v289_v7 = vld [vmem:[%s819_s1 + $0x28] sm:$0xff] (!%p138_p2)  ;;  %vm326_vm2 = vcmask (!%p138_p2), 1043459   ;;  %vm329_vm3 = vcmask (!%p138_p2), 1044484  }
   0x7   : > { %v587_v5 = vpack.c.bf16 (!%p138_p2), %v287_v4, %v286_v2  ;;  %v591_v8 = vpack.c.bf16 (!%p138_p2), %v289_v7, %v288_v6  ;;  %v290_v9 = vld [vmem:[%s819_s1 + $0x30] sm:$0xff] (!%p138_p2)  ;;  %v291_v10 = vld [vmem:[%s819_s1 + $0x38] sm:$0xff] (!%p138_p2)  ;;  %v292_v11 = vld [vmem:[%s819_s1 + $0x40] sm:$0xff] (!%p138_p2)  ;;  %vm332_vm4 = vcmask (!%p138_p2), 1045509   ;;  %vm335_vm5 = vcmask (!%p138_p2), 1046534  }
   0x8   : > { %584 = vmatprep.subr.bf16.mxu0 (!%p138_p2), %v583_v3  ;;  %v293_v12 = vld [vmem:[%s819_s1 + $0x48] sm:$0xff] (!%p138_p2)  ;;  %v595_v17 = vpack.c.bf16 (!%p138_p2), %v291_v10, %v290_v9  ;;  %v294_v29 = vld [vmem:[%s819_s1 + $0x50] sm:$0xff] (!%p138_p2)  ;;  %v295_v30 = vld [vmem:[%s819_s1 + $0x58] sm:$0xff] (!%p138_p2)  ;;  %vm338_vm6 = vcmask (!%p138_p2), 1047559   ;;  %vm354_vm7 = vcmask (!%p138_p2), 785408   ;;  %vm436_vm8 = vcmask (!%p138_p2), 392192  }
   0x9   : > { %586 = vmatpush3.bf16.msra.mxu0 (!%p138_p2), %v583_v3  ;;  %v599_v37 = vpack.c.bf16 (!%p138_p2), %v293_v12, %v292_v11  ;;  %v603_v58 = vpack.c.bf16 (!%p138_p2), %v295_v30, %v294_v29 }
   0xa   : > { %588 = vmatprep.subr.bf16.mxu0 (!%p138_p2), %v587_v5 }
   0xd   : > { %s823_s13 = smov (!%p161_p3, %s494_s13), 1  ;;  %590 = vmatpush3.bf16.msra.mxu0 %v587_v5 }
   0xe   : > { %s540_s26 = sshll.u32 %s823_s13, 6  ;;  %592 = vmatprep.subr.bf16.mxu0 %v591_v8  ;;  %s541_s19 = sshll.u32 %s823_s13, 4 }
   0xf   : > { %s675_s29 = scalar_lea.vmem %s818_s0, %s540_s26  ;;  %s170_s22 = scalar_lea.vmem %s821_s3, %s541_s19 }
  0x10   : > { %v690_v13 = vld [vmem:[%s675_s29] sm:$0x1]  ;;  %v693_v14 = vld [vmem:[%s675_s29 + $0x2] sm:$0x1]  ;;  %v696_v15 = vld [vmem:[%s675_s29 + $0x4] sm:$0x1] }
  0x11   : > { %v699_v16 = vld [vmem:[%s675_s29 + $0x1] sm:$0x1]  ;;  %v702_v18 = vld [vmem:[%s675_s29 + $0x6] sm:$0x1]  ;;  %v705_v19 = vld [vmem:[%s675_s29 + $0x10] sm:$0x1]  ;;  %594 = vmatpush3.bf16.msra.mxu0 %v591_v8 }
  0x12   : > { %v708_v20 = vld [vmem:[%s675_s29 + $0x12] sm:$0x1]  ;;  %v711_v21 = vld [vmem:[%s675_s29 + $0x14] sm:$0x1]  ;;  %v188_v22 = vld [vmem:[%s675_s29 + $0x3] sm:$0x1]  ;;  %596 = vmatprep.subr.bf16.mxu0 %v595_v17  ;;  %v203_v38 = vmax.f32 %v690_v13, %v699_v16 }
  0x13   : > { %v189_v23 = vld [vmem:[%s675_s29 + $0x5] sm:$0x1]  ;;  %v190_v24 = vld [vmem:[%s675_s29 + $0x7] sm:$0x1]  ;;  %v178_v25 = vld [vmem:[%s675_s29 + $0x16] sm:$0x1]  ;;  %v204_v39 = vmax.f32 %v693_v14, %v188_v22 }
  0x14   : > { %v191_v26 = vld [vmem:[%s675_s29 + $0x11] sm:$0x1]  ;;  %v192_v27 = vld [vmem:[%s675_s29 + $0x13] sm:$0x1]  ;;  %v193_v28 = vld [vmem:[%s675_s29 + $0x15] sm:$0x1]  ;;  %v205_v40 = vmax.f32 %v696_v15, %v189_v23  ;;  %v206_v44 = vmax.f32 %v702_v18, %v190_v24 }
  0x15   : > { %v194_v31 = vld [vmem:[%s675_s29 + $0x17] sm:$0x1]  ;;  %v503_v32 = vld [vmem:[%s675_s29 + $0x8] sm:$0x1]  ;;  %v504_v33 = vld [vmem:[%s675_s29 + $0xa] sm:$0x1]  ;;  %v207_v45 = vmax.f32 %v705_v19, %v191_v26  ;;  %v208_v46 = vmax.f32 %v708_v20, %v192_v27  ;;  %v209_v47 = vmax.f32 %v711_v21, %v193_v28  ;;  %598 = vmatpush3.bf16.msra.mxu0 %v595_v17 }
  0x16   : > { %v505_v34 = vld [vmem:[%s675_s29 + $0xc] sm:$0x1]  ;;  %v506_v35 = vld [vmem:[%s675_s29 + $0xe] sm:$0x1]  ;;  %v507_v36 = vld [vmem:[%s675_s29 + $0x18] sm:$0x1]  ;;  %v210_v51 = vmax.f32 %v178_v25, %v194_v31  ;;  %600 = vmatprep.subr.bf16.mxu0 %v599_v37 }
  0x17   : > { %v508_v41 = vld [vmem:[%s675_s29 + $0x1a] sm:$0x1]  ;;  %v509_v42 = vld [vmem:[%s675_s29 + $0x1c] sm:$0x1]  ;;  %v510_v43 = vld [vmem:[%s675_s29 + $0x1e] sm:$0x1] }
  0x18   : > { %v519_v48 = vld [vmem:[%s675_s29 + $0x9] sm:$0x1]  ;;  %v520_v49 = vld [vmem:[%s675_s29 + $0xb] sm:$0x1]  ;;  %v521_v50 = vld [vmem:[%s675_s29 + $0xd] sm:$0x1] }
  0x19   : > { %v522_v52 = vld [vmem:[%s675_s29 + $0xf] sm:$0x1]  ;;  %v523_v53 = vld [vmem:[%s675_s29 + $0x19] sm:$0x1]  ;;  %v524_v54 = vld [vmem:[%s675_s29 + $0x1b] sm:$0x1]  ;;  %v252_v55 = vmax.f32 %v503_v32, %v519_v48  ;;  %v253_v56 = vmax.f32 %v504_v33, %v520_v49  ;;  %v254_v57 = vmax.f32 %v505_v34, %v521_v50  ;;  %602 = vmatpush3.bf16.msra.mxu0 %v599_v37 }
  0x1a   : > { %v525_v59 = vld [vmem:[%s675_s29 + $0x1d] sm:$0x1]  ;;  %v526_v60 = vld [vmem:[%s675_s29 + $0x1f] sm:$0x1]  ;;  %v255_v61 = vmax.f32 %v506_v35, %v522_v52  ;;  %v256_v62 = vmax.f32 %v507_v36, %v523_v53  ;;  %v257_v63 = vmax.f32 %v508_v41, %v524_v54  ;;  %v752_v11 = vld [vmem:[%s675_s29 + $0x20] sm:$0x1]  ;;  %604 = vmatprep.subr.bf16.mxu0 %v603_v58 }
  0x1b   : > { %v258_v0 = vmax.f32 %v509_v42, %v525_v59  ;;  %v259_v1 = vmax.f32 %v510_v43, %v526_v60  ;;  %v268_v2 = vmax.f32 %v203_v38, %v252_v55  ;;  %v269_v3 = vmax.f32 %v204_v39, %v253_v56  ;;  %v755_v12 = vld [vmem:[%s675_s29 + $0x22] sm:$0x1]  ;;  %v758_v13 = vld [vmem:[%s675_s29 + $0x21] sm:$0x1]  ;;  %v181_v18 = vld [vmem:[%s675_s29 + $0x24] sm:$0x1] }
  0x1c   : > { %v270_v4 = vmax.f32 %v205_v40, %v254_v57  ;;  %v271_v5 = vmax.f32 %v206_v44, %v255_v61  ;;  %v272_v6 = vmax.f32 %v207_v45, %v256_v62  ;;  %v273_v7 = vmax.f32 %v208_v46, %v257_v63  ;;  %v182_v19 = vld [vmem:[%s675_s29 + $0x26] sm:$0x1]  ;;  %v183_v20 = vld [vmem:[%s675_s29 + $0x30] sm:$0x1]  ;;  %v196_v21 = vld [vmem:[%s675_s29 + $0x23] sm:$0x1] }
  0x1d   : > { %v274_v8 = vmax.f32 %v209_v47, %v258_v0  ;;  %v275_v9 = vmax.f32 %v210_v51, %v259_v1  ;;  %v319_v10 = vrot.slane %v269_v3, 7  ;;  %v184_v25 = vld [vmem:[%s675_s29 + $0x32] sm:$0x1]  ;;  %v185_v26 = vld [vmem:[%s675_s29 + $0x34] sm:$0x1]  ;;  %606 = vmatpush3.bf16.msra.mxu0 %v603_v58  ;;  %v211_v39 = vmax.f32 %v752_v11, %v758_v13 }
  0x1e   : > { %v322_v14 = vrot.slane %v270_v4, 6  ;;  %v325_v15 = vrot.slane %v271_v5, 5  ;;  %v328_v16 = vrot.slane %v272_v6, 4  ;;  %v331_v17 = vrot.slane %v273_v7, 3  ;;  %v186_v27 = vld [vmem:[%s675_s29 + $0x36] sm:$0x1] }
  0x1f   : > { %v321_v22 = vsel %vm320_vm0, %v319_v10, %v268_v2  ;;  %v334_v23 = vrot.slane %v274_v8, 2  ;;  %v337_v24 = vrot.slane %v275_v9, 1  ;;  %v197_v28 = vld [vmem:[%s675_s29 + $0x25] sm:$0x1]  ;;  %v198_v29 = vld [vmem:[%s675_s29 + $0x27] sm:$0x1]  ;;  %v212_v40 = vmax.f32 %v755_v12, %v196_v21 }
  0x20   : > { %v324_v30 = vsel %vm323_vm1, %v322_v14, %v321_v22  ;;  %v199_v31 = vld [vmem:[%s675_s29 + $0x31] sm:$0x1]  ;;  %v200_v32 = vld [vmem:[%s675_s29 + $0x33] sm:$0x1]  ;;  %v201_v33 = vld [vmem:[%s675_s29 + $0x35] sm:$0x1]  ;;  %v213_v45 = vmax.f32 %v181_v18, %v197_v28  ;;  %v214_v46 = vmax.f32 %v182_v19, %v198_v29 }
  0x21   : > { %v327_v34 = vsel %vm326_vm2, %v325_v15, %v324_v30  ;;  %v202_v35 = vld [vmem:[%s675_s29 + $0x37] sm:$0x1]  ;;  %v511_v36 = vld [vmem:[%s675_s29 + $0x28] sm:$0x1]  ;;  %v512_v37 = vld [vmem:[%s675_s29 + $0x2a] sm:$0x1]  ;;  %v215_v47 = vmax.f32 %v183_v20, %v199_v31  ;;  %v216_v52 = vmax.f32 %v184_v25, %v200_v32  ;;  %v217_v53 = vmax.f32 %v185_v26, %v201_v33 }
  0x22   : > { %v330_v38 = vsel %vm329_vm3, %v328_v16, %v327_v34  ;;  %v513_v41 = vld [vmem:[%s675_s29 + $0x2c] sm:$0x1]  ;;  %v514_v42 = vld [vmem:[%s675_s29 + $0x2e] sm:$0x1]  ;;  %v515_v43 = vld [vmem:[%s675_s29 + $0x38] sm:$0x1]  ;;  %v218_v54 = vmax.f32 %v186_v27, %v202_v35 }
  0x23   : > { %v333_v44 = vsel %vm332_vm4, %v331_v17, %v330_v38  ;;  %v516_v48 = vld [vmem:[%s675_s29 + $0x3a] sm:$0x1]  ;;  %v517_v49 = vld [vmem:[%s675_s29 + $0x3c] sm:$0x1]  ;;  %v518_v50 = vld [vmem:[%s675_s29 + $0x3e] sm:$0x1] }
  0x24   : > { %v336_v51 = vsel %vm335_vm5, %v334_v23, %v333_v44  ;;  %v527_v55 = vld [vmem:[%s675_s29 + $0x29] sm:$0x1]  ;;  %v528_v56 = vld [vmem:[%s675_s29 + $0x2b] sm:$0x1]  ;;  %v529_v57 = vld [vmem:[%s675_s29 + $0x2d] sm:$0x1] }
  0x25   : > { %v339_v58 = vsel %vm338_vm6, %v337_v24, %v336_v51  ;;  %v530_v59 = vld [vmem:[%s675_s29 + $0x2f] sm:$0x1]  ;;  %v531_v60 = vld [vmem:[%s675_s29 + $0x39] sm:$0x1]  ;;  %v532_v61 = vld [vmem:[%s675_s29 + $0x3b] sm:$0x1]  ;;  %v260_v62 = vmax.f32 %v511_v36, %v527_v55  ;;  %v261_v63 = vmax.f32 %v512_v37, %v528_v56  ;;  %v262_v0 = vmax.f32 %v513_v41, %v529_v57 }
  0x26   : > { %580 = vmatprep.mubr.msk.f32.mxu0 %vm354_vm7, %v339_v58  ;;  %v533_v1 = vld [vmem:[%s675_s29 + $0x3d] sm:$0x1]  ;;  %v534_v2 = vld [vmem:[%s675_s29 + $0x3f] sm:$0x1]  ;;  %v263_v3 = vmax.f32 %v514_v42, %v530_v59  ;;  %v264_v4 = vmax.f32 %v515_v43, %v531_v60  ;;  %v265_v5 = vmax.f32 %v516_v48, %v532_v61  ;;  %v535_v30 = vld [vmem:[%s820_s2] ss:$0 sm:$0xff] }
  0x27   : > { %v266_v6 = vmax.f32 %v517_v49, %v533_v1  ;;  %v267_v7 = vmax.f32 %v518_v50, %v534_v2  ;;  %v276_v8 = vmax.f32 %v211_v39, %v260_v62  ;;  %v277_v9 = vmax.f32 %v212_v40, %v261_v63 }
  0x28   : > { %v278_v10 = vmax.f32 %v213_v45, %v262_v0  ;;  %v279_v11 = vmax.f32 %v214_v46, %v263_v3  ;;  %v280_v12 = vmax.f32 %v215_v47, %v264_v4  ;;  %v281_v13 = vmax.f32 %v216_v52, %v265_v5 }
  0x29   : > { %v282_v14 = vmax.f32 %v217_v53, %v266_v6  ;;  %v283_v15 = vmax.f32 %v218_v54, %v267_v7  ;;  %v340_v16 = vrot.slane %v277_v9, 7 }
  0x2a   : > { %v342_v17 = vrot.slane %v278_v10, 6  ;;  %v344_v18 = vrot.slane %v279_v11, 5  ;;  %v346_v19 = vrot.slane %v280_v12, 4  ;;  %v348_v21 = vrot.slane %v281_v13, 3 }
  0x2b   : > { %v341_v20 = vsel %vm320_vm0, %v340_v16, %v276_v8  ;;  %v350_v23 = vrot.slane %v282_v14, 2  ;;  %v352_v25 = vrot.slane %v283_v15, 1 }
  0x2c   : > { %v343_v22 = vsel %vm323_vm1, %v342_v17, %v341_v20 }
  0x2d   : > { %v345_v24 = vsel %vm326_vm2, %v344_v18, %v343_v22 }
  0x2e   : > { %v347_v26 = vsel %vm329_vm3, %v346_v19, %v345_v24 }
  0x2f   : > { %v349_v27 = vsel %vm332_vm4, %v348_v21, %v347_v26 }
  0x30   : > { %v351_v28 = vsel %vm335_vm5, %v350_v23, %v349_v27 }
  0x31   : > { %v353_v29 = vsel %vm338_vm6, %v352_v25, %v351_v28 }
  0x32   : > { %581 = vmatmul.mubr.msk.f32.vlgmr.msra.gmra.mrb[0].mxu0 %vm354_vm7, %v353_v29 }
 0x105   : > { %v582_v31 = vpop.f32.mrb[0].mxu0 }
 0x106   : > { %v431_v32 = vadd.f32 %v582_v31, %v535_v30  ;;  %v425_v33 = vpop.f32.mrb[1].mxu0 }
 0x107   : > { %v426_v34 = vadd.f32 %v535_v30, %v425_v33 }
 0x108   : > { %v435_v35 = vmax.f32 %v431_v32, 0.0 }
 0x109   : > { %v434_v36 = vmax.f32 %v426_v34, 0.0 }
 0x10a   : > { %438 = vst.msk [vmem:[%s170_s22 + $0x8] sm:$0xff] %vm436_vm8, %v435_v35 }
 0x10b   : > { %437 = vst.msk [vmem:[%s170_s22] sm:$0xff] %vm436_vm8, %v434_v36 }
 0x10c PF: > { %s13_s12 = sadd.s32 1, %s621_s12  }
 0x10d   : > { %p10_p4 = scmp.ge.s32.totalorder %s13_s12, 4  }
 0x10f   :  { %12 = sbr.rel (!%p10_p4) target bundleno = 1 (0x1), region = 63 }

// kernel: simple_model_forward.13
= control target key start
LH: loop header
LB: loop body
LE: loop exit
PB: predicated region body
PF: predicated region fallthrough
CT: control target
= control target key end

     0   :  { %v788_v43 = vmov 1983009808   ;;  %v132_v45 = vlaneseq  ;;  %s1183_s0 = inlined_call_operand.vmem [shape: f32[2,768], index: 0, kind: input, shape index: {}]   ;;  %s1184_s1 = inlined_call_operand.vmem [shape: f32[768,128], index: 1, kind: input, shape index: {}]   ;;  %s1185_s2 = inlined_call_operand.vmem [shape: f32[1,128], index: 2, kind: input, shape index: {}]   ;;  %s1186_s3 = inlined_call_operand.vmem [shape: f32[128,128], index: 3, kind: input, shape index: {}]   ;;  %s1187_s4 = inlined_call_operand.vmem [shape: f32[1,128], index: 4, kind: input, shape index: {}]   ;;  %s1188_s5 = inlined_call_operand.hbm [shape: f32[2,128], index: 5, kind: output, shape index: {}]  }
   0x1   :  { %v39_v0 = vld [vmem:[%s1184_s1 + $0x80] sm:$0xff]  ;;  %v40_v1 = vld [vmem:[%s1184_s1 + $0x88] sm:$0xff]  ;;  %v41_v11 = vld [vmem:[%s1184_s1 + $0x90] sm:$0xff]  ;;  %v130_v44 = vunpack.c.l.s4 %v788_v43 }
   0x2   :  { %v23_v2 = vld [vmem:[%s1184_s1] sm:$0xff]  ;;  %v638_v3 = vpack.c.bf16 %v40_v1, %v39_v0  ;;  %v24_v4 = vld [vmem:[%s1184_s1 + $0x8] sm:$0xff]  ;;  %v42_v13 = vld [vmem:[%s1184_s1 + $0x98] sm:$0xff]  ;;  %v133_v60 = vshrl.u32 %v132_v45, 7 }
   0x3   :  { %v71_v5 = vld [vmem:[%s1184_s1 + $0x180] sm:$0xff]  ;;  %v72_v6 = vld [vmem:[%s1184_s1 + $0x188] sm:$0xff]  ;;  %v640_v7 = vpack.c.bf16 %v24_v4, %v23_v2  ;;  %v25_v14 = vld [vmem:[%s1184_s1 + $0x10] sm:$0xff]  ;;  %v642_v16 = vpack.c.bf16 %v42_v13, %v41_v11  ;;  %v131_v59 = vunpack.c.0.s8 %v130_v44 }
   0x4   :  { %v670_v8 = vpack.c.bf16 %v72_v6, %v71_v5  ;;  %v55_v9 = vld [vmem:[%s1184_s1 + $0x100] sm:$0xff]  ;;  %v56_v10 = vld [vmem:[%s1184_s1 + $0x108] sm:$0xff]  ;;  %639 = vmatprep.subr.bf16.mxu0 %v638_v3  ;;  %v26_v15 = vld [vmem:[%s1184_s1 + $0x18] sm:$0xff] }
   0x5   :  { %v672_v12 = vpack.c.bf16 %v56_v10, %v55_v9  ;;  %641 = vmatpush3.bf16.msra.mxu0 %v640_v7  ;;  %v644_v17 = vpack.c.bf16 %v26_v15, %v25_v14  ;;  %v73_v18 = vld [vmem:[%s1184_s1 + $0x190] sm:$0xff]  ;;  %v74_v19 = vld [vmem:[%s1184_s1 + $0x198] sm:$0xff]  ;;  %v43_v23 = vld [vmem:[%s1184_s1 + $0xa0] sm:$0xff]  ;;  %v134_v10 = vsub.s32 %v131_v59, %v133_v60 }
   0x6   :  { %671 = vmatprep.subr.bf16.mxu1 %v670_v8  ;;  %v57_v20 = vld [vmem:[%s1184_s1 + $0x110] sm:$0xff]  ;;  %v674_v21 = vpack.c.bf16 %v74_v19, %v73_v18  ;;  %v58_v22 = vld [vmem:[%s1184_s1 + $0x118] sm:$0xff]  ;;  %v44_v24 = vld [vmem:[%s1184_s1 + $0xa8] sm:$0xff]  ;;  %643 = vmatprep.subr.bf16.mxu0 %v642_v16 }
   0x7   :  { %673 = vmatpush3.bf16.msra.mxu1 %v672_v12  ;;  %v676_v25 = vpack.c.bf16 %v58_v22, %v57_v20  ;;  %v646_v26 = vpack.c.bf16 %v44_v24, %v43_v23  ;;  %v27_v27 = vld [vmem:[%s1184_s1 + $0x20] sm:$0xff]  ;;  %v28_v28 = vld [vmem:[%s1184_s1 + $0x28] sm:$0xff]  ;;  %v45_v35 = vld [vmem:[%s1184_s1 + $0xb0] sm:$0xff] }
   0x8   :  { %v75_v29 = vld [vmem:[%s1184_s1 + $0x1a0] sm:$0xff]  ;;  %675 = vmatprep.subr.bf16.mxu1 %v674_v21  ;;  %v76_v30 = vld [vmem:[%s1184_s1 + $0x1a8] sm:$0xff]  ;;  %v648_v33 = vpack.c.bf16 %v28_v28, %v27_v27  ;;  %v46_v36 = vld [vmem:[%s1184_s1 + $0xb8] sm:$0xff] }
   0x9   :  { %v59_v31 = vld [vmem:[%s1184_s1 + $0x120] sm:$0xff]  ;;  %v60_v32 = vld [vmem:[%s1184_s1 + $0x128] sm:$0xff]  ;;  %645 = vmatpush3.bf16.msra.mxu0 %v644_v17  ;;  %v678_v34 = vpack.c.bf16 %v76_v30, %v75_v29  ;;  %v29_v37 = vld [vmem:[%s1184_s1 + $0x30] sm:$0xff]  ;;  %v650_v39 = vpack.c.bf16 %v46_v36, %v45_v35 }
   0xa   :  { %647 = vmatprep.subr.bf16.mxu0 %v646_v26  ;;  %v680_v38 = vpack.c.bf16 %v60_v32, %v59_v31  ;;  %v30_v40 = vld [vmem:[%s1184_s1 + $0x38] sm:$0xff]  ;;  %v77_v41 = vld [vmem:[%s1184_s1 + $0x1b0] sm:$0xff]  ;;  %v47_v49 = vld [vmem:[%s1184_s1 + $0xc0] sm:$0xff] }
   0xb   :  { %677 = vmatpush3.bf16.msra.mxu1 %v676_v25  ;;  %v78_v42 = vld [vmem:[%s1184_s1 + $0x1b8] sm:$0xff]  ;;  %v61_v47 = vld [vmem:[%s1184_s1 + $0x130] sm:$0xff]  ;;  %v48_v50 = vld [vmem:[%s1184_s1 + $0xc8] sm:$0xff]  ;;  %v652_v51 = vpack.c.bf16 %v30_v40, %v29_v37 }
   0xc   :  { %679 = vmatprep.subr.bf16.mxu1 %v678_v34  ;;  %v682_v46 = vpack.c.bf16 %v78_v42, %v77_v41  ;;  %v62_v48 = vld [vmem:[%s1184_s1 + $0x138] sm:$0xff]  ;;  %v79_v52 = vld [vmem:[%s1184_s1 + $0x1c0] sm:$0xff]  ;;  %v80_v53 = vld [vmem:[%s1184_s1 + $0x1c8] sm:$0xff]  ;;  %v654_v55 = vpack.c.bf16 %v48_v50, %v47_v49 }
   0xd   :  { %649 = vmatpush3.bf16.msra.mxu0 %v648_v33  ;;  %v684_v54 = vpack.c.bf16 %v62_v48, %v61_v47  ;;  %v31_v56 = vld [vmem:[%s1184_s1 + $0x40] sm:$0xff]  ;;  %v32_v57 = vld [vmem:[%s1184_s1 + $0x48] sm:$0xff]  ;;  %v686_v61 = vpack.c.bf16 %v80_v53, %v79_v52  ;;  %v49_v63 = vld [vmem:[%s1184_s1 + $0xd0] sm:$0xff] }
   0xe   :  { %651 = vmatprep.subr.bf16.mxu0 %v650_v39  ;;  %v63_v58 = vld [vmem:[%s1184_s1 + $0x140] sm:$0xff]  ;;  %v64_v62 = vld [vmem:[%s1184_s1 + $0x148] sm:$0xff]  ;;  %v50_v0 = vld [vmem:[%s1184_s1 + $0xd8] sm:$0xff]  ;;  %v656_v3 = vpack.c.bf16 %v32_v57, %v31_v56 }
   0xf   :  { %681 = vmatpush3.bf16.msra.mxu1 %v680_v38  ;;  %v81_v1 = vld [vmem:[%s1184_s1 + $0x1d0] sm:$0xff]  ;;  %v82_v2 = vld [vmem:[%s1184_s1 + $0x1d8] sm:$0xff]  ;;  %v688_v5 = vpack.c.bf16 %v64_v62, %v63_v58  ;;  %v658_v6 = vpack.c.bf16 %v50_v0, %v49_v63  ;;  %v51_v12 = vld [vmem:[%s1184_s1 + $0xe0] sm:$0xff] }
  0x10   :  { %683 = vmatprep.subr.bf16.mxu1 %v682_v46  ;;  %v33_v4 = vld [vmem:[%s1184_s1 + $0x50] sm:$0xff]  ;;  %v34_v7 = vld [vmem:[%s1184_s1 + $0x58] sm:$0xff]  ;;  %v690_v11 = vpack.c.bf16 %v82_v2, %v81_v1  ;;  %v52_v13 = vld [vmem:[%s1184_s1 + $0xe8] sm:$0xff] }
  0x11   :  { %653 = vmatpush3.bf16.msra.mxu0 %v652_v51  ;;  %v65_v8 = vld [vmem:[%s1184_s1 + $0x150] sm:$0xff]  ;;  %v66_v9 = vld [vmem:[%s1184_s1 + $0x158] sm:$0xff]  ;;  %v83_v14 = vld [vmem:[%s1184_s1 + $0x1e0] sm:$0xff]  ;;  %v660_v16 = vpack.c.bf16 %v34_v7, %v33_v4  ;;  %v662_v19 = vpack.c.bf16 %v52_v13, %v51_v12 }
  0x12   :  { %655 = vmatprep.subr.bf16.mxu0 %v654_v55  ;;  %v84_v15 = vld [vmem:[%s1184_s1 + $0x1e8] sm:$0xff]  ;;  %v692_v17 = vpack.c.bf16 %v66_v9, %v65_v8  ;;  %v21_v18 = vld [vmem:[%s1183_s0] sm:$0xff]  ;;  %v53_v27 = vld [vmem:[%s1184_s1 + $0xf0] sm:$0xff] }
  0x13   :  { %685 = vmatpush3.bf16.msra.mxu1 %v684_v54  ;;  %v35_v20 = vld [vmem:[%s1184_s1 + $0x60] sm:$0xff]  ;;  %v36_v21 = vld [vmem:[%s1184_s1 + $0x68] sm:$0xff]  ;;  %v135_v23 = vrot.slane %v21_v18, %v134_v10  ;;  %v128_v24 = vcombine.high %v21_v18, %v21_v18  ;;  %v694_v25 = vpack.c.bf16 %v84_v15, %v83_v14  ;;  %v54_v28 = vld [vmem:[%s1184_s1 + $0xf8] sm:$0xff] }
  0x14   :  { %687 = vmatprep.subr.bf16.mxu1 %v686_v61  ;;  %v67_v22 = vld [vmem:[%s1184_s1 + $0x160] sm:$0xff]  ;;  %v68_v26 = vld [vmem:[%s1184_s1 + $0x168] sm:$0xff]  ;;  %v85_v29 = vld [vmem:[%s1184_s1 + $0x1f0] sm:$0xff]  ;;  %v664_v33 = vpack.c.bf16 %v36_v21, %v35_v20  ;;  %v666_v35 = vpack.c.bf16 %v54_v28, %v53_v27 }
  0x15   :  { %657 = vmatpush3.bf16.msra.mxu0 %v656_v3  ;;  %v86_v30 = vld [vmem:[%s1184_s1 + $0x1f8] sm:$0xff]  ;;  %v143_v31 = vcombine.high %v135_v23, %v135_v23  ;;  %v142_v32 = vrot.slane %v128_v24, %v134_v10  ;;  %v696_v34 = vpack.c.bf16 %v68_v26, %v67_v22  ;;  %v37_v36 = vld [vmem:[%s1184_s1 + $0x70] sm:$0xff]  ;;  %v103_v42 = vld [vmem:[%s1184_s1 + $0x280] sm:$0xff] }
  0x16   :  { %659 = vmatprep.subr.bf16.mxu0 %v658_v6  ;;  %v38_v37 = vld [vmem:[%s1184_s1 + $0x78] sm:$0xff]  ;;  %v69_v38 = vld [vmem:[%s1184_s1 + $0x170] sm:$0xff]  ;;  %v698_v40 = vpack.c.bf16 %v86_v30, %v85_v29  ;;  %v104_v43 = vld [vmem:[%s1184_s1 + $0x288] sm:$0xff] }
  0x17   :  { %689 = vmatpush3.bf16.msra.mxu1 %v688_v5  ;;  %v144_v39 = vcombine.high %v142_v32, %v142_v32  ;;  %223 = vmatprep.mubr.f32.mxu0 %v143_v31  ;;  %v70_v41 = vld [vmem:[%s1184_s1 + $0x178] sm:$0xff]  ;;  %v668_v44 = vpack.c.bf16 %v38_v37, %v37_v36  ;;  %v702_v46 = vpack.c.bf16 %v104_v43, %v103_v42  ;;  %v87_v47 = vld [vmem:[%s1184_s1 + $0x200] sm:$0xff]  ;;  %v88_v48 = vld [vmem:[%s1184_s1 + $0x208] sm:$0xff] }
  0x18   :  { %691 = vmatprep.subr.bf16.mxu1 %v690_v11  ;;  %v700_v45 = vpack.c.bf16 %v70_v41, %v69_v38  ;;  %v105_v49 = vld [vmem:[%s1184_s1 + $0x290] sm:$0xff]  ;;  %v106_v50 = vld [vmem:[%s1184_s1 + $0x298] sm:$0xff]  ;;  %v704_v51 = vpack.c.bf16 %v88_v48, %v87_v47  ;;  %v479_v52 = vld.sshfl [vmem:[%s1183_s0 + $0x8] sm:$0x33 pattern:$0x76325410] }
  0x19   :  { %661 = vmatpush3.bf16.msra.mxu0 %v660_v16  ;;  %293 = vmatprep.mubr.f32.mxu1 %v144_v39  ;;  %v706_v53 = vpack.c.bf16 %v106_v50, %v105_v49  ;;  %v89_v54 = vld [vmem:[%s1184_s1 + $0x210] sm:$0xff]  ;;  %v90_v55 = vld [vmem:[%s1184_s1 + $0x218] sm:$0xff]  ;;  %v152_v56 = vcombine.high %v479_v52, %v479_v52 }
  0x1a   :  { %663 = vmatprep.subr.bf16.mxu0 %v662_v19 }
  0x1b   :  { %693 = vmatpush3.bf16.msra.mxu1 %v692_v17 }
  0x1c   :  { %695 = vmatprep.subr.bf16.mxu1 %v694_v25 }
  0x1d   :  { %665 = vmatpush3.bf16.msra.mxu0 %v664_v33 }
  0x1e   :  { %667 = vmatprep.subr.bf16.mxu0 %v666_v35 }
  0x1f   :  { %697 = vmatpush3.bf16.msra.mxu1 %v696_v34 }
  0x20   :  { %699 = vmatprep.subr.bf16.mxu1 %v698_v40 }
  0x21   :  { %669 = vmatpush3.bf16.msra.mxu0 %v668_v44 }
  0x22   :  { %703 = vmatprep.subr.bf16.mxu0 %v702_v46 }
  0x23   :  { %701 = vmatpush3.bf16.msra.mxu1 %v700_v45 }
  0x24   :  { %10 = vsyncpa [#allocation3], 0  ;;  %v107_v57 = vld [vmem:[%s1184_s1 + $0x2a0] sm:$0xff]  ;;  %v108_v58 = vld [vmem:[%s1184_s1 + $0x2a8] sm:$0xff]  ;;  %224 = vmatmul.mubr.f32.vlgmr.msra.gmra.mrb[0].mxu0 %v135_v23  ;;  %v708_v59 = vpack.c.bf16 %v90_v55, %v89_v54  ;;  %v789_v33 = vmov 0.0|0.0   ;;  %vm790_vm0 = vmmov 0  }
  0x25   :  { %705 = vmatpush3.bf16.msra.mxu0 %v704_v51  ;;  %v710_v60 = vpack.c.bf16 %v108_v58, %v107_v57  ;;  %v91_v61 = vld [vmem:[%s1184_s1 + $0x220] sm:$0xff]  ;;  %v92_v62 = vld [vmem:[%s1184_s1 + $0x228] sm:$0xff]  ;;  %363 = vmatprep.mubr.f32.mxu0 %v152_v56  ;;  %v109_v63 = vld [vmem:[%s1184_s1 + $0x2b0] sm:$0xff]  ;;  %v791_v55 = vmov 0.0   ;;  %s792_s19 = smov [#allocation2]  }
  0x26   :  { %294 = vmatmul.mubr.f32.vlgmr.msra.gmra.mrb[0].mxu1 %v142_v32  ;;  %707 = vmatprep.subr.bf16.mxu0 %v706_v53  ;;  %v110_v0 = vld [vmem:[%s1184_s1 + $0x2b8] sm:$0xff]  ;;  %v712_v1 = vpack.c.bf16 %v92_v62, %v91_v61  ;;  %v93_v3 = vld [vmem:[%s1184_s1 + $0x230] sm:$0xff]  ;;  %v111_v5 = vld [vmem:[%s1184_s1 + $0x2c0] sm:$0xff]  ;;  %s470_s0 = sshll.u32 %s792_s19, 4  ;;  %s471_s0 = int_to_ptr.vmem [resolvable:$true] %s470_s0 }
  0x27   :  { %v714_v2 = vpack.c.bf16 %v110_v0, %v109_v63  ;;  %v94_v4 = vld [vmem:[%s1184_s1 + $0x238] sm:$0xff]  ;;  %v112_v6 = vld [vmem:[%s1184_s1 + $0x2c8] sm:$0xff]  ;;  %v95_v9 = vld [vmem:[%s1184_s1 + $0x240] sm:$0xff]  ;;  %734 = vmatprep.subr.bf16.mxu1 %v789_v33  ;;  %635 = vmatprep.mubr.msk.f32.mxu1 %vm790_vm0, %v791_v55  ;;  %p769_p1 = scmp.lt.s32.totalorder %s471_s0, %s471_s0 }
  0x28   :  { %v716_v7 = vpack.c.bf16 %v94_v4, %v93_v3  ;;  %v718_v8 = vpack.c.bf16 %v112_v6, %v111_v5  ;;  %v96_v10 = vld [vmem:[%s1184_s1 + $0x248] sm:$0xff]  ;;  %v113_v11 = vld [vmem:[%s1184_s1 + $0x2d0] sm:$0xff]  ;;  %v114_v12 = vld [vmem:[%s1184_s1 + $0x2d8] sm:$0xff] }
  0x29   :  { %709 = vmatpush3.bf16.msra.mxu0 %v708_v59  ;;  %v720_v13 = vpack.c.bf16 %v96_v10, %v95_v9  ;;  %v722_v14 = vpack.c.bf16 %v114_v12, %v113_v11  ;;  %v97_v15 = vld [vmem:[%s1184_s1 + $0x250] sm:$0xff]  ;;  %v98_v16 = vld [vmem:[%s1184_s1 + $0x258] sm:$0xff]  ;;  %v115_v17 = vld [vmem:[%s1184_s1 + $0x2e0] sm:$0xff] }
  0x2a   :  { %711 = vmatprep.subr.bf16.mxu0 %v710_v60  ;;  %v116_v18 = vld [vmem:[%s1184_s1 + $0x2e8] sm:$0xff]  ;;  %v724_v19 = vpack.c.bf16 %v98_v16, %v97_v15  ;;  %v99_v21 = vld [vmem:[%s1184_s1 + $0x260] sm:$0xff]  ;;  %v117_v23 = vld [vmem:[%s1184_s1 + $0x2f0] sm:$0xff] }
  0x2b   :  { %v726_v20 = vpack.c.bf16 %v116_v18, %v115_v17  ;;  %v100_v22 = vld [vmem:[%s1184_s1 + $0x268] sm:$0xff]  ;;  %v118_v24 = vld [vmem:[%s1184_s1 + $0x2f8] sm:$0xff]  ;;  %v101_v27 = vld [vmem:[%s1184_s1 + $0x270] sm:$0xff] }
  0x2c   :  { %v728_v25 = vpack.c.bf16 %v100_v22, %v99_v21  ;;  %v730_v26 = vpack.c.bf16 %v118_v24, %v117_v23  ;;  %v102_v28 = vld [vmem:[%s1184_s1 + $0x278] sm:$0xff]  ;;  %v370_v30 = vld [vmem:[%s1186_s3] sm:$0xff]  ;;  %v371_v31 = vld [vmem:[%s1186_s3 + $0x8] sm:$0xff] }
  0x2d   :  { %713 = vmatpush3.bf16.msra.mxu0 %v712_v1  ;;  %v732_v29 = vpack.c.bf16 %v102_v28, %v101_v27  ;;  %v372_v32 = vld [vmem:[%s1186_s3 + $0x10] sm:$0xff]  ;;  %v735_v34 = vpack.c.bf16 %v371_v31, %v370_v30  ;;  %v373_v35 = vld [vmem:[%s1186_s3 + $0x18] sm:$0xff]  ;;  %v374_v37 = vld [vmem:[%s1186_s3 + $0x20] sm:$0xff] }
  0x2e   :  { %715 = vmatprep.subr.bf16.mxu0 %v714_v2  ;;  %v738_v36 = vpack.c.bf16 %v373_v35, %v372_v32  ;;  %v375_v38 = vld [vmem:[%s1186_s3 + $0x28] sm:$0xff]  ;;  %v376_v40 = vld [vmem:[%s1186_s3 + $0x30] sm:$0xff]  ;;  %v377_v41 = vld [vmem:[%s1186_s3 + $0x38] sm:$0xff] }
  0x2f   :  { %736 = vmatpush3.bf16.msra.mxu1 %v735_v34  ;;  %v741_v39 = vpack.c.bf16 %v375_v38, %v374_v37  ;;  %v744_v42 = vpack.c.bf16 %v377_v41, %v376_v40  ;;  %v378_v43 = vld [vmem:[%s1186_s3 + $0x40] sm:$0xff]  ;;  %v379_v44 = vld [vmem:[%s1186_s3 + $0x48] sm:$0xff]  ;;  %v380_v46 = vld [vmem:[%s1186_s3 + $0x50] sm:$0xff] }
  0x30   :  { %737 = vmatprep.subr.bf16.mxu1 %v789_v33  ;;  %v747_v45 = vpack.c.bf16 %v379_v44, %v378_v43  ;;  %v381_v47 = vld [vmem:[%s1186_s3 + $0x58] sm:$0xff]  ;;  %v382_v49 = vld [vmem:[%s1186_s3 + $0x60] sm:$0xff]  ;;  %v383_v50 = vld [vmem:[%s1186_s3 + $0x68] sm:$0xff] }
  0x31   :  { %717 = vmatpush3.bf16.msra.mxu0 %v716_v7  ;;  %v750_v48 = vpack.c.bf16 %v381_v47, %v380_v46  ;;  %v753_v51 = vpack.c.bf16 %v383_v50, %v382_v49  ;;  %v385_v53 = vld [vmem:[%s1186_s3 + $0x78] sm:$0xff]  ;;  %v478_v57 = vld [vmem:[%s1185_s2] ss:$0 sm:$0xff]  ;;  %s764_s2 = scalar_lea.vmem %s471_s0, 32 }
  0x32   :  { %719 = vmatprep.subr.bf16.mxu0 %v718_v8  ;;  %v480_v6 = vld [vmem:[%s1187_s4] ss:$0 sm:$0xff]  ;;  %p765_p0 = scmp.ne.s32.totalorder %s471_s0, %s764_s2  ;;  %p770_p2 = scmp.lt.s32.totalorder %s764_s2, %s764_s2 }
  0x33   :  { %739 = vmatpush3.bf16.msra.mxu1 %v738_v36 }
  0x34   :  { %740 = vmatprep.subr.bf16.mxu1 %v789_v33  ;;  %p771_p3 = por %p770_p2, %p769_p1 }
  0x35   :  { %721 = vmatpush3.bf16.msra.mxu0 %v720_v13 }
  0x36   :  { %723 = vmatprep.subr.bf16.mxu0 %v722_v14  ;;  %p772_p4 = pnand %p771_p3, %p765_p0 }
  0x37   :  { %742 = vmatpush3.bf16.msra.mxu1 %v741_v39 }
  0x38   :  { %743 = vmatprep.subr.bf16.mxu1 %v789_v33 }
  0x39   :  { %725 = vmatpush3.bf16.msra.mxu0 %v724_v19 }
  0x3a   :  { %727 = vmatprep.subr.bf16.mxu0 %v726_v20 }
  0x3b   :  { %745 = vmatpush3.bf16.msra.mxu1 %v744_v42 }
  0x3c   :  { %746 = vmatprep.subr.bf16.mxu1 %v789_v33 }
  0x3d   :  { %729 = vmatpush3.bf16.msra.mxu0 %v728_v25 }
  0x3e   :  { %731 = vmatprep.subr.bf16.mxu0 %v730_v26 }
  0x3f   :  { %748 = vmatpush3.bf16.msra.mxu1 %v747_v45 }
  0x40   :  { %749 = vmatprep.subr.bf16.mxu1 %v789_v33 }
  0x41   :  { %733 = vmatpush3.bf16.msra.mxu0 %v732_v29 }
  0x43   :  { %751 = vmatpush3.bf16.msra.mxu1 %v750_v48 }
  0x44   :  { %364 = vmatmul.mubr.f32.vlgmr.msra.gmra.mrb[2].mxu0 %v479_v52  ;;  %752 = vmatprep.subr.bf16.mxu1 %v789_v33  ;;  %v384_v52 = vld [vmem:[%s1186_s3 + $0x70] sm:$0xff] }
  0x45   :  { %v756_v54 = vpack.c.bf16 %v385_v53, %v384_v52 }
  0x47   :  { %754 = vmatpush3.bf16.msra.mxu1 %v753_v51 }
  0x48   :  { %755 = vmatprep.subr.bf16.mxu1 %v789_v33 }
  0x4b   :  { %757 = vmatpush3.bf16.msra.mxu1 %v756_v54 }
  0xf7   :  { %v513_v56 = vpop.f32.mrb[0].mxu0 }
  0xf8   :  { %v514_v58 = vpop.f32.mrb[1].mxu0 }
  0xf9   :  { %v548_v59 = vpop.f32.mrb[0].mxu1  ;;  %v515_v60 = vadd.f32 %v514_v58, %v513_v56 }
  0xfa   :  { %v549_v61 = vpop.f32.mrb[1].mxu1 }
  0xfb   :  { %v550_v62 = vadd.f32 %v549_v61, %v548_v59  ;;  %v226_v63 = vadd.f32 %v515_v60, %v478_v57 }
  0xfd   :  { %v296_v0 = vadd.f32 %v550_v62, %v226_v63 }
 0x117   :  { %v583_v1 = vpop.f32.mrb[2].mxu0 }
 0x118   :  { %v584_v2 = vpop.f32.mrb[3].mxu0 }
 0x119   :  { %v585_v3 = vadd.f32 %v584_v2, %v583_v1 }
 0x11b   :  { %v366_v4 = vadd.f32 %v585_v3, %v296_v0 }
 0x11d   :  { %v369_v5 = vmax.f32 %v366_v4, 0.0 }
 0x11f   :  { %636 = vmatmul.mubr.f32.vlgmr.msra.gmra.mrb[2].mxu1 %v369_v5 }
 0x1f2   :  { %v459_v7 = vpop.f32.mrb[2].mxu1 }
 0x1f3   :  { %v460_v8 = vadd.f32 %v480_v6, %v459_v7  ;;  %v637_v9 = vpop.f32.mrb[3].mxu1 }
 0x1f5   :  { %463 = vst [vmem:[#allocation2] sm:$0x3] %v460_v8 }
 0x1f6   :  { %775 = shalt.err (!%p772_p4)
}
 0x1f7   :  { %s776_s22 = scalar_lea.hbm %s1188_s5, 32 }
 0x1f8   :  { %p777_p5 = scmp.ne.s32.totalorder %s1188_s5, %s776_s22  ;;  %p780_p6 = scmp.lt.u32.totalorder %s776_s22, %s1188_s5 }
 0x1fa   :  { %p782_p7 = pnand %p780_p6, %p777_p5 }
 0x1fc   :  { %785 = shalt.err (!%p782_p7)
}
 0x1fd   :  { %473 = dma.vmem_to_hbm [thread:$0]  %s471_s0, 32, %s1188_s5, [#allocation3]  }
 0x1fe   :  { %786 = dma.done.wait [#allocation3], 32  }
 0x1ff   :  { %787 = vsyncadd [#allocation3], 4294967264 }
 0x200   :  { %477 = vsyncpa [#allocation3], 1 }

// kernel: simple_model_forward.8
= control target key start
LH: loop header
LB: loop body
LE: loop exit
PB: predicated region body
PF: predicated region fallthrough
CT: control target
= control target key end

     0   :  { %s3850_s12 = smov 0   ;;  %s5559_s0 = inlined_call_operand.vmem [shape: f32[2,16,2,16,2,96], index: 0, kind: input, shape index: {}]   ;;  %s5560_s1 = inlined_call_operand.vmem [shape: f32[96,48], index: 1, kind: input, shape index: {}]   ;;  %s5561_s2 = inlined_call_operand.vmem [shape: f32[1,48], index: 2, kind: input, shape index: {}]   ;;  %s5562_s3 = inlined_call_operand.vmem [shape: f32[2,256,48], index: 3, kind: output, shape index: {}]  }
   0x1 LB: > { %s3104_s13 = sadd.s32 4294967295, %s3828_s12   ;;  %p3108_p0 = scmp.ge.s32.totalorder %s3828_s12, 1  ;;  %s3828_s12 = sphi %s3850_s12, %s13_s12  }
   0x2   : > { %p137_p1 = scmp.lt.s32.totalorder %s3828_s12, 3 }
   0x4   : > { %p138_p2 = pnand %p3108_p0, %p137_p1 }
   0x5   : > { %v1964_v0 = vld [vmem:[%s5560_s1] sm:$0xff] (!%p138_p2)  ;;  %v1965_v1 = vld [vmem:[%s5560_s1 + $0x8] sm:$0xff] (!%p138_p2)  ;;  %v1966_v2 = vld [vmem:[%s5560_s1 + $0x10] sm:$0xff] (!%p138_p2)  ;;  %p161_p3 = scmp.lt.s32.totalorder (!%p138_p2), %s3104_s13, 1  ;;  %vm2240_vm0 = vcmask (!%p138_p2), 1041409   ;;  %vm2243_vm1 = vcmask (!%p138_p2), 1042434  }
   0x6   : > { %141 = sbr.rel (%p138_p2) target bundleno = 631 (0x277), region = 32  ;;  %v3778_v3 = vpack.c.bf16 (!%p138_p2), %v1965_v1, %v1964_v0  ;;  %v1967_v4 = vld [vmem:[%s5560_s1 + $0x18] sm:$0xff] (!%p138_p2)  ;;  %v1968_v6 = vld [vmem:[%s5560_s1 + $0x20] sm:$0xff] (!%p138_p2)  ;;  %v1969_v7 = vld [vmem:[%s5560_s1 + $0x28] sm:$0xff] (!%p138_p2)  ;;  %vm2246_vm2 = vcmask (!%p138_p2), 1043459   ;;  %vm2249_vm3 = vcmask (!%p138_p2), 1044484  }
   0x7   : > { %v3782_v5 = vpack.c.bf16 (!%p138_p2), %v1967_v4, %v1966_v2  ;;  %v3786_v8 = vpack.c.bf16 (!%p138_p2), %v1969_v7, %v1968_v6  ;;  %v1970_v9 = vld [vmem:[%s5560_s1 + $0x30] sm:$0xff] (!%p138_p2)  ;;  %v1971_v10 = vld [vmem:[%s5560_s1 + $0x38] sm:$0xff] (!%p138_p2)  ;;  %v1972_v11 = vld [vmem:[%s5560_s1 + $0x40] sm:$0xff] (!%p138_p2)  ;;  %vm2252_vm4 = vcmask (!%p138_p2), 1045509   ;;  %vm2255_vm5 = vcmask (!%p138_p2), 1046534  }
   0x8   : > { %3779 = vmatprep.subr.bf16.mxu0 (!%p138_p2), %v3778_v3  ;;  %3802 = vmatprep.subr.bf16.mxu1 (!%p138_p2), %v3778_v3  ;;  %v1973_v12 = vld [vmem:[%s5560_s1 + $0x48] sm:$0xff] (!%p138_p2)  ;;  %v1974_v13 = vld [vmem:[%s5560_s1 + $0x50] sm:$0xff] (!%p138_p2)  ;;  %v1975_v14 = vld [vmem:[%s5560_s1 + $0x58] sm:$0xff] (!%p138_p2)  ;;  %v3790_v19 = vpack.c.bf16 (!%p138_p2), %v1971_v10, %v1970_v9  ;;  %vm2258_vm6 = vcmask (!%p138_p2), 1047559   ;;  %vm2694_vm7 = vcmask (!%p138_p2), 785408   ;;  %vm3016_vm8 = vcmask (!%p138_p2), 392192  }
   0x9   : > { %3781 = vmatpush3.bf16.msra.mxu0 (!%p138_p2), %v3778_v3  ;;  %3808 = vmatpush3.bf16.msra.mxu1 (!%p138_p2), %v3778_v3  ;;  %v3794_v34 = vpack.c.bf16 (!%p138_p2), %v1973_v12, %v1972_v11  ;;  %v3936_v35 = vpack.c.bf16 (!%p138_p2), %v1975_v14, %v1974_v13 }
   0xa   : > { %3783 = vmatprep.subr.bf16.mxu0 (!%p138_p2), %v3782_v5  ;;  %3803 = vmatprep.subr.bf16.mxu1 (!%p138_p2), %v3782_v5 }
   0xd   : > { %s5564_s13 = smov (!%p161_p3, %s3104_s13), 1  ;;  %3785 = vmatpush3.bf16.msra.mxu0 %v3782_v5  ;;  %3809 = vmatpush3.bf16.msra.mxu1 %v3782_v5 }
   0xe   : > { %s3660_s26 = sshll.u32 %s5564_s13, 10  ;;  %3787 = vmatprep.subr.bf16.mxu0 %v3786_v8  ;;  %3804 = vmatprep.subr.bf16.mxu1 %v3786_v8  ;;  %s3661_s19 = sshll.u32 %s5564_s13, 8 }
   0xf   : > { %s3882_s29 = scalar_lea.vmem %s5559_s0, %s3660_s26  ;;  %s5445_s21 = scalar_lea.vmem %s5562_s3, %s3661_s19 }
  0x10   : > { %v3903_v15 = vld [vmem:[%s3882_s29] sm:$0x1]  ;;  %v3906_v16 = vld [vmem:[%s3882_s29 + $0x2] sm:$0x1]  ;;  %v3909_v17 = vld [vmem:[%s3882_s29 + $0x4] sm:$0x1] }
  0x11   : > { %v3912_v18 = vld [vmem:[%s3882_s29 + $0x1] sm:$0x1]  ;;  %v3915_v20 = vld [vmem:[%s3882_s29 + $0x6] sm:$0x1]  ;;  %v3918_v21 = vld [vmem:[%s3882_s29 + $0x8] sm:$0x1]  ;;  %3789 = vmatpush3.bf16.msra.mxu0 %v3786_v8  ;;  %3810 = vmatpush3.bf16.msra.mxu1 %v3786_v8 }
  0x12   : > { %v3921_v22 = vld [vmem:[%s3882_s29 + $0xa] sm:$0x1]  ;;  %v3924_v23 = vld [vmem:[%s3882_s29 + $0xc] sm:$0x1]  ;;  %v428_v24 = vld [vmem:[%s3882_s29 + $0x3] sm:$0x1]  ;;  %3791 = vmatprep.subr.bf16.mxu0 %v3790_v19  ;;  %3805 = vmatprep.subr.bf16.mxu1 %v3790_v19  ;;  %v683_v39 = vmax.f32 %v3903_v15, %v3912_v18 }
  0x13   : > { %v429_v25 = vld [vmem:[%s3882_s29 + $0x5] sm:$0x1]  ;;  %v430_v26 = vld [vmem:[%s3882_s29 + $0x7] sm:$0x1]  ;;  %v178_v27 = vld [vmem:[%s3882_s29 + $0xe] sm:$0x1]  ;;  %v684_v40 = vmax.f32 %v3906_v16, %v428_v24 }
  0x14   : > { %v431_v28 = vld [vmem:[%s3882_s29 + $0x9] sm:$0x1]  ;;  %v432_v29 = vld [vmem:[%s3882_s29 + $0xb] sm:$0x1]  ;;  %v433_v30 = vld [vmem:[%s3882_s29 + $0xd] sm:$0x1]  ;;  %v685_v41 = vmax.f32 %v3909_v17, %v429_v25  ;;  %v686_v45 = vmax.f32 %v3915_v20, %v430_v26 }
  0x15   : > { %v434_v31 = vld [vmem:[%s3882_s29 + $0xf] sm:$0x1]  ;;  %v3113_v32 = vld [vmem:[%s3882_s29 + $0x20] sm:$0x1]  ;;  %v3114_v33 = vld [vmem:[%s3882_s29 + $0x22] sm:$0x1]  ;;  %v687_v46 = vmax.f32 %v3918_v21, %v431_v28  ;;  %v688_v47 = vmax.f32 %v3921_v22, %v432_v29  ;;  %v689_v48 = vmax.f32 %v3924_v23, %v433_v30  ;;  %3793 = vmatpush3.bf16.msra.mxu0 %v3790_v19  ;;  %3811 = vmatpush3.bf16.msra.mxu1 %v3790_v19 }
  0x16   : > { %v3115_v36 = vld [vmem:[%s3882_s29 + $0x24] sm:$0x1]  ;;  %v3116_v37 = vld [vmem:[%s3882_s29 + $0x26] sm:$0x1]  ;;  %v3117_v38 = vld [vmem:[%s3882_s29 + $0x28] sm:$0x1]  ;;  %v690_v52 = vmax.f32 %v178_v27, %v434_v31  ;;  %3795 = vmatprep.subr.bf16.mxu0 %v3794_v34  ;;  %3806 = vmatprep.subr.bf16.mxu1 %v3794_v34 }
  0x17   : > { %v3118_v42 = vld [vmem:[%s3882_s29 + $0x2a] sm:$0x1]  ;;  %v3119_v43 = vld [vmem:[%s3882_s29 + $0x2c] sm:$0x1]  ;;  %v3120_v44 = vld [vmem:[%s3882_s29 + $0x2e] sm:$0x1] }
  0x18   : > { %v3369_v49 = vld [vmem:[%s3882_s29 + $0x21] sm:$0x1]  ;;  %v3370_v50 = vld [vmem:[%s3882_s29 + $0x23] sm:$0x1]  ;;  %v3371_v51 = vld [vmem:[%s3882_s29 + $0x25] sm:$0x1] }
  0x19   : > { %v3372_v53 = vld [vmem:[%s3882_s29 + $0x27] sm:$0x1]  ;;  %v3373_v54 = vld [vmem:[%s3882_s29 + $0x29] sm:$0x1]  ;;  %v3374_v55 = vld [vmem:[%s3882_s29 + $0x2b] sm:$0x1]  ;;  %v1452_v56 = vmax.f32 %v3113_v32, %v3369_v49  ;;  %v1453_v57 = vmax.f32 %v3114_v33, %v3370_v50  ;;  %v1454_v58 = vmax.f32 %v3115_v36, %v3371_v51  ;;  %3797 = vmatpush3.bf16.msra.mxu0 %v3794_v34  ;;  %3812 = vmatpush3.bf16.msra.mxu1 %v3794_v34 }
  0x1a   : > { %v3375_v59 = vld [vmem:[%s3882_s29 + $0x2d] sm:$0x1]  ;;  %v3376_v60 = vld [vmem:[%s3882_s29 + $0x2f] sm:$0x1]  ;;  %v1455_v61 = vmax.f32 %v3116_v37, %v3372_v53  ;;  %v1456_v62 = vmax.f32 %v3117_v38, %v3373_v54  ;;  %v1457_v63 = vmax.f32 %v3118_v42, %v3374_v55  ;;  %v3963_v10 = vld [vmem:[%s3882_s29 + $0x200] sm:$0x1]  ;;  %3799 = vmatprep.subr.bf16.mxu0 %v3936_v35  ;;  %3807 = vmatprep.subr.bf16.mxu1 %v3936_v35 }
  0x1b   : > { %v1458_v0 = vmax.f32 %v3119_v43, %v3375_v59  ;;  %v1459_v1 = vmax.f32 %v3120_v44, %v3376_v60  ;;  %v1708_v2 = vmax.f32 %v683_v39, %v1452_v56  ;;  %v1709_v3 = vmax.f32 %v684_v40, %v1453_v57  ;;  %v3966_v11 = vld [vmem:[%s3882_s29 + $0x202] sm:$0x1]  ;;  %v3969_v12 = vld [vmem:[%s3882_s29 + $0x201] sm:$0x1]  ;;  %v3972_v13 = vld [vmem:[%s3882_s29 + $0x203] sm:$0x1] }
  0x1c   : > { %v1710_v4 = vmax.f32 %v685_v41, %v1454_v58  ;;  %v1711_v5 = vmax.f32 %v686_v45, %v1455_v61  ;;  %v1712_v6 = vmax.f32 %v687_v46, %v1456_v62  ;;  %v1713_v7 = vmax.f32 %v688_v47, %v1457_v63  ;;  %v3975_v17 = vld [vmem:[%s3882_s29 + $0x204] sm:$0x1]  ;;  %v3978_v18 = vld [vmem:[%s3882_s29 + $0x206] sm:$0x1]  ;;  %v3981_v19 = vld [vmem:[%s3882_s29 + $0x208] sm:$0x1] }
  0x1d   : > { %v1714_v8 = vmax.f32 %v689_v48, %v1458_v0  ;;  %v3960_v9 = vmax.f32 %v690_v52, %v1459_v1  ;;  %v2239_v14 = vrot.slane %v1709_v3, 7  ;;  %v557_v20 = vld [vmem:[%s3882_s29 + $0x205] sm:$0x1]  ;;  %v304_v25 = vld [vmem:[%s3882_s29 + $0x20a] sm:$0x1]  ;;  %3801 = vmatpush3.bf16.msra.mxu0 %v3936_v35  ;;  %3813 = vmatpush3.bf16.msra.mxu1 %v3936_v35  ;;  %v811_v39 = vmax.f32 %v3963_v10, %v3969_v12 }
  0x1e   : > { %v2242_v15 = vrot.slane %v1710_v4, 6  ;;  %v2245_v16 = vrot.slane %v1711_v5, 5  ;;  %v2248_v21 = vrot.slane %v1712_v6, 4  ;;  %v2251_v22 = vrot.slane %v1713_v7, 3  ;;  %v305_v26 = vld [vmem:[%s3882_s29 + $0x20c] sm:$0x1] }
  0x1f   : > { %v2254_v23 = vrot.slane %v1714_v8, 2  ;;  %v2257_v24 = vrot.slane %v3960_v9, 1  ;;  %v306_v27 = vld [vmem:[%s3882_s29 + $0x20e] sm:$0x1]  ;;  %v558_v28 = vld [vmem:[%s3882_s29 + $0x207] sm:$0x1]  ;;  %v2241_v29 = vsel %vm2240_vm0, %v2239_v14, %v1708_v2  ;;  %v812_v40 = vmax.f32 %v3966_v11, %v3972_v13 }
  0x20   : > { %v559_v30 = vld [vmem:[%s3882_s29 + $0x209] sm:$0x1]  ;;  %v560_v31 = vld [vmem:[%s3882_s29 + $0x20b] sm:$0x1]  ;;  %v561_v32 = vld [vmem:[%s3882_s29 + $0x20d] sm:$0x1]  ;;  %v2244_v33 = vsel %vm2243_vm1, %v2242_v15, %v2241_v29  ;;  %v813_v35 = vmax.f32 %v3975_v17, %v557_v20  ;;  %v814_v45 = vmax.f32 %v3978_v18, %v558_v28 }
  0x21   : > { %v562_v34 = vld [vmem:[%s3882_s29 + $0x20f] sm:$0x1]  ;;  %v3241_v36 = vld [vmem:[%s3882_s29 + $0x220] sm:$0x1]  ;;  %v3242_v37 = vld [vmem:[%s3882_s29 + $0x222] sm:$0x1]  ;;  %v2247_v38 = vsel %vm2246_vm2, %v2245_v16, %v2244_v33  ;;  %v815_v46 = vmax.f32 %v3981_v19, %v559_v30  ;;  %v816_v51 = vmax.f32 %v304_v25, %v560_v31  ;;  %v817_v52 = vmax.f32 %v305_v26, %v561_v32 }
  0x22   : > { %v3243_v41 = vld [vmem:[%s3882_s29 + $0x224] sm:$0x1]  ;;  %v3244_v42 = vld [vmem:[%s3882_s29 + $0x226] sm:$0x1]  ;;  %v3245_v43 = vld [vmem:[%s3882_s29 + $0x228] sm:$0x1]  ;;  %v2250_v44 = vsel %vm2249_vm3, %v2248_v21, %v2247_v38  ;;  %v818_v53 = vmax.f32 %v306_v27, %v562_v34 }
  0x23   : > { %v3246_v47 = vld [vmem:[%s3882_s29 + $0x22a] sm:$0x1]  ;;  %v3247_v48 = vld [vmem:[%s3882_s29 + $0x22c] sm:$0x1]  ;;  %v3248_v49 = vld [vmem:[%s3882_s29 + $0x22e] sm:$0x1]  ;;  %v2253_v50 = vsel %vm2252_vm4, %v2251_v22, %v2250_v44 }
  0x24   : > { %v3497_v54 = vld [vmem:[%s3882_s29 + $0x221] sm:$0x1]  ;;  %v3498_v55 = vld [vmem:[%s3882_s29 + $0x223] sm:$0x1]  ;;  %v3499_v56 = vld [vmem:[%s3882_s29 + $0x225] sm:$0x1]  ;;  %v2256_v57 = vsel %vm2255_vm5, %v2254_v23, %v2253_v50 }
  0x25   : > { %v3500_v58 = vld [vmem:[%s3882_s29 + $0x227] sm:$0x1]  ;;  %v3501_v59 = vld [vmem:[%s3882_s29 + $0x229] sm:$0x1]  ;;  %v3502_v60 = vld [vmem:[%s3882_s29 + $0x22b] sm:$0x1]  ;;  %v1580_v61 = vmax.f32 %v3241_v36, %v3497_v54  ;;  %v1581_v62 = vmax.f32 %v3242_v37, %v3498_v55  ;;  %v1582_v63 = vmax.f32 %v3243_v41, %v3499_v56  ;;  %v2259_v0 = vsel %vm2258_vm6, %v2257_v24, %v2256_v57 }
  0x26   : > { %v3503_v1 = vld [vmem:[%s3882_s29 + $0x22d] sm:$0x1]  ;;  %v3504_v2 = vld [vmem:[%s3882_s29 + $0x22f] sm:$0x1]  ;;  %v1583_v3 = vmax.f32 %v3244_v42, %v3500_v58  ;;  %v1584_v4 = vmax.f32 %v3245_v43, %v3501_v59  ;;  %v1585_v5 = vmax.f32 %v3246_v47, %v3502_v60  ;;  %3730 = vmatprep.mubr.msk.f32.mxu0 %vm2694_vm7, %v2259_v0  ;;  %v4029_v17 = vld [vmem:[%s3882_s29 + $0x10] sm:$0x1] }
  0x27   : > { %v1586_v6 = vmax.f32 %v3247_v48, %v3503_v1  ;;  %v1587_v7 = vmax.f32 %v3248_v49, %v3504_v2  ;;  %v1836_v8 = vmax.f32 %v811_v39, %v1580_v61  ;;  %v1837_v9 = vmax.f32 %v812_v40, %v1581_v62  ;;  %v4032_v18 = vld [vmem:[%s3882_s29 + $0x12] sm:$0x1]  ;;  %v435_v19 = vld [vmem:[%s3882_s29 + $0x11] sm:$0x1]  ;;  %v181_v24 = vld [vmem:[%s3882_s29 + $0x14] sm:$0x1] }
  0x28   : > { %v1838_v10 = vmax.f32 %v813_v35, %v1582_v63  ;;  %v1839_v11 = vmax.f32 %v814_v45, %v1583_v3  ;;  %v1840_v12 = vmax.f32 %v815_v46, %v1584_v4  ;;  %v1841_v13 = vmax.f32 %v816_v51, %v1585_v5  ;;  %v182_v25 = vld [vmem:[%s3882_s29 + $0x16] sm:$0x1]  ;;  %v183_v26 = vld [vmem:[%s3882_s29 + $0x18] sm:$0x1]  ;;  %v436_v27 = vld [vmem:[%s3882_s29 + $0x13] sm:$0x1] }
  0x29   : > { %v1842_v14 = vmax.f32 %v817_v52, %v1586_v6  ;;  %v1843_v15 = vmax.f32 %v818_v53, %v1587_v7  ;;  %v2470_v16 = vrot.slane %v1837_v9, 7  ;;  %v184_v31 = vld [vmem:[%s3882_s29 + $0x1a] sm:$0x1]  ;;  %v185_v32 = vld [vmem:[%s3882_s29 + $0x1c] sm:$0x1]  ;;  %v691_v45 = vmax.f32 %v4029_v17, %v435_v19 }
  0x2a   : > { %v2472_v20 = vrot.slane %v1838_v10, 6  ;;  %v2474_v21 = vrot.slane %v1839_v11, 5  ;;  %v2476_v22 = vrot.slane %v1840_v12, 4  ;;  %v2478_v23 = vrot.slane %v1841_v13, 3  ;;  %v186_v33 = vld [vmem:[%s3882_s29 + $0x1e] sm:$0x1] }
  0x2b   : > { %v2471_v28 = vsel %vm2240_vm0, %v2470_v16, %v1836_v8  ;;  %v2480_v29 = vrot.slane %v1842_v14, 2  ;;  %v2482_v30 = vrot.slane %v1843_v15, 1  ;;  %v437_v34 = vld [vmem:[%s3882_s29 + $0x15] sm:$0x1]  ;;  %v438_v36 = vld [vmem:[%s3882_s29 + $0x17] sm:$0x1]  ;;  %v692_v46 = vmax.f32 %v4032_v18, %v436_v27 }
  0x2c   : > { %v2473_v37 = vsel %vm2243_vm1, %v2472_v20, %v2471_v28  ;;  %v439_v38 = vld [vmem:[%s3882_s29 + $0x19] sm:$0x1]  ;;  %v440_v39 = vld [vmem:[%s3882_s29 + $0x1b] sm:$0x1]  ;;  %v441_v40 = vld [vmem:[%s3882_s29 + $0x1d] sm:$0x1]  ;;  %v693_v51 = vmax.f32 %v181_v24, %v437_v34  ;;  %v694_v52 = vmax.f32 %v182_v25, %v438_v36 }
  0x2d   : > { %v2475_v41 = vsel %vm2246_vm2, %v2474_v21, %v2473_v37  ;;  %v442_v42 = vld [vmem:[%s3882_s29 + $0x1f] sm:$0x1]  ;;  %v3121_v43 = vld [vmem:[%s3882_s29 + $0x30] sm:$0x1]  ;;  %v3122_v44 = vld [vmem:[%s3882_s29 + $0x32] sm:$0x1]  ;;  %v695_v53 = vmax.f32 %v183_v26, %v439_v38  ;;  %v696_v58 = vmax.f32 %v184_v31, %v440_v39  ;;  %v697_v59 = vmax.f32 %v185_v32, %v441_v40 }
  0x2e   : > { %v2477_v35 = vsel %vm2249_vm3, %v2476_v22, %v2475_v41  ;;  %v3123_v47 = vld [vmem:[%s3882_s29 + $0x34] sm:$0x1]  ;;  %v3124_v48 = vld [vmem:[%s3882_s29 + $0x36] sm:$0x1]  ;;  %v3125_v49 = vld [vmem:[%s3882_s29 + $0x38] sm:$0x1]  ;;  %v698_v60 = vmax.f32 %v186_v33, %v442_v42 }
  0x2f   : > { %v2479_v50 = vsel %vm2252_vm4, %v2478_v23, %v2477_v35  ;;  %v3126_v54 = vld [vmem:[%s3882_s29 + $0x3a] sm:$0x1]  ;;  %v3127_v55 = vld [vmem:[%s3882_s29 + $0x3c] sm:$0x1]  ;;  %v3128_v56 = vld [vmem:[%s3882_s29 + $0x3e] sm:$0x1] }
  0x30   : > { %v2481_v57 = vsel %vm2255_vm5, %v2480_v29, %v2479_v50  ;;  %v3377_v61 = vld [vmem:[%s3882_s29 + $0x31] sm:$0x1]  ;;  %v3378_v62 = vld [vmem:[%s3882_s29 + $0x33] sm:$0x1]  ;;  %v3379_v63 = vld [vmem:[%s3882_s29 + $0x35] sm:$0x1] }
  0x31   : > { %v2483_v0 = vsel %vm2258_vm6, %v2482_v30, %v2481_v57  ;;  %v3380_v1 = vld [vmem:[%s3882_s29 + $0x37] sm:$0x1]  ;;  %v3381_v2 = vld [vmem:[%s3882_s29 + $0x39] sm:$0x1]  ;;  %v3382_v3 = vld [vmem:[%s3882_s29 + $0x3b] sm:$0x1]  ;;  %v1460_v4 = vmax.f32 %v3121_v43, %v3377_v61  ;;  %v1461_v5 = vmax.f32 %v3122_v44, %v3378_v62  ;;  %v1462_v6 = vmax.f32 %v3123_v47, %v3379_v63 }
  0x32   : > { %3754 = vmatprep.mubr.msk.f32.mxu1 %vm2694_vm7, %v2483_v0  ;;  %v3383_v7 = vld [vmem:[%s3882_s29 + $0x3d] sm:$0x1]  ;;  %v3384_v8 = vld [vmem:[%s3882_s29 + $0x3f] sm:$0x1]  ;;  %v1463_v9 = vmax.f32 %v3124_v48, %v3380_v1  ;;  %v1464_v10 = vmax.f32 %v3125_v49, %v3381_v2  ;;  %v1465_v11 = vmax.f32 %v3126_v54, %v3382_v3  ;;  %v4075_v23 = vld [vmem:[%s3882_s29 + $0x210] sm:$0x1] }
  0x33   : > { %v1466_v12 = vmax.f32 %v3127_v55, %v3383_v7  ;;  %v1467_v13 = vmax.f32 %v3128_v56, %v3384_v8  ;;  %v1716_v14 = vmax.f32 %v691_v45, %v1460_v4  ;;  %v1717_v15 = vmax.f32 %v692_v46, %v1461_v5  ;;  %v4078_v24 = vld [vmem:[%s3882_s29 + $0x212] sm:$0x1]  ;;  %v563_v25 = vld [vmem:[%s3882_s29 + $0x211] sm:$0x1]  ;;  %v309_v30 = vld [vmem:[%s3882_s29 + $0x214] sm:$0x1] }
  0x34   : > { %v1718_v16 = vmax.f32 %v693_v51, %v1462_v6  ;;  %v1719_v17 = vmax.f32 %v694_v52, %v1463_v9  ;;  %v1720_v18 = vmax.f32 %v695_v53, %v1464_v10  ;;  %v1721_v19 = vmax.f32 %v696_v58, %v1465_v11  ;;  %v310_v31 = vld [vmem:[%s3882_s29 + $0x216] sm:$0x1]  ;;  %v311_v32 = vld [vmem:[%s3882_s29 + $0x218] sm:$0x1]  ;;  %v564_v33 = vld [vmem:[%s3882_s29 + $0x213] sm:$0x1] }
  0x35   : > { %v1722_v20 = vmax.f32 %v697_v59, %v1466_v12  ;;  %v1723_v21 = vmax.f32 %v698_v60, %v1467_v13  ;;  %v2260_v22 = vrot.slane %v1717_v15, 7  ;;  %v312_v38 = vld [vmem:[%s3882_s29 + $0x21a] sm:$0x1]  ;;  %v313_v39 = vld [vmem:[%s3882_s29 + $0x21c] sm:$0x1]  ;;  %v819_v51 = vmax.f32 %v4075_v23, %v563_v25 }
  0x36   : > { %v2262_v26 = vrot.slane %v1718_v16, 6  ;;  %v2264_v27 = vrot.slane %v1719_v17, 5  ;;  %v2266_v28 = vrot.slane %v1720_v18, 4  ;;  %v2268_v29 = vrot.slane %v1721_v19, 3  ;;  %v314_v40 = vld [vmem:[%s3882_s29 + $0x21e] sm:$0x1] }
  0x37   : > { %v2261_v34 = vsel %vm2240_vm0, %v2260_v22, %v1716_v14  ;;  %v2270_v36 = vrot.slane %v1722_v20, 2  ;;  %v2272_v37 = vrot.slane %v1723_v21, 1  ;;  %v565_v41 = vld [vmem:[%s3882_s29 + $0x215] sm:$0x1]  ;;  %v566_v42 = vld [vmem:[%s3882_s29 + $0x217] sm:$0x1]  ;;  %v820_v52 = vmax.f32 %v4078_v24, %v564_v33 }
  0x38   : > { %v2263_v43 = vsel %vm2243_vm1, %v2262_v26, %v2261_v34  ;;  %v567_v44 = vld [vmem:[%s3882_s29 + $0x219] sm:$0x1]  ;;  %v568_v35 = vld [vmem:[%s3882_s29 + $0x21b] sm:$0x1]  ;;  %v569_v45 = vld [vmem:[%s3882_s29 + $0x21d] sm:$0x1]  ;;  %v821_v57 = vmax.f32 %v309_v30, %v565_v41  ;;  %v822_v58 = vmax.f32 %v310_v31, %v566_v42 }
  0x39   : > { %v2265_v46 = vsel %vm2246_vm2, %v2264_v27, %v2263_v43  ;;  %v570_v47 = vld [vmem:[%s3882_s29 + $0x21f] sm:$0x1]  ;;  %v3249_v48 = vld [vmem:[%s3882_s29 + $0x230] sm:$0x1]  ;;  %v3250_v49 = vld [vmem:[%s3882_s29 + $0x232] sm:$0x1]  ;;  %v823_v59 = vmax.f32 %v311_v32, %v567_v44  ;;  %v824_v0 = vmax.f32 %v312_v38, %v568_v35  ;;  %v825_v1 = vmax.f32 %v313_v39, %v569_v45 }
  0x3a   : > { %v2267_v50 = vsel %vm2249_vm3, %v2266_v28, %v2265_v46  ;;  %v3251_v53 = vld [vmem:[%s3882_s29 + $0x234] sm:$0x1]  ;;  %v3252_v54 = vld [vmem:[%s3882_s29 + $0x236] sm:$0x1]  ;;  %v3253_v55 = vld [vmem:[%s3882_s29 + $0x238] sm:$0x1]  ;;  %v826_v2 = vmax.f32 %v314_v40, %v570_v47 }
  0x3b   : > { %v2269_v56 = vsel %vm2252_vm4, %v2268_v29, %v2267_v50  ;;  %v3254_v60 = vld [vmem:[%s3882_s29 + $0x23a] sm:$0x1]  ;;  %v3255_v61 = vld [vmem:[%s3882_s29 + $0x23c] sm:$0x1]  ;;  %v3256_v62 = vld [vmem:[%s3882_s29 + $0x23e] sm:$0x1] }
  0x3c   : > { %v2271_v63 = vsel %vm2255_vm5, %v2270_v36, %v2269_v56  ;;  %v3505_v3 = vld [vmem:[%s3882_s29 + $0x231] sm:$0x1]  ;;  %v3506_v4 = vld [vmem:[%s3882_s29 + $0x233] sm:$0x1]  ;;  %v3507_v5 = vld [vmem:[%s3882_s29 + $0x235] sm:$0x1] }
  0x3d   : > { %v2273_v6 = vsel %vm2258_vm6, %v2272_v37, %v2271_v63  ;;  %v3508_v7 = vld [vmem:[%s3882_s29 + $0x237] sm:$0x1]  ;;  %v3509_v8 = vld [vmem:[%s3882_s29 + $0x239] sm:$0x1]  ;;  %v3510_v9 = vld [vmem:[%s3882_s29 + $0x23b] sm:$0x1]  ;;  %v1588_v10 = vmax.f32 %v3249_v48, %v3505_v3  ;;  %v1589_v11 = vmax.f32 %v3250_v49, %v3506_v4  ;;  %v1590_v12 = vmax.f32 %v3251_v53, %v3507_v5 }
  0x3e   : > { %3731 = vmatmul.mubr.msk.f32.vlgmr.msra.gmra.mrb[0].mxu0 %vm2694_vm7, %v2273_v6  ;;  %v3511_v13 = vld [vmem:[%s3882_s29 + $0x23d] sm:$0x1]  ;;  %v3512_v14 = vld [vmem:[%s3882_s29 + $0x23f] sm:$0x1]  ;;  %v1591_v15 = vmax.f32 %v3252_v54, %v3508_v7  ;;  %v1592_v16 = vmax.f32 %v3253_v55, %v3509_v8  ;;  %v1593_v17 = vmax.f32 %v3254_v60, %v3510_v9  ;;  %v4121_v29 = vld [vmem:[%s3882_s29 + $0x40] sm:$0x1] }
  0x3f   : > { %v1594_v18 = vmax.f32 %v3255_v61, %v3511_v13  ;;  %v1595_v19 = vmax.f32 %v3256_v62, %v3512_v14  ;;  %v1844_v20 = vmax.f32 %v819_v51, %v1588_v10  ;;  %v1845_v21 = vmax.f32 %v820_v52, %v1589_v11  ;;  %v4124_v30 = vld [vmem:[%s3882_s29 + $0x42] sm:$0x1]  ;;  %v443_v31 = vld [vmem:[%s3882_s29 + $0x41] sm:$0x1]  ;;  %v189_v37 = vld [vmem:[%s3882_s29 + $0x44] sm:$0x1] }
  0x40   : > { %v1846_v22 = vmax.f32 %v821_v57, %v1590_v12  ;;  %v1847_v23 = vmax.f32 %v822_v58, %v1591_v15  ;;  %v1848_v24 = vmax.f32 %v823_v59, %v1592_v16  ;;  %v1849_v25 = vmax.f32 %v824_v0, %v1593_v17  ;;  %v190_v38 = vld [vmem:[%s3882_s29 + $0x46] sm:$0x1]  ;;  %v191_v39 = vld [vmem:[%s3882_s29 + $0x48] sm:$0x1]  ;;  %v444_v40 = vld [vmem:[%s3882_s29 + $0x43] sm:$0x1] }
  0x41   : > { %v1850_v26 = vmax.f32 %v825_v1, %v1594_v18  ;;  %v1851_v27 = vmax.f32 %v826_v2, %v1595_v19  ;;  %v2484_v28 = vrot.slane %v1845_v21, 7  ;;  %v192_v44 = vld [vmem:[%s3882_s29 + $0x4a] sm:$0x1]  ;;  %v193_v35 = vld [vmem:[%s3882_s29 + $0x4c] sm:$0x1]  ;;  %v699_v57 = vmax.f32 %v4121_v29, %v443_v31 }
  0x42   : > { %v2486_v32 = vrot.slane %v1846_v22, 6  ;;  %v2488_v33 = vrot.slane %v1847_v23, 5  ;;  %v2490_v34 = vrot.slane %v1848_v24, 4  ;;  %v2492_v36 = vrot.slane %v1849_v25, 3  ;;  %v194_v45 = vld [vmem:[%s3882_s29 + $0x4e] sm:$0x1] }
  0x43   : > { %v2485_v41 = vsel %vm2240_vm0, %v2484_v28, %v1844_v20  ;;  %v2494_v42 = vrot.slane %v1850_v26, 2  ;;  %v2496_v43 = vrot.slane %v1851_v27, 1  ;;  %v445_v46 = vld [vmem:[%s3882_s29 + $0x45] sm:$0x1]  ;;  %v446_v47 = vld [vmem:[%s3882_s29 + $0x47] sm:$0x1]  ;;  %v700_v58 = vmax.f32 %v4124_v30, %v444_v40 }
  0x44   : > { %v2487_v48 = vsel %vm2243_vm1, %v2486_v32, %v2485_v41  ;;  %v447_v49 = vld [vmem:[%s3882_s29 + $0x49] sm:$0x1]  ;;  %v448_v50 = vld [vmem:[%s3882_s29 + $0x4b] sm:$0x1]  ;;  %v449_v51 = vld [vmem:[%s3882_s29 + $0x4d] sm:$0x1]  ;;  %v701_v63 = vmax.f32 %v189_v37, %v445_v46  ;;  %v702_v0 = vmax.f32 %v190_v38, %v446_v47 }
  0x45   : > { %v2489_v52 = vsel %vm2246_vm2, %v2488_v33, %v2487_v48  ;;  %v450_v53 = vld [vmem:[%s3882_s29 + $0x4f] sm:$0x1]  ;;  %v3129_v54 = vld [vmem:[%s3882_s29 + $0x60] sm:$0x1]  ;;  %v3130_v55 = vld [vmem:[%s3882_s29 + $0x62] sm:$0x1]  ;;  %v703_v1 = vmax.f32 %v191_v39, %v447_v49  ;;  %v704_v6 = vmax.f32 %v192_v44, %v448_v50  ;;  %v705_v7 = vmax.f32 %v193_v35, %v449_v51 }
  0x46   : > { %v2491_v56 = vsel %vm2249_vm3, %v2490_v34, %v2489_v52  ;;  %v3131_v59 = vld [vmem:[%s3882_s29 + $0x64] sm:$0x1]  ;;  %v3132_v60 = vld [vmem:[%s3882_s29 + $0x66] sm:$0x1]  ;;  %v3133_v61 = vld [vmem:[%s3882_s29 + $0x68] sm:$0x1]  ;;  %v706_v8 = vmax.f32 %v194_v45, %v450_v53 }
  0x47   : > { %v2493_v62 = vsel %vm2252_vm4, %v2492_v36, %v2491_v56  ;;  %v3134_v2 = vld [vmem:[%s3882_s29 + $0x6a] sm:$0x1]  ;;  %v3135_v3 = vld [vmem:[%s3882_s29 + $0x6c] sm:$0x1]  ;;  %v3136_v4 = vld [vmem:[%s3882_s29 + $0x6e] sm:$0x1] }
  0x48   : > { %v2495_v5 = vsel %vm2255_vm5, %v2494_v42, %v2493_v62  ;;  %v3385_v9 = vld [vmem:[%s3882_s29 + $0x61] sm:$0x1]  ;;  %v3386_v10 = vld [vmem:[%s3882_s29 + $0x63] sm:$0x1]  ;;  %v3387_v11 = vld [vmem:[%s3882_s29 + $0x65] sm:$0x1] }
  0x49   : > { %v2497_v12 = vsel %vm2258_vm6, %v2496_v43, %v2495_v5  ;;  %v3388_v13 = vld [vmem:[%s3882_s29 + $0x67] sm:$0x1]  ;;  %v3389_v14 = vld [vmem:[%s3882_s29 + $0x69] sm:$0x1]  ;;  %v3390_v15 = vld [vmem:[%s3882_s29 + $0x6b] sm:$0x1]  ;;  %v1468_v16 = vmax.f32 %v3129_v54, %v3385_v9  ;;  %v1469_v17 = vmax.f32 %v3130_v55, %v3386_v10  ;;  %v1470_v18 = vmax.f32 %v3131_v59, %v3387_v11 }
  0x4a   : > { %3755 = vmatmul.mubr.msk.f32.vlgmr.msra.gmra.mrb[0].mxu1 %vm2694_vm7, %v2497_v12  ;;  %v3391_v19 = vld [vmem:[%s3882_s29 + $0x6d] sm:$0x1]  ;;  %v3392_v20 = vld [vmem:[%s3882_s29 + $0x6f] sm:$0x1]  ;;  %v1471_v21 = vmax.f32 %v3132_v60, %v3388_v13  ;;  %v1472_v22 = vmax.f32 %v3133_v61, %v3389_v14  ;;  %v1473_v23 = vmax.f32 %v3134_v2, %v3390_v15  ;;  %v4167_v36 = vld [vmem:[%s3882_s29 + $0x240] sm:$0x1] }
  0x4b   : > { %v1474_v24 = vmax.f32 %v3135_v3, %v3391_v19  ;;  %v1475_v25 = vmax.f32 %v3136_v4, %v3392_v20  ;;  %v1724_v26 = vmax.f32 %v699_v57, %v1468_v16  ;;  %v1725_v27 = vmax.f32 %v700_v58, %v1469_v17  ;;  %v4170_v37 = vld [vmem:[%s3882_s29 + $0x242] sm:$0x1]  ;;  %v571_v38 = vld [vmem:[%s3882_s29 + $0x241] sm:$0x1]  ;;  %v317_v43 = vld [vmem:[%s3882_s29 + $0x244] sm:$0x1] }
  0x4c   : > { %v1726_v28 = vmax.f32 %v701_v63, %v1470_v18  ;;  %v1727_v29 = vmax.f32 %v702_v0, %v1471_v21  ;;  %v1728_v30 = vmax.f32 %v703_v1, %v1472_v22  ;;  %v1729_v31 = vmax.f32 %v704_v6, %v1473_v23  ;;  %v318_v44 = vld [vmem:[%s3882_s29 + $0x246] sm:$0x1]  ;;  %v319_v35 = vld [vmem:[%s3882_s29 + $0x248] sm:$0x1]  ;;  %v572_v45 = vld [vmem:[%s3882_s29 + $0x243] sm:$0x1] }
  0x4d   : > { %v1730_v32 = vmax.f32 %v705_v7, %v1474_v24  ;;  %v1731_v33 = vmax.f32 %v706_v8, %v1475_v25  ;;  %v2274_v34 = vrot.slane %v1725_v27, 7  ;;  %v320_v49 = vld [vmem:[%s3882_s29 + $0x24a] sm:$0x1]  ;;  %v321_v50 = vld [vmem:[%s3882_s29 + $0x24c] sm:$0x1]  ;;  %v827_v63 = vmax.f32 %v4167_v36, %v571_v38 }
  0x4e   : > { %v2276_v39 = vrot.slane %v1726_v28, 6  ;;  %v2278_v40 = vrot.slane %v1727_v29, 5  ;;  %v2280_v41 = vrot.slane %v1728_v30, 4  ;;  %v2282_v42 = vrot.slane %v1729_v31, 3  ;;  %v322_v51 = vld [vmem:[%s3882_s29 + $0x24e] sm:$0x1] }
  0x4f   : > { %v2275_v46 = vsel %vm2240_vm0, %v2274_v34, %v1724_v26  ;;  %v2284_v47 = vrot.slane %v1730_v32, 2  ;;  %v2286_v48 = vrot.slane %v1731_v33, 1  ;;  %v573_v52 = vld [vmem:[%s3882_s29 + $0x245] sm:$0x1]  ;;  %v574_v53 = vld [vmem:[%s3882_s29 + $0x247] sm:$0x1]  ;;  %v828_v0 = vmax.f32 %v4170_v37, %v572_v45 }
  0x50   : > { %v2277_v54 = vsel %vm2243_vm1, %v2276_v39, %v2275_v46  ;;  %v575_v55 = vld [vmem:[%s3882_s29 + $0x249] sm:$0x1]  ;;  %v576_v56 = vld [vmem:[%s3882_s29 + $0x24b] sm:$0x1]  ;;  %v577_v57 = vld [vmem:[%s3882_s29 + $0x24d] sm:$0x1]  ;;  %v829_v5 = vmax.f32 %v317_v43, %v573_v52  ;;  %v830_v6 = vmax.f32 %v318_v44, %v574_v53 }
  0x51   : > { %v2279_v58 = vsel %vm2246_vm2, %v2278_v40, %v2277_v54  ;;  %v578_v59 = vld [vmem:[%s3882_s29 + $0x24f] sm:$0x1]  ;;  %v3257_v60 = vld [vmem:[%s3882_s29 + $0x260] sm:$0x1]  ;;  %v3258_v61 = vld [vmem:[%s3882_s29 + $0x262] sm:$0x1]  ;;  %v831_v7 = vmax.f32 %v319_v35, %v575_v55  ;;  %v832_v12 = vmax.f32 %v320_v49, %v576_v56  ;;  %v833_v13 = vmax.f32 %v321_v50, %v577_v57 }
  0x52   : > { %v2281_v62 = vsel %vm2249_vm3, %v2280_v41, %v2279_v58  ;;  %v3259_v1 = vld [vmem:[%s3882_s29 + $0x264] sm:$0x1]  ;;  %v3260_v2 = vld [vmem:[%s3882_s29 + $0x266] sm:$0x1]  ;;  %v3261_v3 = vld [vmem:[%s3882_s29 + $0x268] sm:$0x1]  ;;  %v834_v14 = vmax.f32 %v322_v51, %v578_v59 }
  0x53   : > { %v2283_v4 = vsel %vm2252_vm4, %v2282_v42, %v2281_v62  ;;  %v3262_v8 = vld [vmem:[%s3882_s29 + $0x26a] sm:$0x1]  ;;  %v3263_v9 = vld [vmem:[%s3882_s29 + $0x26c] sm:$0x1]  ;;  %v3264_v10 = vld [vmem:[%s3882_s29 + $0x26e] sm:$0x1] }
  0x54   : > { %v2285_v11 = vsel %vm2255_vm5, %v2284_v47, %v2283_v4  ;;  %v3513_v15 = vld [vmem:[%s3882_s29 + $0x261] sm:$0x1]  ;;  %v3514_v16 = vld [vmem:[%s3882_s29 + $0x263] sm:$0x1]  ;;  %v3515_v17 = vld [vmem:[%s3882_s29 + $0x265] sm:$0x1] }
  0x55   : > { %v2287_v18 = vsel %vm2258_vm6, %v2286_v48, %v2285_v11  ;;  %v3516_v19 = vld [vmem:[%s3882_s29 + $0x267] sm:$0x1]  ;;  %v3517_v20 = vld [vmem:[%s3882_s29 + $0x269] sm:$0x1]  ;;  %v3518_v21 = vld [vmem:[%s3882_s29 + $0x26b] sm:$0x1]  ;;  %v1596_v22 = vmax.f32 %v3257_v60, %v3513_v15  ;;  %v1597_v23 = vmax.f32 %v3258_v61, %v3514_v16  ;;  %v1598_v24 = vmax.f32 %v3259_v1, %v3515_v17 }
  0x56   : > { %3733 = vmatprep.mubr.msk.f32.mxu0 %vm2694_vm7, %v2287_v18  ;;  %v3519_v25 = vld [vmem:[%s3882_s29 + $0x26d] sm:$0x1]  ;;  %v3520_v26 = vld [vmem:[%s3882_s29 + $0x26f] sm:$0x1]  ;;  %v1599_v27 = vmax.f32 %v3260_v2, %v3516_v19  ;;  %v1600_v28 = vmax.f32 %v3261_v3, %v3517_v20  ;;  %v1601_v29 = vmax.f32 %v3262_v8, %v3518_v21  ;;  %v4213_v42 = vld [vmem:[%s3882_s29 + $0x50] sm:$0x1] }
  0x57   : > { %v1602_v30 = vmax.f32 %v3263_v9, %v3519_v25  ;;  %v1603_v31 = vmax.f32 %v3264_v10, %v3520_v26  ;;  %v1852_v32 = vmax.f32 %v827_v63, %v1596_v22  ;;  %v1853_v33 = vmax.f32 %v828_v0, %v1597_v23  ;;  %v4216_v43 = vld [vmem:[%s3882_s29 + $0x52] sm:$0x1]  ;;  %v451_v44 = vld [vmem:[%s3882_s29 + $0x51] sm:$0x1]  ;;  %v197_v48 = vld [vmem:[%s3882_s29 + $0x54] sm:$0x1] }
  0x58   : > { %v1854_v34 = vmax.f32 %v829_v5, %v1598_v24  ;;  %v1855_v36 = vmax.f32 %v830_v6, %v1599_v27  ;;  %v1856_v37 = vmax.f32 %v831_v7, %v1600_v28  ;;  %v1857_v38 = vmax.f32 %v832_v12, %v1601_v29  ;;  %v198_v49 = vld [vmem:[%s3882_s29 + $0x56] sm:$0x1]  ;;  %v199_v50 = vld [vmem:[%s3882_s29 + $0x58] sm:$0x1]  ;;  %v452_v51 = vld [vmem:[%s3882_s29 + $0x53] sm:$0x1] }
  0x59   : > { %v1858_v39 = vmax.f32 %v833_v13, %v1602_v30  ;;  %v1859_v40 = vmax.f32 %v834_v14, %v1603_v31  ;;  %v2498_v41 = vrot.slane %v1853_v33, 7  ;;  %v200_v55 = vld [vmem:[%s3882_s29 + $0x5a] sm:$0x1]  ;;  %v201_v56 = vld [vmem:[%s3882_s29 + $0x5c] sm:$0x1]  ;;  %v707_v5 = vmax.f32 %v4213_v42, %v451_v44 }
  0x5a   : > { %v2500_v35 = vrot.slane %v1854_v34, 6  ;;  %v2502_v45 = vrot.slane %v1855_v36, 5  ;;  %v2504_v46 = vrot.slane %v1856_v37, 4  ;;  %v2506_v47 = vrot.slane %v1857_v38, 3  ;;  %v202_v57 = vld [vmem:[%s3882_s29 + $0x5e] sm:$0x1] }
  0x5b   : > { %v2499_v52 = vsel %vm2240_vm0, %v2498_v41, %v1852_v32  ;;  %v2508_v53 = vrot.slane %v1858_v39, 2  ;;  %v2510_v54 = vrot.slane %v1859_v40, 1  ;;  %v453_v58 = vld [vmem:[%s3882_s29 + $0x55] sm:$0x1]  ;;  %v454_v59 = vld [vmem:[%s3882_s29 + $0x57] sm:$0x1]  ;;  %v708_v6 = vmax.f32 %v4216_v43, %v452_v51 }
  0x5c   : > { %v2501_v60 = vsel %vm2243_vm1, %v2500_v35, %v2499_v52  ;;  %v455_v61 = vld [vmem:[%s3882_s29 + $0x59] sm:$0x1]  ;;  %v456_v62 = vld [vmem:[%s3882_s29 + $0x5b] sm:$0x1]  ;;  %v457_v63 = vld [vmem:[%s3882_s29 + $0x5d] sm:$0x1]  ;;  %v709_v11 = vmax.f32 %v197_v48, %v453_v58  ;;  %v710_v12 = vmax.f32 %v198_v49, %v454_v59 }
  0x5d   : > { %v2503_v0 = vsel %vm2246_vm2, %v2502_v45, %v2501_v60  ;;  %v458_v1 = vld [vmem:[%s3882_s29 + $0x5f] sm:$0x1]  ;;  %v3137_v2 = vld [vmem:[%s3882_s29 + $0x70] sm:$0x1]  ;;  %v3138_v3 = vld [vmem:[%s3882_s29 + $0x72] sm:$0x1]  ;;  %v711_v13 = vmax.f32 %v199_v50, %v455_v61  ;;  %v712_v18 = vmax.f32 %v200_v55, %v456_v62  ;;  %v713_v19 = vmax.f32 %v201_v56, %v457_v63 }
  0x5e   : > { %v2505_v4 = vsel %vm2249_vm3, %v2504_v46, %v2503_v0  ;;  %v3139_v7 = vld [vmem:[%s3882_s29 + $0x74] sm:$0x1]  ;;  %v3140_v8 = vld [vmem:[%s3882_s29 + $0x76] sm:$0x1]  ;;  %v3141_v9 = vld [vmem:[%s3882_s29 + $0x78] sm:$0x1]  ;;  %v714_v20 = vmax.f32 %v202_v57, %v458_v1 }
  0x5f   : > { %v2507_v10 = vsel %vm2252_vm4, %v2506_v47, %v2505_v4  ;;  %v3142_v14 = vld [vmem:[%s3882_s29 + $0x7a] sm:$0x1]  ;;  %v3143_v15 = vld [vmem:[%s3882_s29 + $0x7c] sm:$0x1]  ;;  %v3144_v16 = vld [vmem:[%s3882_s29 + $0x7e] sm:$0x1] }
  0x60   : > { %v2509_v17 = vsel %vm2255_vm5, %v2508_v53, %v2507_v10  ;;  %v3393_v21 = vld [vmem:[%s3882_s29 + $0x71] sm:$0x1]  ;;  %v3394_v22 = vld [vmem:[%s3882_s29 + $0x73] sm:$0x1]  ;;  %v3395_v23 = vld [vmem:[%s3882_s29 + $0x75] sm:$0x1] }
  0x61   : > { %v2511_v24 = vsel %vm2258_vm6, %v2510_v54, %v2509_v17  ;;  %v3396_v25 = vld [vmem:[%s3882_s29 + $0x77] sm:$0x1]  ;;  %v3397_v26 = vld [vmem:[%s3882_s29 + $0x79] sm:$0x1]  ;;  %v3398_v27 = vld [vmem:[%s3882_s29 + $0x7b] sm:$0x1]  ;;  %v1476_v28 = vmax.f32 %v3137_v2, %v3393_v21  ;;  %v1477_v29 = vmax.f32 %v3138_v3, %v3394_v22  ;;  %v1478_v30 = vmax.f32 %v3139_v7, %v3395_v23 }
  0x62   : > { %3757 = vmatprep.mubr.msk.f32.mxu1 %vm2694_vm7, %v2511_v24  ;;  %v3399_v31 = vld [vmem:[%s3882_s29 + $0x7d] sm:$0x1]  ;;  %v3400_v32 = vld [vmem:[%s3882_s29 + $0x7f] sm:$0x1]  ;;  %v1479_v33 = vmax.f32 %v3140_v8, %v3396_v25  ;;  %v1480_v34 = vmax.f32 %v3141_v9, %v3397_v26  ;;  %v1481_v36 = vmax.f32 %v3142_v14, %v3398_v27  ;;  %v4259_v47 = vld [vmem:[%s3882_s29 + $0x250] sm:$0x1] }
  0x63   : > { %v1482_v37 = vmax.f32 %v3143_v15, %v3399_v31  ;;  %v1483_v38 = vmax.f32 %v3144_v16, %v3400_v32  ;;  %v1732_v39 = vmax.f32 %v707_v5, %v1476_v28  ;;  %v1733_v40 = vmax.f32 %v708_v6, %v1477_v29  ;;  %v4262_v48 = vld [vmem:[%s3882_s29 + $0x252] sm:$0x1]  ;;  %v579_v49 = vld [vmem:[%s3882_s29 + $0x251] sm:$0x1]  ;;  %v325_v54 = vld [vmem:[%s3882_s29 + $0x254] sm:$0x1] }
  0x64   : > { %v1734_v41 = vmax.f32 %v709_v11, %v1478_v30  ;;  %v1735_v42 = vmax.f32 %v710_v12, %v1479_v33  ;;  %v1736_v43 = vmax.f32 %v711_v13, %v1480_v34  ;;  %v1737_v44 = vmax.f32 %v712_v18, %v1481_v36  ;;  %v326_v55 = vld [vmem:[%s3882_s29 + $0x256] sm:$0x1]  ;;  %v327_v56 = vld [vmem:[%s3882_s29 + $0x258] sm:$0x1]  ;;  %v580_v57 = vld [vmem:[%s3882_s29 + $0x253] sm:$0x1] }
  0x65   : > { %v1738_v35 = vmax.f32 %v713_v19, %v1482_v37  ;;  %v1739_v45 = vmax.f32 %v714_v20, %v1483_v38  ;;  %v2288_v46 = vrot.slane %v1733_v40, 7  ;;  %v328_v61 = vld [vmem:[%s3882_s29 + $0x25a] sm:$0x1]  ;;  %v329_v62 = vld [vmem:[%s3882_s29 + $0x25c] sm:$0x1]  ;;  %v835_v11 = vmax.f32 %v4259_v47, %v579_v49 }
  0x66   : > { %v2290_v50 = vrot.slane %v1734_v41, 6  ;;  %v2292_v51 = vrot.slane %v1735_v42, 5  ;;  %v2294_v52 = vrot.slane %v1736_v43, 4  ;;  %v2296_v53 = vrot.slane %v1737_v44, 3  ;;  %v330_v63 = vld [vmem:[%s3882_s29 + $0x25e] sm:$0x1] }
  0x67   : > { %v2289_v58 = vsel %vm2240_vm0, %v2288_v46, %v1732_v39  ;;  %v2298_v59 = vrot.slane %v1738_v35, 2  ;;  %v2300_v60 = vrot.slane %v1739_v45, 1  ;;  %v581_v0 = vld [vmem:[%s3882_s29 + $0x255] sm:$0x1]  ;;  %v582_v1 = vld [vmem:[%s3882_s29 + $0x257] sm:$0x1]  ;;  %v836_v12 = vmax.f32 %v4262_v48, %v580_v57 }
  0x68   : > { %v2291_v2 = vsel %vm2243_vm1, %v2290_v50, %v2289_v58  ;;  %v583_v3 = vld [vmem:[%s3882_s29 + $0x259] sm:$0x1]  ;;  %v584_v4 = vld [vmem:[%s3882_s29 + $0x25b] sm:$0x1]  ;;  %v585_v5 = vld [vmem:[%s3882_s29 + $0x25d] sm:$0x1]  ;;  %v837_v17 = vmax.f32 %v325_v54, %v581_v0  ;;  %v838_v18 = vmax.f32 %v326_v55, %v582_v1 }
  0x69   : > { %v2293_v6 = vsel %vm2246_vm2, %v2292_v51, %v2291_v2  ;;  %v586_v7 = vld [vmem:[%s3882_s29 + $0x25f] sm:$0x1]  ;;  %v3265_v8 = vld [vmem:[%s3882_s29 + $0x270] sm:$0x1]  ;;  %v3266_v9 = vld [vmem:[%s3882_s29 + $0x272] sm:$0x1]  ;;  %v839_v19 = vmax.f32 %v327_v56, %v583_v3  ;;  %v840_v24 = vmax.f32 %v328_v61, %v584_v4  ;;  %v841_v25 = vmax.f32 %v329_v62, %v585_v5 }
  0x6a   : > { %v2295_v10 = vsel %vm2249_vm3, %v2294_v52, %v2293_v6  ;;  %v3267_v13 = vld [vmem:[%s3882_s29 + $0x274] sm:$0x1]  ;;  %v3268_v14 = vld [vmem:[%s3882_s29 + $0x276] sm:$0x1]  ;;  %v3269_v15 = vld [vmem:[%s3882_s29 + $0x278] sm:$0x1]  ;;  %v842_v26 = vmax.f32 %v330_v63, %v586_v7 }
  0x6b   : > { %v2297_v16 = vsel %vm2252_vm4, %v2296_v53, %v2295_v10  ;;  %v3270_v20 = vld [vmem:[%s3882_s29 + $0x27a] sm:$0x1]  ;;  %v3271_v21 = vld [vmem:[%s3882_s29 + $0x27c] sm:$0x1]  ;;  %v3272_v22 = vld [vmem:[%s3882_s29 + $0x27e] sm:$0x1] }
  0x6c   : > { %v2299_v23 = vsel %vm2255_vm5, %v2298_v59, %v2297_v16  ;;  %v3521_v27 = vld [vmem:[%s3882_s29 + $0x271] sm:$0x1]  ;;  %v3522_v28 = vld [vmem:[%s3882_s29 + $0x273] sm:$0x1]  ;;  %v3523_v29 = vld [vmem:[%s3882_s29 + $0x275] sm:$0x1] }
  0x6d   : > { %v2301_v30 = vsel %vm2258_vm6, %v2300_v60, %v2299_v23  ;;  %v3524_v31 = vld [vmem:[%s3882_s29 + $0x277] sm:$0x1]  ;;  %v3525_v32 = vld [vmem:[%s3882_s29 + $0x279] sm:$0x1]  ;;  %v3526_v33 = vld [vmem:[%s3882_s29 + $0x27b] sm:$0x1]  ;;  %v1604_v34 = vmax.f32 %v3265_v8, %v3521_v27  ;;  %v1605_v36 = vmax.f32 %v3266_v9, %v3522_v28  ;;  %v1606_v37 = vmax.f32 %v3267_v13, %v3523_v29 }
  0x6e   : > { %3734 = vmatmul.mubr.msk.f32.gmra.mrb[2].mxu0 %vm2694_vm7, %v2301_v30  ;;  %v3527_v38 = vld [vmem:[%s3882_s29 + $0x27d] sm:$0x1]  ;;  %v3528_v39 = vld [vmem:[%s3882_s29 + $0x27f] sm:$0x1]  ;;  %v1607_v40 = vmax.f32 %v3268_v14, %v3524_v31  ;;  %v1608_v41 = vmax.f32 %v3269_v15, %v3525_v32  ;;  %v1609_v42 = vmax.f32 %v3270_v20, %v3526_v33  ;;  %v4305_v53 = vld [vmem:[%s3882_s29 + $0x80] sm:$0x1] }
  0x6f   : > { %v1610_v43 = vmax.f32 %v3271_v21, %v3527_v38  ;;  %v1611_v44 = vmax.f32 %v3272_v22, %v3528_v39  ;;  %v1860_v35 = vmax.f32 %v835_v11, %v1604_v34  ;;  %v1861_v45 = vmax.f32 %v836_v12, %v1605_v36  ;;  %v4308_v54 = vld [vmem:[%s3882_s29 + $0x82] sm:$0x1]  ;;  %v459_v55 = vld [vmem:[%s3882_s29 + $0x81] sm:$0x1]  ;;  %v205_v60 = vld [vmem:[%s3882_s29 + $0x84] sm:$0x1] }
  0x70   : > { %v1862_v46 = vmax.f32 %v837_v17, %v1606_v37  ;;  %v1863_v47 = vmax.f32 %v838_v18, %v1607_v40  ;;  %v1864_v48 = vmax.f32 %v839_v19, %v1608_v41  ;;  %v1865_v49 = vmax.f32 %v840_v24, %v1609_v42  ;;  %v206_v61 = vld [vmem:[%s3882_s29 + $0x86] sm:$0x1]  ;;  %v207_v62 = vld [vmem:[%s3882_s29 + $0x88] sm:$0x1]  ;;  %v460_v63 = vld [vmem:[%s3882_s29 + $0x83] sm:$0x1] }
  0x71   : > { %v1866_v50 = vmax.f32 %v841_v25, %v1610_v43  ;;  %v1867_v51 = vmax.f32 %v842_v26, %v1611_v44  ;;  %v2512_v52 = vrot.slane %v1861_v45, 7  ;;  %v208_v3 = vld [vmem:[%s3882_s29 + $0x8a] sm:$0x1]  ;;  %v209_v4 = vld [vmem:[%s3882_s29 + $0x8c] sm:$0x1]  ;;  %v715_v17 = vmax.f32 %v4305_v53, %v459_v55 }
  0x72   : > { %v2514_v56 = vrot.slane %v1862_v46, 6  ;;  %v2516_v57 = vrot.slane %v1863_v47, 5  ;;  %v2518_v58 = vrot.slane %v1864_v48, 4  ;;  %v2520_v59 = vrot.slane %v1865_v49, 3  ;;  %v210_v5 = vld [vmem:[%s3882_s29 + $0x8e] sm:$0x1] }
  0x73   : > { %v2513_v0 = vsel %vm2240_vm0, %v2512_v52, %v1860_v35  ;;  %v2522_v1 = vrot.slane %v1866_v50, 2  ;;  %v2524_v2 = vrot.slane %v1867_v51, 1  ;;  %v461_v6 = vld [vmem:[%s3882_s29 + $0x85] sm:$0x1]  ;;  %v462_v7 = vld [vmem:[%s3882_s29 + $0x87] sm:$0x1]  ;;  %v716_v18 = vmax.f32 %v4308_v54, %v460_v63 }
  0x74   : > { %v2515_v8 = vsel %vm2243_vm1, %v2514_v56, %v2513_v0  ;;  %v463_v9 = vld [vmem:[%s3882_s29 + $0x89] sm:$0x1]  ;;  %v464_v10 = vld [vmem:[%s3882_s29 + $0x8b] sm:$0x1]  ;;  %v465_v11 = vld [vmem:[%s3882_s29 + $0x8d] sm:$0x1]  ;;  %v717_v23 = vmax.f32 %v205_v60, %v461_v6  ;;  %v718_v24 = vmax.f32 %v206_v61, %v462_v7 }
  0x75   : > { %v2517_v12 = vsel %vm2246_vm2, %v2516_v57, %v2515_v8  ;;  %v466_v13 = vld [vmem:[%s3882_s29 + $0x8f] sm:$0x1]  ;;  %v3145_v14 = vld [vmem:[%s3882_s29 + $0xa0] sm:$0x1]  ;;  %v3146_v15 = vld [vmem:[%s3882_s29 + $0xa2] sm:$0x1]  ;;  %v719_v25 = vmax.f32 %v207_v62, %v463_v9  ;;  %v720_v30 = vmax.f32 %v208_v3, %v464_v10  ;;  %v721_v31 = vmax.f32 %v209_v4, %v465_v11 }
  0x76   : > { %v2519_v16 = vsel %vm2249_vm3, %v2518_v58, %v2517_v12  ;;  %v3147_v19 = vld [vmem:[%s3882_s29 + $0xa4] sm:$0x1]  ;;  %v3148_v20 = vld [vmem:[%s3882_s29 + $0xa6] sm:$0x1]  ;;  %v3149_v21 = vld [vmem:[%s3882_s29 + $0xa8] sm:$0x1]  ;;  %v722_v32 = vmax.f32 %v210_v5, %v466_v13 }
  0x77   : > { %v2521_v22 = vsel %vm2252_vm4, %v2520_v59, %v2519_v16  ;;  %v3150_v26 = vld [vmem:[%s3882_s29 + $0xaa] sm:$0x1]  ;;  %v3151_v27 = vld [vmem:[%s3882_s29 + $0xac] sm:$0x1]  ;;  %v3152_v28 = vld [vmem:[%s3882_s29 + $0xae] sm:$0x1] }
  0x78   : > { %v2523_v29 = vsel %vm2255_vm5, %v2522_v1, %v2521_v22  ;;  %v3401_v33 = vld [vmem:[%s3882_s29 + $0xa1] sm:$0x1]  ;;  %v3402_v34 = vld [vmem:[%s3882_s29 + $0xa3] sm:$0x1]  ;;  %v3403_v36 = vld [vmem:[%s3882_s29 + $0xa5] sm:$0x1] }
  0x79   : > { %v2525_v37 = vsel %vm2258_vm6, %v2524_v2, %v2523_v29  ;;  %v3404_v38 = vld [vmem:[%s3882_s29 + $0xa7] sm:$0x1]  ;;  %v3405_v39 = vld [vmem:[%s3882_s29 + $0xa9] sm:$0x1]  ;;  %v3406_v40 = vld [vmem:[%s3882_s29 + $0xab] sm:$0x1]  ;;  %v1484_v41 = vmax.f32 %v3145_v14, %v3401_v33  ;;  %v1485_v42 = vmax.f32 %v3146_v15, %v3402_v34  ;;  %v1486_v43 = vmax.f32 %v3147_v19, %v3403_v36 }
  0x7a   : > { %3758 = vmatmul.mubr.msk.f32.gmra.mrb[2].mxu1 %vm2694_vm7, %v2525_v37  ;;  %v3407_v44 = vld [vmem:[%s3882_s29 + $0xad] sm:$0x1]  ;;  %v3408_v35 = vld [vmem:[%s3882_s29 + $0xaf] sm:$0x1]  ;;  %v1487_v45 = vmax.f32 %v3148_v20, %v3404_v38  ;;  %v1488_v46 = vmax.f32 %v3149_v21, %v3405_v39  ;;  %v1489_v47 = vmax.f32 %v3150_v26, %v3406_v40  ;;  %v4351_v59 = vld [vmem:[%s3882_s29 + $0x280] sm:$0x1] }
  0x7b   : > { %v1490_v48 = vmax.f32 %v3151_v27, %v3407_v44  ;;  %v1491_v49 = vmax.f32 %v3152_v28, %v3408_v35  ;;  %v1740_v50 = vmax.f32 %v715_v17, %v1484_v41  ;;  %v1741_v51 = vmax.f32 %v716_v18, %v1485_v42  ;;  %v4354_v60 = vld [vmem:[%s3882_s29 + $0x282] sm:$0x1]  ;;  %v587_v61 = vld [vmem:[%s3882_s29 + $0x281] sm:$0x1]  ;;  %v333_v2 = vld [vmem:[%s3882_s29 + $0x284] sm:$0x1] }
  0x7c   : > { %v1742_v52 = vmax.f32 %v717_v23, %v1486_v43  ;;  %v1743_v53 = vmax.f32 %v718_v24, %v1487_v45  ;;  %v1744_v54 = vmax.f32 %v719_v25, %v1488_v46  ;;  %v1745_v55 = vmax.f32 %v720_v30, %v1489_v47  ;;  %v334_v3 = vld [vmem:[%s3882_s29 + $0x286] sm:$0x1]  ;;  %v335_v4 = vld [vmem:[%s3882_s29 + $0x288] sm:$0x1]  ;;  %v588_v5 = vld [vmem:[%s3882_s29 + $0x283] sm:$0x1] }
  0x7d   : > { %v1746_v56 = vmax.f32 %v721_v31, %v1490_v48  ;;  %v1747_v57 = vmax.f32 %v722_v32, %v1491_v49  ;;  %v2302_v58 = vrot.slane %v1741_v51, 7  ;;  %v336_v9 = vld [vmem:[%s3882_s29 + $0x28a] sm:$0x1]  ;;  %v337_v10 = vld [vmem:[%s3882_s29 + $0x28c] sm:$0x1]  ;;  %v843_v23 = vmax.f32 %v4351_v59, %v587_v61 }
  0x7e   : > { %v2304_v62 = vrot.slane %v1742_v52, 6  ;;  %v2306_v63 = vrot.slane %v1743_v53, 5  ;;  %v2308_v0 = vrot.slane %v1744_v54, 4  ;;  %v2310_v1 = vrot.slane %v1745_v55, 3  ;;  %v338_v11 = vld [vmem:[%s3882_s29 + $0x28e] sm:$0x1] }
  0x7f   : > { %v2303_v6 = vsel %vm2240_vm0, %v2302_v58, %v1740_v50  ;;  %v2312_v7 = vrot.slane %v1746_v56, 2  ;;  %v2314_v8 = vrot.slane %v1747_v57, 1  ;;  %v589_v12 = vld [vmem:[%s3882_s29 + $0x285] sm:$0x1]  ;;  %v590_v13 = vld [vmem:[%s3882_s29 + $0x287] sm:$0x1]  ;;  %v844_v24 = vmax.f32 %v4354_v60, %v588_v5 }
  0x80   : > { %v2305_v14 = vsel %vm2243_vm1, %v2304_v62, %v2303_v6  ;;  %v591_v15 = vld [vmem:[%s3882_s29 + $0x289] sm:$0x1]  ;;  %v592_v16 = vld [vmem:[%s3882_s29 + $0x28b] sm:$0x1]  ;;  %v593_v17 = vld [vmem:[%s3882_s29 + $0x28d] sm:$0x1]  ;;  %v845_v29 = vmax.f32 %v333_v2, %v589_v12  ;;  %v846_v30 = vmax.f32 %v334_v3, %v590_v13 }
  0x81   : > { %v2307_v18 = vsel %vm2246_vm2, %v2306_v63, %v2305_v14  ;;  %v594_v19 = vld [vmem:[%s3882_s29 + $0x28f] sm:$0x1]  ;;  %v3273_v20 = vld [vmem:[%s3882_s29 + $0x2a0] sm:$0x1]  ;;  %v3274_v21 = vld [vmem:[%s3882_s29 + $0x2a2] sm:$0x1]  ;;  %v847_v31 = vmax.f32 %v335_v4, %v591_v15  ;;  %v848_v37 = vmax.f32 %v336_v9, %v592_v16  ;;  %v849_v38 = vmax.f32 %v337_v10, %v593_v17 }
  0x82   : > { %v2309_v22 = vsel %vm2249_vm3, %v2308_v0, %v2307_v18  ;;  %v3275_v25 = vld [vmem:[%s3882_s29 + $0x2a4] sm:$0x1]  ;;  %v3276_v26 = vld [vmem:[%s3882_s29 + $0x2a6] sm:$0x1]  ;;  %v3277_v27 = vld [vmem:[%s3882_s29 + $0x2a8] sm:$0x1]  ;;  %v850_v39 = vmax.f32 %v338_v11, %v594_v19 }
  0x83   : > { %v2311_v28 = vsel %vm2252_vm4, %v2310_v1, %v2309_v22  ;;  %v3278_v32 = vld [vmem:[%s3882_s29 + $0x2aa] sm:$0x1]  ;;  %v3279_v33 = vld [vmem:[%s3882_s29 + $0x2ac] sm:$0x1]  ;;  %v3280_v34 = vld [vmem:[%s3882_s29 + $0x2ae] sm:$0x1] }
  0x84   : > { %v2313_v36 = vsel %vm2255_vm5, %v2312_v7, %v2311_v28  ;;  %v3529_v40 = vld [vmem:[%s3882_s29 + $0x2a1] sm:$0x1]  ;;  %v3530_v41 = vld [vmem:[%s3882_s29 + $0x2a3] sm:$0x1]  ;;  %v3531_v42 = vld [vmem:[%s3882_s29 + $0x2a5] sm:$0x1] }
  0x85   : > { %v2315_v43 = vsel %vm2258_vm6, %v2314_v8, %v2313_v36  ;;  %v3532_v44 = vld [vmem:[%s3882_s29 + $0x2a7] sm:$0x1]  ;;  %v3533_v35 = vld [vmem:[%s3882_s29 + $0x2a9] sm:$0x1]  ;;  %v3534_v45 = vld [vmem:[%s3882_s29 + $0x2ab] sm:$0x1]  ;;  %v1612_v46 = vmax.f32 %v3273_v20, %v3529_v40  ;;  %v1613_v47 = vmax.f32 %v3274_v21, %v3530_v41  ;;  %v1614_v48 = vmax.f32 %v3275_v25, %v3531_v42 }
  0x86   : > { %3736 = vmatprep.mubr.msk.f32.mxu0 %vm2694_vm7, %v2315_v43  ;;  %v3535_v49 = vld [vmem:[%s3882_s29 + $0x2ad] sm:$0x1]  ;;  %v3536_v50 = vld [vmem:[%s3882_s29 + $0x2af] sm:$0x1]  ;;  %v1615_v51 = vmax.f32 %v3276_v26, %v3532_v44  ;;  %v1616_v52 = vmax.f32 %v3277_v27, %v3533_v35  ;;  %v1617_v53 = vmax.f32 %v3278_v32, %v3534_v45  ;;  %v4397_v1 = vld [vmem:[%s3882_s29 + $0x90] sm:$0x1] }
  0x87   : > { %v1618_v54 = vmax.f32 %v3279_v33, %v3535_v49  ;;  %v1619_v55 = vmax.f32 %v3280_v34, %v3536_v50  ;;  %v1868_v56 = vmax.f32 %v843_v23, %v1612_v46  ;;  %v1869_v57 = vmax.f32 %v844_v24, %v1613_v47  ;;  %v4400_v2 = vld [vmem:[%s3882_s29 + $0x92] sm:$0x1]  ;;  %v467_v3 = vld [vmem:[%s3882_s29 + $0x91] sm:$0x1]  ;;  %v213_v8 = vld [vmem:[%s3882_s29 + $0x94] sm:$0x1] }
  0x88   : > { %v1870_v58 = vmax.f32 %v845_v29, %v1614_v48  ;;  %v1871_v59 = vmax.f32 %v846_v30, %v1615_v51  ;;  %v1872_v60 = vmax.f32 %v847_v31, %v1616_v52  ;;  %v1873_v61 = vmax.f32 %v848_v37, %v1617_v53  ;;  %v214_v9 = vld [vmem:[%s3882_s29 + $0x96] sm:$0x1]  ;;  %v215_v10 = vld [vmem:[%s3882_s29 + $0x98] sm:$0x1]  ;;  %v468_v11 = vld [vmem:[%s3882_s29 + $0x93] sm:$0x1] }
  0x89   : > { %v1874_v62 = vmax.f32 %v849_v38, %v1618_v54  ;;  %v1875_v63 = vmax.f32 %v850_v39, %v1619_v55  ;;  %v2526_v0 = vrot.slane %v1869_v57, 7  ;;  %v216_v15 = vld [vmem:[%s3882_s29 + $0x9a] sm:$0x1]  ;;  %v217_v16 = vld [vmem:[%s3882_s29 + $0x9c] sm:$0x1]  ;;  %v723_v29 = vmax.f32 %v4397_v1, %v467_v3 }
  0x8a   : > { %v2528_v4 = vrot.slane %v1870_v58, 6  ;;  %v2530_v5 = vrot.slane %v1871_v59, 5  ;;  %v2532_v6 = vrot.slane %v1872_v60, 4  ;;  %v2534_v7 = vrot.slane %v1873_v61, 3  ;;  %v218_v17 = vld [vmem:[%s3882_s29 + $0x9e] sm:$0x1] }
  0x8b   : > { %v2527_v12 = vsel %vm2240_vm0, %v2526_v0, %v1868_v56  ;;  %v2536_v13 = vrot.slane %v1874_v62, 2  ;;  %v2538_v14 = vrot.slane %v1875_v63, 1  ;;  %v469_v18 = vld [vmem:[%s3882_s29 + $0x95] sm:$0x1]  ;;  %v470_v19 = vld [vmem:[%s3882_s29 + $0x97] sm:$0x1]  ;;  %v724_v30 = vmax.f32 %v4400_v2, %v468_v11 }
  0x8c   : > { %v2529_v20 = vsel %vm2243_vm1, %v2528_v4, %v2527_v12  ;;  %v471_v21 = vld [vmem:[%s3882_s29 + $0x99] sm:$0x1]  ;;  %v472_v22 = vld [vmem:[%s3882_s29 + $0x9b] sm:$0x1]  ;;  %v473_v23 = vld [vmem:[%s3882_s29 + $0x9d] sm:$0x1]  ;;  %v725_v36 = vmax.f32 %v213_v8, %v469_v18  ;;  %v726_v37 = vmax.f32 %v214_v9, %v470_v19 }
  0x8d   : > { %v2531_v24 = vsel %vm2246_vm2, %v2530_v5, %v2529_v20  ;;  %v474_v25 = vld [vmem:[%s3882_s29 + $0x9f] sm:$0x1]  ;;  %v3153_v26 = vld [vmem:[%s3882_s29 + $0xb0] sm:$0x1]  ;;  %v3154_v27 = vld [vmem:[%s3882_s29 + $0xb2] sm:$0x1]  ;;  %v727_v38 = vmax.f32 %v215_v10, %v471_v21  ;;  %v728_v43 = vmax.f32 %v216_v15, %v472_v22  ;;  %v729_v44 = vmax.f32 %v217_v16, %v473_v23 }
  0x8e   : > { %v2533_v28 = vsel %vm2249_vm3, %v2532_v6, %v2531_v24  ;;  %v3155_v31 = vld [vmem:[%s3882_s29 + $0xb4] sm:$0x1]  ;;  %v3156_v32 = vld [vmem:[%s3882_s29 + $0xb6] sm:$0x1]  ;;  %v3157_v33 = vld [vmem:[%s3882_s29 + $0xb8] sm:$0x1]  ;;  %v730_v35 = vmax.f32 %v218_v17, %v474_v25 }
  0x8f   : > { %v2535_v34 = vsel %vm2252_vm4, %v2534_v7, %v2533_v28  ;;  %v3158_v39 = vld [vmem:[%s3882_s29 + $0xba] sm:$0x1]  ;;  %v3159_v40 = vld [vmem:[%s3882_s29 + $0xbc] sm:$0x1]  ;;  %v3160_v41 = vld [vmem:[%s3882_s29 + $0xbe] sm:$0x1] }
  0x90   : > { %v2537_v42 = vsel %vm2255_vm5, %v2536_v13, %v2535_v34  ;;  %v3409_v45 = vld [vmem:[%s3882_s29 + $0xb1] sm:$0x1]  ;;  %v3410_v46 = vld [vmem:[%s3882_s29 + $0xb3] sm:$0x1]  ;;  %v3411_v47 = vld [vmem:[%s3882_s29 + $0xb5] sm:$0x1] }
  0x91   : > { %v2539_v48 = vsel %vm2258_vm6, %v2538_v14, %v2537_v42  ;;  %v3412_v49 = vld [vmem:[%s3882_s29 + $0xb7] sm:$0x1]  ;;  %v3413_v50 = vld [vmem:[%s3882_s29 + $0xb9] sm:$0x1]  ;;  %v3414_v51 = vld [vmem:[%s3882_s29 + $0xbb] sm:$0x1]  ;;  %v1492_v52 = vmax.f32 %v3153_v26, %v3409_v45  ;;  %v1493_v53 = vmax.f32 %v3154_v27, %v3410_v46  ;;  %v1494_v54 = vmax.f32 %v3155_v31, %v3411_v47 }
  0x92   : > { %3760 = vmatprep.mubr.msk.f32.mxu1 %vm2694_vm7, %v2539_v48  ;;  %v3415_v55 = vld [vmem:[%s3882_s29 + $0xbd] sm:$0x1]  ;;  %v3416_v56 = vld [vmem:[%s3882_s29 + $0xbf] sm:$0x1]  ;;  %v1495_v57 = vmax.f32 %v3156_v32, %v3412_v49  ;;  %v1496_v58 = vmax.f32 %v3157_v33, %v3413_v50  ;;  %v1497_v59 = vmax.f32 %v3158_v39, %v3414_v51  ;;  %v4443_v7 = vld [vmem:[%s3882_s29 + $0x290] sm:$0x1] }
  0x93   : > { %v1498_v60 = vmax.f32 %v3159_v40, %v3415_v55  ;;  %v1499_v61 = vmax.f32 %v3160_v41, %v3416_v56  ;;  %v1748_v62 = vmax.f32 %v723_v29, %v1492_v52  ;;  %v1749_v63 = vmax.f32 %v724_v30, %v1493_v53  ;;  %v4446_v8 = vld [vmem:[%s3882_s29 + $0x292] sm:$0x1]  ;;  %v595_v9 = vld [vmem:[%s3882_s29 + $0x291] sm:$0x1]  ;;  %v341_v14 = vld [vmem:[%s3882_s29 + $0x294] sm:$0x1] }
  0x94   : > { %v1750_v0 = vmax.f32 %v725_v36, %v1494_v54  ;;  %v1751_v1 = vmax.f32 %v726_v37, %v1495_v57  ;;  %v1752_v2 = vmax.f32 %v727_v38, %v1496_v58  ;;  %v1753_v3 = vmax.f32 %v728_v43, %v1497_v59  ;;  %v342_v15 = vld [vmem:[%s3882_s29 + $0x296] sm:$0x1]  ;;  %v343_v16 = vld [vmem:[%s3882_s29 + $0x298] sm:$0x1]  ;;  %v596_v17 = vld [vmem:[%s3882_s29 + $0x293] sm:$0x1] }
  0x95   : > { %v1754_v4 = vmax.f32 %v729_v44, %v1498_v60  ;;  %v1755_v5 = vmax.f32 %v730_v35, %v1499_v61  ;;  %v2316_v6 = vrot.slane %v1749_v63, 7  ;;  %v344_v21 = vld [vmem:[%s3882_s29 + $0x29a] sm:$0x1]  ;;  %v345_v22 = vld [vmem:[%s3882_s29 + $0x29c] sm:$0x1]  ;;  %v851_v36 = vmax.f32 %v4443_v7, %v595_v9 }
  0x96   : > { %v2318_v10 = vrot.slane %v1750_v0, 6  ;;  %v2320_v11 = vrot.slane %v1751_v1, 5  ;;  %v2322_v12 = vrot.slane %v1752_v2, 4  ;;  %v2324_v13 = vrot.slane %v1753_v3, 3  ;;  %v346_v23 = vld [vmem:[%s3882_s29 + $0x29e] sm:$0x1] }
  0x97   : > { %v2317_v18 = vsel %vm2240_vm0, %v2316_v6, %v1748_v62  ;;  %v2326_v19 = vrot.slane %v1754_v4, 2  ;;  %v2328_v20 = vrot.slane %v1755_v5, 1  ;;  %v597_v24 = vld [vmem:[%s3882_s29 + $0x295] sm:$0x1]  ;;  %v598_v25 = vld [vmem:[%s3882_s29 + $0x297] sm:$0x1]  ;;  %v852_v37 = vmax.f32 %v4446_v8, %v596_v17 }
  0x98   : > { %v2319_v26 = vsel %vm2243_vm1, %v2318_v10, %v2317_v18  ;;  %v599_v27 = vld [vmem:[%s3882_s29 + $0x299] sm:$0x1]  ;;  %v600_v28 = vld [vmem:[%s3882_s29 + $0x29b] sm:$0x1]  ;;  %v601_v29 = vld [vmem:[%s3882_s29 + $0x29d] sm:$0x1]  ;;  %v853_v42 = vmax.f32 %v341_v14, %v597_v24  ;;  %v854_v43 = vmax.f32 %v342_v15, %v598_v25 }
  0x99   : > { %v2321_v30 = vsel %vm2246_vm2, %v2320_v11, %v2319_v26  ;;  %v602_v31 = vld [vmem:[%s3882_s29 + $0x29f] sm:$0x1]  ;;  %v3281_v32 = vld [vmem:[%s3882_s29 + $0x2b0] sm:$0x1]  ;;  %v3282_v33 = vld [vmem:[%s3882_s29 + $0x2b2] sm:$0x1]  ;;  %v855_v44 = vmax.f32 %v343_v16, %v599_v27  ;;  %v856_v48 = vmax.f32 %v344_v21, %v600_v28  ;;  %v857_v49 = vmax.f32 %v345_v22, %v601_v29 }
  0x9a   : > { %v2323_v34 = vsel %vm2249_vm3, %v2322_v12, %v2321_v30  ;;  %v3283_v38 = vld [vmem:[%s3882_s29 + $0x2b4] sm:$0x1]  ;;  %v3284_v39 = vld [vmem:[%s3882_s29 + $0x2b6] sm:$0x1]  ;;  %v3285_v40 = vld [vmem:[%s3882_s29 + $0x2b8] sm:$0x1]  ;;  %v858_v50 = vmax.f32 %v346_v23, %v602_v31 }
  0x9b   : > { %v2325_v41 = vsel %vm2252_vm4, %v2324_v13, %v2323_v34  ;;  %v3286_v35 = vld [vmem:[%s3882_s29 + $0x2ba] sm:$0x1]  ;;  %v3287_v45 = vld [vmem:[%s3882_s29 + $0x2bc] sm:$0x1]  ;;  %v3288_v46 = vld [vmem:[%s3882_s29 + $0x2be] sm:$0x1] }
  0x9c   : > { %v2327_v47 = vsel %vm2255_vm5, %v2326_v19, %v2325_v41  ;;  %v3537_v51 = vld [vmem:[%s3882_s29 + $0x2b1] sm:$0x1]  ;;  %v3538_v52 = vld [vmem:[%s3882_s29 + $0x2b3] sm:$0x1]  ;;  %v3539_v53 = vld [vmem:[%s3882_s29 + $0x2b5] sm:$0x1] }
  0x9d   : > { %v2329_v54 = vsel %vm2258_vm6, %v2328_v20, %v2327_v47  ;;  %v3540_v55 = vld [vmem:[%s3882_s29 + $0x2b7] sm:$0x1]  ;;  %v3541_v56 = vld [vmem:[%s3882_s29 + $0x2b9] sm:$0x1]  ;;  %v3542_v57 = vld [vmem:[%s3882_s29 + $0x2bb] sm:$0x1]  ;;  %v1620_v58 = vmax.f32 %v3281_v32, %v3537_v51  ;;  %v1621_v59 = vmax.f32 %v3282_v33, %v3538_v52  ;;  %v1622_v60 = vmax.f32 %v3283_v38, %v3539_v53 }
  0x9e   : > { %3737 = vmatmul.mubr.msk.f32.gmra.mrb[4].mxu0 %vm2694_vm7, %v2329_v54  ;;  %v3543_v61 = vld [vmem:[%s3882_s29 + $0x2bd] sm:$0x1]  ;;  %v3544_v62 = vld [vmem:[%s3882_s29 + $0x2bf] sm:$0x1]  ;;  %v1623_v63 = vmax.f32 %v3284_v39, %v3540_v55  ;;  %v1624_v0 = vmax.f32 %v3285_v40, %v3541_v56  ;;  %v1625_v1 = vmax.f32 %v3286_v35, %v3542_v57  ;;  %v4489_v13 = vld [vmem:[%s3882_s29 + $0xc0] sm:$0x1] }
  0x9f   : > { %v1626_v2 = vmax.f32 %v3287_v45, %v3543_v61  ;;  %v1627_v3 = vmax.f32 %v3288_v46, %v3544_v62  ;;  %v1876_v4 = vmax.f32 %v851_v36, %v1620_v58  ;;  %v1877_v5 = vmax.f32 %v852_v37, %v1621_v59  ;;  %v4492_v14 = vld [vmem:[%s3882_s29 + $0xc2] sm:$0x1]  ;;  %v475_v15 = vld [vmem:[%s3882_s29 + $0xc1] sm:$0x1]  ;;  %v221_v20 = vld [vmem:[%s3882_s29 + $0xc4] sm:$0x1] }
  0xa0   : > { %v1878_v6 = vmax.f32 %v853_v42, %v1622_v60  ;;  %v1879_v7 = vmax.f32 %v854_v43, %v1623_v63  ;;  %v1880_v8 = vmax.f32 %v855_v44, %v1624_v0  ;;  %v1881_v9 = vmax.f32 %v856_v48, %v1625_v1  ;;  %v222_v21 = vld [vmem:[%s3882_s29 + $0xc6] sm:$0x1]  ;;  %v223_v22 = vld [vmem:[%s3882_s29 + $0xc8] sm:$0x1]  ;;  %v476_v23 = vld [vmem:[%s3882_s29 + $0xc3] sm:$0x1] }
  0xa1   : > { %v1882_v10 = vmax.f32 %v857_v49, %v1626_v2  ;;  %v1883_v11 = vmax.f32 %v858_v50, %v1627_v3  ;;  %v2540_v12 = vrot.slane %v1877_v5, 7  ;;  %v224_v27 = vld [vmem:[%s3882_s29 + $0xca] sm:$0x1]  ;;  %v225_v28 = vld [vmem:[%s3882_s29 + $0xcc] sm:$0x1]  ;;  %v731_v42 = vmax.f32 %v4489_v13, %v475_v15 }
  0xa2   : > { %v2542_v16 = vrot.slane %v1878_v6, 6  ;;  %v2544_v17 = vrot.slane %v1879_v7, 5  ;;  %v2546_v18 = vrot.slane %v1880_v8, 4  ;;  %v2548_v19 = vrot.slane %v1881_v9, 3  ;;  %v226_v29 = vld [vmem:[%s3882_s29 + $0xce] sm:$0x1] }
  0xa3   : > { %v2541_v24 = vsel %vm2240_vm0, %v2540_v12, %v1876_v4  ;;  %v2550_v25 = vrot.slane %v1882_v10, 2  ;;  %v2552_v26 = vrot.slane %v1883_v11, 1  ;;  %v477_v30 = vld [vmem:[%s3882_s29 + $0xc5] sm:$0x1]  ;;  %v478_v31 = vld [vmem:[%s3882_s29 + $0xc7] sm:$0x1]  ;;  %v732_v43 = vmax.f32 %v4492_v14, %v476_v23 }
  0xa4   : > { %v2543_v32 = vsel %vm2243_vm1, %v2542_v16, %v2541_v24  ;;  %v479_v33 = vld [vmem:[%s3882_s29 + $0xc9] sm:$0x1]  ;;  %v480_v34 = vld [vmem:[%s3882_s29 + $0xcb] sm:$0x1]  ;;  %v481_v36 = vld [vmem:[%s3882_s29 + $0xcd] sm:$0x1]  ;;  %v733_v47 = vmax.f32 %v221_v20, %v477_v30  ;;  %v734_v48 = vmax.f32 %v222_v21, %v478_v31 }
  0xa5   : > { %v2545_v37 = vsel %vm2246_vm2, %v2544_v17, %v2543_v32  ;;  %v482_v38 = vld [vmem:[%s3882_s29 + $0xcf] sm:$0x1]  ;;  %v3161_v39 = vld [vmem:[%s3882_s29 + $0xe0] sm:$0x1]  ;;  %v3162_v40 = vld [vmem:[%s3882_s29 + $0xe2] sm:$0x1]  ;;  %v735_v49 = vmax.f32 %v223_v22, %v479_v33  ;;  %v736_v54 = vmax.f32 %v224_v27, %v480_v34  ;;  %v737_v55 = vmax.f32 %v225_v28, %v481_v36 }
  0xa6   : > { %v2547_v41 = vsel %vm2249_vm3, %v2546_v18, %v2545_v37  ;;  %v3163_v44 = vld [vmem:[%s3882_s29 + $0xe4] sm:$0x1]  ;;  %v3164_v35 = vld [vmem:[%s3882_s29 + $0xe6] sm:$0x1]  ;;  %v3165_v45 = vld [vmem:[%s3882_s29 + $0xe8] sm:$0x1]  ;;  %v738_v56 = vmax.f32 %v226_v29, %v482_v38 }
  0xa7   : > { %v2549_v46 = vsel %vm2252_vm4, %v2548_v19, %v2547_v41  ;;  %v3166_v50 = vld [vmem:[%s3882_s29 + $0xea] sm:$0x1]  ;;  %v3167_v51 = vld [vmem:[%s3882_s29 + $0xec] sm:$0x1]  ;;  %v3168_v52 = vld [vmem:[%s3882_s29 + $0xee] sm:$0x1] }
  0xa8   : > { %v2551_v53 = vsel %vm2255_vm5, %v2550_v25, %v2549_v46  ;;  %v3417_v57 = vld [vmem:[%s3882_s29 + $0xe1] sm:$0x1]  ;;  %v3418_v58 = vld [vmem:[%s3882_s29 + $0xe3] sm:$0x1]  ;;  %v3419_v59 = vld [vmem:[%s3882_s29 + $0xe5] sm:$0x1] }
  0xa9   : > { %v2553_v60 = vsel %vm2258_vm6, %v2552_v26, %v2551_v53  ;;  %v3420_v61 = vld [vmem:[%s3882_s29 + $0xe7] sm:$0x1]  ;;  %v3421_v62 = vld [vmem:[%s3882_s29 + $0xe9] sm:$0x1]  ;;  %v3422_v63 = vld [vmem:[%s3882_s29 + $0xeb] sm:$0x1]  ;;  %v1500_v0 = vmax.f32 %v3161_v39, %v3417_v57  ;;  %v1501_v1 = vmax.f32 %v3162_v40, %v3418_v58  ;;  %v1502_v2 = vmax.f32 %v3163_v44, %v3419_v59 }
  0xaa   : > { %3761 = vmatmul.mubr.msk.f32.gmra.mrb[4].mxu1 %vm2694_vm7, %v2553_v60  ;;  %v3423_v3 = vld [vmem:[%s3882_s29 + $0xed] sm:$0x1]  ;;  %v3424_v4 = vld [vmem:[%s3882_s29 + $0xef] sm:$0x1]  ;;  %v1503_v5 = vmax.f32 %v3164_v35, %v3420_v61  ;;  %v1504_v6 = vmax.f32 %v3165_v45, %v3421_v62  ;;  %v1505_v7 = vmax.f32 %v3166_v50, %v3422_v63  ;;  %v4535_v19 = vld [vmem:[%s3882_s29 + $0x2c0] sm:$0x1] }
  0xab   : > { %v1506_v8 = vmax.f32 %v3167_v51, %v3423_v3  ;;  %v1507_v9 = vmax.f32 %v3168_v52, %v3424_v4  ;;  %v1756_v10 = vmax.f32 %v731_v42, %v1500_v0  ;;  %v1757_v11 = vmax.f32 %v732_v43, %v1501_v1  ;;  %v4538_v20 = vld [vmem:[%s3882_s29 + $0x2c2] sm:$0x1]  ;;  %v603_v21 = vld [vmem:[%s3882_s29 + $0x2c1] sm:$0x1]  ;;  %v349_v26 = vld [vmem:[%s3882_s29 + $0x2c4] sm:$0x1] }
  0xac   : > { %v1758_v12 = vmax.f32 %v733_v47, %v1502_v2  ;;  %v1759_v13 = vmax.f32 %v734_v48, %v1503_v5  ;;  %v1760_v14 = vmax.f32 %v735_v49, %v1504_v6  ;;  %v1761_v15 = vmax.f32 %v736_v54, %v1505_v7  ;;  %v350_v27 = vld [vmem:[%s3882_s29 + $0x2c6] sm:$0x1]  ;;  %v351_v28 = vld [vmem:[%s3882_s29 + $0x2c8] sm:$0x1]  ;;  %v604_v29 = vld [vmem:[%s3882_s29 + $0x2c3] sm:$0x1] }
  0xad   : > { %v1762_v16 = vmax.f32 %v737_v55, %v1506_v8  ;;  %v1763_v17 = vmax.f32 %v738_v56, %v1507_v9  ;;  %v2330_v18 = vrot.slane %v1757_v11, 7  ;;  %v352_v33 = vld [vmem:[%s3882_s29 + $0x2ca] sm:$0x1]  ;;  %v353_v34 = vld [vmem:[%s3882_s29 + $0x2cc] sm:$0x1]  ;;  %v859_v47 = vmax.f32 %v4535_v19, %v603_v21 }
  0xae   : > { %v2332_v22 = vrot.slane %v1758_v12, 6  ;;  %v2334_v23 = vrot.slane %v1759_v13, 5  ;;  %v2336_v24 = vrot.slane %v1760_v14, 4  ;;  %v2338_v25 = vrot.slane %v1761_v15, 3  ;;  %v354_v36 = vld [vmem:[%s3882_s29 + $0x2ce] sm:$0x1] }
  0xaf   : > { %v2331_v30 = vsel %vm2240_vm0, %v2330_v18, %v1756_v10  ;;  %v2340_v31 = vrot.slane %v1762_v16, 2  ;;  %v2342_v32 = vrot.slane %v1763_v17, 1  ;;  %v605_v37 = vld [vmem:[%s3882_s29 + $0x2c5] sm:$0x1]  ;;  %v606_v38 = vld [vmem:[%s3882_s29 + $0x2c7] sm:$0x1]  ;;  %v860_v48 = vmax.f32 %v4538_v20, %v604_v29 }
  0xb0   : > { %v2333_v39 = vsel %vm2243_vm1, %v2332_v22, %v2331_v30  ;;  %v607_v40 = vld [vmem:[%s3882_s29 + $0x2c9] sm:$0x1]  ;;  %v608_v41 = vld [vmem:[%s3882_s29 + $0x2cb] sm:$0x1]  ;;  %v609_v42 = vld [vmem:[%s3882_s29 + $0x2cd] sm:$0x1]  ;;  %v861_v53 = vmax.f32 %v349_v26, %v605_v37  ;;  %v862_v54 = vmax.f32 %v350_v27, %v606_v38 }
  0xb1   : > { %v2335_v43 = vsel %vm2246_vm2, %v2334_v23, %v2333_v39  ;;  %v610_v44 = vld [vmem:[%s3882_s29 + $0x2cf] sm:$0x1]  ;;  %v3289_v35 = vld [vmem:[%s3882_s29 + $0x2e0] sm:$0x1]  ;;  %v3290_v45 = vld [vmem:[%s3882_s29 + $0x2e2] sm:$0x1]  ;;  %v863_v55 = vmax.f32 %v351_v28, %v607_v40  ;;  %v864_v60 = vmax.f32 %v352_v33, %v608_v41  ;;  %v865_v61 = vmax.f32 %v353_v34, %v609_v42 }
  0xb2   : > { %v2337_v46 = vsel %vm2249_vm3, %v2336_v24, %v2335_v43  ;;  %v3291_v49 = vld [vmem:[%s3882_s29 + $0x2e4] sm:$0x1]  ;;  %v3292_v50 = vld [vmem:[%s3882_s29 + $0x2e6] sm:$0x1]  ;;  %v3293_v51 = vld [vmem:[%s3882_s29 + $0x2e8] sm:$0x1]  ;;  %v866_v62 = vmax.f32 %v354_v36, %v610_v44 }
  0xb3   : > { %v2339_v52 = vsel %vm2252_vm4, %v2338_v25, %v2337_v46  ;;  %v3294_v56 = vld [vmem:[%s3882_s29 + $0x2ea] sm:$0x1]  ;;  %v3295_v57 = vld [vmem:[%s3882_s29 + $0x2ec] sm:$0x1]  ;;  %v3296_v58 = vld [vmem:[%s3882_s29 + $0x2ee] sm:$0x1] }
  0xb4   : > { %v2341_v59 = vsel %vm2255_vm5, %v2340_v31, %v2339_v52  ;;  %v3545_v63 = vld [vmem:[%s3882_s29 + $0x2e1] sm:$0x1]  ;;  %v3546_v0 = vld [vmem:[%s3882_s29 + $0x2e3] sm:$0x1]  ;;  %v3547_v1 = vld [vmem:[%s3882_s29 + $0x2e5] sm:$0x1] }
  0xb5   : > { %v2343_v2 = vsel %vm2258_vm6, %v2342_v32, %v2341_v59  ;;  %v3548_v3 = vld [vmem:[%s3882_s29 + $0x2e7] sm:$0x1]  ;;  %v3549_v4 = vld [vmem:[%s3882_s29 + $0x2e9] sm:$0x1]  ;;  %v3550_v5 = vld [vmem:[%s3882_s29 + $0x2eb] sm:$0x1]  ;;  %v1628_v6 = vmax.f32 %v3289_v35, %v3545_v63  ;;  %v1629_v7 = vmax.f32 %v3290_v45, %v3546_v0  ;;  %v1630_v8 = vmax.f32 %v3291_v49, %v3547_v1 }
  0xb6   : > { %3739 = vmatprep.mubr.msk.f32.mxu0 %vm2694_vm7, %v2343_v2  ;;  %v3551_v9 = vld [vmem:[%s3882_s29 + $0x2ed] sm:$0x1]  ;;  %v3552_v10 = vld [vmem:[%s3882_s29 + $0x2ef] sm:$0x1]  ;;  %v1631_v11 = vmax.f32 %v3292_v50, %v3548_v3  ;;  %v1632_v12 = vmax.f32 %v3293_v51, %v3549_v4  ;;  %v1633_v13 = vmax.f32 %v3294_v56, %v3550_v5  ;;  %v4581_v25 = vld [vmem:[%s3882_s29 + $0xd0] sm:$0x1] }
  0xb7   : > { %v1634_v14 = vmax.f32 %v3295_v57, %v3551_v9  ;;  %v1635_v15 = vmax.f32 %v3296_v58, %v3552_v10  ;;  %v1884_v16 = vmax.f32 %v859_v47, %v1628_v6  ;;  %v1885_v17 = vmax.f32 %v860_v48, %v1629_v7  ;;  %v4584_v26 = vld [vmem:[%s3882_s29 + $0xd2] sm:$0x1]  ;;  %v483_v27 = vld [vmem:[%s3882_s29 + $0xd1] sm:$0x1]  ;;  %v229_v32 = vld [vmem:[%s3882_s29 + $0xd4] sm:$0x1] }
  0xb8   : > { %v1886_v18 = vmax.f32 %v861_v53, %v1630_v8  ;;  %v1887_v19 = vmax.f32 %v862_v54, %v1631_v11  ;;  %v1888_v20 = vmax.f32 %v863_v55, %v1632_v12  ;;  %v1889_v21 = vmax.f32 %v864_v60, %v1633_v13  ;;  %v230_v33 = vld [vmem:[%s3882_s29 + $0xd6] sm:$0x1]  ;;  %v231_v34 = vld [vmem:[%s3882_s29 + $0xd8] sm:$0x1]  ;;  %v484_v36 = vld [vmem:[%s3882_s29 + $0xd3] sm:$0x1] }
  0xb9   : > { %v1890_v22 = vmax.f32 %v865_v61, %v1634_v14  ;;  %v1891_v23 = vmax.f32 %v866_v62, %v1635_v15  ;;  %v2554_v24 = vrot.slane %v1885_v17, 7  ;;  %v232_v40 = vld [vmem:[%s3882_s29 + $0xda] sm:$0x1]  ;;  %v233_v41 = vld [vmem:[%s3882_s29 + $0xdc] sm:$0x1]  ;;  %v739_v53 = vmax.f32 %v4581_v25, %v483_v27 }
  0xba   : > { %v2556_v28 = vrot.slane %v1886_v18, 6  ;;  %v2558_v29 = vrot.slane %v1887_v19, 5  ;;  %v2560_v30 = vrot.slane %v1888_v20, 4  ;;  %v2562_v31 = vrot.slane %v1889_v21, 3  ;;  %v234_v42 = vld [vmem:[%s3882_s29 + $0xde] sm:$0x1] }
  0xbb   : > { %v2555_v37 = vsel %vm2240_vm0, %v2554_v24, %v1884_v16  ;;  %v2564_v38 = vrot.slane %v1890_v22, 2  ;;  %v2566_v39 = vrot.slane %v1891_v23, 1  ;;  %v485_v43 = vld [vmem:[%s3882_s29 + $0xd5] sm:$0x1]  ;;  %v486_v44 = vld [vmem:[%s3882_s29 + $0xd7] sm:$0x1]  ;;  %v740_v54 = vmax.f32 %v4584_v26, %v484_v36 }
  0xbc   : > { %v2557_v35 = vsel %vm2243_vm1, %v2556_v28, %v2555_v37  ;;  %v487_v45 = vld [vmem:[%s3882_s29 + $0xd9] sm:$0x1]  ;;  %v488_v46 = vld [vmem:[%s3882_s29 + $0xdb] sm:$0x1]  ;;  %v489_v47 = vld [vmem:[%s3882_s29 + $0xdd] sm:$0x1]  ;;  %v741_v59 = vmax.f32 %v229_v32, %v485_v43  ;;  %v742_v60 = vmax.f32 %v230_v33, %v486_v44 }
  0xbd   : > { %v2559_v48 = vsel %vm2246_vm2, %v2558_v29, %v2557_v35  ;;  %v490_v49 = vld [vmem:[%s3882_s29 + $0xdf] sm:$0x1]  ;;  %v3169_v50 = vld [vmem:[%s3882_s29 + $0xf0] sm:$0x1]  ;;  %v3170_v51 = vld [vmem:[%s3882_s29 + $0xf2] sm:$0x1]  ;;  %v743_v61 = vmax.f32 %v231_v34, %v487_v45  ;;  %v744_v2 = vmax.f32 %v232_v40, %v488_v46  ;;  %v745_v3 = vmax.f32 %v233_v41, %v489_v47 }
  0xbe   : > { %v2561_v52 = vsel %vm2249_vm3, %v2560_v30, %v2559_v48  ;;  %v3171_v55 = vld [vmem:[%s3882_s29 + $0xf4] sm:$0x1]  ;;  %v3172_v56 = vld [vmem:[%s3882_s29 + $0xf6] sm:$0x1]  ;;  %v3173_v57 = vld [vmem:[%s3882_s29 + $0xf8] sm:$0x1]  ;;  %v746_v4 = vmax.f32 %v234_v42, %v490_v49 }
  0xbf   : > { %v2563_v58 = vsel %vm2252_vm4, %v2562_v31, %v2561_v52  ;;  %v3174_v62 = vld [vmem:[%s3882_s29 + $0xfa] sm:$0x1]  ;;  %v3175_v63 = vld [vmem:[%s3882_s29 + $0xfc] sm:$0x1]  ;;  %v3176_v0 = vld [vmem:[%s3882_s29 + $0xfe] sm:$0x1] }
  0xc0   : > { %v2565_v1 = vsel %vm2255_vm5, %v2564_v38, %v2563_v58  ;;  %v3425_v5 = vld [vmem:[%s3882_s29 + $0xf1] sm:$0x1]  ;;  %v3426_v6 = vld [vmem:[%s3882_s29 + $0xf3] sm:$0x1]  ;;  %v3427_v7 = vld [vmem:[%s3882_s29 + $0xf5] sm:$0x1] }
  0xc1   : > { %v2567_v8 = vsel %vm2258_vm6, %v2566_v39, %v2565_v1  ;;  %v3428_v9 = vld [vmem:[%s3882_s29 + $0xf7] sm:$0x1]  ;;  %v3429_v10 = vld [vmem:[%s3882_s29 + $0xf9] sm:$0x1]  ;;  %v3430_v11 = vld [vmem:[%s3882_s29 + $0xfb] sm:$0x1]  ;;  %v1508_v12 = vmax.f32 %v3169_v50, %v3425_v5  ;;  %v1509_v13 = vmax.f32 %v3170_v51, %v3426_v6  ;;  %v1510_v14 = vmax.f32 %v3171_v55, %v3427_v7 }
  0xc2   : > { %3763 = vmatprep.mubr.msk.f32.mxu1 %vm2694_vm7, %v2567_v8  ;;  %v3431_v15 = vld [vmem:[%s3882_s29 + $0xfd] sm:$0x1]  ;;  %v3432_v16 = vld [vmem:[%s3882_s29 + $0xff] sm:$0x1]  ;;  %v1511_v17 = vmax.f32 %v3172_v56, %v3428_v9  ;;  %v1512_v18 = vmax.f32 %v3173_v57, %v3429_v10  ;;  %v1513_v19 = vmax.f32 %v3174_v62, %v3430_v11  ;;  %v4627_v31 = vld [vmem:[%s3882_s29 + $0x2d0] sm:$0x1] }
  0xc3   : > { %v1514_v20 = vmax.f32 %v3175_v63, %v3431_v15  ;;  %v1515_v21 = vmax.f32 %v3176_v0, %v3432_v16  ;;  %v1764_v22 = vmax.f32 %v739_v53, %v1508_v12  ;;  %v1765_v23 = vmax.f32 %v740_v54, %v1509_v13  ;;  %v4630_v32 = vld [vmem:[%s3882_s29 + $0x2d2] sm:$0x1]  ;;  %v611_v33 = vld [vmem:[%s3882_s29 + $0x2d1] sm:$0x1]  ;;  %v357_v39 = vld [vmem:[%s3882_s29 + $0x2d4] sm:$0x1] }
  0xc4   : > { %v1766_v24 = vmax.f32 %v741_v59, %v1510_v14  ;;  %v1767_v25 = vmax.f32 %v742_v60, %v1511_v17  ;;  %v1768_v26 = vmax.f32 %v743_v61, %v1512_v18  ;;  %v1769_v27 = vmax.f32 %v744_v2, %v1513_v19  ;;  %v358_v40 = vld [vmem:[%s3882_s29 + $0x2d6] sm:$0x1]  ;;  %v359_v41 = vld [vmem:[%s3882_s29 + $0x2d8] sm:$0x1]  ;;  %v612_v42 = vld [vmem:[%s3882_s29 + $0x2d3] sm:$0x1] }
  0xc5   : > { %v1770_v28 = vmax.f32 %v745_v3, %v1514_v20  ;;  %v1771_v29 = vmax.f32 %v746_v4, %v1515_v21  ;;  %v2344_v30 = vrot.slane %v1765_v23, 7  ;;  %v360_v45 = vld [vmem:[%s3882_s29 + $0x2da] sm:$0x1]  ;;  %v361_v46 = vld [vmem:[%s3882_s29 + $0x2dc] sm:$0x1]  ;;  %v867_v59 = vmax.f32 %v4627_v31, %v611_v33 }
  0xc6   : > { %v2346_v34 = vrot.slane %v1766_v24, 6  ;;  %v2348_v36 = vrot.slane %v1767_v25, 5  ;;  %v2350_v37 = vrot.slane %v1768_v26, 4  ;;  %v2352_v38 = vrot.slane %v1769_v27, 3  ;;  %v362_v47 = vld [vmem:[%s3882_s29 + $0x2de] sm:$0x1] }
  0xc7   : > { %v2345_v43 = vsel %vm2240_vm0, %v2344_v30, %v1764_v22  ;;  %v2354_v44 = vrot.slane %v1770_v28, 2  ;;  %v2356_v35 = vrot.slane %v1771_v29, 1  ;;  %v613_v48 = vld [vmem:[%s3882_s29 + $0x2d5] sm:$0x1]  ;;  %v614_v49 = vld [vmem:[%s3882_s29 + $0x2d7] sm:$0x1]  ;;  %v868_v60 = vmax.f32 %v4630_v32, %v612_v42 }
  0xc8   : > { %v2347_v50 = vsel %vm2243_vm1, %v2346_v34, %v2345_v43  ;;  %v615_v51 = vld [vmem:[%s3882_s29 + $0x2d9] sm:$0x1]  ;;  %v616_v52 = vld [vmem:[%s3882_s29 + $0x2db] sm:$0x1]  ;;  %v617_v53 = vld [vmem:[%s3882_s29 + $0x2dd] sm:$0x1]  ;;  %v869_v1 = vmax.f32 %v357_v39, %v613_v48  ;;  %v870_v2 = vmax.f32 %v358_v40, %v614_v49 }
  0xc9   : > { %v2349_v54 = vsel %vm2246_vm2, %v2348_v36, %v2347_v50  ;;  %v618_v55 = vld [vmem:[%s3882_s29 + $0x2df] sm:$0x1]  ;;  %v3297_v56 = vld [vmem:[%s3882_s29 + $0x2f0] sm:$0x1]  ;;  %v3298_v57 = vld [vmem:[%s3882_s29 + $0x2f2] sm:$0x1]  ;;  %v871_v3 = vmax.f32 %v359_v41, %v615_v51  ;;  %v872_v8 = vmax.f32 %v360_v45, %v616_v52  ;;  %v873_v9 = vmax.f32 %v361_v46, %v617_v53 }
  0xca   : > { %v2351_v58 = vsel %vm2249_vm3, %v2350_v37, %v2349_v54  ;;  %v3299_v61 = vld [vmem:[%s3882_s29 + $0x2f4] sm:$0x1]  ;;  %v3300_v62 = vld [vmem:[%s3882_s29 + $0x2f6] sm:$0x1]  ;;  %v3301_v63 = vld [vmem:[%s3882_s29 + $0x2f8] sm:$0x1]  ;;  %v874_v10 = vmax.f32 %v362_v47, %v618_v55 }
  0xcb   : > { %v2353_v0 = vsel %vm2252_vm4, %v2352_v38, %v2351_v58  ;;  %v3302_v4 = vld [vmem:[%s3882_s29 + $0x2fa] sm:$0x1]  ;;  %v3303_v5 = vld [vmem:[%s3882_s29 + $0x2fc] sm:$0x1]  ;;  %v3304_v6 = vld [vmem:[%s3882_s29 + $0x2fe] sm:$0x1] }
  0xcc   : > { %v2355_v7 = vsel %vm2255_vm5, %v2354_v44, %v2353_v0  ;;  %v3553_v11 = vld [vmem:[%s3882_s29 + $0x2f1] sm:$0x1]  ;;  %v3554_v12 = vld [vmem:[%s3882_s29 + $0x2f3] sm:$0x1]  ;;  %v3555_v13 = vld [vmem:[%s3882_s29 + $0x2f5] sm:$0x1] }
  0xcd   : > { %v2357_v14 = vsel %vm2258_vm6, %v2356_v35, %v2355_v7  ;;  %v3556_v15 = vld [vmem:[%s3882_s29 + $0x2f7] sm:$0x1]  ;;  %v3557_v16 = vld [vmem:[%s3882_s29 + $0x2f9] sm:$0x1]  ;;  %v3558_v17 = vld [vmem:[%s3882_s29 + $0x2fb] sm:$0x1]  ;;  %v1636_v18 = vmax.f32 %v3297_v56, %v3553_v11  ;;  %v1637_v19 = vmax.f32 %v3298_v57, %v3554_v12  ;;  %v1638_v20 = vmax.f32 %v3299_v61, %v3555_v13 }
  0xce   : > { %3740 = vmatmul.mubr.msk.f32.gmra.mrb[6].mxu0 %vm2694_vm7, %v2357_v14  ;;  %v3559_v21 = vld [vmem:[%s3882_s29 + $0x2fd] sm:$0x1]  ;;  %v3560_v22 = vld [vmem:[%s3882_s29 + $0x2ff] sm:$0x1]  ;;  %v1639_v23 = vmax.f32 %v3300_v62, %v3556_v15  ;;  %v1640_v24 = vmax.f32 %v3301_v63, %v3557_v16  ;;  %v1641_v25 = vmax.f32 %v3302_v4, %v3558_v17  ;;  %v4673_v38 = vld [vmem:[%s3882_s29 + $0x100] sm:$0x1] }
  0xcf   : > { %v1642_v26 = vmax.f32 %v3303_v5, %v3559_v21  ;;  %v1643_v27 = vmax.f32 %v3304_v6, %v3560_v22  ;;  %v1892_v28 = vmax.f32 %v867_v59, %v1636_v18  ;;  %v1893_v29 = vmax.f32 %v868_v60, %v1637_v19  ;;  %v4676_v39 = vld [vmem:[%s3882_s29 + $0x102] sm:$0x1]  ;;  %v491_v40 = vld [vmem:[%s3882_s29 + $0x101] sm:$0x1]  ;;  %v237_v35 = vld [vmem:[%s3882_s29 + $0x104] sm:$0x1] }
  0xd0   : > { %v1894_v30 = vmax.f32 %v869_v1, %v1638_v20  ;;  %v1895_v31 = vmax.f32 %v870_v2, %v1639_v23  ;;  %v1896_v32 = vmax.f32 %v871_v3, %v1640_v24  ;;  %v1897_v33 = vmax.f32 %v872_v8, %v1641_v25  ;;  %v238_v45 = vld [vmem:[%s3882_s29 + $0x106] sm:$0x1]  ;;  %v239_v46 = vld [vmem:[%s3882_s29 + $0x108] sm:$0x1]  ;;  %v492_v47 = vld [vmem:[%s3882_s29 + $0x103] sm:$0x1] }
  0xd1   : > { %v1898_v34 = vmax.f32 %v873_v9, %v1642_v26  ;;  %v1899_v36 = vmax.f32 %v874_v10, %v1643_v27  ;;  %v2568_v37 = vrot.slane %v1893_v29, 7  ;;  %v240_v51 = vld [vmem:[%s3882_s29 + $0x10a] sm:$0x1]  ;;  %v241_v52 = vld [vmem:[%s3882_s29 + $0x10c] sm:$0x1]  ;;  %v747_v1 = vmax.f32 %v4673_v38, %v491_v40 }
  0xd2   : > { %v2570_v41 = vrot.slane %v1894_v30, 6  ;;  %v2572_v42 = vrot.slane %v1895_v31, 5  ;;  %v2574_v43 = vrot.slane %v1896_v32, 4  ;;  %v2576_v44 = vrot.slane %v1897_v33, 3  ;;  %v242_v53 = vld [vmem:[%s3882_s29 + $0x10e] sm:$0x1] }
  0xd3   : > { %v2569_v48 = vsel %vm2240_vm0, %v2568_v37, %v1892_v28  ;;  %v2578_v49 = vrot.slane %v1898_v34, 2  ;;  %v2580_v50 = vrot.slane %v1899_v36, 1  ;;  %v493_v54 = vld [vmem:[%s3882_s29 + $0x105] sm:$0x1]  ;;  %v494_v55 = vld [vmem:[%s3882_s29 + $0x107] sm:$0x1]  ;;  %v748_v2 = vmax.f32 %v4676_v39, %v492_v47 }
  0xd4   : > { %v2571_v56 = vsel %vm2243_vm1, %v2570_v41, %v2569_v48  ;;  %v495_v57 = vld [vmem:[%s3882_s29 + $0x109] sm:$0x1]  ;;  %v496_v58 = vld [vmem:[%s3882_s29 + $0x10b] sm:$0x1]  ;;  %v497_v59 = vld [vmem:[%s3882_s29 + $0x10d] sm:$0x1]  ;;  %v749_v7 = vmax.f32 %v237_v35, %v493_v54  ;;  %v750_v8 = vmax.f32 %v238_v45, %v494_v55 }
  0xd5   : > { %v2573_v60 = vsel %vm2246_vm2, %v2572_v42, %v2571_v56  ;;  %v498_v61 = vld [vmem:[%s3882_s29 + $0x10f] sm:$0x1]  ;;  %v3177_v62 = vld [vmem:[%s3882_s29 + $0x120] sm:$0x1]  ;;  %v3178_v63 = vld [vmem:[%s3882_s29 + $0x122] sm:$0x1]  ;;  %v751_v9 = vmax.f32 %v239_v46, %v495_v57  ;;  %v752_v14 = vmax.f32 %v240_v51, %v496_v58  ;;  %v753_v15 = vmax.f32 %v241_v52, %v497_v59 }
  0xd6   : > { %v2575_v0 = vsel %vm2249_vm3, %v2574_v43, %v2573_v60  ;;  %v3179_v3 = vld [vmem:[%s3882_s29 + $0x124] sm:$0x1]  ;;  %v3180_v4 = vld [vmem:[%s3882_s29 + $0x126] sm:$0x1]  ;;  %v3181_v5 = vld [vmem:[%s3882_s29 + $0x128] sm:$0x1]  ;;  %v754_v16 = vmax.f32 %v242_v53, %v498_v61 }
  0xd7   : > { %v2577_v6 = vsel %vm2252_vm4, %v2576_v44, %v2575_v0  ;;  %v3182_v10 = vld [vmem:[%s3882_s29 + $0x12a] sm:$0x1]  ;;  %v3183_v11 = vld [vmem:[%s3882_s29 + $0x12c] sm:$0x1]  ;;  %v3184_v12 = vld [vmem:[%s3882_s29 + $0x12e] sm:$0x1] }
  0xd8   : > { %v2579_v13 = vsel %vm2255_vm5, %v2578_v49, %v2577_v6  ;;  %v3433_v17 = vld [vmem:[%s3882_s29 + $0x121] sm:$0x1]  ;;  %v3434_v18 = vld [vmem:[%s3882_s29 + $0x123] sm:$0x1]  ;;  %v3435_v19 = vld [vmem:[%s3882_s29 + $0x125] sm:$0x1] }
  0xd9   : > { %v2581_v20 = vsel %vm2258_vm6, %v2580_v50, %v2579_v13  ;;  %v3436_v21 = vld [vmem:[%s3882_s29 + $0x127] sm:$0x1]  ;;  %v3437_v22 = vld [vmem:[%s3882_s29 + $0x129] sm:$0x1]  ;;  %v3438_v23 = vld [vmem:[%s3882_s29 + $0x12b] sm:$0x1]  ;;  %v1516_v24 = vmax.f32 %v3177_v62, %v3433_v17  ;;  %v1517_v25 = vmax.f32 %v3178_v63, %v3434_v18  ;;  %v1518_v26 = vmax.f32 %v3179_v3, %v3435_v19 }
  0xda   : > { %3764 = vmatmul.mubr.msk.f32.gmra.mrb[6].mxu1 %vm2694_vm7, %v2581_v20  ;;  %v3439_v27 = vld [vmem:[%s3882_s29 + $0x12d] sm:$0x1]  ;;  %v3440_v28 = vld [vmem:[%s3882_s29 + $0x12f] sm:$0x1]  ;;  %v1519_v29 = vmax.f32 %v3180_v4, %v3436_v21  ;;  %v1520_v30 = vmax.f32 %v3181_v5, %v3437_v22  ;;  %v1521_v31 = vmax.f32 %v3182_v10, %v3438_v23  ;;  %v4719_v44 = vld [vmem:[%s3882_s29 + $0x300] sm:$0x1] }
  0xdb   : > { %v1522_v32 = vmax.f32 %v3183_v11, %v3439_v27  ;;  %v1523_v33 = vmax.f32 %v3184_v12, %v3440_v28  ;;  %v1772_v34 = vmax.f32 %v747_v1, %v1516_v24  ;;  %v1773_v36 = vmax.f32 %v748_v2, %v1517_v25  ;;  %v4722_v35 = vld [vmem:[%s3882_s29 + $0x302] sm:$0x1]  ;;  %v619_v45 = vld [vmem:[%s3882_s29 + $0x301] sm:$0x1]  ;;  %v365_v50 = vld [vmem:[%s3882_s29 + $0x304] sm:$0x1] }
  0xdc   : > { %v1774_v37 = vmax.f32 %v749_v7, %v1518_v26  ;;  %v1775_v38 = vmax.f32 %v750_v8, %v1519_v29  ;;  %v1776_v39 = vmax.f32 %v751_v9, %v1520_v30  ;;  %v1777_v40 = vmax.f32 %v752_v14, %v1521_v31  ;;  %v366_v51 = vld [vmem:[%s3882_s29 + $0x306] sm:$0x1]  ;;  %v367_v52 = vld [vmem:[%s3882_s29 + $0x308] sm:$0x1]  ;;  %v620_v53 = vld [vmem:[%s3882_s29 + $0x303] sm:$0x1] }
  0xdd   : > { %v1778_v41 = vmax.f32 %v753_v15, %v1522_v32  ;;  %v1779_v42 = vmax.f32 %v754_v16, %v1523_v33  ;;  %v2358_v43 = vrot.slane %v1773_v36, 7  ;;  %v368_v57 = vld [vmem:[%s3882_s29 + $0x30a] sm:$0x1]  ;;  %v369_v58 = vld [vmem:[%s3882_s29 + $0x30c] sm:$0x1]  ;;  %v875_v7 = vmax.f32 %v4719_v44, %v619_v45 }
  0xde   : > { %v2360_v46 = vrot.slane %v1774_v37, 6  ;;  %v2362_v47 = vrot.slane %v1775_v38, 5  ;;  %v2364_v48 = vrot.slane %v1776_v39, 4  ;;  %v2366_v49 = vrot.slane %v1777_v40, 3  ;;  %v370_v59 = vld [vmem:[%s3882_s29 + $0x30e] sm:$0x1] }
  0xdf   : > { %v2359_v54 = vsel %vm2240_vm0, %v2358_v43, %v1772_v34  ;;  %v2368_v55 = vrot.slane %v1778_v41, 2  ;;  %v2370_v56 = vrot.slane %v1779_v42, 1  ;;  %v621_v60 = vld [vmem:[%s3882_s29 + $0x305] sm:$0x1]  ;;  %v622_v61 = vld [vmem:[%s3882_s29 + $0x307] sm:$0x1]  ;;  %v876_v8 = vmax.f32 %v4722_v35, %v620_v53 }
  0xe0   : > { %v2361_v62 = vsel %vm2243_vm1, %v2360_v46, %v2359_v54  ;;  %v623_v63 = vld [vmem:[%s3882_s29 + $0x309] sm:$0x1]  ;;  %v624_v0 = vld [vmem:[%s3882_s29 + $0x30b] sm:$0x1]  ;;  %v625_v1 = vld [vmem:[%s3882_s29 + $0x30d] sm:$0x1]  ;;  %v877_v13 = vmax.f32 %v365_v50, %v621_v60  ;;  %v878_v14 = vmax.f32 %v366_v51, %v622_v61 }
  0xe1   : > { %v2363_v2 = vsel %vm2246_vm2, %v2362_v47, %v2361_v62  ;;  %v626_v3 = vld [vmem:[%s3882_s29 + $0x30f] sm:$0x1]  ;;  %v3305_v4 = vld [vmem:[%s3882_s29 + $0x320] sm:$0x1]  ;;  %v3306_v5 = vld [vmem:[%s3882_s29 + $0x322] sm:$0x1]  ;;  %v879_v15 = vmax.f32 %v367_v52, %v623_v63  ;;  %v880_v20 = vmax.f32 %v368_v57, %v624_v0  ;;  %v881_v21 = vmax.f32 %v369_v58, %v625_v1 }
  0xe2   : > { %v2365_v6 = vsel %vm2249_vm3, %v2364_v48, %v2363_v2  ;;  %v3307_v9 = vld [vmem:[%s3882_s29 + $0x324] sm:$0x1]  ;;  %v3308_v10 = vld [vmem:[%s3882_s29 + $0x326] sm:$0x1]  ;;  %v3309_v11 = vld [vmem:[%s3882_s29 + $0x328] sm:$0x1]  ;;  %v882_v22 = vmax.f32 %v370_v59, %v626_v3 }
  0xe3   : > { %v2367_v12 = vsel %vm2252_vm4, %v2366_v49, %v2365_v6  ;;  %v3310_v16 = vld [vmem:[%s3882_s29 + $0x32a] sm:$0x1]  ;;  %v3311_v17 = vld [vmem:[%s3882_s29 + $0x32c] sm:$0x1]  ;;  %v3312_v18 = vld [vmem:[%s3882_s29 + $0x32e] sm:$0x1] }
  0xe4   : > { %v2369_v19 = vsel %vm2255_vm5, %v2368_v55, %v2367_v12  ;;  %v3561_v23 = vld [vmem:[%s3882_s29 + $0x321] sm:$0x1]  ;;  %v3562_v24 = vld [vmem:[%s3882_s29 + $0x323] sm:$0x1]  ;;  %v3563_v25 = vld [vmem:[%s3882_s29 + $0x325] sm:$0x1] }
  0xe5   : > { %v2371_v26 = vsel %vm2258_vm6, %v2370_v56, %v2369_v19  ;;  %v3564_v27 = vld [vmem:[%s3882_s29 + $0x327] sm:$0x1]  ;;  %v3565_v28 = vld [vmem:[%s3882_s29 + $0x329] sm:$0x1]  ;;  %v3566_v29 = vld [vmem:[%s3882_s29 + $0x32b] sm:$0x1]  ;;  %v1644_v30 = vmax.f32 %v3305_v4, %v3561_v23  ;;  %v1645_v31 = vmax.f32 %v3306_v5, %v3562_v24  ;;  %v1646_v32 = vmax.f32 %v3307_v9, %v3563_v25 }
  0xe6   : > { %3742 = vmatprep.mubr.msk.f32.mxu0 %vm2694_vm7, %v2371_v26  ;;  %v3567_v33 = vld [vmem:[%s3882_s29 + $0x32d] sm:$0x1]  ;;  %v3568_v34 = vld [vmem:[%s3882_s29 + $0x32f] sm:$0x1]  ;;  %v1647_v36 = vmax.f32 %v3308_v10, %v3564_v27  ;;  %v1648_v37 = vmax.f32 %v3309_v11, %v3565_v28  ;;  %v1649_v38 = vmax.f32 %v3310_v16, %v3566_v29  ;;  %v4765_v49 = vld [vmem:[%s3882_s29 + $0x110] sm:$0x1] }
  0xe7   : > { %v1650_v39 = vmax.f32 %v3311_v17, %v3567_v33  ;;  %v1651_v40 = vmax.f32 %v3312_v18, %v3568_v34  ;;  %v1900_v41 = vmax.f32 %v875_v7, %v1644_v30  ;;  %v1901_v42 = vmax.f32 %v876_v8, %v1645_v31  ;;  %v4768_v50 = vld [vmem:[%s3882_s29 + $0x112] sm:$0x1]  ;;  %v499_v51 = vld [vmem:[%s3882_s29 + $0x111] sm:$0x1]  ;;  %v245_v56 = vld [vmem:[%s3882_s29 + $0x114] sm:$0x1] }
  0xe8   : > { %v1902_v43 = vmax.f32 %v877_v13, %v1646_v32  ;;  %v1903_v44 = vmax.f32 %v878_v14, %v1647_v36  ;;  %v1904_v35 = vmax.f32 %v879_v15, %v1648_v37  ;;  %v1905_v45 = vmax.f32 %v880_v20, %v1649_v38  ;;  %v246_v57 = vld [vmem:[%s3882_s29 + $0x116] sm:$0x1]  ;;  %v247_v58 = vld [vmem:[%s3882_s29 + $0x118] sm:$0x1]  ;;  %v500_v59 = vld [vmem:[%s3882_s29 + $0x113] sm:$0x1] }
  0xe9   : > { %v1906_v46 = vmax.f32 %v881_v21, %v1650_v39  ;;  %v1907_v47 = vmax.f32 %v882_v22, %v1651_v40  ;;  %v2582_v48 = vrot.slane %v1901_v42, 7  ;;  %v248_v63 = vld [vmem:[%s3882_s29 + $0x11a] sm:$0x1]  ;;  %v249_v0 = vld [vmem:[%s3882_s29 + $0x11c] sm:$0x1]  ;;  %v755_v13 = vmax.f32 %v4765_v49, %v499_v51 }
  0xea   : > { %v2584_v52 = vrot.slane %v1902_v43, 6  ;;  %v2586_v53 = vrot.slane %v1903_v44, 5  ;;  %v2588_v54 = vrot.slane %v1904_v35, 4  ;;  %v2590_v55 = vrot.slane %v1905_v45, 3  ;;  %v250_v1 = vld [vmem:[%s3882_s29 + $0x11e] sm:$0x1] }
  0xeb   : > { %v2583_v60 = vsel %vm2240_vm0, %v2582_v48, %v1900_v41  ;;  %v2592_v61 = vrot.slane %v1906_v46, 2  ;;  %v2594_v62 = vrot.slane %v1907_v47, 1  ;;  %v501_v2 = vld [vmem:[%s3882_s29 + $0x115] sm:$0x1]  ;;  %v502_v3 = vld [vmem:[%s3882_s29 + $0x117] sm:$0x1]  ;;  %v756_v14 = vmax.f32 %v4768_v50, %v500_v59 }
  0xec   : > { %v2585_v4 = vsel %vm2243_vm1, %v2584_v52, %v2583_v60  ;;  %v503_v5 = vld [vmem:[%s3882_s29 + $0x119] sm:$0x1]  ;;  %v504_v6 = vld [vmem:[%s3882_s29 + $0x11b] sm:$0x1]  ;;  %v505_v7 = vld [vmem:[%s3882_s29 + $0x11d] sm:$0x1]  ;;  %v757_v19 = vmax.f32 %v245_v56, %v501_v2  ;;  %v758_v20 = vmax.f32 %v246_v57, %v502_v3 }
  0xed   : > { %v2587_v8 = vsel %vm2246_vm2, %v2586_v53, %v2585_v4  ;;  %v506_v9 = vld [vmem:[%s3882_s29 + $0x11f] sm:$0x1]  ;;  %v3185_v10 = vld [vmem:[%s3882_s29 + $0x130] sm:$0x1]  ;;  %v3186_v11 = vld [vmem:[%s3882_s29 + $0x132] sm:$0x1]  ;;  %v759_v21 = vmax.f32 %v247_v58, %v503_v5  ;;  %v760_v26 = vmax.f32 %v248_v63, %v504_v6  ;;  %v761_v27 = vmax.f32 %v249_v0, %v505_v7 }
  0xee   : > { %v2589_v12 = vsel %vm2249_vm3, %v2588_v54, %v2587_v8  ;;  %v3187_v15 = vld [vmem:[%s3882_s29 + $0x134] sm:$0x1]  ;;  %v3188_v16 = vld [vmem:[%s3882_s29 + $0x136] sm:$0x1]  ;;  %v3189_v17 = vld [vmem:[%s3882_s29 + $0x138] sm:$0x1]  ;;  %v762_v28 = vmax.f32 %v250_v1, %v506_v9 }
  0xef   : > { %v2591_v18 = vsel %vm2252_vm4, %v2590_v55, %v2589_v12  ;;  %v3190_v22 = vld [vmem:[%s3882_s29 + $0x13a] sm:$0x1]  ;;  %v3191_v23 = vld [vmem:[%s3882_s29 + $0x13c] sm:$0x1]  ;;  %v3192_v24 = vld [vmem:[%s3882_s29 + $0x13e] sm:$0x1] }
  0xf0   : > { %v2593_v25 = vsel %vm2255_vm5, %v2592_v61, %v2591_v18  ;;  %v3441_v29 = vld [vmem:[%s3882_s29 + $0x131] sm:$0x1]  ;;  %v3442_v30 = vld [vmem:[%s3882_s29 + $0x133] sm:$0x1]  ;;  %v3443_v31 = vld [vmem:[%s3882_s29 + $0x135] sm:$0x1] }
  0xf1   : > { %v2595_v32 = vsel %vm2258_vm6, %v2594_v62, %v2593_v25  ;;  %v3444_v33 = vld [vmem:[%s3882_s29 + $0x137] sm:$0x1]  ;;  %v3445_v34 = vld [vmem:[%s3882_s29 + $0x139] sm:$0x1]  ;;  %v3446_v36 = vld [vmem:[%s3882_s29 + $0x13b] sm:$0x1]  ;;  %v1524_v37 = vmax.f32 %v3185_v10, %v3441_v29  ;;  %v1525_v38 = vmax.f32 %v3186_v11, %v3442_v30  ;;  %v1526_v39 = vmax.f32 %v3187_v15, %v3443_v31 }
  0xf2   : > { %3766 = vmatprep.mubr.msk.f32.mxu1 %vm2694_vm7, %v2595_v32  ;;  %v3447_v40 = vld [vmem:[%s3882_s29 + $0x13d] sm:$0x1]  ;;  %v3448_v41 = vld [vmem:[%s3882_s29 + $0x13f] sm:$0x1]  ;;  %v1527_v42 = vmax.f32 %v3188_v16, %v3444_v33  ;;  %v1528_v43 = vmax.f32 %v3189_v17, %v3445_v34  ;;  %v1529_v44 = vmax.f32 %v3190_v22, %v3446_v36  ;;  %v4811_v55 = vld [vmem:[%s3882_s29 + $0x310] sm:$0x1] }
  0xf3   : > { %v1530_v35 = vmax.f32 %v3191_v23, %v3447_v40  ;;  %v1531_v45 = vmax.f32 %v3192_v24, %v3448_v41  ;;  %v1780_v46 = vmax.f32 %v755_v13, %v1524_v37  ;;  %v1781_v47 = vmax.f32 %v756_v14, %v1525_v38  ;;  %v4814_v56 = vld [vmem:[%s3882_s29 + $0x312] sm:$0x1]  ;;  %v627_v57 = vld [vmem:[%s3882_s29 + $0x311] sm:$0x1]  ;;  %v373_v62 = vld [vmem:[%s3882_s29 + $0x314] sm:$0x1] }
  0xf4   : > { %v1782_v48 = vmax.f32 %v757_v19, %v1526_v39  ;;  %v1783_v49 = vmax.f32 %v758_v20, %v1527_v42  ;;  %v1784_v50 = vmax.f32 %v759_v21, %v1528_v43  ;;  %v1785_v51 = vmax.f32 %v760_v26, %v1529_v44  ;;  %v374_v63 = vld [vmem:[%s3882_s29 + $0x316] sm:$0x1]  ;;  %v375_v0 = vld [vmem:[%s3882_s29 + $0x318] sm:$0x1]  ;;  %v628_v1 = vld [vmem:[%s3882_s29 + $0x313] sm:$0x1] }
  0xf5   : > { %v1786_v52 = vmax.f32 %v761_v27, %v1530_v35  ;;  %v1787_v53 = vmax.f32 %v762_v28, %v1531_v45  ;;  %v2372_v54 = vrot.slane %v1781_v47, 7  ;;  %v376_v5 = vld [vmem:[%s3882_s29 + $0x31a] sm:$0x1]  ;;  %v377_v6 = vld [vmem:[%s3882_s29 + $0x31c] sm:$0x1]  ;;  %v883_v19 = vmax.f32 %v4811_v55, %v627_v57 }
  0xf6   : > { %v2374_v58 = vrot.slane %v1782_v48, 6  ;;  %v2376_v59 = vrot.slane %v1783_v49, 5  ;;  %v2378_v60 = vrot.slane %v1784_v50, 4  ;;  %v2380_v61 = vrot.slane %v1785_v51, 3  ;;  %v378_v7 = vld [vmem:[%s3882_s29 + $0x31e] sm:$0x1] }
  0xf7   : > { %v2373_v2 = vsel %vm2240_vm0, %v2372_v54, %v1780_v46  ;;  %v2382_v3 = vrot.slane %v1786_v52, 2  ;;  %v2384_v4 = vrot.slane %v1787_v53, 1  ;;  %v629_v8 = vld [vmem:[%s3882_s29 + $0x315] sm:$0x1]  ;;  %v630_v9 = vld [vmem:[%s3882_s29 + $0x317] sm:$0x1]  ;;  %v884_v20 = vmax.f32 %v4814_v56, %v628_v1 }
  0xf8   : > { %v2375_v10 = vsel %vm2243_vm1, %v2374_v58, %v2373_v2  ;;  %v631_v11 = vld [vmem:[%s3882_s29 + $0x319] sm:$0x1]  ;;  %v632_v12 = vld [vmem:[%s3882_s29 + $0x31b] sm:$0x1]  ;;  %v633_v13 = vld [vmem:[%s3882_s29 + $0x31d] sm:$0x1]  ;;  %v885_v25 = vmax.f32 %v373_v62, %v629_v8  ;;  %v886_v26 = vmax.f32 %v374_v63, %v630_v9 }
  0xf9   : > { %v2377_v14 = vsel %vm2246_vm2, %v2376_v59, %v2375_v10  ;;  %v634_v15 = vld [vmem:[%s3882_s29 + $0x31f] sm:$0x1]  ;;  %v3313_v16 = vld [vmem:[%s3882_s29 + $0x330] sm:$0x1]  ;;  %v3314_v17 = vld [vmem:[%s3882_s29 + $0x332] sm:$0x1]  ;;  %v887_v27 = vmax.f32 %v375_v0, %v631_v11  ;;  %v888_v32 = vmax.f32 %v376_v5, %v632_v12  ;;  %v889_v33 = vmax.f32 %v377_v6, %v633_v13 }
  0xfa   : > { %v2379_v18 = vsel %vm2249_vm3, %v2378_v60, %v2377_v14  ;;  %v3315_v21 = vld [vmem:[%s3882_s29 + $0x334] sm:$0x1]  ;;  %v3316_v22 = vld [vmem:[%s3882_s29 + $0x336] sm:$0x1]  ;;  %v3317_v23 = vld [vmem:[%s3882_s29 + $0x338] sm:$0x1]  ;;  %v890_v34 = vmax.f32 %v378_v7, %v634_v15 }
  0xfb   : > { %v2381_v24 = vsel %vm2252_vm4, %v2380_v61, %v2379_v18  ;;  %v3318_v28 = vld [vmem:[%s3882_s29 + $0x33a] sm:$0x1]  ;;  %v3319_v29 = vld [vmem:[%s3882_s29 + $0x33c] sm:$0x1]  ;;  %v3320_v30 = vld [vmem:[%s3882_s29 + $0x33e] sm:$0x1] }
  0xfc   : > { %v2383_v31 = vsel %vm2255_vm5, %v2382_v3, %v2381_v24  ;;  %v3569_v36 = vld [vmem:[%s3882_s29 + $0x331] sm:$0x1]  ;;  %v3570_v37 = vld [vmem:[%s3882_s29 + $0x333] sm:$0x1]  ;;  %v3571_v38 = vld [vmem:[%s3882_s29 + $0x335] sm:$0x1] }
  0xfd   : > { %v2385_v39 = vsel %vm2258_vm6, %v2384_v4, %v2383_v31  ;;  %v3572_v40 = vld [vmem:[%s3882_s29 + $0x337] sm:$0x1]  ;;  %v3573_v41 = vld [vmem:[%s3882_s29 + $0x339] sm:$0x1]  ;;  %v3574_v42 = vld [vmem:[%s3882_s29 + $0x33b] sm:$0x1]  ;;  %v1652_v43 = vmax.f32 %v3313_v16, %v3569_v36  ;;  %v1653_v44 = vmax.f32 %v3314_v17, %v3570_v37  ;;  %v1654_v35 = vmax.f32 %v3315_v21, %v3571_v38 }
  0xfe   : > { %3743 = vmatmul.mubr.msk.f32.gmra.mrb[8].mxu0 %vm2694_vm7, %v2385_v39  ;;  %v3575_v45 = vld [vmem:[%s3882_s29 + $0x33d] sm:$0x1]  ;;  %v3576_v46 = vld [vmem:[%s3882_s29 + $0x33f] sm:$0x1]  ;;  %v1655_v47 = vmax.f32 %v3316_v22, %v3572_v40  ;;  %v1656_v48 = vmax.f32 %v3317_v23, %v3573_v41  ;;  %v1657_v49 = vmax.f32 %v3318_v28, %v3574_v42  ;;  %v4857_v61 = vld [vmem:[%s3882_s29 + $0x140] sm:$0x1] }
  0xff   : > { %v1658_v50 = vmax.f32 %v3319_v29, %v3575_v45  ;;  %v1659_v51 = vmax.f32 %v3320_v30, %v3576_v46  ;;  %v1908_v52 = vmax.f32 %v883_v19, %v1652_v43  ;;  %v1909_v53 = vmax.f32 %v884_v20, %v1653_v44  ;;  %v4860_v62 = vld [vmem:[%s3882_s29 + $0x142] sm:$0x1]  ;;  %v507_v63 = vld [vmem:[%s3882_s29 + $0x141] sm:$0x1]  ;;  %v253_v4 = vld [vmem:[%s3882_s29 + $0x144] sm:$0x1] }
 0x100   : > { %v1910_v54 = vmax.f32 %v885_v25, %v1654_v35  ;;  %v1911_v55 = vmax.f32 %v886_v26, %v1655_v47  ;;  %v1912_v56 = vmax.f32 %v887_v27, %v1656_v48  ;;  %v1913_v57 = vmax.f32 %v888_v32, %v1657_v49  ;;  %v254_v5 = vld [vmem:[%s3882_s29 + $0x146] sm:$0x1]  ;;  %v255_v6 = vld [vmem:[%s3882_s29 + $0x148] sm:$0x1]  ;;  %v508_v7 = vld [vmem:[%s3882_s29 + $0x143] sm:$0x1] }
 0x101   : > { %v1914_v58 = vmax.f32 %v889_v33, %v1658_v50  ;;  %v1915_v59 = vmax.f32 %v890_v34, %v1659_v51  ;;  %v2596_v60 = vrot.slane %v1909_v53, 7  ;;  %v256_v11 = vld [vmem:[%s3882_s29 + $0x14a] sm:$0x1]  ;;  %v257_v12 = vld [vmem:[%s3882_s29 + $0x14c] sm:$0x1]  ;;  %v763_v25 = vmax.f32 %v4857_v61, %v507_v63 }
 0x102   : > { %v2598_v0 = vrot.slane %v1910_v54, 6  ;;  %v2600_v1 = vrot.slane %v1911_v55, 5  ;;  %v2602_v2 = vrot.slane %v1912_v56, 4  ;;  %v2604_v3 = vrot.slane %v1913_v57, 3  ;;  %v258_v13 = vld [vmem:[%s3882_s29 + $0x14e] sm:$0x1] }
 0x103   : > { %v2597_v8 = vsel %vm2240_vm0, %v2596_v60, %v1908_v52  ;;  %v2606_v9 = vrot.slane %v1914_v58, 2  ;;  %v2608_v10 = vrot.slane %v1915_v59, 1  ;;  %v509_v14 = vld [vmem:[%s3882_s29 + $0x145] sm:$0x1]  ;;  %v510_v15 = vld [vmem:[%s3882_s29 + $0x147] sm:$0x1]  ;;  %v764_v26 = vmax.f32 %v4860_v62, %v508_v7 }
 0x104   : > { %v2599_v16 = vsel %vm2243_vm1, %v2598_v0, %v2597_v8  ;;  %v511_v17 = vld [vmem:[%s3882_s29 + $0x149] sm:$0x1]  ;;  %v512_v18 = vld [vmem:[%s3882_s29 + $0x14b] sm:$0x1]  ;;  %v513_v19 = vld [vmem:[%s3882_s29 + $0x14d] sm:$0x1]  ;;  %v765_v31 = vmax.f32 %v253_v4, %v509_v14  ;;  %v766_v32 = vmax.f32 %v254_v5, %v510_v15 }
 0x105   : > { %v2601_v20 = vsel %vm2246_vm2, %v2600_v1, %v2599_v16  ;;  %v514_v21 = vld [vmem:[%s3882_s29 + $0x14f] sm:$0x1]  ;;  %v3193_v22 = vld [vmem:[%s3882_s29 + $0x160] sm:$0x1]  ;;  %v3194_v23 = vld [vmem:[%s3882_s29 + $0x162] sm:$0x1]  ;;  %v767_v33 = vmax.f32 %v255_v6, %v511_v17  ;;  %v768_v39 = vmax.f32 %v256_v11, %v512_v18  ;;  %v769_v40 = vmax.f32 %v257_v12, %v513_v19 }
 0x106   : > { %v2603_v24 = vsel %vm2249_vm3, %v2602_v2, %v2601_v20  ;;  %v3195_v27 = vld [vmem:[%s3882_s29 + $0x164] sm:$0x1]  ;;  %v3196_v28 = vld [vmem:[%s3882_s29 + $0x166] sm:$0x1]  ;;  %v3197_v29 = vld [vmem:[%s3882_s29 + $0x168] sm:$0x1]  ;;  %v770_v41 = vmax.f32 %v258_v13, %v514_v21 }
 0x107   : > { %v2605_v30 = vsel %vm2252_vm4, %v2604_v3, %v2603_v24  ;;  %v3198_v34 = vld [vmem:[%s3882_s29 + $0x16a] sm:$0x1]  ;;  %v3199_v36 = vld [vmem:[%s3882_s29 + $0x16c] sm:$0x1]  ;;  %v3200_v37 = vld [vmem:[%s3882_s29 + $0x16e] sm:$0x1] }
 0x108   : > { %v2607_v38 = vsel %vm2255_vm5, %v2606_v9, %v2605_v30  ;;  %v3449_v42 = vld [vmem:[%s3882_s29 + $0x161] sm:$0x1]  ;;  %v3450_v43 = vld [vmem:[%s3882_s29 + $0x163] sm:$0x1]  ;;  %v3451_v44 = vld [vmem:[%s3882_s29 + $0x165] sm:$0x1] }
 0x109   : > { %v2609_v35 = vsel %vm2258_vm6, %v2608_v10, %v2607_v38  ;;  %v3452_v45 = vld [vmem:[%s3882_s29 + $0x167] sm:$0x1]  ;;  %v3453_v46 = vld [vmem:[%s3882_s29 + $0x169] sm:$0x1]  ;;  %v3454_v47 = vld [vmem:[%s3882_s29 + $0x16b] sm:$0x1]  ;;  %v1532_v48 = vmax.f32 %v3193_v22, %v3449_v42  ;;  %v1533_v49 = vmax.f32 %v3194_v23, %v3450_v43  ;;  %v1534_v50 = vmax.f32 %v3195_v27, %v3451_v44 }
 0x10a   : > { %3767 = vmatmul.mubr.msk.f32.gmra.mrb[8].mxu1 %vm2694_vm7, %v2609_v35  ;;  %v3455_v51 = vld [vmem:[%s3882_s29 + $0x16d] sm:$0x1]  ;;  %v3456_v52 = vld [vmem:[%s3882_s29 + $0x16f] sm:$0x1]  ;;  %v1535_v53 = vmax.f32 %v3196_v28, %v3452_v45  ;;  %v1536_v54 = vmax.f32 %v3197_v29, %v3453_v46  ;;  %v1537_v55 = vmax.f32 %v3198_v34, %v3454_v47  ;;  %v4903_v3 = vld [vmem:[%s3882_s29 + $0x340] sm:$0x1] }
 0x10b   : > { %v1538_v56 = vmax.f32 %v3199_v36, %v3455_v51  ;;  %v1539_v57 = vmax.f32 %v3200_v37, %v3456_v52  ;;  %v1788_v58 = vmax.f32 %v763_v25, %v1532_v48  ;;  %v1789_v59 = vmax.f32 %v764_v26, %v1533_v49  ;;  %v4906_v4 = vld [vmem:[%s3882_s29 + $0x342] sm:$0x1]  ;;  %v635_v5 = vld [vmem:[%s3882_s29 + $0x341] sm:$0x1]  ;;  %v381_v10 = vld [vmem:[%s3882_s29 + $0x344] sm:$0x1] }
 0x10c   : > { %v1790_v60 = vmax.f32 %v765_v31, %v1534_v50  ;;  %v1791_v61 = vmax.f32 %v766_v32, %v1535_v53  ;;  %v1792_v62 = vmax.f32 %v767_v33, %v1536_v54  ;;  %v1793_v63 = vmax.f32 %v768_v39, %v1537_v55  ;;  %v382_v11 = vld [vmem:[%s3882_s29 + $0x346] sm:$0x1]  ;;  %v383_v12 = vld [vmem:[%s3882_s29 + $0x348] sm:$0x1]  ;;  %v636_v13 = vld [vmem:[%s3882_s29 + $0x343] sm:$0x1] }
 0x10d   : > { %v1794_v0 = vmax.f32 %v769_v40, %v1538_v56  ;;  %v1795_v1 = vmax.f32 %v770_v41, %v1539_v57  ;;  %v2386_v2 = vrot.slane %v1789_v59, 7  ;;  %v384_v17 = vld [vmem:[%s3882_s29 + $0x34a] sm:$0x1]  ;;  %v385_v18 = vld [vmem:[%s3882_s29 + $0x34c] sm:$0x1]  ;;  %v891_v31 = vmax.f32 %v4903_v3, %v635_v5 }
 0x10e   : > { %v2388_v6 = vrot.slane %v1790_v60, 6  ;;  %v2390_v7 = vrot.slane %v1791_v61, 5  ;;  %v2392_v8 = vrot.slane %v1792_v62, 4  ;;  %v2394_v9 = vrot.slane %v1793_v63, 3  ;;  %v386_v19 = vld [vmem:[%s3882_s29 + $0x34e] sm:$0x1] }
 0x10f   : > { %v2387_v14 = vsel %vm2240_vm0, %v2386_v2, %v1788_v58  ;;  %v2396_v15 = vrot.slane %v1794_v0, 2  ;;  %v2398_v16 = vrot.slane %v1795_v1, 1  ;;  %v637_v20 = vld [vmem:[%s3882_s29 + $0x345] sm:$0x1]  ;;  %v638_v21 = vld [vmem:[%s3882_s29 + $0x347] sm:$0x1]  ;;  %v892_v32 = vmax.f32 %v4906_v4, %v636_v13 }
 0x110   : > { %v2389_v22 = vsel %vm2243_vm1, %v2388_v6, %v2387_v14  ;;  %v639_v23 = vld [vmem:[%s3882_s29 + $0x349] sm:$0x1]  ;;  %v640_v24 = vld [vmem:[%s3882_s29 + $0x34b] sm:$0x1]  ;;  %v641_v25 = vld [vmem:[%s3882_s29 + $0x34d] sm:$0x1]  ;;  %v893_v38 = vmax.f32 %v381_v10, %v637_v20  ;;  %v894_v39 = vmax.f32 %v382_v11, %v638_v21 }
 0x111   : > { %v2391_v26 = vsel %vm2246_vm2, %v2390_v7, %v2389_v22  ;;  %v642_v27 = vld [vmem:[%s3882_s29 + $0x34f] sm:$0x1]  ;;  %v3321_v28 = vld [vmem:[%s3882_s29 + $0x360] sm:$0x1]  ;;  %v3322_v29 = vld [vmem:[%s3882_s29 + $0x362] sm:$0x1]  ;;  %v895_v40 = vmax.f32 %v383_v12, %v639_v23  ;;  %v896_v35 = vmax.f32 %v384_v17, %v640_v24  ;;  %v897_v45 = vmax.f32 %v385_v18, %v641_v25 }
 0x112   : > { %v2393_v30 = vsel %vm2249_vm3, %v2392_v8, %v2391_v26  ;;  %v3323_v33 = vld [vmem:[%s3882_s29 + $0x364] sm:$0x1]  ;;  %v3324_v34 = vld [vmem:[%s3882_s29 + $0x366] sm:$0x1]  ;;  %v3325_v36 = vld [vmem:[%s3882_s29 + $0x368] sm:$0x1]  ;;  %v898_v46 = vmax.f32 %v386_v19, %v642_v27 }
 0x113   : > { %v2395_v37 = vsel %vm2252_vm4, %v2394_v9, %v2393_v30  ;;  %v3326_v41 = vld [vmem:[%s3882_s29 + $0x36a] sm:$0x1]  ;;  %v3327_v42 = vld [vmem:[%s3882_s29 + $0x36c] sm:$0x1]  ;;  %v3328_v43 = vld [vmem:[%s3882_s29 + $0x36e] sm:$0x1] }
 0x114   : > { %v2397_v44 = vsel %vm2255_vm5, %v2396_v15, %v2395_v37  ;;  %v3577_v47 = vld [vmem:[%s3882_s29 + $0x361] sm:$0x1]  ;;  %v3578_v48 = vld [vmem:[%s3882_s29 + $0x363] sm:$0x1]  ;;  %v3579_v49 = vld [vmem:[%s3882_s29 + $0x365] sm:$0x1] }
 0x115   : > { %v2399_v50 = vsel %vm2258_vm6, %v2398_v16, %v2397_v44  ;;  %v3580_v51 = vld [vmem:[%s3882_s29 + $0x367] sm:$0x1]  ;;  %v3581_v52 = vld [vmem:[%s3882_s29 + $0x369] sm:$0x1]  ;;  %v3582_v53 = vld [vmem:[%s3882_s29 + $0x36b] sm:$0x1]  ;;  %v1660_v54 = vmax.f32 %v3321_v28, %v3577_v47  ;;  %v1661_v55 = vmax.f32 %v3322_v29, %v3578_v48  ;;  %v1662_v56 = vmax.f32 %v3323_v33, %v3579_v49 }
 0x116   : > { %3745 = vmatprep.mubr.msk.f32.mxu0 %vm2694_vm7, %v2399_v50  ;;  %v3583_v57 = vld [vmem:[%s3882_s29 + $0x36d] sm:$0x1]  ;;  %v3584_v58 = vld [vmem:[%s3882_s29 + $0x36f] sm:$0x1]  ;;  %v1663_v59 = vmax.f32 %v3324_v34, %v3580_v51  ;;  %v1664_v60 = vmax.f32 %v3325_v36, %v3581_v52  ;;  %v1665_v61 = vmax.f32 %v3326_v41, %v3582_v53  ;;  %v4949_v9 = vld [vmem:[%s3882_s29 + $0x150] sm:$0x1] }
 0x117   : > { %v1666_v62 = vmax.f32 %v3327_v42, %v3583_v57  ;;  %v1667_v63 = vmax.f32 %v3328_v43, %v3584_v58  ;;  %v1916_v0 = vmax.f32 %v891_v31, %v1660_v54  ;;  %v1917_v1 = vmax.f32 %v892_v32, %v1661_v55  ;;  %v4952_v10 = vld [vmem:[%s3882_s29 + $0x152] sm:$0x1]  ;;  %v515_v11 = vld [vmem:[%s3882_s29 + $0x151] sm:$0x1]  ;;  %v261_v16 = vld [vmem:[%s3882_s29 + $0x154] sm:$0x1] }
 0x118   : > { %v1918_v2 = vmax.f32 %v893_v38, %v1662_v56  ;;  %v1919_v3 = vmax.f32 %v894_v39, %v1663_v59  ;;  %v1920_v4 = vmax.f32 %v895_v40, %v1664_v60  ;;  %v1921_v5 = vmax.f32 %v896_v35, %v1665_v61  ;;  %v262_v17 = vld [vmem:[%s3882_s29 + $0x156] sm:$0x1]  ;;  %v263_v18 = vld [vmem:[%s3882_s29 + $0x158] sm:$0x1]  ;;  %v516_v19 = vld [vmem:[%s3882_s29 + $0x153] sm:$0x1] }
 0x119   : > { %v1922_v6 = vmax.f32 %v897_v45, %v1666_v62  ;;  %v1923_v7 = vmax.f32 %v898_v46, %v1667_v63  ;;  %v2610_v8 = vrot.slane %v1917_v1, 7  ;;  %v264_v23 = vld [vmem:[%s3882_s29 + $0x15a] sm:$0x1]  ;;  %v265_v24 = vld [vmem:[%s3882_s29 + $0x15c] sm:$0x1]  ;;  %v771_v38 = vmax.f32 %v4949_v9, %v515_v11 }
 0x11a   : > { %v2612_v12 = vrot.slane %v1918_v2, 6  ;;  %v2614_v13 = vrot.slane %v1919_v3, 5  ;;  %v2616_v14 = vrot.slane %v1920_v4, 4  ;;  %v2618_v15 = vrot.slane %v1921_v5, 3  ;;  %v266_v25 = vld [vmem:[%s3882_s29 + $0x15e] sm:$0x1] }
 0x11b   : > { %v2611_v20 = vsel %vm2240_vm0, %v2610_v8, %v1916_v0  ;;  %v2620_v21 = vrot.slane %v1922_v6, 2  ;;  %v2622_v22 = vrot.slane %v1923_v7, 1  ;;  %v517_v26 = vld [vmem:[%s3882_s29 + $0x155] sm:$0x1]  ;;  %v518_v27 = vld [vmem:[%s3882_s29 + $0x157] sm:$0x1]  ;;  %v772_v39 = vmax.f32 %v4952_v10, %v516_v19 }
 0x11c   : > { %v2613_v28 = vsel %vm2243_vm1, %v2612_v12, %v2611_v20  ;;  %v519_v29 = vld [vmem:[%s3882_s29 + $0x159] sm:$0x1]  ;;  %v520_v30 = vld [vmem:[%s3882_s29 + $0x15b] sm:$0x1]  ;;  %v521_v31 = vld [vmem:[%s3882_s29 + $0x15d] sm:$0x1]  ;;  %v773_v44 = vmax.f32 %v261_v16, %v517_v26  ;;  %v774_v35 = vmax.f32 %v262_v17, %v518_v27 }
 0x11d   : > { %v2615_v32 = vsel %vm2246_vm2, %v2614_v13, %v2613_v28  ;;  %v522_v33 = vld [vmem:[%s3882_s29 + $0x15f] sm:$0x1]  ;;  %v3201_v34 = vld [vmem:[%s3882_s29 + $0x170] sm:$0x1]  ;;  %v3202_v36 = vld [vmem:[%s3882_s29 + $0x172] sm:$0x1]  ;;  %v775_v45 = vmax.f32 %v263_v18, %v519_v29  ;;  %v776_v50 = vmax.f32 %v264_v23, %v520_v30  ;;  %v777_v51 = vmax.f32 %v265_v24, %v521_v31 }
 0x11e   : > { %v2617_v37 = vsel %vm2249_vm3, %v2616_v14, %v2615_v32  ;;  %v3203_v40 = vld [vmem:[%s3882_s29 + $0x174] sm:$0x1]  ;;  %v3204_v41 = vld [vmem:[%s3882_s29 + $0x176] sm:$0x1]  ;;  %v3205_v42 = vld [vmem:[%s3882_s29 + $0x178] sm:$0x1]  ;;  %v778_v52 = vmax.f32 %v266_v25, %v522_v33 }
 0x11f   : > { %v2619_v43 = vsel %vm2252_vm4, %v2618_v15, %v2617_v37  ;;  %v3206_v46 = vld [vmem:[%s3882_s29 + $0x17a] sm:$0x1]  ;;  %v3207_v47 = vld [vmem:[%s3882_s29 + $0x17c] sm:$0x1]  ;;  %v3208_v48 = vld [vmem:[%s3882_s29 + $0x17e] sm:$0x1] }
 0x120   : > { %v2621_v49 = vsel %vm2255_vm5, %v2620_v21, %v2619_v43  ;;  %v3457_v53 = vld [vmem:[%s3882_s29 + $0x171] sm:$0x1]  ;;  %v3458_v54 = vld [vmem:[%s3882_s29 + $0x173] sm:$0x1]  ;;  %v3459_v55 = vld [vmem:[%s3882_s29 + $0x175] sm:$0x1] }
 0x121   : > { %v2623_v56 = vsel %vm2258_vm6, %v2622_v22, %v2621_v49  ;;  %v3460_v57 = vld [vmem:[%s3882_s29 + $0x177] sm:$0x1]  ;;  %v3461_v58 = vld [vmem:[%s3882_s29 + $0x179] sm:$0x1]  ;;  %v3462_v59 = vld [vmem:[%s3882_s29 + $0x17b] sm:$0x1]  ;;  %v1540_v60 = vmax.f32 %v3201_v34, %v3457_v53  ;;  %v1541_v61 = vmax.f32 %v3202_v36, %v3458_v54  ;;  %v1542_v62 = vmax.f32 %v3203_v40, %v3459_v55 }
 0x122   : > { %3769 = vmatprep.mubr.msk.f32.mxu1 %vm2694_vm7, %v2623_v56  ;;  %v3463_v63 = vld [vmem:[%s3882_s29 + $0x17d] sm:$0x1]  ;;  %v3464_v0 = vld [vmem:[%s3882_s29 + $0x17f] sm:$0x1]  ;;  %v1543_v1 = vmax.f32 %v3204_v41, %v3460_v57  ;;  %v1544_v2 = vmax.f32 %v3205_v42, %v3461_v58  ;;  %v1545_v3 = vmax.f32 %v3206_v46, %v3462_v59  ;;  %v4995_v15 = vld [vmem:[%s3882_s29 + $0x350] sm:$0x1] }
 0x123   : > { %v1546_v4 = vmax.f32 %v3207_v47, %v3463_v63  ;;  %v1547_v5 = vmax.f32 %v3208_v48, %v3464_v0  ;;  %v1796_v6 = vmax.f32 %v771_v38, %v1540_v60  ;;  %v1797_v7 = vmax.f32 %v772_v39, %v1541_v61  ;;  %v4998_v16 = vld [vmem:[%s3882_s29 + $0x352] sm:$0x1]  ;;  %v643_v17 = vld [vmem:[%s3882_s29 + $0x351] sm:$0x1]  ;;  %v389_v22 = vld [vmem:[%s3882_s29 + $0x354] sm:$0x1] }
 0x124   : > { %v1798_v8 = vmax.f32 %v773_v44, %v1542_v62  ;;  %v1799_v9 = vmax.f32 %v774_v35, %v1543_v1  ;;  %v1800_v10 = vmax.f32 %v775_v45, %v1544_v2  ;;  %v1801_v11 = vmax.f32 %v776_v50, %v1545_v3  ;;  %v390_v23 = vld [vmem:[%s3882_s29 + $0x356] sm:$0x1]  ;;  %v391_v24 = vld [vmem:[%s3882_s29 + $0x358] sm:$0x1]  ;;  %v644_v25 = vld [vmem:[%s3882_s29 + $0x353] sm:$0x1] }
 0x125   : > { %v1802_v12 = vmax.f32 %v777_v51, %v1546_v4  ;;  %v1803_v13 = vmax.f32 %v778_v52, %v1547_v5  ;;  %v2400_v14 = vrot.slane %v1797_v7, 7  ;;  %v392_v29 = vld [vmem:[%s3882_s29 + $0x35a] sm:$0x1]  ;;  %v393_v30 = vld [vmem:[%s3882_s29 + $0x35c] sm:$0x1]  ;;  %v899_v44 = vmax.f32 %v4995_v15, %v643_v17 }
 0x126   : > { %v2402_v18 = vrot.slane %v1798_v8, 6  ;;  %v2404_v19 = vrot.slane %v1799_v9, 5  ;;  %v2406_v20 = vrot.slane %v1800_v10, 4  ;;  %v2408_v21 = vrot.slane %v1801_v11, 3  ;;  %v394_v31 = vld [vmem:[%s3882_s29 + $0x35e] sm:$0x1] }
 0x127   : > { %v2401_v26 = vsel %vm2240_vm0, %v2400_v14, %v1796_v6  ;;  %v2410_v27 = vrot.slane %v1802_v12, 2  ;;  %v2412_v28 = vrot.slane %v1803_v13, 1  ;;  %v645_v32 = vld [vmem:[%s3882_s29 + $0x355] sm:$0x1]  ;;  %v646_v33 = vld [vmem:[%s3882_s29 + $0x357] sm:$0x1]  ;;  %v900_v35 = vmax.f32 %v4998_v16, %v644_v25 }
 0x128   : > { %v2403_v34 = vsel %vm2243_vm1, %v2402_v18, %v2401_v26  ;;  %v647_v36 = vld [vmem:[%s3882_s29 + $0x359] sm:$0x1]  ;;  %v648_v37 = vld [vmem:[%s3882_s29 + $0x35b] sm:$0x1]  ;;  %v649_v38 = vld [vmem:[%s3882_s29 + $0x35d] sm:$0x1]  ;;  %v901_v49 = vmax.f32 %v389_v22, %v645_v32  ;;  %v902_v50 = vmax.f32 %v390_v23, %v646_v33 }
 0x129   : > { %v2405_v39 = vsel %vm2246_vm2, %v2404_v19, %v2403_v34  ;;  %v650_v40 = vld [vmem:[%s3882_s29 + $0x35f] sm:$0x1]  ;;  %v3329_v41 = vld [vmem:[%s3882_s29 + $0x370] sm:$0x1]  ;;  %v3330_v42 = vld [vmem:[%s3882_s29 + $0x372] sm:$0x1]  ;;  %v903_v51 = vmax.f32 %v391_v24, %v647_v36  ;;  %v904_v56 = vmax.f32 %v392_v29, %v648_v37  ;;  %v905_v57 = vmax.f32 %v393_v30, %v649_v38 }
 0x12a   : > { %v2407_v43 = vsel %vm2249_vm3, %v2406_v20, %v2405_v39  ;;  %v3331_v45 = vld [vmem:[%s3882_s29 + $0x374] sm:$0x1]  ;;  %v3332_v46 = vld [vmem:[%s3882_s29 + $0x376] sm:$0x1]  ;;  %v3333_v47 = vld [vmem:[%s3882_s29 + $0x378] sm:$0x1]  ;;  %v906_v58 = vmax.f32 %v394_v31, %v650_v40 }
 0x12b   : > { %v2409_v48 = vsel %vm2252_vm4, %v2408_v21, %v2407_v43  ;;  %v3334_v52 = vld [vmem:[%s3882_s29 + $0x37a] sm:$0x1]  ;;  %v3335_v53 = vld [vmem:[%s3882_s29 + $0x37c] sm:$0x1]  ;;  %v3336_v54 = vld [vmem:[%s3882_s29 + $0x37e] sm:$0x1] }
 0x12c   : > { %v2411_v55 = vsel %vm2255_vm5, %v2410_v27, %v2409_v48  ;;  %v3585_v59 = vld [vmem:[%s3882_s29 + $0x371] sm:$0x1]  ;;  %v3586_v60 = vld [vmem:[%s3882_s29 + $0x373] sm:$0x1]  ;;  %v3587_v61 = vld [vmem:[%s3882_s29 + $0x375] sm:$0x1] }
 0x12d   : > { %v2413_v62 = vsel %vm2258_vm6, %v2412_v28, %v2411_v55  ;;  %v3588_v63 = vld [vmem:[%s3882_s29 + $0x377] sm:$0x1]  ;;  %v3589_v0 = vld [vmem:[%s3882_s29 + $0x379] sm:$0x1]  ;;  %v3590_v1 = vld [vmem:[%s3882_s29 + $0x37b] sm:$0x1]  ;;  %v1668_v2 = vmax.f32 %v3329_v41, %v3585_v59  ;;  %v1669_v3 = vmax.f32 %v3330_v42, %v3586_v60  ;;  %v1670_v4 = vmax.f32 %v3331_v45, %v3587_v61 }
 0x12e   : > { %3746 = vmatmul.mubr.msk.f32.gmra.mrb[10].mxu0 %vm2694_vm7, %v2413_v62  ;;  %v3591_v5 = vld [vmem:[%s3882_s29 + $0x37d] sm:$0x1]  ;;  %v3592_v6 = vld [vmem:[%s3882_s29 + $0x37f] sm:$0x1]  ;;  %v1671_v7 = vmax.f32 %v3332_v46, %v3588_v63  ;;  %v1672_v8 = vmax.f32 %v3333_v47, %v3589_v0  ;;  %v1673_v9 = vmax.f32 %v3334_v52, %v3590_v1  ;;  %v5041_v21 = vld [vmem:[%s3882_s29 + $0x180] sm:$0x1] }
 0x12f   : > { %v1674_v10 = vmax.f32 %v3335_v53, %v3591_v5  ;;  %v1675_v11 = vmax.f32 %v3336_v54, %v3592_v6  ;;  %v1924_v12 = vmax.f32 %v899_v44, %v1668_v2  ;;  %v1925_v13 = vmax.f32 %v900_v35, %v1669_v3  ;;  %v5044_v22 = vld [vmem:[%s3882_s29 + $0x182] sm:$0x1]  ;;  %v523_v23 = vld [vmem:[%s3882_s29 + $0x181] sm:$0x1]  ;;  %v5047_v24 = vpop.f32.mrb[0].mxu0 }
 0x130   : > { %v1926_v14 = vmax.f32 %v901_v49, %v1670_v4  ;;  %v1927_v15 = vmax.f32 %v902_v50, %v1671_v7  ;;  %v1928_v16 = vmax.f32 %v903_v51, %v1672_v8  ;;  %v1929_v17 = vmax.f32 %v904_v56, %v1673_v9  ;;  %v269_v29 = vld [vmem:[%s3882_s29 + $0x184] sm:$0x1]  ;;  %v270_v30 = vld [vmem:[%s3882_s29 + $0x186] sm:$0x1]  ;;  %v271_v31 = vld [vmem:[%s3882_s29 + $0x188] sm:$0x1] }
 0x131   : > { %v1930_v18 = vmax.f32 %v905_v57, %v1674_v10  ;;  %v1931_v19 = vmax.f32 %v906_v58, %v1675_v11  ;;  %v2624_v20 = vrot.slane %v1925_v13, 7  ;;  %v524_v32 = vld [vmem:[%s3882_s29 + $0x183] sm:$0x1]  ;;  %v272_v37 = vld [vmem:[%s3882_s29 + $0x18a] sm:$0x1]  ;;  %v779_v50 = vmax.f32 %v5041_v21, %v523_v23 }
 0x132   : > { %v2626_v25 = vrot.slane %v1926_v14, 6  ;;  %v2628_v26 = vrot.slane %v1927_v15, 5  ;;  %v2630_v27 = vrot.slane %v1928_v16, 4  ;;  %v2632_v28 = vrot.slane %v1929_v17, 3  ;;  %v273_v38 = vld [vmem:[%s3882_s29 + $0x18c] sm:$0x1] }
 0x133   : > { %v2625_v33 = vsel %vm2240_vm0, %v2624_v20, %v1924_v12  ;;  %v2634_v34 = vrot.slane %v1930_v18, 2  ;;  %v2636_v36 = vrot.slane %v1931_v19, 1  ;;  %v274_v39 = vld [vmem:[%s3882_s29 + $0x18e] sm:$0x1]  ;;  %v525_v40 = vld [vmem:[%s3882_s29 + $0x185] sm:$0x1]  ;;  %v780_v51 = vmax.f32 %v5044_v22, %v524_v32 }
 0x134   : > { %v526_v41 = vld [vmem:[%s3882_s29 + $0x187] sm:$0x1]  ;;  %v2627_v42 = vsel %vm2243_vm1, %v2626_v25, %v2625_v33  ;;  %v527_v43 = vld [vmem:[%s3882_s29 + $0x189] sm:$0x1]  ;;  %v528_v44 = vld [vmem:[%s3882_s29 + $0x18b] sm:$0x1]  ;;  %v781_v56 = vmax.f32 %v269_v29, %v525_v40 }
 0x135   : > { %v529_v35 = vld [vmem:[%s3882_s29 + $0x18d] sm:$0x1]  ;;  %v2629_v45 = vsel %vm2246_vm2, %v2628_v26, %v2627_v42  ;;  %v530_v46 = vld [vmem:[%s3882_s29 + $0x18f] sm:$0x1]  ;;  %v3209_v47 = vld [vmem:[%s3882_s29 + $0x1a0] sm:$0x1]  ;;  %v782_v57 = vmax.f32 %v270_v30, %v526_v41  ;;  %v783_v58 = vmax.f32 %v271_v31, %v527_v43  ;;  %v784_v63 = vmax.f32 %v272_v37, %v528_v44 }
 0x136   : > { %v3210_v48 = vld [vmem:[%s3882_s29 + $0x1a2] sm:$0x1]  ;;  %v2631_v49 = vsel %vm2249_vm3, %v2630_v27, %v2629_v45  ;;  %v3211_v52 = vld [vmem:[%s3882_s29 + $0x1a4] sm:$0x1]  ;;  %v3212_v53 = vld [vmem:[%s3882_s29 + $0x1a6] sm:$0x1]  ;;  %v785_v0 = vmax.f32 %v273_v38, %v529_v35  ;;  %v786_v1 = vmax.f32 %v274_v39, %v530_v46 }
 0x137   : > { %v3213_v54 = vld [vmem:[%s3882_s29 + $0x1a8] sm:$0x1]  ;;  %v2633_v55 = vsel %vm2252_vm4, %v2632_v28, %v2631_v49  ;;  %v3214_v59 = vld [vmem:[%s3882_s29 + $0x1aa] sm:$0x1]  ;;  %v3215_v60 = vld [vmem:[%s3882_s29 + $0x1ac] sm:$0x1] }
 0x138   : > { %v3216_v61 = vld [vmem:[%s3882_s29 + $0x1ae] sm:$0x1]  ;;  %v2635_v62 = vsel %vm2255_vm5, %v2634_v34, %v2633_v55  ;;  %v3465_v2 = vld [vmem:[%s3882_s29 + $0x1a1] sm:$0x1]  ;;  %v3466_v3 = vld [vmem:[%s3882_s29 + $0x1a3] sm:$0x1] }
 0x139   : > { %v3467_v4 = vld [vmem:[%s3882_s29 + $0x1a5] sm:$0x1]  ;;  %v2637_v5 = vsel %vm2258_vm6, %v2636_v36, %v2635_v62  ;;  %v3468_v6 = vld [vmem:[%s3882_s29 + $0x1a7] sm:$0x1]  ;;  %v3469_v7 = vld [vmem:[%s3882_s29 + $0x1a9] sm:$0x1]  ;;  %v1548_v9 = vmax.f32 %v3209_v47, %v3465_v2  ;;  %v1549_v10 = vmax.f32 %v3210_v48, %v3466_v3 }
 0x13a   : > { %v3470_v8 = vld [vmem:[%s3882_s29 + $0x1ab] sm:$0x1]  ;;  %v1550_v11 = vmax.f32 %v3211_v52, %v3467_v4  ;;  %3770 = vmatmul.mubr.msk.f32.gmra.mrb[10].mxu1 %vm2694_vm7, %v2637_v5  ;;  %v3471_v12 = vld [vmem:[%s3882_s29 + $0x1ad] sm:$0x1]  ;;  %v3472_v13 = vld [vmem:[%s3882_s29 + $0x1af] sm:$0x1]  ;;  %v1551_v14 = vmax.f32 %v3212_v53, %v3468_v6  ;;  %v1552_v15 = vmax.f32 %v3213_v54, %v3469_v7 }
 0x13b   : > { %v1553_v16 = vmax.f32 %v3214_v59, %v3470_v8  ;;  %v1554_v17 = vmax.f32 %v3215_v60, %v3471_v12  ;;  %v1555_v18 = vmax.f32 %v3216_v61, %v3472_v13  ;;  %v1804_v19 = vmax.f32 %v779_v50, %v1548_v9  ;;  %v5089_v29 = vld [vmem:[%s3882_s29 + $0x380] sm:$0x1]  ;;  %v5092_v30 = vld [vmem:[%s3882_s29 + $0x382] sm:$0x1]  ;;  %v651_v31 = vld [vmem:[%s3882_s29 + $0x381] sm:$0x1] }
 0x13c   : > { %v1805_v20 = vmax.f32 %v780_v51, %v1549_v10  ;;  %v1806_v21 = vmax.f32 %v781_v56, %v1550_v11  ;;  %v1807_v22 = vmax.f32 %v782_v57, %v1551_v14  ;;  %v1808_v23 = vmax.f32 %v783_v58, %v1552_v15  ;;  %v397_v37 = vld [vmem:[%s3882_s29 + $0x384] sm:$0x1]  ;;  %v398_v38 = vld [vmem:[%s3882_s29 + $0x386] sm:$0x1]  ;;  %v399_v39 = vld [vmem:[%s3882_s29 + $0x388] sm:$0x1] }
 0x13d   : > { %v1809_v25 = vmax.f32 %v784_v63, %v1553_v16  ;;  %v1810_v26 = vmax.f32 %v785_v0, %v1554_v17  ;;  %v1811_v27 = vmax.f32 %v786_v1, %v1555_v18  ;;  %v652_v40 = vld [vmem:[%s3882_s29 + $0x383] sm:$0x1]  ;;  %v400_v44 = vld [vmem:[%s3882_s29 + $0x38a] sm:$0x1]  ;;  %v401_v35 = vld [vmem:[%s3882_s29 + $0x38c] sm:$0x1]  ;;  %v907_v57 = vmax.f32 %v5089_v29, %v651_v31 }
 0x13e   : > { %v2414_v28 = vrot.slane %v1805_v20, 7  ;;  %v2416_v32 = vrot.slane %v1806_v21, 6  ;;  %v2418_v33 = vrot.slane %v1807_v22, 5  ;;  %v2420_v34 = vrot.slane %v1808_v23, 4  ;;  %v402_v45 = vld [vmem:[%s3882_s29 + $0x38e] sm:$0x1] }
 0x13f   : > { %v2422_v36 = vrot.slane %v1809_v25, 3  ;;  %v2424_v42 = vrot.slane %v1810_v26, 2  ;;  %v2426_v43 = vrot.slane %v1811_v27, 1  ;;  %v653_v46 = vld [vmem:[%s3882_s29 + $0x385] sm:$0x1]  ;;  %v908_v58 = vmax.f32 %v5092_v30, %v652_v40  ;;  %v5141_v40 = vpop.f32.mrb[0].mxu1 }
 0x140   : > { %v2415_v41 = vsel %vm2240_vm0, %v2414_v28, %v1804_v19  ;;  %v654_v47 = vld [vmem:[%s3882_s29 + $0x387] sm:$0x1]  ;;  %v655_v49 = vld [vmem:[%s3882_s29 + $0x389] sm:$0x1]  ;;  %v656_v50 = vld [vmem:[%s3882_s29 + $0x38b] sm:$0x1]  ;;  %v909_v63 = vmax.f32 %v397_v37, %v653_v46 }
 0x141   : > { %v2417_v48 = vsel %vm2243_vm1, %v2416_v32, %v2415_v41  ;;  %v657_v51 = vld [vmem:[%s3882_s29 + $0x38d] sm:$0x1]  ;;  %v658_v53 = vld [vmem:[%s3882_s29 + $0x38f] sm:$0x1]  ;;  %v3337_v54 = vld [vmem:[%s3882_s29 + $0x3a0] sm:$0x1]  ;;  %v910_v0 = vmax.f32 %v398_v38, %v654_v47  ;;  %v911_v1 = vmax.f32 %v399_v39, %v655_v49  ;;  %v912_v6 = vmax.f32 %v400_v44, %v656_v50 }
 0x142   : > { %v2419_v52 = vsel %vm2246_vm2, %v2418_v33, %v2417_v48  ;;  %v3338_v55 = vld [vmem:[%s3882_s29 + $0x3a2] sm:$0x1]  ;;  %v3339_v59 = vld [vmem:[%s3882_s29 + $0x3a4] sm:$0x1]  ;;  %v3340_v60 = vld [vmem:[%s3882_s29 + $0x3a6] sm:$0x1]  ;;  %v913_v7 = vmax.f32 %v401_v35, %v657_v51  ;;  %v914_v8 = vmax.f32 %v402_v45, %v658_v53 }
 0x143   : > { %v2421_v56 = vsel %vm2249_vm3, %v2420_v34, %v2419_v52  ;;  %v3341_v61 = vld [vmem:[%s3882_s29 + $0x3a8] sm:$0x1]  ;;  %v3342_v2 = vld [vmem:[%s3882_s29 + $0x3aa] sm:$0x1]  ;;  %v3343_v3 = vld [vmem:[%s3882_s29 + $0x3ac] sm:$0x1] }
 0x144   : > { %v2423_v62 = vsel %vm2252_vm4, %v2422_v36, %v2421_v56  ;;  %v3344_v4 = vld [vmem:[%s3882_s29 + $0x3ae] sm:$0x1]  ;;  %v3593_v9 = vld [vmem:[%s3882_s29 + $0x3a1] sm:$0x1]  ;;  %v3594_v10 = vld [vmem:[%s3882_s29 + $0x3a3] sm:$0x1] }
 0x145   : > { %v2425_v5 = vsel %vm2255_vm5, %v2424_v42, %v2423_v62  ;;  %v3595_v11 = vld [vmem:[%s3882_s29 + $0x3a5] sm:$0x1]  ;;  %v3596_v13 = vld [vmem:[%s3882_s29 + $0x3a7] sm:$0x1]  ;;  %v3597_v14 = vld [vmem:[%s3882_s29 + $0x3a9] sm:$0x1]  ;;  %v1676_v16 = vmax.f32 %v3337_v54, %v3593_v9  ;;  %v1677_v17 = vmax.f32 %v3338_v55, %v3594_v10 }
 0x146   : > { %v2427_v12 = vsel %vm2258_vm6, %v2426_v43, %v2425_v5  ;;  %v3598_v15 = vld [vmem:[%s3882_s29 + $0x3ab] sm:$0x1]  ;;  %v1678_v18 = vmax.f32 %v3339_v59, %v3595_v11  ;;  %v3599_v19 = vld [vmem:[%s3882_s29 + $0x3ad] sm:$0x1]  ;;  %v3600_v20 = vld [vmem:[%s3882_s29 + $0x3af] sm:$0x1]  ;;  %v1679_v21 = vmax.f32 %v3340_v60, %v3596_v13  ;;  %v1680_v22 = vmax.f32 %v3341_v61, %v3597_v14 }
 0x147   : > { %3748 = vmatprep.mubr.msk.f32.mxu0 %vm2694_vm7, %v2427_v12  ;;  %v1681_v23 = vmax.f32 %v3342_v2, %v3598_v15  ;;  %v1682_v25 = vmax.f32 %v3343_v3, %v3599_v19  ;;  %v1683_v26 = vmax.f32 %v3344_v4, %v3600_v20  ;;  %v1932_v27 = vmax.f32 %v907_v57, %v1676_v16  ;;  %v5135_v37 = vld [vmem:[%s3882_s29 + $0x190] sm:$0x1]  ;;  %v5138_v38 = vld [vmem:[%s3882_s29 + $0x192] sm:$0x1]  ;;  %v531_v39 = vld [vmem:[%s3882_s29 + $0x191] sm:$0x1] }
 0x148   : > { %v1933_v28 = vmax.f32 %v908_v58, %v1677_v17  ;;  %v1934_v29 = vmax.f32 %v909_v63, %v1678_v18  ;;  %v1935_v30 = vmax.f32 %v910_v0, %v1679_v21  ;;  %v1936_v31 = vmax.f32 %v911_v1, %v1680_v22  ;;  %v277_v35 = vld [vmem:[%s3882_s29 + $0x194] sm:$0x1]  ;;  %v278_v45 = vld [vmem:[%s3882_s29 + $0x196] sm:$0x1]  ;;  %v279_v46 = vld [vmem:[%s3882_s29 + $0x198] sm:$0x1] }
 0x149   : > { %v1937_v32 = vmax.f32 %v912_v6, %v1681_v23  ;;  %v1938_v33 = vmax.f32 %v913_v7, %v1682_v25  ;;  %v1939_v34 = vmax.f32 %v914_v8, %v1683_v26  ;;  %v532_v47 = vld [vmem:[%s3882_s29 + $0x193] sm:$0x1]  ;;  %v280_v51 = vld [vmem:[%s3882_s29 + $0x19a] sm:$0x1]  ;;  %v281_v52 = vld [vmem:[%s3882_s29 + $0x19c] sm:$0x1]  ;;  %v787_v1 = vmax.f32 %v5135_v37, %v531_v39 }
 0x14a   : > { %v2638_v36 = vrot.slane %v1933_v28, 7  ;;  %v2640_v41 = vrot.slane %v1934_v29, 6  ;;  %v2642_v42 = vrot.slane %v1935_v30, 5  ;;  %v2644_v43 = vrot.slane %v1936_v31, 4  ;;  %v282_v53 = vld [vmem:[%s3882_s29 + $0x19e] sm:$0x1] }
 0x14b   : > { %v2646_v44 = vrot.slane %v1937_v32, 3  ;;  %v2648_v49 = vrot.slane %v1938_v33, 2  ;;  %v2650_v50 = vrot.slane %v1939_v34, 1  ;;  %v533_v54 = vld [vmem:[%s3882_s29 + $0x195] sm:$0x1]  ;;  %v788_v2 = vmax.f32 %v5138_v38, %v532_v47 }
 0x14c   : > { %v2639_v48 = vsel %vm2240_vm0, %v2638_v36, %v1932_v27  ;;  %v534_v55 = vld [vmem:[%s3882_s29 + $0x197] sm:$0x1]  ;;  %v535_v57 = vld [vmem:[%s3882_s29 + $0x199] sm:$0x1]  ;;  %v536_v58 = vld [vmem:[%s3882_s29 + $0x19b] sm:$0x1]  ;;  %v789_v7 = vmax.f32 %v277_v35, %v533_v54 }
 0x14d   : > { %v2641_v56 = vsel %vm2243_vm1, %v2640_v41, %v2639_v48  ;;  %v537_v59 = vld [vmem:[%s3882_s29 + $0x19d] sm:$0x1]  ;;  %v538_v61 = vld [vmem:[%s3882_s29 + $0x19f] sm:$0x1]  ;;  %v3217_v62 = vld [vmem:[%s3882_s29 + $0x1b0] sm:$0x1]  ;;  %v790_v8 = vmax.f32 %v278_v45, %v534_v55  ;;  %v791_v9 = vmax.f32 %v279_v46, %v535_v57  ;;  %v792_v14 = vmax.f32 %v280_v51, %v536_v58 }
 0x14e   : > { %v2643_v60 = vsel %vm2246_vm2, %v2642_v42, %v2641_v56  ;;  %v3218_v63 = vld [vmem:[%s3882_s29 + $0x1b2] sm:$0x1]  ;;  %v3219_v3 = vld [vmem:[%s3882_s29 + $0x1b4] sm:$0x1]  ;;  %v3220_v4 = vld [vmem:[%s3882_s29 + $0x1b6] sm:$0x1]  ;;  %v793_v15 = vmax.f32 %v281_v52, %v537_v59  ;;  %v794_v16 = vmax.f32 %v282_v53, %v538_v61 }
 0x14f   : > { %v2645_v0 = vsel %vm2249_vm3, %v2644_v43, %v2643_v60  ;;  %v3221_v5 = vld [vmem:[%s3882_s29 + $0x1b8] sm:$0x1]  ;;  %v3222_v10 = vld [vmem:[%s3882_s29 + $0x1ba] sm:$0x1]  ;;  %v3223_v11 = vld [vmem:[%s3882_s29 + $0x1bc] sm:$0x1] }
 0x150   : > { %v2647_v6 = vsel %vm2252_vm4, %v2646_v44, %v2645_v0  ;;  %v3224_v12 = vld [vmem:[%s3882_s29 + $0x1be] sm:$0x1]  ;;  %v3473_v17 = vld [vmem:[%s3882_s29 + $0x1b1] sm:$0x1]  ;;  %v3474_v18 = vld [vmem:[%s3882_s29 + $0x1b3] sm:$0x1] }
 0x151   : > { %v2649_v13 = vsel %vm2255_vm5, %v2648_v49, %v2647_v6  ;;  %v3475_v19 = vld [vmem:[%s3882_s29 + $0x1b5] sm:$0x1]  ;;  %v3476_v21 = vld [vmem:[%s3882_s29 + $0x1b7] sm:$0x1]  ;;  %v3477_v22 = vld [vmem:[%s3882_s29 + $0x1b9] sm:$0x1]  ;;  %v1556_v25 = vmax.f32 %v3217_v62, %v3473_v17  ;;  %v1557_v26 = vmax.f32 %v3218_v63, %v3474_v18 }
 0x152   : > { %v2651_v20 = vsel %vm2258_vm6, %v2650_v50, %v2649_v13  ;;  %v3478_v23 = vld [vmem:[%s3882_s29 + $0x1bb] sm:$0x1]  ;;  %v1558_v27 = vmax.f32 %v3219_v3, %v3475_v19  ;;  %v3479_v28 = vld [vmem:[%s3882_s29 + $0x1bd] sm:$0x1]  ;;  %v3480_v29 = vld [vmem:[%s3882_s29 + $0x1bf] sm:$0x1]  ;;  %v1559_v30 = vmax.f32 %v3220_v4, %v3476_v21  ;;  %v1560_v31 = vmax.f32 %v3221_v5, %v3477_v22 }
 0x153   : > { %3772 = vmatprep.mubr.msk.f32.mxu1 %vm2694_vm7, %v2651_v20  ;;  %v1561_v32 = vmax.f32 %v3222_v10, %v3478_v23  ;;  %v1562_v33 = vmax.f32 %v3223_v11, %v3479_v28  ;;  %v1563_v34 = vmax.f32 %v3224_v12, %v3480_v29  ;;  %v1812_v36 = vmax.f32 %v787_v1, %v1556_v25  ;;  %v5183_v45 = vld [vmem:[%s3882_s29 + $0x390] sm:$0x1]  ;;  %v5186_v46 = vld [vmem:[%s3882_s29 + $0x392] sm:$0x1]  ;;  %v659_v47 = vld [vmem:[%s3882_s29 + $0x391] sm:$0x1] }
 0x154   : > { %v1813_v37 = vmax.f32 %v788_v2, %v1557_v26  ;;  %v1814_v38 = vmax.f32 %v789_v7, %v1558_v27  ;;  %v1815_v39 = vmax.f32 %v790_v8, %v1559_v30  ;;  %v1816_v41 = vmax.f32 %v791_v9, %v1560_v31  ;;  %v5189_v48 = vpop.f32.mrb[1].mxu0  ;;  %v405_v53 = vld [vmem:[%s3882_s29 + $0x394] sm:$0x1]  ;;  %v406_v54 = vld [vmem:[%s3882_s29 + $0x396] sm:$0x1] }
 0x155   : > { %v1817_v42 = vmax.f32 %v792_v14, %v1561_v32  ;;  %v1818_v43 = vmax.f32 %v793_v15, %v1562_v33  ;;  %v1819_v44 = vmax.f32 %v794_v16, %v1563_v34  ;;  %v407_v55 = vld [vmem:[%s3882_s29 + $0x398] sm:$0x1]  ;;  %v660_v56 = vld [vmem:[%s3882_s29 + $0x393] sm:$0x1]  ;;  %v408_v60 = vld [vmem:[%s3882_s29 + $0x39a] sm:$0x1]  ;;  %v915_v10 = vmax.f32 %v5183_v45, %v659_v47 }
 0x156   : > { %v2428_v35 = vrot.slane %v1813_v37, 7  ;;  %v2430_v49 = vrot.slane %v1814_v38, 6  ;;  %v2432_v50 = vrot.slane %v1815_v39, 5  ;;  %v2434_v51 = vrot.slane %v1816_v41, 4  ;;  %v409_v61 = vld [vmem:[%s3882_s29 + $0x39c] sm:$0x1] }
 0x157   : > { %v2436_v52 = vrot.slane %v1817_v42, 3  ;;  %v2438_v58 = vrot.slane %v1818_v43, 2  ;;  %v2440_v59 = vrot.slane %v1819_v44, 1  ;;  %v410_v62 = vld [vmem:[%s3882_s29 + $0x39e] sm:$0x1]  ;;  %v916_v11 = vmax.f32 %v5186_v46, %v660_v56 }
 0x158   : > { %v2429_v57 = vsel %vm2240_vm0, %v2428_v35, %v1812_v36  ;;  %v661_v63 = vld [vmem:[%s3882_s29 + $0x395] sm:$0x1]  ;;  %v662_v0 = vld [vmem:[%s3882_s29 + $0x397] sm:$0x1]  ;;  %v663_v2 = vld [vmem:[%s3882_s29 + $0x399] sm:$0x1] }
 0x159   : > { %v2431_v1 = vsel %vm2243_vm1, %v2430_v49, %v2429_v57  ;;  %v664_v3 = vld [vmem:[%s3882_s29 + $0x39b] sm:$0x1]  ;;  %v665_v4 = vld [vmem:[%s3882_s29 + $0x39d] sm:$0x1]  ;;  %v666_v6 = vld [vmem:[%s3882_s29 + $0x39f] sm:$0x1]  ;;  %v917_v16 = vmax.f32 %v405_v53, %v661_v63  ;;  %v918_v17 = vmax.f32 %v406_v54, %v662_v0  ;;  %v919_v18 = vmax.f32 %v407_v55, %v663_v2 }
 0x15a   : > { %v2433_v5 = vsel %vm2246_vm2, %v2432_v50, %v2431_v1  ;;  %v3345_v7 = vld [vmem:[%s3882_s29 + $0x3b0] sm:$0x1]  ;;  %v3346_v8 = vld [vmem:[%s3882_s29 + $0x3b2] sm:$0x1]  ;;  %v3347_v12 = vld [vmem:[%s3882_s29 + $0x3b4] sm:$0x1]  ;;  %v920_v23 = vmax.f32 %v408_v60, %v664_v3  ;;  %v921_v25 = vmax.f32 %v409_v61, %v665_v4  ;;  %v922_v26 = vmax.f32 %v410_v62, %v666_v6 }
 0x15b   : > { %v2435_v9 = vsel %vm2249_vm3, %v2434_v51, %v2433_v5  ;;  %v3348_v13 = vld [vmem:[%s3882_s29 + $0x3b6] sm:$0x1]  ;;  %v3349_v14 = vld [vmem:[%s3882_s29 + $0x3b8] sm:$0x1]  ;;  %v3350_v19 = vld [vmem:[%s3882_s29 + $0x3ba] sm:$0x1] }
 0x15c   : > { %v2437_v15 = vsel %vm2252_vm4, %v2436_v52, %v2435_v9  ;;  %v3351_v20 = vld [vmem:[%s3882_s29 + $0x3bc] sm:$0x1]  ;;  %v3352_v21 = vld [vmem:[%s3882_s29 + $0x3be] sm:$0x1]  ;;  %v3601_v27 = vld [vmem:[%s3882_s29 + $0x3b1] sm:$0x1] }
 0x15d   : > { %v2439_v22 = vsel %vm2255_vm5, %v2438_v58, %v2437_v15  ;;  %v3602_v28 = vld [vmem:[%s3882_s29 + $0x3b3] sm:$0x1]  ;;  %v3603_v29 = vld [vmem:[%s3882_s29 + $0x3b5] sm:$0x1]  ;;  %v3604_v31 = vld [vmem:[%s3882_s29 + $0x3b7] sm:$0x1]  ;;  %v1684_v34 = vmax.f32 %v3345_v7, %v3601_v27 }
 0x15e   : > { %v2441_v30 = vsel %vm2258_vm6, %v2440_v59, %v2439_v22  ;;  %v3605_v32 = vld [vmem:[%s3882_s29 + $0x3b9] sm:$0x1]  ;;  %v3606_v33 = vld [vmem:[%s3882_s29 + $0x3bb] sm:$0x1]  ;;  %v1685_v36 = vmax.f32 %v3346_v8, %v3602_v28  ;;  %v1686_v37 = vmax.f32 %v3347_v12, %v3603_v29  ;;  %v3607_v38 = vld [vmem:[%s3882_s29 + $0x3bd] sm:$0x1]  ;;  %v1687_v41 = vmax.f32 %v3348_v13, %v3604_v31 }
 0x15f   : > { %3749 = vmatmul.mubr.msk.f32.gmra.mrb[12].mxu0 %vm2694_vm7, %v2441_v30  ;;  %v3608_v39 = vld [vmem:[%s3882_s29 + $0x3bf] sm:$0x1]  ;;  %v1688_v42 = vmax.f32 %v3349_v14, %v3605_v32  ;;  %v1689_v43 = vmax.f32 %v3350_v19, %v3606_v33  ;;  %v1690_v44 = vmax.f32 %v3351_v20, %v3607_v38  ;;  %v1940_v45 = vmax.f32 %v915_v10, %v1684_v34  ;;  %v5231_v55 = vld [vmem:[%s3882_s29 + $0x1c0] sm:$0x1]  ;;  %v5234_v56 = vld [vmem:[%s3882_s29 + $0x1c2] sm:$0x1] }
 0x160   : > { %v1691_v35 = vmax.f32 %v3352_v21, %v3608_v39  ;;  %v1941_v46 = vmax.f32 %v916_v11, %v1685_v36  ;;  %v1942_v47 = vmax.f32 %v917_v16, %v1686_v37  ;;  %v1943_v49 = vmax.f32 %v918_v17, %v1687_v41  ;;  %v539_v57 = vld [vmem:[%s3882_s29 + $0x1c1] sm:$0x1]  ;;  %v5237_v58 = vpop.f32.mrb[1].mxu1  ;;  %v285_v63 = vld [vmem:[%s3882_s29 + $0x1c4] sm:$0x1] }
 0x161   : > { %v1944_v50 = vmax.f32 %v919_v18, %v1688_v42  ;;  %v1945_v51 = vmax.f32 %v920_v23, %v1689_v43  ;;  %v1946_v52 = vmax.f32 %v921_v25, %v1690_v44  ;;  %v286_v0 = vld [vmem:[%s3882_s29 + $0x1c6] sm:$0x1]  ;;  %v287_v1 = vld [vmem:[%s3882_s29 + $0x1c8] sm:$0x1]  ;;  %v540_v2 = vld [vmem:[%s3882_s29 + $0x1c3] sm:$0x1]  ;;  %v795_v20 = vmax.f32 %v5231_v55, %v539_v57 }
 0x162   : > { %v1947_v53 = vmax.f32 %v922_v26, %v1691_v35  ;;  %v2652_v54 = vrot.slane %v1941_v46, 7  ;;  %v2654_v59 = vrot.slane %v1942_v47, 6  ;;  %v2656_v60 = vrot.slane %v1943_v49, 5  ;;  %v288_v6 = vld [vmem:[%s3882_s29 + $0x1ca] sm:$0x1] }
 0x163   : > { %v2658_v61 = vrot.slane %v1944_v50, 4  ;;  %v2660_v62 = vrot.slane %v1945_v51, 3  ;;  %v2662_v4 = vrot.slane %v1946_v52, 2  ;;  %v289_v7 = vld [vmem:[%s3882_s29 + $0x1cc] sm:$0x1]  ;;  %v796_v21 = vmax.f32 %v5234_v56, %v540_v2 }
 0x164   : > { %v2653_v3 = vsel %vm2240_vm0, %v2652_v54, %v1940_v45  ;;  %v2664_v5 = vrot.slane %v1947_v53, 1  ;;  %v290_v8 = vld [vmem:[%s3882_s29 + $0x1ce] sm:$0x1]  ;;  %v541_v9 = vld [vmem:[%s3882_s29 + $0x1c5] sm:$0x1] }
 0x165   : > { %v542_v10 = vld [vmem:[%s3882_s29 + $0x1c7] sm:$0x1]  ;;  %v2655_v11 = vsel %vm2243_vm1, %v2654_v59, %v2653_v3  ;;  %v543_v12 = vld [vmem:[%s3882_s29 + $0x1c9] sm:$0x1]  ;;  %v544_v13 = vld [vmem:[%s3882_s29 + $0x1cb] sm:$0x1]  ;;  %v797_v27 = vmax.f32 %v285_v63, %v541_v9 }
 0x166   : > { %v545_v14 = vld [vmem:[%s3882_s29 + $0x1cd] sm:$0x1]  ;;  %v2657_v15 = vsel %vm2246_vm2, %v2656_v60, %v2655_v11  ;;  %v546_v16 = vld [vmem:[%s3882_s29 + $0x1cf] sm:$0x1]  ;;  %v3225_v17 = vld [vmem:[%s3882_s29 + $0x1e0] sm:$0x1]  ;;  %v798_v28 = vmax.f32 %v286_v0, %v542_v10  ;;  %v799_v29 = vmax.f32 %v287_v1, %v543_v12  ;;  %v800_v34 = vmax.f32 %v288_v6, %v544_v13 }
 0x167   : > { %v3226_v18 = vld [vmem:[%s3882_s29 + $0x1e2] sm:$0x1]  ;;  %v2659_v19 = vsel %vm2249_vm3, %v2658_v61, %v2657_v15  ;;  %v3227_v22 = vld [vmem:[%s3882_s29 + $0x1e4] sm:$0x1]  ;;  %v3228_v23 = vld [vmem:[%s3882_s29 + $0x1e6] sm:$0x1]  ;;  %v801_v36 = vmax.f32 %v289_v7, %v545_v14  ;;  %v802_v37 = vmax.f32 %v290_v8, %v546_v16 }
 0x168   : > { %v3229_v25 = vld [vmem:[%s3882_s29 + $0x1e8] sm:$0x1]  ;;  %v2661_v26 = vsel %vm2252_vm4, %v2660_v62, %v2659_v19  ;;  %v3230_v30 = vld [vmem:[%s3882_s29 + $0x1ea] sm:$0x1]  ;;  %v3231_v31 = vld [vmem:[%s3882_s29 + $0x1ec] sm:$0x1] }
 0x169   : > { %v3232_v32 = vld [vmem:[%s3882_s29 + $0x1ee] sm:$0x1]  ;;  %v2663_v33 = vsel %vm2255_vm5, %v2662_v4, %v2661_v26  ;;  %v3481_v38 = vld [vmem:[%s3882_s29 + $0x1e1] sm:$0x1]  ;;  %v3482_v39 = vld [vmem:[%s3882_s29 + $0x1e3] sm:$0x1] }
 0x16a   : > { %v3483_v41 = vld [vmem:[%s3882_s29 + $0x1e5] sm:$0x1]  ;;  %v2665_v42 = vsel %vm2258_vm6, %v2664_v5, %v2663_v33  ;;  %v3484_v43 = vld [vmem:[%s3882_s29 + $0x1e7] sm:$0x1]  ;;  %v3485_v44 = vld [vmem:[%s3882_s29 + $0x1e9] sm:$0x1]  ;;  %v1564_v45 = vmax.f32 %v3225_v17, %v3481_v38  ;;  %v1565_v46 = vmax.f32 %v3226_v18, %v3482_v39 }
 0x16b   : > { %v3486_v35 = vld [vmem:[%s3882_s29 + $0x1eb] sm:$0x1]  ;;  %v1566_v47 = vmax.f32 %v3227_v22, %v3483_v41  ;;  %3773 = vmatmul.mubr.msk.f32.gmra.mrb[12].mxu1 %vm2694_vm7, %v2665_v42  ;;  %v3487_v49 = vld [vmem:[%s3882_s29 + $0x1ed] sm:$0x1]  ;;  %v3488_v50 = vld [vmem:[%s3882_s29 + $0x1ef] sm:$0x1]  ;;  %v1567_v51 = vmax.f32 %v3228_v23, %v3484_v43  ;;  %v1568_v52 = vmax.f32 %v3229_v25, %v3485_v44 }
 0x16c   : > { %v1569_v53 = vmax.f32 %v3230_v30, %v3486_v35  ;;  %v1570_v54 = vmax.f32 %v3231_v31, %v3487_v49  ;;  %v1571_v55 = vmax.f32 %v3232_v32, %v3488_v50  ;;  %v1820_v56 = vmax.f32 %v795_v20, %v1564_v45  ;;  %v5279_v2 = vld [vmem:[%s3882_s29 + $0x3c0] sm:$0x1]  ;;  %v5282_v3 = vld [vmem:[%s3882_s29 + $0x3c2] sm:$0x1]  ;;  %v667_v4 = vld [vmem:[%s3882_s29 + $0x3c1] sm:$0x1] }
 0x16d   : > { %v1821_v57 = vmax.f32 %v796_v21, %v1565_v46  ;;  %v1822_v59 = vmax.f32 %v797_v27, %v1566_v47  ;;  %v1823_v60 = vmax.f32 %v798_v28, %v1567_v51  ;;  %v1824_v61 = vmax.f32 %v799_v29, %v1568_v52  ;;  %v5285_v5 = vpop.f32.mrb[2].mxu0  ;;  %v413_v10 = vld [vmem:[%s3882_s29 + $0x3c4] sm:$0x1]  ;;  %v414_v11 = vld [vmem:[%s3882_s29 + $0x3c6] sm:$0x1] }
 0x16e   : > { %v1825_v62 = vmax.f32 %v800_v34, %v1569_v53  ;;  %v1826_v63 = vmax.f32 %v801_v36, %v1570_v54  ;;  %v1827_v0 = vmax.f32 %v802_v37, %v1571_v55  ;;  %v415_v12 = vld [vmem:[%s3882_s29 + $0x3c8] sm:$0x1]  ;;  %v668_v13 = vld [vmem:[%s3882_s29 + $0x3c3] sm:$0x1]  ;;  %v416_v17 = vld [vmem:[%s3882_s29 + $0x3ca] sm:$0x1]  ;;  %v923_v32 = vmax.f32 %v5279_v2, %v667_v4 }
 0x16f   : > { %v2442_v1 = vrot.slane %v1821_v57, 7  ;;  %v2444_v6 = vrot.slane %v1822_v59, 6  ;;  %v2446_v7 = vrot.slane %v1823_v60, 5  ;;  %v2448_v8 = vrot.slane %v1824_v61, 4  ;;  %v417_v18 = vld [vmem:[%s3882_s29 + $0x3cc] sm:$0x1] }
 0x170   : > { %v2450_v9 = vrot.slane %v1825_v62, 3  ;;  %v2452_v15 = vrot.slane %v1826_v63, 2  ;;  %v2454_v16 = vrot.slane %v1827_v0, 1  ;;  %v418_v19 = vld [vmem:[%s3882_s29 + $0x3ce] sm:$0x1]  ;;  %v924_v33 = vmax.f32 %v5282_v3, %v668_v13 }
 0x171   : > { %v2443_v14 = vsel %vm2240_vm0, %v2442_v1, %v1820_v56  ;;  %v669_v20 = vld [vmem:[%s3882_s29 + $0x3c5] sm:$0x1]  ;;  %v670_v21 = vld [vmem:[%s3882_s29 + $0x3c7] sm:$0x1]  ;;  %v671_v23 = vld [vmem:[%s3882_s29 + $0x3c9] sm:$0x1] }
 0x172   : > { %v2445_v22 = vsel %vm2243_vm1, %v2444_v6, %v2443_v14  ;;  %v672_v25 = vld [vmem:[%s3882_s29 + $0x3cb] sm:$0x1]  ;;  %v673_v26 = vld [vmem:[%s3882_s29 + $0x3cd] sm:$0x1]  ;;  %v674_v28 = vld [vmem:[%s3882_s29 + $0x3cf] sm:$0x1]  ;;  %v925_v39 = vmax.f32 %v413_v10, %v669_v20  ;;  %v926_v41 = vmax.f32 %v414_v11, %v670_v21  ;;  %v927_v42 = vmax.f32 %v415_v12, %v671_v23 }
 0x173   : > { %v2447_v27 = vsel %vm2246_vm2, %v2446_v7, %v2445_v22  ;;  %v3353_v29 = vld [vmem:[%s3882_s29 + $0x3e0] sm:$0x1]  ;;  %v3354_v30 = vld [vmem:[%s3882_s29 + $0x3e2] sm:$0x1]  ;;  %v3355_v34 = vld [vmem:[%s3882_s29 + $0x3e4] sm:$0x1]  ;;  %v928_v46 = vmax.f32 %v416_v17, %v672_v25  ;;  %v929_v47 = vmax.f32 %v417_v18, %v673_v26  ;;  %v930_v49 = vmax.f32 %v418_v19, %v674_v28 }
 0x174   : > { %v2449_v31 = vsel %vm2249_vm3, %v2448_v8, %v2447_v27  ;;  %v3356_v36 = vld [vmem:[%s3882_s29 + $0x3e6] sm:$0x1]  ;;  %v3357_v37 = vld [vmem:[%s3882_s29 + $0x3e8] sm:$0x1]  ;;  %v3358_v43 = vld [vmem:[%s3882_s29 + $0x3ea] sm:$0x1] }
 0x175   : > { %v2451_v38 = vsel %vm2252_vm4, %v2450_v9, %v2449_v31  ;;  %v3359_v44 = vld [vmem:[%s3882_s29 + $0x3ec] sm:$0x1]  ;;  %v3360_v35 = vld [vmem:[%s3882_s29 + $0x3ee] sm:$0x1]  ;;  %v3609_v50 = vld [vmem:[%s3882_s29 + $0x3e1] sm:$0x1] }
 0x176   : > { %v2453_v45 = vsel %vm2255_vm5, %v2452_v15, %v2451_v38  ;;  %v3610_v51 = vld [vmem:[%s3882_s29 + $0x3e3] sm:$0x1]  ;;  %v3611_v52 = vld [vmem:[%s3882_s29 + $0x3e5] sm:$0x1]  ;;  %v3612_v54 = vld [vmem:[%s3882_s29 + $0x3e7] sm:$0x1]  ;;  %v1692_v57 = vmax.f32 %v3353_v29, %v3609_v50 }
 0x177   : > { %v2455_v53 = vsel %vm2258_vm6, %v2454_v16, %v2453_v45  ;;  %v3613_v55 = vld [vmem:[%s3882_s29 + $0x3e9] sm:$0x1]  ;;  %v3614_v56 = vld [vmem:[%s3882_s29 + $0x3eb] sm:$0x1]  ;;  %v1693_v59 = vmax.f32 %v3354_v30, %v3610_v51  ;;  %v1694_v60 = vmax.f32 %v3355_v34, %v3611_v52  ;;  %v3615_v61 = vld [vmem:[%s3882_s29 + $0x3ed] sm:$0x1]  ;;  %v1695_v63 = vmax.f32 %v3356_v36, %v3612_v54 }
 0x178   : > { %3751 = vmatprep.mubr.msk.f32.mxu0 %vm2694_vm7, %v2455_v53  ;;  %v3616_v62 = vld [vmem:[%s3882_s29 + $0x3ef] sm:$0x1]  ;;  %v1696_v0 = vmax.f32 %v3357_v37, %v3613_v55  ;;  %v1697_v1 = vmax.f32 %v3358_v43, %v3614_v56  ;;  %v1698_v2 = vmax.f32 %v3359_v44, %v3615_v61  ;;  %v1948_v4 = vmax.f32 %v923_v32, %v1692_v57  ;;  %v5327_v14 = vld [vmem:[%s3882_s29 + $0x1d0] sm:$0x1]  ;;  %v5330_v15 = vld [vmem:[%s3882_s29 + $0x1d2] sm:$0x1] }
 0x179   : > { %v1699_v3 = vmax.f32 %v3360_v35, %v3616_v62  ;;  %v1949_v6 = vmax.f32 %v924_v33, %v1693_v59  ;;  %v1950_v7 = vmax.f32 %v925_v39, %v1694_v60  ;;  %v1951_v8 = vmax.f32 %v926_v41, %v1695_v63  ;;  %v547_v16 = vld [vmem:[%s3882_s29 + $0x1d1] sm:$0x1]  ;;  %v5333_v17 = vpop.f32.mrb[2].mxu1  ;;  %v293_v22 = vld [vmem:[%s3882_s29 + $0x1d4] sm:$0x1] }
 0x17a   : > { %v1952_v9 = vmax.f32 %v927_v42, %v1696_v0  ;;  %v1953_v10 = vmax.f32 %v928_v46, %v1697_v1  ;;  %v1954_v11 = vmax.f32 %v929_v47, %v1698_v2  ;;  %v294_v23 = vld [vmem:[%s3882_s29 + $0x1d6] sm:$0x1]  ;;  %v295_v25 = vld [vmem:[%s3882_s29 + $0x1d8] sm:$0x1]  ;;  %v548_v26 = vld [vmem:[%s3882_s29 + $0x1d3] sm:$0x1]  ;;  %v803_v45 = vmax.f32 %v5327_v14, %v547_v16 }
 0x17b   : > { %v1955_v12 = vmax.f32 %v930_v49, %v1699_v3  ;;  %v2666_v13 = vrot.slane %v1949_v6, 7  ;;  %v2668_v18 = vrot.slane %v1950_v7, 6  ;;  %v2670_v19 = vrot.slane %v1951_v8, 5  ;;  %v296_v30 = vld [vmem:[%s3882_s29 + $0x1da] sm:$0x1] }
 0x17c   : > { %v2672_v20 = vrot.slane %v1952_v9, 4  ;;  %v2674_v21 = vrot.slane %v1953_v10, 3  ;;  %v2676_v28 = vrot.slane %v1954_v11, 2  ;;  %v297_v31 = vld [vmem:[%s3882_s29 + $0x1dc] sm:$0x1]  ;;  %v804_v46 = vmax.f32 %v5330_v15, %v548_v26 }
 0x17d   : > { %v2667_v27 = vsel %vm2240_vm0, %v2666_v13, %v1948_v4  ;;  %v2678_v29 = vrot.slane %v1955_v12, 1  ;;  %v298_v32 = vld [vmem:[%s3882_s29 + $0x1de] sm:$0x1]  ;;  %v549_v33 = vld [vmem:[%s3882_s29 + $0x1d5] sm:$0x1] }
 0x17e   : > { %v550_v34 = vld [vmem:[%s3882_s29 + $0x1d7] sm:$0x1]  ;;  %v2669_v36 = vsel %vm2243_vm1, %v2668_v18, %v2667_v27  ;;  %v551_v37 = vld [vmem:[%s3882_s29 + $0x1d9] sm:$0x1]  ;;  %v552_v38 = vld [vmem:[%s3882_s29 + $0x1db] sm:$0x1]  ;;  %v805_v52 = vmax.f32 %v293_v22, %v549_v33 }
 0x17f   : > { %v553_v39 = vld [vmem:[%s3882_s29 + $0x1dd] sm:$0x1]  ;;  %v2671_v41 = vsel %vm2246_vm2, %v2670_v19, %v2669_v36  ;;  %v554_v42 = vld [vmem:[%s3882_s29 + $0x1df] sm:$0x1]  ;;  %v3233_v43 = vld [vmem:[%s3882_s29 + $0x1f0] sm:$0x1]  ;;  %v806_v53 = vmax.f32 %v294_v23, %v550_v34  ;;  %v807_v54 = vmax.f32 %v295_v25, %v551_v37  ;;  %v808_v60 = vmax.f32 %v296_v30, %v552_v38 }
 0x180   : > { %v3234_v44 = vld [vmem:[%s3882_s29 + $0x1f2] sm:$0x1]  ;;  %v2673_v35 = vsel %vm2249_vm3, %v2672_v20, %v2671_v41  ;;  %v3235_v47 = vld [vmem:[%s3882_s29 + $0x1f4] sm:$0x1]  ;;  %v3236_v49 = vld [vmem:[%s3882_s29 + $0x1f6] sm:$0x1]  ;;  %v809_v61 = vmax.f32 %v297_v31, %v553_v39  ;;  %v810_v62 = vmax.f32 %v298_v32, %v554_v42 }
 0x181   : > { %v3237_v50 = vld [vmem:[%s3882_s29 + $0x1f8] sm:$0x1]  ;;  %v2675_v51 = vsel %vm2252_vm4, %v2674_v21, %v2673_v35  ;;  %v3238_v55 = vld [vmem:[%s3882_s29 + $0x1fa] sm:$0x1]  ;;  %v3239_v56 = vld [vmem:[%s3882_s29 + $0x1fc] sm:$0x1] }
 0x182   : > { %v3240_v57 = vld [vmem:[%s3882_s29 + $0x1fe] sm:$0x1]  ;;  %v2677_v59 = vsel %vm2255_vm5, %v2676_v28, %v2675_v51  ;;  %v3489_v63 = vld [vmem:[%s3882_s29 + $0x1f1] sm:$0x1]  ;;  %v3490_v0 = vld [vmem:[%s3882_s29 + $0x1f3] sm:$0x1] }
 0x183   : > { %v3491_v1 = vld [vmem:[%s3882_s29 + $0x1f5] sm:$0x1]  ;;  %v2679_v2 = vsel %vm2258_vm6, %v2678_v29, %v2677_v59  ;;  %v3492_v3 = vld [vmem:[%s3882_s29 + $0x1f7] sm:$0x1]  ;;  %v3493_v4 = vld [vmem:[%s3882_s29 + $0x1f9] sm:$0x1]  ;;  %v1572_v7 = vmax.f32 %v3233_v43, %v3489_v63  ;;  %v1573_v8 = vmax.f32 %v3234_v44, %v3490_v0 }
 0x184   : > { %v3494_v6 = vld [vmem:[%s3882_s29 + $0x1fb] sm:$0x1]  ;;  %v1574_v9 = vmax.f32 %v3235_v47, %v3491_v1  ;;  %3775 = vmatprep.mubr.msk.f32.mxu1 %vm2694_vm7, %v2679_v2  ;;  %v3495_v10 = vld [vmem:[%s3882_s29 + $0x1fd] sm:$0x1]  ;;  %v3496_v11 = vld [vmem:[%s3882_s29 + $0x1ff] sm:$0x1]  ;;  %v1575_v12 = vmax.f32 %v3236_v49, %v3492_v3  ;;  %v1576_v13 = vmax.f32 %v3237_v50, %v3493_v4 }
 0x185   : > { %v1577_v14 = vmax.f32 %v3238_v55, %v3494_v6  ;;  %v1578_v15 = vmax.f32 %v3239_v56, %v3495_v10  ;;  %v1579_v16 = vmax.f32 %v3240_v57, %v3496_v11  ;;  %v1828_v18 = vmax.f32 %v803_v45, %v1572_v7  ;;  %v5375_v28 = vld [vmem:[%s3882_s29 + $0x3d0] sm:$0x1]  ;;  %v5378_v29 = vld [vmem:[%s3882_s29 + $0x3d2] sm:$0x1]  ;;  %v5381_v30 = vld [vmem:[%s3882_s29 + $0x3d1] sm:$0x1] }
 0x186   : > { %v1829_v19 = vmax.f32 %v804_v46, %v1573_v8  ;;  %v1830_v20 = vmax.f32 %v805_v52, %v1574_v9  ;;  %v1831_v21 = vmax.f32 %v806_v53, %v1575_v12  ;;  %v1832_v22 = vmax.f32 %v807_v54, %v1576_v13  ;;  %v5383_v31 = vpop.f32.mrb[3].mxu0  ;;  %v5386_v37 = vld [vmem:[%s3882_s29 + $0x3d4] sm:$0x1]  ;;  %v5389_v38 = vld [vmem:[%s3882_s29 + $0x3d6] sm:$0x1] }
 0x187   : > { %v1833_v23 = vmax.f32 %v808_v60, %v1577_v14  ;;  %v1834_v25 = vmax.f32 %v809_v61, %v1578_v15  ;;  %v1835_v26 = vmax.f32 %v810_v62, %v1579_v16  ;;  %v5392_v39 = vld [vmem:[%s3882_s29 + $0x3d8] sm:$0x1]  ;;  %v676_v41 = vld [vmem:[%s3882_s29 + $0x3d3] sm:$0x1]  ;;  %v424_v35 = vld [vmem:[%s3882_s29 + $0x3da] sm:$0x1]  ;;  %v931_v60 = vmax.f32 %v5375_v28, %v5381_v30 }
 0x188   : > { %v2456_v27 = vrot.slane %v1829_v19, 7  ;;  %v2458_v32 = vrot.slane %v1830_v20, 6  ;;  %v2460_v33 = vrot.slane %v1831_v21, 5  ;;  %v2462_v34 = vrot.slane %v1832_v22, 4  ;;  %v425_v45 = vld [vmem:[%s3882_s29 + $0x3dc] sm:$0x1] }
 0x189   : > { %v2464_v36 = vrot.slane %v1833_v23, 3  ;;  %v2466_v43 = vrot.slane %v1834_v25, 2  ;;  %v2468_v44 = vrot.slane %v1835_v26, 1  ;;  %v426_v46 = vld [vmem:[%s3882_s29 + $0x3de] sm:$0x1]  ;;  %v932_v61 = vmax.f32 %v5378_v29, %v676_v41 }
 0x18a   : > { %v2457_v42 = vsel %vm2240_vm0, %v2456_v27, %v1828_v18  ;;  %v677_v47 = vld [vmem:[%s3882_s29 + $0x3d5] sm:$0x1]  ;;  %v678_v49 = vld [vmem:[%s3882_s29 + $0x3d7] sm:$0x1]  ;;  %v679_v51 = vld [vmem:[%s3882_s29 + $0x3d9] sm:$0x1] }
 0x18b   : > { %v2459_v50 = vsel %vm2243_vm1, %v2458_v32, %v2457_v42  ;;  %v680_v52 = vld [vmem:[%s3882_s29 + $0x3db] sm:$0x1]  ;;  %v681_v53 = vld [vmem:[%s3882_s29 + $0x3dd] sm:$0x1]  ;;  %v682_v55 = vld [vmem:[%s3882_s29 + $0x3df] sm:$0x1]  ;;  %v933_v2 = vmax.f32 %v5386_v37, %v677_v47  ;;  %v934_v3 = vmax.f32 %v5389_v38, %v678_v49  ;;  %v935_v4 = vmax.f32 %v5392_v39, %v679_v51 }
 0x18c   : > { %v2461_v54 = vsel %vm2246_vm2, %v2460_v33, %v2459_v50  ;;  %v3361_v56 = vld [vmem:[%s3882_s29 + $0x3f0] sm:$0x1]  ;;  %v3362_v57 = vld [vmem:[%s3882_s29 + $0x3f2] sm:$0x1]  ;;  %v3363_v62 = vld [vmem:[%s3882_s29 + $0x3f4] sm:$0x1]  ;;  %v936_v10 = vmax.f32 %v424_v35, %v680_v52  ;;  %v937_v11 = vmax.f32 %v425_v45, %v681_v53  ;;  %v938_v12 = vmax.f32 %v426_v46, %v682_v55 }
 0x18d   : > { %v2463_v59 = vsel %vm2249_vm3, %v2462_v34, %v2461_v54  ;;  %v3364_v63 = vld [vmem:[%s3882_s29 + $0x3f6] sm:$0x1]  ;;  %v3365_v0 = vld [vmem:[%s3882_s29 + $0x3f8] sm:$0x1]  ;;  %v3366_v6 = vld [vmem:[%s3882_s29 + $0x3fa] sm:$0x1] }
 0x18e   : > { %v2465_v1 = vsel %vm2252_vm4, %v2464_v36, %v2463_v59  ;;  %v3367_v7 = vld [vmem:[%s3882_s29 + $0x3fc] sm:$0x1]  ;;  %v3368_v8 = vld [vmem:[%s3882_s29 + $0x3fe] sm:$0x1]  ;;  %v3617_v13 = vld [vmem:[%s3882_s29 + $0x3f1] sm:$0x1] }
 0x18f   : > { %v2467_v9 = vsel %vm2255_vm5, %v2466_v43, %v2465_v1  ;;  %v3618_v14 = vld [vmem:[%s3882_s29 + $0x3f3] sm:$0x1]  ;;  %v3619_v15 = vld [vmem:[%s3882_s29 + $0x3f5] sm:$0x1]  ;;  %v3620_v18 = vld [vmem:[%s3882_s29 + $0x3f7] sm:$0x1]  ;;  %v1700_v21 = vmax.f32 %v3361_v56, %v3617_v13 }
 0x190   : > { %v2469_v16 = vsel %vm2258_vm6, %v2468_v44, %v2467_v9  ;;  %v3621_v19 = vld [vmem:[%s3882_s29 + $0x3f9] sm:$0x1]  ;;  %v3622_v20 = vld [vmem:[%s3882_s29 + $0x3fb] sm:$0x1]  ;;  %v1701_v22 = vmax.f32 %v3362_v57, %v3618_v14  ;;  %v1702_v23 = vmax.f32 %v3363_v62, %v3619_v15  ;;  %v3623_v25 = vld [vmem:[%s3882_s29 + $0x3fd] sm:$0x1]  ;;  %v1703_v27 = vmax.f32 %v3364_v63, %v3620_v18 }
 0x191   : > { %3752 = vmatmul.mubr.msk.f32.gmra.mrb[14].mxu0 %vm2694_vm7, %v2469_v16  ;;  %v3624_v26 = vld [vmem:[%s3882_s29 + $0x3ff] sm:$0x1]  ;;  %v1704_v28 = vmax.f32 %v3365_v0, %v3621_v19  ;;  %v1705_v29 = vmax.f32 %v3366_v6, %v3622_v20  ;;  %v5437_v30 = vld [vmem:[%s5561_s2] ss:$0 sm:$0xff]  ;;  %v1706_v32 = vmax.f32 %v3367_v7, %v3623_v25  ;;  %v1956_v34 = vmax.f32 %v931_v60, %v1700_v21  ;;  %v2915_v37 = vpop.f32.mrb[3].mxu1  ;;  %v3738_v38 = vpop.f32.mrb[4].mxu0 }
 0x192   : > { %v1707_v33 = vmax.f32 %v3368_v8, %v3624_v26  ;;  %v1957_v36 = vmax.f32 %v932_v61, %v1701_v22  ;;  %v1958_v39 = vmax.f32 %v933_v2, %v1702_v23  ;;  %v1959_v41 = vmax.f32 %v934_v3, %v1703_v27  ;;  %v3762_v44 = vpop.f32.mrb[4].mxu1  ;;  %v2845_v35 = vpop.f32.mrb[5].mxu0 }
 0x193   : > { %v1960_v42 = vmax.f32 %v935_v4, %v1704_v28  ;;  %v1961_v43 = vmax.f32 %v936_v10, %v1705_v29  ;;  %v1962_v45 = vmax.f32 %v937_v11, %v1706_v32  ;;  %v2831_v49 = vadd.f32 %v5047_v24, %v5437_v30  ;;  %v2925_v50 = vpop.f32.mrb[5].mxu1 }
 0x194   : > { %v1963_v46 = vmax.f32 %v938_v12, %v1707_v33  ;;  %v2680_v47 = vrot.slane %v1957_v36, 7  ;;  %v2682_v51 = vrot.slane %v1958_v39, 6  ;;  %v2684_v52 = vrot.slane %v1959_v41, 5 }
 0x195   : > { %v2686_v53 = vrot.slane %v1960_v42, 4  ;;  %v2688_v54 = vrot.slane %v1961_v43, 3  ;;  %v2690_v56 = vrot.slane %v1962_v45, 2  ;;  %v2985_v59 = vmax.f32 %v2831_v49, 0.0 }
 0x196   : > { %v2681_v55 = vsel %vm2240_vm0, %v2680_v47, %v1956_v34  ;;  %v2692_v57 = vrot.slane %v1963_v46, 1  ;;  %v2911_v24 = vadd.f32 %v5141_v40, %v5437_v30  ;;  %v2826_v61 = vadd.f32 %v5437_v30, %v5189_v48 }
 0x197   : > { %v2683_v60 = vsel %vm2243_vm1, %v2682_v51, %v2681_v55  ;;  %v2906_v62 = vadd.f32 %v5437_v30, %v5237_v58  ;;  %3018 = vst.msk [vmem:[%s5445_s21 + $0x8] sm:$0xff] %vm3016_vm8, %v2985_v59  ;;  %v2841_v0 = vadd.f32 %v5285_v5, %v5437_v30  ;;  %v2921_v1 = vadd.f32 %v5333_v17, %v5437_v30 }
 0x198   : > { %v2685_v63 = vsel %vm2246_vm2, %v2684_v52, %v2683_v60  ;;  %v2836_v40 = vadd.f32 %v5437_v30, %v5383_v31  ;;  %v3001_v2 = vmax.f32 %v2911_v24, 0.0  ;;  %v2984_v58 = vmax.f32 %v2826_v61, 0.0 }
 0x199   : > { %v2687_v48 = vsel %vm2249_vm3, %v2686_v53, %v2685_v63  ;;  %v3000_v3 = vmax.f32 %v2906_v62, 0.0  ;;  %v2987_v6 = vmax.f32 %v2841_v0, 0.0  ;;  %v3003_v7 = vmax.f32 %v2921_v1, 0.0 }
 0x19a   : > { %v2689_v4 = vsel %vm2252_vm4, %v2688_v54, %v2687_v48  ;;  %v2986_v8 = vmax.f32 %v2836_v40, 0.0  ;;  %3034 = vst.msk [vmem:[%s5445_s21 + $0x88] sm:$0xff] %vm3016_vm8, %v3001_v2  ;;  %3017 = vst.msk [vmem:[%s5445_s21] sm:$0xff] %vm3016_vm8, %v2984_v58  ;;  %v2916_v17 = vadd.f32 %v5437_v30, %v2915_v37  ;;  %v2851_v31 = vadd.f32 %v3738_v38, %v5437_v30 }
 0x19b   : > { %v2691_v5 = vsel %vm2255_vm5, %v2690_v56, %v2689_v4  ;;  %3033 = vst.msk [vmem:[%s5445_s21 + $0x80] sm:$0xff] %vm3016_vm8, %v3000_v3  ;;  %v2931_v9 = vadd.f32 %v3762_v44, %v5437_v30  ;;  %3020 = vst.msk [vmem:[%s5445_s21 + $0x18] sm:$0xff] %vm3016_vm8, %v2987_v6  ;;  %v2846_v11 = vadd.f32 %v5437_v30, %v2845_v35 }
 0x19c   : > { %v2693_v10 = vsel %vm2258_vm6, %v2692_v57, %v2691_v5  ;;  %3036 = vst.msk [vmem:[%s5445_s21 + $0x98] sm:$0xff] %vm3016_vm8, %v3003_v7  ;;  %3019 = vst.msk [vmem:[%s5445_s21 + $0x10] sm:$0xff] %vm3016_vm8, %v2986_v8  ;;  %v2926_v12 = vadd.f32 %v5437_v30, %v2925_v50  ;;  %v3002_v13 = vmax.f32 %v2916_v17, 0.0  ;;  %v2989_v14 = vmax.f32 %v2851_v31, 0.0 }
 0x19d   : > { %3776 = vmatmul.mubr.msk.f32.gmra.mrb[14].mxu1 %vm2694_vm7, %v2693_v10  ;;  %v3005_v15 = vmax.f32 %v2931_v9, 0.0  ;;  %v2988_v16 = vmax.f32 %v2846_v11, 0.0 }
 0x19e   : > { %v3004_v18 = vmax.f32 %v2926_v12, 0.0  ;;  %3035 = vst.msk [vmem:[%s5445_s21 + $0x90] sm:$0xff] %vm3016_vm8, %v3002_v13  ;;  %3022 = vst.msk [vmem:[%s5445_s21 + $0x28] sm:$0xff] %vm3016_vm8, %v2989_v14 }
 0x19f   : > { %3038 = vst.msk [vmem:[%s5445_s21 + $0xa8] sm:$0xff] %vm3016_vm8, %v3005_v15  ;;  %3021 = vst.msk [vmem:[%s5445_s21 + $0x20] sm:$0xff] %vm3016_vm8, %v2988_v16 }
 0x1a0   : > { %3037 = vst.msk [vmem:[%s5445_s21 + $0xa0] sm:$0xff] %vm3016_vm8, %v3004_v18 }
 0x1a1   : > { %v3741_v19 = vpop.f32.mrb[6].mxu0 }
 0x1a2   : > { %v2861_v20 = vadd.f32 %v3741_v19, %v5437_v30  ;;  %v2855_v21 = vpop.f32.mrb[7].mxu0 }
 0x1a3   : > { %v2856_v22 = vadd.f32 %v5437_v30, %v2855_v21 }
 0x1a4   : > { %v2991_v23 = vmax.f32 %v2861_v20, 0.0 }
 0x1a5   : > { %v2990_v25 = vmax.f32 %v2856_v22, 0.0 }
 0x1a6   : > { %3024 = vst.msk [vmem:[%s5445_s21 + $0x38] sm:$0xff] %vm3016_vm8, %v2991_v23 }
 0x1a7   : > { %3023 = vst.msk [vmem:[%s5445_s21 + $0x30] sm:$0xff] %vm3016_vm8, %v2990_v25 }
 0x1ad   : > { %v3765_v26 = vpop.f32.mrb[6].mxu1 }
 0x1ae   : > { %v2941_v27 = vadd.f32 %v3765_v26, %v5437_v30  ;;  %v2935_v28 = vpop.f32.mrb[7].mxu1 }
 0x1af   : > { %v2936_v29 = vadd.f32 %v5437_v30, %v2935_v28 }
 0x1b0   : > { %v3007_v32 = vmax.f32 %v2941_v27, 0.0 }
 0x1b1   : > { %v3006_v33 = vmax.f32 %v2936_v29, 0.0 }
 0x1b2   : > { %3040 = vst.msk [vmem:[%s5445_s21 + $0xb8] sm:$0xff] %vm3016_vm8, %v3007_v32 }
 0x1b3   : > { %3039 = vst.msk [vmem:[%s5445_s21 + $0xb0] sm:$0xff] %vm3016_vm8, %v3006_v33 }
 0x1d1   : > { %v3744_v34 = vpop.f32.mrb[8].mxu0 }
 0x1d2   : > { %v2871_v36 = vadd.f32 %v3744_v34, %v5437_v30  ;;  %v2865_v37 = vpop.f32.mrb[9].mxu0 }
 0x1d3   : > { %v2866_v38 = vadd.f32 %v5437_v30, %v2865_v37 }
 0x1d4   : > { %v2993_v39 = vmax.f32 %v2871_v36, 0.0 }
 0x1d5   : > { %v2992_v41 = vmax.f32 %v2866_v38, 0.0 }
 0x1d6   : > { %3026 = vst.msk [vmem:[%s5445_s21 + $0x48] sm:$0xff] %vm3016_vm8, %v2993_v39 }
 0x1d7   : > { %3025 = vst.msk [vmem:[%s5445_s21 + $0x40] sm:$0xff] %vm3016_vm8, %v2992_v41 }
 0x1dd   : > { %v3768_v42 = vpop.f32.mrb[8].mxu1 }
 0x1de   : > { %v2951_v43 = vadd.f32 %v3768_v42, %v5437_v30  ;;  %v2945_v44 = vpop.f32.mrb[9].mxu1 }
 0x1df   : > { %v2946_v35 = vadd.f32 %v5437_v30, %v2945_v44 }
 0x1e0   : > { %v3009_v45 = vmax.f32 %v2951_v43, 0.0 }
 0x1e1   : > { %v3008_v46 = vmax.f32 %v2946_v35, 0.0 }
 0x1e2   : > { %3042 = vst.msk [vmem:[%s5445_s21 + $0xc8] sm:$0xff] %vm3016_vm8, %v3009_v45 }
 0x1e3   : > { %3041 = vst.msk [vmem:[%s5445_s21 + $0xc0] sm:$0xff] %vm3016_vm8, %v3008_v46 }
 0x201   : > { %v3747_v47 = vpop.f32.mrb[10].mxu0 }
 0x202   : > { %v2881_v49 = vadd.f32 %v3747_v47, %v5437_v30  ;;  %v2875_v50 = vpop.f32.mrb[11].mxu0 }
 0x203   : > { %v2876_v51 = vadd.f32 %v5437_v30, %v2875_v50 }
 0x204   : > { %v2995_v52 = vmax.f32 %v2881_v49, 0.0 }
 0x205   : > { %v2994_v53 = vmax.f32 %v2876_v51, 0.0 }
 0x206   : > { %3028 = vst.msk [vmem:[%s5445_s21 + $0x58] sm:$0xff] %vm3016_vm8, %v2995_v52 }
 0x207   : > { %3027 = vst.msk [vmem:[%s5445_s21 + $0x50] sm:$0xff] %vm3016_vm8, %v2994_v53 }
 0x20d   : > { %v3771_v54 = vpop.f32.mrb[10].mxu1 }
 0x20e   : > { %v2961_v55 = vadd.f32 %v3771_v54, %v5437_v30  ;;  %v2955_v56 = vpop.f32.mrb[11].mxu1 }
 0x20f   : > { %v2956_v57 = vadd.f32 %v5437_v30, %v2955_v56 }
 0x210   : > { %v3011_v59 = vmax.f32 %v2961_v55, 0.0 }
 0x211   : > { %v3010_v60 = vmax.f32 %v2956_v57, 0.0 }
 0x212   : > { %3044 = vst.msk [vmem:[%s5445_s21 + $0xd8] sm:$0xff] %vm3016_vm8, %v3011_v59 }
 0x213   : > { %3043 = vst.msk [vmem:[%s5445_s21 + $0xd0] sm:$0xff] %vm3016_vm8, %v3010_v60 }
 0x232   : > { %v3750_v24 = vpop.f32.mrb[12].mxu0 }
 0x233   : > { %v2891_v61 = vadd.f32 %v3750_v24, %v5437_v30  ;;  %v2885_v62 = vpop.f32.mrb[13].mxu0 }
 0x234   : > { %v2886_v63 = vadd.f32 %v5437_v30, %v2885_v62 }
 0x235   : > { %v2997_v0 = vmax.f32 %v2891_v61, 0.0 }
 0x236   : > { %v2996_v1 = vmax.f32 %v2886_v63, 0.0 }
 0x237   : > { %3030 = vst.msk [vmem:[%s5445_s21 + $0x68] sm:$0xff] %vm3016_vm8, %v2997_v0 }
 0x238   : > { %3029 = vst.msk [vmem:[%s5445_s21 + $0x60] sm:$0xff] %vm3016_vm8, %v2996_v1 }
 0x23e   : > { %v3774_v40 = vpop.f32.mrb[12].mxu1 }
 0x23f   : > { %v2971_v48 = vadd.f32 %v3774_v40, %v5437_v30  ;;  %v2965_v2 = vpop.f32.mrb[13].mxu1 }
 0x240   : > { %v2966_v58 = vadd.f32 %v5437_v30, %v2965_v2 }
 0x241   : > { %v3013_v3 = vmax.f32 %v2971_v48, 0.0 }
 0x242   : > { %v3012_v4 = vmax.f32 %v2966_v58, 0.0 }
 0x243   : > { %3046 = vst.msk [vmem:[%s5445_s21 + $0xe8] sm:$0xff] %vm3016_vm8, %v3013_v3 }
 0x244   : > { %3045 = vst.msk [vmem:[%s5445_s21 + $0xe0] sm:$0xff] %vm3016_vm8, %v3012_v4 }
 0x264   : > { %v3753_v6 = vpop.f32.mrb[14].mxu0 }
 0x265   : > { %v2901_v7 = vadd.f32 %v3753_v6, %v5437_v30  ;;  %v2895_v8 = vpop.f32.mrb[15].mxu0 }
 0x266   : > { %v2896_v5 = vadd.f32 %v5437_v30, %v2895_v8 }
 0x267   : > { %v2999_v17 = vmax.f32 %v2901_v7, 0.0 }
 0x268   : > { %v2998_v31 = vmax.f32 %v2896_v5, 0.0 }
 0x269   : > { %3032 = vst.msk [vmem:[%s5445_s21 + $0x78] sm:$0xff] %vm3016_vm8, %v2999_v17 }
 0x26a   : > { %3031 = vst.msk [vmem:[%s5445_s21 + $0x70] sm:$0xff] %vm3016_vm8, %v2998_v31 }
 0x270   : > { %v3777_v9 = vpop.f32.mrb[14].mxu1 }
 0x271   : > { %v2981_v10 = vadd.f32 %v3777_v9, %v5437_v30  ;;  %v2975_v11 = vpop.f32.mrb[15].mxu1 }
 0x272   : > { %v2976_v12 = vadd.f32 %v5437_v30, %v2975_v11 }
 0x273   : > { %v3015_v13 = vmax.f32 %v2981_v10, 0.0 }
 0x274   : > { %v3014_v14 = vmax.f32 %v2976_v12, 0.0 }
 0x275   : > { %3048 = vst.msk [vmem:[%s5445_s21 + $0xf8] sm:$0xff] %vm3016_vm8, %v3015_v13 }
 0x276   : > { %3047 = vst.msk [vmem:[%s5445_s21 + $0xf0] sm:$0xff] %vm3016_vm8, %v3014_v14 }
 0x277 PF: > { %s13_s12 = sadd.s32 1, %s3828_s12  }
 0x278   : > { %p10_p4 = scmp.ge.s32.totalorder %s13_s12, 4  }
 0x27a   :  { %12 = sbr.rel (!%p10_p4) target bundleno = 1 (0x1), region = 63 }

</bundles_post_ra>
